<compile_context>
chip_gen: v7x
topology: tpu7x:2x2x1
jax: 0.10.0
libtpu: 0.0.40
codegen_flags: <defaults>
</compile_context>

<pallas_src>
import functools

import jax
import jax.numpy as jnp
from jax.experimental import pallas as pl
from jax.experimental.pallas import tpu as pltpu

BN_EPS = 1e-5
_PAD = 128   # flat-axis zero pad (lane-tile aligned); requires 3*W + 3 <= _PAD


# ----------------------------------------------------------------------------
# Pallas kernel
# ----------------------------------------------------------------------------
def _rescbam_kernel(x_ref, w1_ref, s1_ref, t1_ref, w2_ref, s2_ref, t2_ref,
                    wca1_ref, wca2_ref, masks_ref, wsa_ref,
                    out_ref, patch_scr, pad_scr, *, width, n_img):
    C, HW = x_ref.shape[1], x_ref.shape[2]
    W = width
    R = n_img * C                                 # rows of the padded-image scratch

    def wmask(dw):                                # (1, HW) 0/1 column-validity mask
        return masks_ref[dw + 3:dw + 4, :]

    # ---- zero the flat-axis pad columns (every step: megacore/"parallel"-safe) -
    pad_zeros = jnp.zeros((R, _PAD), jnp.float32)
    pad_scr[:, 0:_PAD] = pad_zeros
    pad_scr[:, _PAD + HW:_PAD + HW + _PAD] = pad_zeros

    def set_center_image(n, v):                   # write image n's (C, HW) center
        pad_scr[n * C:(n + 1) * C, _PAD:_PAD + HW] = v

    def conv3x3_bn(w_ref, s_ref, t_ref):
        # im2col from the padded scratch: 9 lane-shifted (R, HW) views, written
        # as bf16 into the (9C, n_img*HW) patch scratch (per-image column blocks).
        for kh in range(3):
            for kw in range(3):
                dh, dw = kh - 1, kw - 1
                sl = pad_scr[:, _PAD + dh * W + dw:_PAD + dh * W + dw + HW]  # f32
                if dw != 0:
                    sl = sl * wmask(dw)           # kill row-wrapped columns
                slb = sl.astype(jnp.bfloat16)     # MXU operand only; f32 elsewhere
                t = kh * 3 + kw
                for n in range(n_img):
                    patch_scr[t * C:(t + 1) * C, n * HW:(n + 1) * HW] = \
                        slb[n * C:(n + 1) * C, :]
        # One MXU matmul per conv: (C, 9C)bf16 @ (9C, n_img*HW)bf16 -> f32.
        h = jnp.dot(w_ref[...], patch_scr[...],
                    preferred_element_type=jnp.float32)
        return h * s_ref[...] + t_ref[...]        # folded conv-bias + BN (f32)

    # ---- conv1 -> bn1 -> relu ------------------------------------------------
    for n in range(n_img):
        set_center_image(n, x_ref[n])
    h = jnp.maximum(conv3x3_bn(w1_ref, s1_ref, t1_ref), 0.0)

    # ---- conv2 -> bn2 ----------------------------------------------------------
    for n in range(n_img):
        set_center_image(n, h[:, n * HW:(n + 1) * HW])
    h = conv3x3_bn(w2_ref, s2_ref, t2_ref)        # (C, n_img*HW), f32

    # ---- channel attention: one MLP pass over all stacked [avg | max] columns --
    pooled_cols = []
    for n in range(n_img):
        blk = h[:, n * HW:(n + 1) * HW]
        pooled_cols.append(jnp.mean(blk, axis=1, keepdims=True))
        pooled_cols.append(jnp.max(blk, axis=1, keepdims=True))
    pooled = jnp.concatenate(pooled_cols, axis=1)                       # (C, 2*n_img)
    z = jnp.maximum(jnp.dot(wca1_ref[...], pooled,
                            preferred_element_type=jnp.float32), 0.0)   # (Cr, 2*n_img)
    a = jnp.dot(wca2_ref[...], z, preferred_element_type=jnp.float32)   # (C, 2*n_img)

    hc_list, avg_list, max_list = [], [], []
    for n in range(n_img):
        ca = jax.nn.sigmoid(a[:, 2 * n:2 * n + 1] + a[:, 2 * n + 1:2 * n + 2])  # (C,1)
        hc = h[:, n * HW:(n + 1) * HW] * ca                              # (C, HW)
        hc_list.append(hc)
        avg_list.append(jnp.mean(hc, axis=0, keepdims=True))
        max_list.append(jnp.max(hc, axis=0, keepdims=True))

    # ---- spatial attention: 7x7 conv vectorized over stacked avg/max maps ------
    #   pad_scr rows [0:n_img)        = per-image channel-avg maps
    #   pad_scr rows [n_img:2*n_img)  = per-image channel-max maps
    pad_scr[0:2 * n_img, _PAD:_PAD + HW] = jnp.concatenate(avg_list + max_list,
                                                           axis=0)
    # Hoisted row indicators (broadcasts are not CSE'd by JAX -> build once).
    rows = jax.lax.broadcasted_iota(jnp.int32, (2 * n_img, 1), 0)
    avg_ind = (rows < n_img).astype(jnp.float32)                         # (2*n_img,1)
    max_ind = 1.0 - avg_ind

    sa_acc = jnp.zeros((2 * n_img, HW), jnp.float32)
    for kw in range(7):
        dw = kw - 3
        part = jnp.zeros((2 * n_img, HW), jnp.float32)
        for kh in range(7):
            dh = kh - 3
            off = _PAD + dh * W + dw
            sl = pad_scr[0:2 * n_img, off:off + HW]          # ONE shift per tap
            wcol = (wsa_ref[kh * 7 + kw] * avg_ind
                    + wsa_ref[49 + kh * 7 + kw] * max_ind)   # (2*n_img, 1)
            part = part + wcol * sl
        if dw != 0:
            part = part * wmask(dw)
        sa_acc = sa_acc + part
    sig_sa = jax.nn.sigmoid(sa_acc[0:n_img, :] + sa_acc[n_img:2 * n_img, :])  # (n_img,HW)

    # ---- residual + relu --------------------------------------------------------
    for n in range(n_img):
        out_ref[n] = jnp.maximum(hc_list[n] * sig_sa[n:n + 1, :] + x_ref[n],
                                 0.0).astype(out_ref.dtype)


# ----------------------------------------------------------------------------
# Per-step VMEM footprint estimate + images-per-step selection
# ----------------------------------------------------------------------------
def _vmem_bytes_estimate(n_img, C, HW, Cr):
    blk_io = n_img * C * HW * 4                     # one (n_img, C, HW) f32 block
    io = 2 * 2 * blk_io                             # x + out, double-buffered
    w_conv = 2 * 2 * (C * 9 * C * 2)                # w1m, w2m (bf16), double-buffered
    small = 2 * (4 * C * 4 + Cr * C * 4 + C * Cr * 4 + 7 * HW * 4)
    scratch = 9 * C * n_img * HW * 2                # bf16 im2col patches
    scratch += n_img * C * (HW + 2 * _PAD) * 4      # f32 padded-image scratch
    return io + w_conv + small + scratch


def _pick_imgs_per_step(B, C, HW, Cr, vmem_budget=24 * 1024 * 1024, max_imgs=8):
    """Largest images-per-step that (a) divides B, (b) keeps grid >= 2 when B >= 2
    (both v7x TensorCores stay busy), and (c) fits a conservative VMEM budget
    (v7x: 32 MiB default scoped / 64 MiB physical)."""
    best = 1
    for d in range(1, B + 1):
        if B % d != 0 or d > max_imgs:
            continue
        if B >= 2 and B // d < 2:
            continue
        if _vmem_bytes_estimate(d, C, HW, Cr) > vmem_budget:
            continue
        best = d
    return best


# ----------------------------------------------------------------------------
# Wrapper: parameter packing + pallas_call (NCHW in / NCHW out, no transposes)
# ----------------------------------------------------------------------------
@jax.jit
def rescbam_forward(x_nchw, params):
    B, C, H, W = x_nchw.shape
    HW = H * W
    Cr = params["wfc1"].shape[0]
    assert 3 * W + 3 <= _PAD, "increase _PAD for wider feature maps"
    assert C % 8 == 0 and HW % 128 == 0, "C must be 8-aligned and H*W 128-aligned"

    n_img = _pick_imgs_per_step(B, C, HW, Cr)

    x_flat = x_nchw.reshape(B, C, HW).astype(jnp.float32)      # free reshape

    # Conv weights packed as (C_out, 9*C_in), tap-major (kh, kw), channel-minor.
    # bf16 MXU operands (f32 accumulation in-kernel).
    w1m = jnp.transpose(params["w1"], (0, 2, 3, 1)).reshape(C, 9 * C).astype(jnp.bfloat16)
    w2m = jnp.transpose(params["w2"], (0, 2, 3, 1)).reshape(C, 9 * C).astype(jnp.bfloat16)

    def bn_fold(b, g, beta, m, v):
        s = g / jnp.sqrt(v + BN_EPS)
        return s.reshape(C, 1), ((b - m) * s + beta).reshape(C, 1)

    s1, t1 = bn_fold(params["b1"], params["g1"], params["bt1"],
                     params["m1"], params["v1"])
    s2, t2 = bn_fold(params["b2"], params["g2"], params["bt2"],
                     params["m2"], params["v2"])

    # Column-validity masks for horizontal offsets dw in [-3, 3] (row 3 is dw=0).
    col = jnp.arange(HW, dtype=jnp.int32) % W
    masks = jnp.stack([((col + d >= 0) & (col + d < W)) for d in range(-3, 4)],
                      axis=0).astype(jnp.float32)              # (7, HW)

    wsa_flat = params["wsa"].reshape(-1).astype(jnp.float32)   # (98,) -> SMEM
    wfc1 = params["wfc1"].astype(jnp.float32)                  # (Cr, C)
    wfc2 = params["wfc2"].astype(jnp.float32)                  # (C, Cr)

    # NOTE: at larger C the constant-operand specs below could additionally use
    # pipeline_mode=pl.Buffered(1) to drop their second pipeline buffer;
    # negligible at this size, so left at the default.
    const2 = lambda b: (0, 0)
    grid_spec = pltpu.PrefetchScalarGridSpec(
        num_scalar_prefetch=0,
        grid=(B // n_img,),
        in_specs=[
            pl.BlockSpec((n_img, C, HW), lambda b: (b, 0, 0)),   # x (flat NCHW)
            pl.BlockSpec((C, 9 * C), const2),                    # w1 (bf16)
            pl.BlockSpec((C, 1), const2),                        # bn1 scale
            pl.BlockSpec((C, 1), const2),                        # bn1 shift (+bias)
            pl.BlockSpec((C, 9 * C), const2),                    # w2 (bf16)
            pl.BlockSpec((C, 1), const2),                        # bn2 scale
            pl.BlockSpec((C, 1), const2),                        # bn2 shift (+bias)
            pl.BlockSpec((Cr, C), const2),                       # ca fc1
            pl.BlockSpec((C, Cr), const2),                       # ca fc2
            pl.BlockSpec((7, HW), const2),                       # column masks
            pl.BlockSpec(memory_space=pltpu.MemorySpace.SMEM),   # 7x7 sa weights
        ],
        out_specs=pl.BlockSpec((n_img, C, HW), lambda b: (b, 0, 0)),
        scratch_shapes=[
            pltpu.VMEM((9 * C, n_img * HW), jnp.bfloat16),             # im2col patches
            pltpu.VMEM((n_img * C, HW + 2 * _PAD), jnp.float32),       # padded images
        ],
    )

    out_flat = pl.pallas_call(
        functools.partial(_rescbam_kernel, width=W, n_img=n_img),
        out_shape=jax.ShapeDtypeStruct((B, C, HW), jnp.float32),
        grid_spec=grid_spec,
        compiler_params=pltpu.CompilerParams(dimension_semantics=("parallel",)),
    )(x_flat, w1m, s1, t1, w2m, s2, t2, wfc1, wfc2, masks, wsa_flat)

    return out_flat.reshape(B, C, H, W)


# ----------------------------------------------------------------------------
# Deterministic parameter init (shapes follow the PyTorch module, inplanes=planes=C)
# ----------------------------------------------------------------------------
def init_params(key, C, ratio=16):
    Cr = max(C // ratio, 1)
    ks = jax.random.split(key, 16)
    n = lambda k, shape, s: (s * jax.random.normal(k, shape)).astype(jnp.float32)
    return {
        "w1": n(ks[0], (C, C, 3, 3), 0.05), "b1": n(ks[1], (C,), 0.05),
        "g1": 1.0 + n(ks[2], (C,), 0.1), "bt1": n(ks[3], (C,), 0.1),
        "m1": n(ks[4], (C,), 0.1),
        "v1": jax.random.uniform(ks[5], (C,), jnp.float32, 0.5, 1.5),
        "w2": n(ks[6], (C, C, 3, 3), 0.05), "b2": n(ks[7], (C,), 0.05),
        "g2": 1.0 + n(ks[8], (C,), 0.1), "bt2": n(ks[9], (C,), 0.1),
        "m2": n(ks[10], (C,), 0.1),
        "v2": jax.random.uniform(ks[11], (C,), jnp.float32, 0.5, 1.5),
        "wfc1": n(ks[12], (Cr, C), 0.1),      # Conv2d(C, Cr, 1, bias=False)
        "wfc2": n(ks[13], (C, Cr), 0.1),      # Conv2d(Cr, C, 1, bias=False)
        "wsa": n(ks[14], (2, 7, 7), 0.1),     # Conv2d(2, 1, 7, bias=False)
    }


# ----------------------------------------------------------------------------
# Pure-JAX f32 reference (NCHW, mirrors the PyTorch forward) for verification
# ----------------------------------------------------------------------------
def ref_forward(x, p):
    dn = ("NCHW", "OIHW", "NCHW")
    hi = jax.lax.Precision.HIGHEST

    def conv3(x, w, b):
        y = jax.lax.conv_general_dilated(x, w, (1, 1), [(1, 1), (1, 1)],
                                         dimension_numbers=dn, precision=hi)
        return y + b[None, :, None, None]

    def bn(x, g, bt, m, v):
        return ((x - m[None, :, None, None]) / jnp.sqrt(v[None, :, None, None] + BN_EPS)
                * g[None, :, None, None] + bt[None, :, None, None])

    out = jnp.maximum(bn(conv3(x, p["w1"], p["b1"]),
                         p["g1"], p["bt1"], p["m1"], p["v1"]), 0.0)
    out = bn(conv3(out, p["w2"], p["b2"]), p["g2"], p["bt2"], p["m2"], p["v2"])

    avg = jnp.mean(out, axis=(2, 3))
    mx = jnp.max(out, axis=(2, 3))

    def fc(v):
        z = jnp.maximum(jnp.dot(v, p["wfc1"].T, precision=hi), 0.0)
        return jnp.dot(z, p["wfc2"].T, precision=hi)

    ca = jax.nn.sigmoid(fc(avg) + fc(mx))[:, :, None, None]
    out = out * ca

    avg_s = jnp.mean(out, axis=1, keepdims=True)
    max_s = jnp.max(out, axis=1, keepdims=True)
    cat = jnp.concatenate([avg_s, max_s], axis=1)
    sa = jax.lax.conv_general_dilated(cat, p["wsa"][None], (1, 1), [(3, 3), (3, 3)],
                                      dimension_numbers=dn, precision=hi)
    out = out * jax.nn.sigmoid(sa)
    return jnp.maximum(out + x, 0.0)


# ----------------------------------------------------------------------------
if __name__ == "__main__":
    B, C, H, W = 4, 32, 16, 16           # ratio=16 -> hidden channels = 2
    key = jax.random.PRNGKey(0)
    kx, kp = jax.random.split(key)
    x = jax.random.normal(kx, (B, C, H, W), jnp.float32)
    params = init_params(kp, C)

    out = rescbam_forward(x, params)
    out = jax.block_until_ready(out)

    ref = ref_forward(x, params)
    # Tolerance deliberately relaxed vs the all-f32 version (was 2e-3): the MXU
    # operands (im2col patches + conv weights) are bf16 per the perf review;
    # accumulation stays f32, so error is bounded by bf16 operand rounding over
    # the K=288 dot products (~1e-2 worst case on this data).
    if not jnp.allclose(out, ref, atol=2e-2, rtol=2e-2):
        max_err = float(jnp.max(jnp.abs(out - ref)))
        raise AssertionError(f"Pallas output mismatch, max abs err = {max_err}")

    print("KERNEL_OK")
</pallas_src>

<mosaic_0001>
module attributes {stable_mosaic.version = 11 : i64} {
  func.func @_rescbam_kernel(%arg0: i32, %arg1: memref<2x32x256xf32, #tpu.memory_space<vmem>>, %arg2: memref<32x288xbf16, #tpu.memory_space<vmem>>, %arg3: memref<32x1xf32, #tpu.memory_space<vmem>>, %arg4: memref<32x1xf32, #tpu.memory_space<vmem>>, %arg5: memref<32x288xbf16, #tpu.memory_space<vmem>>, %arg6: memref<32x1xf32, #tpu.memory_space<vmem>>, %arg7: memref<32x1xf32, #tpu.memory_space<vmem>>, %arg8: memref<2x32xf32, #tpu.memory_space<vmem>>, %arg9: memref<32x2xf32, #tpu.memory_space<vmem>>, %arg10: memref<7x256xf32, #tpu.memory_space<vmem>>, %arg11: memref<98xf32, #tpu.memory_space<smem>>, %arg12: memref<2x32x256xf32, #tpu.memory_space<vmem>>, %arg13: memref<288x512xbf16, #tpu.memory_space<vmem>>, %arg14: memref<64x512xf32, #tpu.memory_space<vmem>>) attributes {dimension_semantics = [#tpu.dimension_semantics<parallel>], iteration_bounds = array<i64: 2>, scalar_prefetch = 0 : i64, scratch_operands = 2 : i64, tpu.core_type = #tpu.core_type<tc>, window_params = [{transform_indices = @transform_0, window_bounds = array<i64: 2, 32, 256>}, {pipeline_mode = #tpu.pipeline_mode<synchronous>, transform_indices = @transform_1, window_bounds = array<i64: 32, 288>}, {pipeline_mode = #tpu.pipeline_mode<synchronous>, transform_indices = @transform_2, window_bounds = array<i64: 32, 1>}, {pipeline_mode = #tpu.pipeline_mode<synchronous>, transform_indices = @transform_3, window_bounds = array<i64: 32, 1>}, {pipeline_mode = #tpu.pipeline_mode<synchronous>, transform_indices = @transform_4, window_bounds = array<i64: 32, 288>}, {pipeline_mode = #tpu.pipeline_mode<synchronous>, transform_indices = @transform_5, window_bounds = array<i64: 32, 1>}, {pipeline_mode = #tpu.pipeline_mode<synchronous>, transform_indices = @transform_6, window_bounds = array<i64: 32, 1>}, {pipeline_mode = #tpu.pipeline_mode<synchronous>, transform_indices = @transform_7, window_bounds = array<i64: 2, 32>}, {pipeline_mode = #tpu.pipeline_mode<synchronous>, transform_indices = @transform_8, window_bounds = array<i64: 32, 2>}, {pipeline_mode = #tpu.pipeline_mode<synchronous>, transform_indices = @transform_9, window_bounds = array<i64: 7, 256>}, {transform_indices = @transform_10, window_bounds = array<i64: 98>}, {transform_indices = @transform_11, window_bounds = array<i64: 2, 32, 256>}]} {
    %cst = arith.constant 0.000000e+00 : f32
    %0 = vector.broadcast %cst : f32 to vector<64x128xf32>
    %c0 = arith.constant 0 : index
    %c0_0 = arith.constant 0 : index
    %1 = vector.load %arg14[%c0, %c0_0] : memref<64x512xf32, #tpu.memory_space<vmem>>, vector<64x128xf32>
    tpu.vector_store %arg14[%c0, %c0_0], %0 {strides = array<i32>} : memref<64x512xf32, #tpu.memory_space<vmem>>, vector<64x128xf32>,
    %c0_1 = arith.constant 0 : index
    %c384 = arith.constant 384 : index
    %2 = vector.load %arg14[%c0_1, %c384] : memref<64x512xf32, #tpu.memory_space<vmem>>, vector<64x128xf32>
    tpu.vector_store %arg14[%c0_1, %c384], %0 {strides = array<i32>} : memref<64x512xf32, #tpu.memory_space<vmem>>, vector<64x128xf32>,
    %c0_2 = arith.constant 0 : index
    %c0_3 = arith.constant 0 : index
    %c0_4 = arith.constant 0 : index
    %3 = vector.load %arg1[%c0_2, %c0_3, %c0_4] : memref<2x32x256xf32, #tpu.memory_space<vmem>>, vector<1x32x256xf32>
    %4 = vector.shape_cast %3 : vector<1x32x256xf32> to vector<32x256xf32>
    %c0_5 = arith.constant 0 : index
    %c128 = arith.constant 128 : index
    %5 = vector.load %arg14[%c0_5, %c128] : memref<64x512xf32, #tpu.memory_space<vmem>>, vector<32x256xf32>
    tpu.vector_store %arg14[%c0_5, %c128], %4 {strides = array<i32>} : memref<64x512xf32, #tpu.memory_space<vmem>>, vector<32x256xf32>,
    %c1 = arith.constant 1 : index
    %c0_6 = arith.constant 0 : index
    %c0_7 = arith.constant 0 : index
    %6 = vector.load %arg1[%c1, %c0_6, %c0_7] : memref<2x32x256xf32, #tpu.memory_space<vmem>>, vector<1x32x256xf32>
    %7 = vector.shape_cast %6 : vector<1x32x256xf32> to vector<32x256xf32>
    %c32 = arith.constant 32 : index
    %c128_8 = arith.constant 128 : index
    %8 = vector.load %arg14[%c32, %c128_8] : memref<64x512xf32, #tpu.memory_space<vmem>>, vector<32x256xf32>
    tpu.vector_store %arg14[%c32, %c128_8], %7 {strides = array<i32>} : memref<64x512xf32, #tpu.memory_space<vmem>>, vector<32x256xf32>,
    %c0_9 = arith.constant 0 : index
    %c111 = arith.constant 111 : index
    %9 = vector.load %arg14[%c0_9, %c111] : memref<64x512xf32, #tpu.memory_space<vmem>>, vector<64x256xf32>
    %c2 = arith.constant 2 : index
    %c0_10 = arith.constant 0 : index
    %10 = vector.load %arg10[%c2, %c0_10] : memref<7x256xf32, #tpu.memory_space<vmem>>, vector<1x256xf32>
    %11 = vector.broadcast %10 : vector<1x256xf32> to vector<64x256xf32>
    %12 = arith.mulf %9, %11 : vector<64x256xf32>
    %13 = arith.truncf %12 : vector<64x256xf32> to vector<64x256xbf16>
    %14 = vector.extract_strided_slice %13 {offsets = [0, 0], sizes = [32, 256], strides = [1, 1]} : vector<64x256xbf16> to vector<32x256xbf16>
    %c0_11 = arith.constant 0 : index
    %c0_12 = arith.constant 0 : index
    %15 = vector.load %arg13[%c0_11, %c0_12] : memref<288x512xbf16, #tpu.memory_space<vmem>>, vector<32x256xbf16>
    tpu.vector_store %arg13[%c0_11, %c0_12], %14 {strides = array<i32>} : memref<288x512xbf16, #tpu.memory_space<vmem>>, vector<32x256xbf16>,
    %16 = vector.extract_strided_slice %13 {offsets = [32, 0], sizes = [32, 256], strides = [1, 1]} : vector<64x256xbf16> to vector<32x256xbf16>
    %c0_13 = arith.constant 0 : index
    %c256 = arith.constant 256 : index
    %17 = vector.load %arg13[%c0_13, %c256] : memref<288x512xbf16, #tpu.memory_space<vmem>>, vector<32x256xbf16>
    tpu.vector_store %arg13[%c0_13, %c256], %16 {strides = array<i32>} : memref<288x512xbf16, #tpu.memory_space<vmem>>, vector<32x256xbf16>,
    %c0_14 = arith.constant 0 : index
    %c112 = arith.constant 112 : index
    %18 = vector.load %arg14[%c0_14, %c112] : memref<64x512xf32, #tpu.memory_space<vmem>>, vector<64x256xf32>
    %19 = arith.truncf %18 : vector<64x256xf32> to vector<64x256xbf16>
    %20 = vector.extract_strided_slice %19 {offsets = [0, 0], sizes = [32, 256], strides = [1, 1]} : vector<64x256xbf16> to vector<32x256xbf16>
    %c32_15 = arith.constant 32 : index
    %c0_16 = arith.constant 0 : index
    %21 = vector.load %arg13[%c32_15, %c0_16] : memref<288x512xbf16, #tpu.memory_space<vmem>>, vector<32x256xbf16>
    tpu.vector_store %arg13[%c32_15, %c0_16], %20 {strides = array<i32>} : memref<288x512xbf16, #tpu.memory_space<vmem>>, vector<32x256xbf16>,
    %22 = vector.extract_strided_slice %19 {offsets = [32, 0], sizes = [32, 256], strides = [1, 1]} : vector<64x256xbf16> to vector<32x256xbf16>
    %c32_17 = arith.constant 32 : index
    %c256_18 = arith.constant 256 : index
    %23 = vector.load %arg13[%c32_17, %c256_18] : memref<288x512xbf16, #tpu.memory_space<vmem>>, vector<32x256xbf16>
    tpu.vector_store %arg13[%c32_17, %c256_18], %22 {strides = array<i32>} : memref<288x512xbf16, #tpu.memory_space<vmem>>, vector<32x256xbf16>,
    %c0_19 = arith.constant 0 : index
    %c113 = arith.constant 113 : index
    %24 = vector.load %arg14[%c0_19, %c113] : memref<64x512xf32, #tpu.memory_space<vmem>>, vector<64x256xf32>
    %c4 = arith.constant 4 : index
    %c0_20 = arith.constant 0 : index
    %25 = vector.load %arg10[%c4, %c0_20] : memref<7x256xf32, #tpu.memory_space<vmem>>, vector<1x256xf32>
    %26 = vector.broadcast %25 : vector<1x256xf32> to vector<64x256xf32>
    %27 = arith.mulf %24, %26 : vector<64x256xf32>
    %28 = arith.truncf %27 : vector<64x256xf32> to vector<64x256xbf16>
    %29 = vector.extract_strided_slice %28 {offsets = [0, 0], sizes = [32, 256], strides = [1, 1]} : vector<64x256xbf16> to vector<32x256xbf16>
    %c64 = arith.constant 64 : index
    %c0_21 = arith.constant 0 : index
    %30 = vector.load %arg13[%c64, %c0_21] : memref<288x512xbf16, #tpu.memory_space<vmem>>, vector<32x256xbf16>
    tpu.vector_store %arg13[%c64, %c0_21], %29 {strides = array<i32>} : memref<288x512xbf16, #tpu.memory_space<vmem>>, vector<32x256xbf16>,
    %31 = vector.extract_strided_slice %28 {offsets = [32, 0], sizes = [32, 256], strides = [1, 1]} : vector<64x256xbf16> to vector<32x256xbf16>
    %c64_22 = arith.constant 64 : index
    %c256_23 = arith.constant 256 : index
    %32 = vector.load %arg13[%c64_22, %c256_23] : memref<288x512xbf16, #tpu.memory_space<vmem>>, vector<32x256xbf16>
    tpu.vector_store %arg13[%c64_22, %c256_23], %31 {strides = array<i32>} : memref<288x512xbf16, #tpu.memory_space<vmem>>, vector<32x256xbf16>,
    %c0_24 = arith.constant 0 : index
    %c127 = arith.constant 127 : index
    %33 = vector.load %arg14[%c0_24, %c127] : memref<64x512xf32, #tpu.memory_space<vmem>>, vector<64x256xf32>
    %c2_25 = arith.constant 2 : index
    %c0_26 = arith.constant 0 : index
    %34 = vector.load %arg10[%c2_25, %c0_26] : memref<7x256xf32, #tpu.memory_space<vmem>>, vector<1x256xf32>
    %35 = vector.broadcast %34 : vector<1x256xf32> to vector<64x256xf32>
    %36 = arith.mulf %33, %35 : vector<64x256xf32>
    %37 = arith.truncf %36 : vector<64x256xf32> to vector<64x256xbf16>
    %38 = vector.extract_strided_slice %37 {offsets = [0, 0], sizes = [32, 256], strides = [1, 1]} : vector<64x256xbf16> to vector<32x256xbf16>
    %c96 = arith.constant 96 : index
    %c0_27 = arith.constant 0 : index
    %39 = vector.load %arg13[%c96, %c0_27] : memref<288x512xbf16, #tpu.memory_space<vmem>>, vector<32x256xbf16>
    tpu.vector_store %arg13[%c96, %c0_27], %38 {strides = array<i32>} : memref<288x512xbf16, #tpu.memory_space<vmem>>, vector<32x256xbf16>,
    %40 = vector.extract_strided_slice %37 {offsets = [32, 0], sizes = [32, 256], strides = [1, 1]} : vector<64x256xbf16> to vector<32x256xbf16>
    %c96_28 = arith.constant 96 : index
    %c256_29 = arith.constant 256 : index
    %41 = vector.load %arg13[%c96_28, %c256_29] : memref<288x512xbf16, #tpu.memory_space<vmem>>, vector<32x256xbf16>
    tpu.vector_store %arg13[%c96_28, %c256_29], %40 {strides = array<i32>} : memref<288x512xbf16, #tpu.memory_space<vmem>>, vector<32x256xbf16>,
    %c0_30 = arith.constant 0 : index
    %c128_31 = arith.constant 128 : index
    %42 = vector.load %arg14[%c0_30, %c128_31] : memref<64x512xf32, #tpu.memory_space<vmem>>, vector<64x256xf32>
    %43 = arith.truncf %42 : vector<64x256xf32> to vector<64x256xbf16>
    %44 = vector.extract_strided_slice %43 {offsets = [0, 0], sizes = [32, 256], strides = [1, 1]} : vector<64x256xbf16> to vector<32x256xbf16>
    %c128_32 = arith.constant 128 : index
    %c0_33 = arith.constant 0 : index
    %45 = vector.load %arg13[%c128_32, %c0_33] : memref<288x512xbf16, #tpu.memory_space<vmem>>, vector<32x256xbf16>
    tpu.vector_store %arg13[%c128_32, %c0_33], %44 {strides = array<i32>} : memref<288x512xbf16, #tpu.memory_space<vmem>>, vector<32x256xbf16>,
    %46 = vector.extract_strided_slice %43 {offsets = [32, 0], sizes = [32, 256], strides = [1, 1]} : vector<64x256xbf16> to vector<32x256xbf16>
    %c128_34 = arith.constant 128 : index
    %c256_35 = arith.constant 256 : index
    %47 = vector.load %arg13[%c128_34, %c256_35] : memref<288x512xbf16, #tpu.memory_space<vmem>>, vector<32x256xbf16>
    tpu.vector_store %arg13[%c128_34, %c256_35], %46 {strides = array<i32>} : memref<288x512xbf16, #tpu.memory_space<vmem>>, vector<32x256xbf16>,
    %c0_36 = arith.constant 0 : index
    %c129 = arith.constant 129 : index
    %48 = vector.load %arg14[%c0_36, %c129] : memref<64x512xf32, #tpu.memory_space<vmem>>, vector<64x256xf32>
    %c4_37 = arith.constant 4 : index
    %c0_38 = arith.constant 0 : index
    %49 = vector.load %arg10[%c4_37, %c0_38] : memref<7x256xf32, #tpu.memory_space<vmem>>, vector<1x256xf32>
    %50 = vector.broadcast %49 : vector<1x256xf32> to vector<64x256xf32>
    %51 = arith.mulf %48, %50 : vector<64x256xf32>
    %52 = arith.truncf %51 : vector<64x256xf32> to vector<64x256xbf16>
    %53 = vector.extract_strided_slice %52 {offsets = [0, 0], sizes = [32, 256], strides = [1, 1]} : vector<64x256xbf16> to vector<32x256xbf16>
    %c160 = arith.constant 160 : index
    %c0_39 = arith.constant 0 : index
    %54 = vector.load %arg13[%c160, %c0_39] : memref<288x512xbf16, #tpu.memory_space<vmem>>, vector<32x256xbf16>
    tpu.vector_store %arg13[%c160, %c0_39], %53 {strides = array<i32>} : memref<288x512xbf16, #tpu.memory_space<vmem>>, vector<32x256xbf16>,
    %55 = vector.extract_strided_slice %52 {offsets = [32, 0], sizes = [32, 256], strides = [1, 1]} : vector<64x256xbf16> to vector<32x256xbf16>
    %c160_40 = arith.constant 160 : index
    %c256_41 = arith.constant 256 : index
    %56 = vector.load %arg13[%c160_40, %c256_41] : memref<288x512xbf16, #tpu.memory_space<vmem>>, vector<32x256xbf16>
    tpu.vector_store %arg13[%c160_40, %c256_41], %55 {strides = array<i32>} : memref<288x512xbf16, #tpu.memory_space<vmem>>, vector<32x256xbf16>,
    %c0_42 = arith.constant 0 : index
    %c143 = arith.constant 143 : index
    %57 = vector.load %arg14[%c0_42, %c143] : memref<64x512xf32, #tpu.memory_space<vmem>>, vector<64x256xf32>
    %c2_43 = arith.constant 2 : index
    %c0_44 = arith.constant 0 : index
    %58 = vector.load %arg10[%c2_43, %c0_44] : memref<7x256xf32, #tpu.memory_space<vmem>>, vector<1x256xf32>
    %59 = vector.broadcast %58 : vector<1x256xf32> to vector<64x256xf32>
    %60 = arith.mulf %57, %59 : vector<64x256xf32>
    %61 = arith.truncf %60 : vector<64x256xf32> to vector<64x256xbf16>
    %62 = vector.extract_strided_slice %61 {offsets = [0, 0], sizes = [32, 256], strides = [1, 1]} : vector<64x256xbf16> to vector<32x256xbf16>
    %c192 = arith.constant 192 : index
    %c0_45 = arith.constant 0 : index
    %63 = vector.load %arg13[%c192, %c0_45] : memref<288x512xbf16, #tpu.memory_space<vmem>>, vector<32x256xbf16>
    tpu.vector_store %arg13[%c192, %c0_45], %62 {strides = array<i32>} : memref<288x512xbf16, #tpu.memory_space<vmem>>, vector<32x256xbf16>,
    %64 = vector.extract_strided_slice %61 {offsets = [32, 0], sizes = [32, 256], strides = [1, 1]} : vector<64x256xbf16> to vector<32x256xbf16>
    %c192_46 = arith.constant 192 : index
    %c256_47 = arith.constant 256 : index
    %65 = vector.load %arg13[%c192_46, %c256_47] : memref<288x512xbf16, #tpu.memory_space<vmem>>, vector<32x256xbf16>
    tpu.vector_store %arg13[%c192_46, %c256_47], %64 {strides = array<i32>} : memref<288x512xbf16, #tpu.memory_space<vmem>>, vector<32x256xbf16>,
    %c0_48 = arith.constant 0 : index
    %c144 = arith.constant 144 : index
    %66 = vector.load %arg14[%c0_48, %c144] : memref<64x512xf32, #tpu.memory_space<vmem>>, vector<64x256xf32>
    %67 = arith.truncf %66 : vector<64x256xf32> to vector<64x256xbf16>
    %68 = vector.extract_strided_slice %67 {offsets = [0, 0], sizes = [32, 256], strides = [1, 1]} : vector<64x256xbf16> to vector<32x256xbf16>
    %c224 = arith.constant 224 : index
    %c0_49 = arith.constant 0 : index
    %69 = vector.load %arg13[%c224, %c0_49] : memref<288x512xbf16, #tpu.memory_space<vmem>>, vector<32x256xbf16>
    tpu.vector_store %arg13[%c224, %c0_49], %68 {strides = array<i32>} : memref<288x512xbf16, #tpu.memory_space<vmem>>, vector<32x256xbf16>,
    %70 = vector.extract_strided_slice %67 {offsets = [32, 0], sizes = [32, 256], strides = [1, 1]} : vector<64x256xbf16> to vector<32x256xbf16>
    %c224_50 = arith.constant 224 : index
    %c256_51 = arith.constant 256 : index
    %71 = vector.load %arg13[%c224_50, %c256_51] : memref<288x512xbf16, #tpu.memory_space<vmem>>, vector<32x256xbf16>
    tpu.vector_store %arg13[%c224_50, %c256_51], %70 {strides = array<i32>} : memref<288x512xbf16, #tpu.memory_space<vmem>>, vector<32x256xbf16>,
    %c0_52 = arith.constant 0 : index
    %c145 = arith.constant 145 : index
    %72 = vector.load %arg14[%c0_52, %c145] : memref<64x512xf32, #tpu.memory_space<vmem>>, vector<64x256xf32>
    %c4_53 = arith.constant 4 : index
    %c0_54 = arith.constant 0 : index
    %73 = vector.load %arg10[%c4_53, %c0_54] : memref<7x256xf32, #tpu.memory_space<vmem>>, vector<1x256xf32>
    %74 = vector.broadcast %73 : vector<1x256xf32> to vector<64x256xf32>
    %75 = arith.mulf %72, %74 : vector<64x256xf32>
    %76 = arith.truncf %75 : vector<64x256xf32> to vector<64x256xbf16>
    %77 = vector.extract_strided_slice %76 {offsets = [0, 0], sizes = [32, 256], strides = [1, 1]} : vector<64x256xbf16> to vector<32x256xbf16>
    %c256_55 = arith.constant 256 : index
    %c0_56 = arith.constant 0 : index
    %78 = vector.load %arg13[%c256_55, %c0_56] : memref<288x512xbf16, #tpu.memory_space<vmem>>, vector<32x256xbf16>
    tpu.vector_store %arg13[%c256_55, %c0_56], %77 {strides = array<i32>} : memref<288x512xbf16, #tpu.memory_space<vmem>>, vector<32x256xbf16>,
    %79 = vector.extract_strided_slice %76 {offsets = [32, 0], sizes = [32, 256], strides = [1, 1]} : vector<64x256xbf16> to vector<32x256xbf16>
    %c256_57 = arith.constant 256 : index
    %c256_58 = arith.constant 256 : index
    %80 = vector.load %arg13[%c256_57, %c256_58] : memref<288x512xbf16, #tpu.memory_space<vmem>>, vector<32x256xbf16>
    tpu.vector_store %arg13[%c256_57, %c256_58], %79 {strides = array<i32>} : memref<288x512xbf16, #tpu.memory_space<vmem>>, vector<32x256xbf16>,
    %c0_59 = arith.constant 0 : index
    %c0_60 = arith.constant 0 : index
    %81 = vector.load %arg2[%c0_59, %c0_60] : memref<32x288xbf16, #tpu.memory_space<vmem>>, vector<32x288xbf16>
    %c0_61 = arith.constant 0 : index
    %c0_62 = arith.constant 0 : index
    %82 = vector.load %arg13[%c0_61, %c0_62] : memref<288x512xbf16, #tpu.memory_space<vmem>>, vector<288x512xbf16>
    %cst_63 = arith.constant dense<0.000000e+00> : vector<32x512xf32>
    %83 = tpu.matmul %81, %82, %cst_63 {dimension_numbers = #tpu.dot_dimension_numbers<[1], [0], [0], [1], [0, 0, 1, 1], [], []>} : vector<32x288xbf16>, vector<288x512xbf16>, vector<32x512xf32> -> vector<32x512xf32>
    %c0_64 = arith.constant 0 : index
    %c0_65 = arith.constant 0 : index
    %84 = vector.load %arg3[%c0_64, %c0_65] : memref<32x1xf32, #tpu.memory_space<vmem>>, vector<32x1xf32>
    %85 = vector.broadcast %84 : vector<32x1xf32> to vector<32x512xf32>
    %86 = arith.mulf %83, %85 : vector<32x512xf32>
    %c0_66 = arith.constant 0 : index
    %c0_67 = arith.constant 0 : index
    %87 = vector.load %arg4[%c0_66, %c0_67] : memref<32x1xf32, #tpu.memory_space<vmem>>, vector<32x1xf32>
    %88 = vector.broadcast %87 : vector<32x1xf32> to vector<32x512xf32>
    %89 = arith.addf %86, %88 : vector<32x512xf32>
    %cst_68 = arith.constant 0.000000e+00 : f32
    %90 = vector.broadcast %cst_68 : f32 to vector<32x512xf32>
    %91 = arith.maximumf %89, %90 : vector<32x512xf32>
    %92 = vector.extract_strided_slice %91 {offsets = [0, 0], sizes = [32, 256], strides = [1, 1]} : vector<32x512xf32> to vector<32x256xf32>
    %c0_69 = arith.constant 0 : index
    %c128_70 = arith.constant 128 : index
    %93 = vector.load %arg14[%c0_69, %c128_70] : memref<64x512xf32, #tpu.memory_space<vmem>>, vector<32x256xf32>
    tpu.vector_store %arg14[%c0_69, %c128_70], %92 {strides = array<i32>} : memref<64x512xf32, #tpu.memory_space<vmem>>, vector<32x256xf32>,
    %94 = vector.extract_strided_slice %91 {offsets = [0, 256], sizes = [32, 256], strides = [1, 1]} : vector<32x512xf32> to vector<32x256xf32>
    %c32_71 = arith.constant 32 : index
    %c128_72 = arith.constant 128 : index
    %95 = vector.load %arg14[%c32_71, %c128_72] : memref<64x512xf32, #tpu.memory_space<vmem>>, vector<32x256xf32>
    tpu.vector_store %arg14[%c32_71, %c128_72], %94 {strides = array<i32>} : memref<64x512xf32, #tpu.memory_space<vmem>>, vector<32x256xf32>,
    %c0_73 = arith.constant 0 : index
    %c111_74 = arith.constant 111 : index
    %96 = vector.load %arg14[%c0_73, %c111_74] : memref<64x512xf32, #tpu.memory_space<vmem>>, vector<64x256xf32>
    %c2_75 = arith.constant 2 : index
    %c0_76 = arith.constant 0 : index
    %97 = vector.load %arg10[%c2_75, %c0_76] : memref<7x256xf32, #tpu.memory_space<vmem>>, vector<1x256xf32>
    %98 = vector.broadcast %97 : vector<1x256xf32> to vector<64x256xf32>
    %99 = arith.mulf %96, %98 : vector<64x256xf32>
    %100 = arith.truncf %99 : vector<64x256xf32> to vector<64x256xbf16>
    %101 = vector.extract_strided_slice %100 {offsets = [0, 0], sizes = [32, 256], strides = [1, 1]} : vector<64x256xbf16> to vector<32x256xbf16>
    %c0_77 = arith.constant 0 : index
    %c0_78 = arith.constant 0 : index
    %102 = vector.load %arg13[%c0_77, %c0_78] : memref<288x512xbf16, #tpu.memory_space<vmem>>, vector<32x256xbf16>
    tpu.vector_store %arg13[%c0_77, %c0_78], %101 {strides = array<i32>} : memref<288x512xbf16, #tpu.memory_space<vmem>>, vector<32x256xbf16>,
    %103 = vector.extract_strided_slice %100 {offsets = [32, 0], sizes = [32, 256], strides = [1, 1]} : vector<64x256xbf16> to vector<32x256xbf16>
    %c0_79 = arith.constant 0 : index
    %c256_80 = arith.constant 256 : index
    %104 = vector.load %arg13[%c0_79, %c256_80] : memref<288x512xbf16, #tpu.memory_space<vmem>>, vector<32x256xbf16>
    tpu.vector_store %arg13[%c0_79, %c256_80], %103 {strides = array<i32>} : memref<288x512xbf16, #tpu.memory_space<vmem>>, vector<32x256xbf16>,
    %c0_81 = arith.constant 0 : index
    %c112_82 = arith.constant 112 : index
    %105 = vector.load %arg14[%c0_81, %c112_82] : memref<64x512xf32, #tpu.memory_space<vmem>>, vector<64x256xf32>
    %106 = arith.truncf %105 : vector<64x256xf32> to vector<64x256xbf16>
    %107 = vector.extract_strided_slice %106 {offsets = [0, 0], sizes = [32, 256], strides = [1, 1]} : vector<64x256xbf16> to vector<32x256xbf16>
    %c32_83 = arith.constant 32 : index
    %c0_84 = arith.constant 0 : index
    %108 = vector.load %arg13[%c32_83, %c0_84] : memref<288x512xbf16, #tpu.memory_space<vmem>>, vector<32x256xbf16>
    tpu.vector_store %arg13[%c32_83, %c0_84], %107 {strides = array<i32>} : memref<288x512xbf16, #tpu.memory_space<vmem>>, vector<32x256xbf16>,
    %109 = vector.extract_strided_slice %106 {offsets = [32, 0], sizes = [32, 256], strides = [1, 1]} : vector<64x256xbf16> to vector<32x256xbf16>
    %c32_85 = arith.constant 32 : index
    %c256_86 = arith.constant 256 : index
    %110 = vector.load %arg13[%c32_85, %c256_86] : memref<288x512xbf16, #tpu.memory_space<vmem>>, vector<32x256xbf16>
    tpu.vector_store %arg13[%c32_85, %c256_86], %109 {strides = array<i32>} : memref<288x512xbf16, #tpu.memory_space<vmem>>, vector<32x256xbf16>,
    %c0_87 = arith.constant 0 : index
    %c113_88 = arith.constant 113 : index
    %111 = vector.load %arg14[%c0_87, %c113_88] : memref<64x512xf32, #tpu.memory_space<vmem>>, vector<64x256xf32>
    %c4_89 = arith.constant 4 : index
    %c0_90 = arith.constant 0 : index
    %112 = vector.load %arg10[%c4_89, %c0_90] : memref<7x256xf32, #tpu.memory_space<vmem>>, vector<1x256xf32>
    %113 = vector.broadcast %112 : vector<1x256xf32> to vector<64x256xf32>
    %114 = arith.mulf %111, %113 : vector<64x256xf32>
    %115 = arith.truncf %114 : vector<64x256xf32> to vector<64x256xbf16>
    %116 = vector.extract_strided_slice %115 {offsets = [0, 0], sizes = [32, 256], strides = [1, 1]} : vector<64x256xbf16> to vector<32x256xbf16>
    %c64_91 = arith.constant 64 : index
    %c0_92 = arith.constant 0 : index
    %117 = vector.load %arg13[%c64_91, %c0_92] : memref<288x512xbf16, #tpu.memory_space<vmem>>, vector<32x256xbf16>
    tpu.vector_store %arg13[%c64_91, %c0_92], %116 {strides = array<i32>} : memref<288x512xbf16, #tpu.memory_space<vmem>>, vector<32x256xbf16>,
    %118 = vector.extract_strided_slice %115 {offsets = [32, 0], sizes = [32, 256], strides = [1, 1]} : vector<64x256xbf16> to vector<32x256xbf16>
    %c64_93 = arith.constant 64 : index
    %c256_94 = arith.constant 256 : index
    %119 = vector.load %arg13[%c64_93, %c256_94] : memref<288x512xbf16, #tpu.memory_space<vmem>>, vector<32x256xbf16>
    tpu.vector_store %arg13[%c64_93, %c256_94], %118 {strides = array<i32>} : memref<288x512xbf16, #tpu.memory_space<vmem>>, vector<32x256xbf16>,
    %c0_95 = arith.constant 0 : index
    %c127_96 = arith.constant 127 : index
    %120 = vector.load %arg14[%c0_95, %c127_96] : memref<64x512xf32, #tpu.memory_space<vmem>>, vector<64x256xf32>
    %c2_97 = arith.constant 2 : index
    %c0_98 = arith.constant 0 : index
    %121 = vector.load %arg10[%c2_97, %c0_98] : memref<7x256xf32, #tpu.memory_space<vmem>>, vector<1x256xf32>
    %122 = vector.broadcast %121 : vector<1x256xf32> to vector<64x256xf32>
    %123 = arith.mulf %120, %122 : vector<64x256xf32>
    %124 = arith.truncf %123 : vector<64x256xf32> to vector<64x256xbf16>
    %125 = vector.extract_strided_slice %124 {offsets = [0, 0], sizes = [32, 256], strides = [1, 1]} : vector<64x256xbf16> to vector<32x256xbf16>
    %c96_99 = arith.constant 96 : index
    %c0_100 = arith.constant 0 : index
    %126 = vector.load %arg13[%c96_99, %c0_100] : memref<288x512xbf16, #tpu.memory_space<vmem>>, vector<32x256xbf16>
    tpu.vector_store %arg13[%c96_99, %c0_100], %125 {strides = array<i32>} : memref<288x512xbf16, #tpu.memory_space<vmem>>, vector<32x256xbf16>,
    %127 = vector.extract_strided_slice %124 {offsets = [32, 0], sizes = [32, 256], strides = [1, 1]} : vector<64x256xbf16> to vector<32x256xbf16>
    %c96_101 = arith.constant 96 : index
    %c256_102 = arith.constant 256 : index
    %128 = vector.load %arg13[%c96_101, %c256_102] : memref<288x512xbf16, #tpu.memory_space<vmem>>, vector<32x256xbf16>
    tpu.vector_store %arg13[%c96_101, %c256_102], %127 {strides = array<i32>} : memref<288x512xbf16, #tpu.memory_space<vmem>>, vector<32x256xbf16>,
    %c0_103 = arith.constant 0 : index
    %c128_104 = arith.constant 128 : index
    %129 = vector.load %arg14[%c0_103, %c128_104] : memref<64x512xf32, #tpu.memory_space<vmem>>, vector<64x256xf32>
    %130 = arith.truncf %129 : vector<64x256xf32> to vector<64x256xbf16>
    %131 = vector.extract_strided_slice %130 {offsets = [0, 0], sizes = [32, 256], strides = [1, 1]} : vector<64x256xbf16> to vector<32x256xbf16>
    %c128_105 = arith.constant 128 : index
    %c0_106 = arith.constant 0 : index
    %132 = vector.load %arg13[%c128_105, %c0_106] : memref<288x512xbf16, #tpu.memory_space<vmem>>, vector<32x256xbf16>
    tpu.vector_store %arg13[%c128_105, %c0_106], %131 {strides = array<i32>} : memref<288x512xbf16, #tpu.memory_space<vmem>>, vector<32x256xbf16>,
    %133 = vector.extract_strided_slice %130 {offsets = [32, 0], sizes = [32, 256], strides = [1, 1]} : vector<64x256xbf16> to vector<32x256xbf16>
    %c128_107 = arith.constant 128 : index
    %c256_108 = arith.constant 256 : index
    %134 = vector.load %arg13[%c128_107, %c256_108] : memref<288x512xbf16, #tpu.memory_space<vmem>>, vector<32x256xbf16>
    tpu.vector_store %arg13[%c128_107, %c256_108], %133 {strides = array<i32>} : memref<288x512xbf16, #tpu.memory_space<vmem>>, vector<32x256xbf16>,
    %c0_109 = arith.constant 0 : index
    %c129_110 = arith.constant 129 : index
    %135 = vector.load %arg14[%c0_109, %c129_110] : memref<64x512xf32, #tpu.memory_space<vmem>>, vector<64x256xf32>
    %c4_111 = arith.constant 4 : index
    %c0_112 = arith.constant 0 : index
    %136 = vector.load %arg10[%c4_111, %c0_112] : memref<7x256xf32, #tpu.memory_space<vmem>>, vector<1x256xf32>
    %137 = vector.broadcast %136 : vector<1x256xf32> to vector<64x256xf32>
    %138 = arith.mulf %135, %137 : vector<64x256xf32>
    %139 = arith.truncf %138 : vector<64x256xf32> to vector<64x256xbf16>
    %140 = vector.extract_strided_slice %139 {offsets = [0, 0], sizes = [32, 256], strides = [1, 1]} : vector<64x256xbf16> to vector<32x256xbf16>
    %c160_113 = arith.constant 160 : index
    %c0_114 = arith.constant 0 : index
    %141 = vector.load %arg13[%c160_113, %c0_114] : memref<288x512xbf16, #tpu.memory_space<vmem>>, vector<32x256xbf16>
    tpu.vector_store %arg13[%c160_113, %c0_114], %140 {strides = array<i32>} : memref<288x512xbf16, #tpu.memory_space<vmem>>, vector<32x256xbf16>,
    %142 = vector.extract_strided_slice %139 {offsets = [32, 0], sizes = [32, 256], strides = [1, 1]} : vector<64x256xbf16> to vector<32x256xbf16>
    %c160_115 = arith.constant 160 : index
    %c256_116 = arith.constant 256 : index
    %143 = vector.load %arg13[%c160_115, %c256_116] : memref<288x512xbf16, #tpu.memory_space<vmem>>, vector<32x256xbf16>
    tpu.vector_store %arg13[%c160_115, %c256_116], %142 {strides = array<i32>} : memref<288x512xbf16, #tpu.memory_space<vmem>>, vector<32x256xbf16>,
    %c0_117 = arith.constant 0 : index
    %c143_118 = arith.constant 143 : index
    %144 = vector.load %arg14[%c0_117, %c143_118] : memref<64x512xf32, #tpu.memory_space<vmem>>, vector<64x256xf32>
    %c2_119 = arith.constant 2 : index
    %c0_120 = arith.constant 0 : index
    %145 = vector.load %arg10[%c2_119, %c0_120] : memref<7x256xf32, #tpu.memory_space<vmem>>, vector<1x256xf32>
    %146 = vector.broadcast %145 : vector<1x256xf32> to vector<64x256xf32>
    %147 = arith.mulf %144, %146 : vector<64x256xf32>
    %148 = arith.truncf %147 : vector<64x256xf32> to vector<64x256xbf16>
    %149 = vector.extract_strided_slice %148 {offsets = [0, 0], sizes = [32, 256], strides = [1, 1]} : vector<64x256xbf16> to vector<32x256xbf16>
    %c192_121 = arith.constant 192 : index
    %c0_122 = arith.constant 0 : index
    %150 = vector.load %arg13[%c192_121, %c0_122] : memref<288x512xbf16, #tpu.memory_space<vmem>>, vector<32x256xbf16>
    tpu.vector_store %arg13[%c192_121, %c0_122], %149 {strides = array<i32>} : memref<288x512xbf16, #tpu.memory_space<vmem>>, vector<32x256xbf16>,
    %151 = vector.extract_strided_slice %148 {offsets = [32, 0], sizes = [32, 256], strides = [1, 1]} : vector<64x256xbf16> to vector<32x256xbf16>
    %c192_123 = arith.constant 192 : index
    %c256_124 = arith.constant 256 : index
    %152 = vector.load %arg13[%c192_123, %c256_124] : memref<288x512xbf16, #tpu.memory_space<vmem>>, vector<32x256xbf16>
    tpu.vector_store %arg13[%c192_123, %c256_124], %151 {strides = array<i32>} : memref<288x512xbf16, #tpu.memory_space<vmem>>, vector<32x256xbf16>,
    %c0_125 = arith.constant 0 : index
    %c144_126 = arith.constant 144 : index
    %153 = vector.load %arg14[%c0_125, %c144_126] : memref<64x512xf32, #tpu.memory_space<vmem>>, vector<64x256xf32>
    %154 = arith.truncf %153 : vector<64x256xf32> to vector<64x256xbf16>
    %155 = vector.extract_strided_slice %154 {offsets = [0, 0], sizes = [32, 256], strides = [1, 1]} : vector<64x256xbf16> to vector<32x256xbf16>
    %c224_127 = arith.constant 224 : index
    %c0_128 = arith.constant 0 : index
    %156 = vector.load %arg13[%c224_127, %c0_128] : memref<288x512xbf16, #tpu.memory_space<vmem>>, vector<32x256xbf16>
    tpu.vector_store %arg13[%c224_127, %c0_128], %155 {strides = array<i32>} : memref<288x512xbf16, #tpu.memory_space<vmem>>, vector<32x256xbf16>,
    %157 = vector.extract_strided_slice %154 {offsets = [32, 0], sizes = [32, 256], strides = [1, 1]} : vector<64x256xbf16> to vector<32x256xbf16>
    %c224_129 = arith.constant 224 : index
    %c256_130 = arith.constant 256 : index
    %158 = vector.load %arg13[%c224_129, %c256_130] : memref<288x512xbf16, #tpu.memory_space<vmem>>, vector<32x256xbf16>
    tpu.vector_store %arg13[%c224_129, %c256_130], %157 {strides = array<i32>} : memref<288x512xbf16, #tpu.memory_space<vmem>>, vector<32x256xbf16>,
    %c0_131 = arith.constant 0 : index
    %c145_132 = arith.constant 145 : index
    %159 = vector.load %arg14[%c0_131, %c145_132] : memref<64x512xf32, #tpu.memory_space<vmem>>, vector<64x256xf32>
    %c4_133 = arith.constant 4 : index
    %c0_134 = arith.constant 0 : index
    %160 = vector.load %arg10[%c4_133, %c0_134] : memref<7x256xf32, #tpu.memory_space<vmem>>, vector<1x256xf32>
    %161 = vector.broadcast %160 : vector<1x256xf32> to vector<64x256xf32>
    %162 = arith.mulf %159, %161 : vector<64x256xf32>
    %163 = arith.truncf %162 : vector<64x256xf32> to vector<64x256xbf16>
    %164 = vector.extract_strided_slice %163 {offsets = [0, 0], sizes = [32, 256], strides = [1, 1]} : vector<64x256xbf16> to vector<32x256xbf16>
    %c256_135 = arith.constant 256 : index
    %c0_136 = arith.constant 0 : index
    %165 = vector.load %arg13[%c256_135, %c0_136] : memref<288x512xbf16, #tpu.memory_space<vmem>>, vector<32x256xbf16>
    tpu.vector_store %arg13[%c256_135, %c0_136], %164 {strides = array<i32>} : memref<288x512xbf16, #tpu.memory_space<vmem>>, vector<32x256xbf16>,
    %166 = vector.extract_strided_slice %163 {offsets = [32, 0], sizes = [32, 256], strides = [1, 1]} : vector<64x256xbf16> to vector<32x256xbf16>
    %c256_137 = arith.constant 256 : index
    %c256_138 = arith.constant 256 : index
    %167 = vector.load %arg13[%c256_137, %c256_138] : memref<288x512xbf16, #tpu.memory_space<vmem>>, vector<32x256xbf16>
    tpu.vector_store %arg13[%c256_137, %c256_138], %166 {strides = array<i32>} : memref<288x512xbf16, #tpu.memory_space<vmem>>, vector<32x256xbf16>,
    %c0_139 = arith.constant 0 : index
    %c0_140 = arith.constant 0 : index
    %168 = vector.load %arg5[%c0_139, %c0_140] : memref<32x288xbf16, #tpu.memory_space<vmem>>, vector<32x288xbf16>
    %c0_141 = arith.constant 0 : index
    %c0_142 = arith.constant 0 : index
    %169 = vector.load %arg13[%c0_141, %c0_142] : memref<288x512xbf16, #tpu.memory_space<vmem>>, vector<288x512xbf16>
    %cst_143 = arith.constant dense<0.000000e+00> : vector<32x512xf32>
    %170 = tpu.matmul %168, %169, %cst_143 {dimension_numbers = #tpu.dot_dimension_numbers<[1], [0], [0], [1], [0, 0, 1, 1], [], []>} : vector<32x288xbf16>, vector<288x512xbf16>, vector<32x512xf32> -> vector<32x512xf32>
    %c0_144 = arith.constant 0 : index
    %c0_145 = arith.constant 0 : index
    %171 = vector.load %arg6[%c0_144, %c0_145] : memref<32x1xf32, #tpu.memory_space<vmem>>, vector<32x1xf32>
    %172 = vector.broadcast %171 : vector<32x1xf32> to vector<32x512xf32>
    %173 = arith.mulf %170, %172 : vector<32x512xf32>
    %c0_146 = arith.constant 0 : index
    %c0_147 = arith.constant 0 : index
    %174 = vector.load %arg7[%c0_146, %c0_147] : memref<32x1xf32, #tpu.memory_space<vmem>>, vector<32x1xf32>
    %175 = vector.broadcast %174 : vector<32x1xf32> to vector<32x512xf32>
    %176 = arith.addf %173, %175 : vector<32x512xf32>
    %177 = vector.extract_strided_slice %176 {offsets = [0, 0], sizes = [32, 256], strides = [1, 1]} : vector<32x512xf32> to vector<32x256xf32>
    %cst_148 = arith.constant dense<0.000000e+00> : vector<32xf32>
    %178 = vector.multi_reduction <add>, %177, %cst_148 [1] : vector<32x256xf32> to vector<32xf32>
    %179 = vector.shape_cast %178 : vector<32xf32> to vector<32x1xf32>
    %cst_149 = arith.constant 2.560000e+02 : f32
    %180 = vector.broadcast %cst_149 : f32 to vector<32x1xf32>
    %181 = arith.divf %179, %180 : vector<32x1xf32>
    %cst_150 = arith.constant dense<0xFF800000> : vector<32xf32>
    %182 = vector.multi_reduction <maximumf>, %177, %cst_150 [1] : vector<32x256xf32> to vector<32xf32>
    %183 = vector.shape_cast %182 : vector<32xf32> to vector<32x1xf32>
    %184 = vector.extract_strided_slice %176 {offsets = [0, 256], sizes = [32, 256], strides = [1, 1]} : vector<32x512xf32> to vector<32x256xf32>
    %cst_151 = arith.constant dense<0.000000e+00> : vector<32xf32>
    %185 = vector.multi_reduction <add>, %184, %cst_151 [1] : vector<32x256xf32> to vector<32xf32>
    %186 = vector.shape_cast %185 : vector<32xf32> to vector<32x1xf32>
    %cst_152 = arith.constant 2.560000e+02 : f32
    %187 = vector.broadcast %cst_152 : f32 to vector<32x1xf32>
    %188 = arith.divf %186, %187 : vector<32x1xf32>
    %cst_153 = arith.constant dense<0xFF800000> : vector<32xf32>
    %189 = vector.multi_reduction <maximumf>, %184, %cst_153 [1] : vector<32x256xf32> to vector<32xf32>
    %190 = vector.shape_cast %189 : vector<32xf32> to vector<32x1xf32>
    %191 = tpu.concatenate %181, %183, %188, %190 in 1 : vector<32x1xf32>, vector<32x1xf32>, vector<32x1xf32>, vector<32x1xf32> -> vector<32x4xf32>
    %c0_154 = arith.constant 0 : index
    %c0_155 = arith.constant 0 : index
    %192 = vector.load %arg8[%c0_154, %c0_155] : memref<2x32xf32, #tpu.memory_space<vmem>>, vector<2x32xf32>
    %cst_156 = arith.constant dense<0.000000e+00> : vector<2x4xf32>
    %193 = tpu.matmul %192, %191, %cst_156 {dimension_numbers = #tpu.dot_dimension_numbers<[1], [0], [0], [1], [0, 0, 1, 1], [], []>} : vector<2x32xf32>, vector<32x4xf32>, vector<2x4xf32> -> vector<2x4xf32>
    %cst_157 = arith.constant 0.000000e+00 : f32
    %194 = vector.broadcast %cst_157 : f32 to vector<2x4xf32>
    %195 = arith.maximumf %193, %194 : vector<2x4xf32>
    %c0_158 = arith.constant 0 : index
    %c0_159 = arith.constant 0 : index
    %196 = vector.load %arg9[%c0_158, %c0_159] : memref<32x2xf32, #tpu.memory_space<vmem>>, vector<32x2xf32>
    %cst_160 = arith.constant dense<0.000000e+00> : vector<32x4xf32>
    %197 = tpu.matmul %196, %195, %cst_160 {dimension_numbers = #tpu.dot_dimension_numbers<[1], [0], [0], [1], [0, 0, 1, 1], [], []>} : vector<32x2xf32>, vector<2x4xf32>, vector<32x4xf32> -> vector<32x4xf32>
    %198 = vector.extract_strided_slice %197 {offsets = [0, 0], sizes = [32, 1], strides = [1, 1]} : vector<32x4xf32> to vector<32x1xf32>
    %199 = vector.extract_strided_slice %197 {offsets = [0, 1], sizes = [32, 1], strides = [1, 1]} : vector<32x4xf32> to vector<32x1xf32>
    %200 = arith.addf %198, %199 : vector<32x1xf32>
    %201 = arith.negf %200 : vector<32x1xf32>
    %202 = math.exp %201 : vector<32x1xf32>
    %cst_161 = arith.constant 1.000000e+00 : f32
    %203 = vector.broadcast %cst_161 : f32 to vector<32x1xf32>
    %204 = arith.addf %203, %202 : vector<32x1xf32>
    %205 = arith.divf %203, %204 : vector<32x1xf32>
    %206 = vector.extract_strided_slice %176 {offsets = [0, 0], sizes = [32, 256], strides = [1, 1]} : vector<32x512xf32> to vector<32x256xf32>
    %207 = vector.broadcast %205 : vector<32x1xf32> to vector<32x256xf32>
    %208 = arith.mulf %206, %207 : vector<32x256xf32>
    %cst_162 = arith.constant dense<0.000000e+00> : vector<256xf32>
    %209 = vector.multi_reduction <add>, %208, %cst_162 [0] : vector<32x256xf32> to vector<256xf32>
    %210 = vector.shape_cast %209 : vector<256xf32> to vector<1x256xf32>
    %cst_163 = arith.constant 3.200000e+01 : f32
    %211 = vector.broadcast %cst_163 : f32 to vector<1x256xf32>
    %212 = arith.divf %210, %211 : vector<1x256xf32>
    %cst_164 = arith.constant dense<0xFF800000> : vector<256xf32>
    %213 = vector.multi_reduction <maximumf>, %208, %cst_164 [0] : vector<32x256xf32> to vector<256xf32>
    %214 = vector.shape_cast %213 : vector<256xf32> to vector<1x256xf32>
    %215 = vector.extract_strided_slice %197 {offsets = [0, 2], sizes = [32, 1], strides = [1, 1]} : vector<32x4xf32> to vector<32x1xf32>
    %216 = vector.extract_strided_slice %197 {offsets = [0, 3], sizes = [32, 1], strides = [1, 1]} : vector<32x4xf32> to vector<32x1xf32>
    %217 = arith.addf %215, %216 : vector<32x1xf32>
    %218 = arith.negf %217 : vector<32x1xf32>
    %219 = math.exp %218 : vector<32x1xf32>
    %cst_165 = arith.constant 1.000000e+00 : f32
    %220 = vector.broadcast %cst_165 : f32 to vector<32x1xf32>
    %221 = arith.addf %220, %219 : vector<32x1xf32>
    %222 = arith.divf %220, %221 : vector<32x1xf32>
    %223 = vector.extract_strided_slice %176 {offsets = [0, 256], sizes = [32, 256], strides = [1, 1]} : vector<32x512xf32> to vector<32x256xf32>
    %224 = vector.broadcast %222 : vector<32x1xf32> to vector<32x256xf32>
    %225 = arith.mulf %223, %224 : vector<32x256xf32>
    %cst_166 = arith.constant dense<0.000000e+00> : vector<256xf32>
    %226 = vector.multi_reduction <add>, %225, %cst_166 [0] : vector<32x256xf32> to vector<256xf32>
    %227 = vector.shape_cast %226 : vector<256xf32> to vector<1x256xf32>
    %cst_167 = arith.constant 3.200000e+01 : f32
    %228 = vector.broadcast %cst_167 : f32 to vector<1x256xf32>
    %229 = arith.divf %227, %228 : vector<1x256xf32>
    %cst_168 = arith.constant dense<0xFF800000> : vector<256xf32>
    %230 = vector.multi_reduction <maximumf>, %225, %cst_168 [0] : vector<32x256xf32> to vector<256xf32>
    %231 = vector.shape_cast %230 : vector<256xf32> to vector<1x256xf32>
    %232 = tpu.concatenate %212, %229, %214, %231 in 0 : vector<1x256xf32>, vector<1x256xf32>, vector<1x256xf32>, vector<1x256xf32> -> vector<4x256xf32>
    %c0_169 = arith.constant 0 : index
    %c128_170 = arith.constant 128 : index
    %233 = vector.load %arg14[%c0_169, %c128_170] : memref<64x512xf32, #tpu.memory_space<vmem>>, vector<4x256xf32>
    tpu.vector_store %arg14[%c0_169, %c128_170], %232 {strides = array<i32>} : memref<64x512xf32, #tpu.memory_space<vmem>>, vector<4x256xf32>,
    %234 = tpu.iota {dimensions = array<i32: 0>} : vector<4x1xi32>
    %c2_i32 = arith.constant 2 : i32
    %235 = vector.broadcast %c2_i32 : i32 to vector<4x1xi32>
    %236 = arith.cmpi slt, %234, %235 : vector<4x1xi32>
    %237 = arith.extui %236 : vector<4x1xi1> to vector<4x1xi32>
    %238 = arith.sitofp %237 : vector<4x1xi32> to vector<4x1xf32>
    %cst_171 = arith.constant 1.000000e+00 : f32
    %239 = vector.broadcast %cst_171 : f32 to vector<4x1xf32>
    %240 = arith.subf %239, %238 : vector<4x1xf32>
    %cst_172 = arith.constant 0.000000e+00 : f32
    %241 = vector.broadcast %cst_172 : f32 to vector<4x256xf32>
    %cst_173 = arith.constant 0.000000e+00 : f32
    %242 = vector.broadcast %cst_173 : f32 to vector<4x256xf32>
    %c0_174 = arith.constant 0 : index
    %c77 = arith.constant 77 : index
    %243 = vector.load %arg14[%c0_174, %c77] : memref<64x512xf32, #tpu.memory_space<vmem>>, vector<4x256xf32>
    %c0_175 = arith.constant 0 : index
    %244 = memref.load %arg11[%c0_175] : memref<98xf32, #tpu.memory_space<smem>>
    %245 = vector.broadcast %244 : f32 to vector<4x1xf32>
    %246 = arith.mulf %245, %238 : vector<4x1xf32>
    %c49 = arith.constant 49 : index
    %247 = memref.load %arg11[%c49] : memref<98xf32, #tpu.memory_space<smem>>
    %248 = vector.broadcast %247 : f32 to vector<4x1xf32>
    %249 = arith.mulf %248, %240 : vector<4x1xf32>
    %250 = arith.addf %246, %249 : vector<4x1xf32>
    %251 = vector.broadcast %250 : vector<4x1xf32> to vector<4x256xf32>
    %252 = arith.mulf %251, %243 : vector<4x256xf32>
    %253 = arith.addf %242, %252 : vector<4x256xf32>
    %c0_176 = arith.constant 0 : index
    %c93 = arith.constant 93 : index
    %254 = vector.load %arg14[%c0_176, %c93] : memref<64x512xf32, #tpu.memory_space<vmem>>, vector<4x256xf32>
    %c7 = arith.constant 7 : index
    %255 = memref.load %arg11[%c7] : memref<98xf32, #tpu.memory_space<smem>>
    %256 = vector.broadcast %255 : f32 to vector<4x1xf32>
    %257 = arith.mulf %256, %238 : vector<4x1xf32>
    %c56 = arith.constant 56 : index
    %258 = memref.load %arg11[%c56] : memref<98xf32, #tpu.memory_space<smem>>
    %259 = vector.broadcast %258 : f32 to vector<4x1xf32>
    %260 = arith.mulf %259, %240 : vector<4x1xf32>
    %261 = arith.addf %257, %260 : vector<4x1xf32>
    %262 = vector.broadcast %261 : vector<4x1xf32> to vector<4x256xf32>
    %263 = arith.mulf %262, %254 : vector<4x256xf32>
    %264 = arith.addf %253, %263 : vector<4x256xf32>
    %c0_177 = arith.constant 0 : index
    %c109 = arith.constant 109 : index
    %265 = vector.load %arg14[%c0_177, %c109] : memref<64x512xf32, #tpu.memory_space<vmem>>, vector<4x256xf32>
    %c14 = arith.constant 14 : index
    %266 = memref.load %arg11[%c14] : memref<98xf32, #tpu.memory_space<smem>>
    %267 = vector.broadcast %266 : f32 to vector<4x1xf32>
    %268 = arith.mulf %267, %238 : vector<4x1xf32>
    %c63 = arith.constant 63 : index
    %269 = memref.load %arg11[%c63] : memref<98xf32, #tpu.memory_space<smem>>
    %270 = vector.broadcast %269 : f32 to vector<4x1xf32>
    %271 = arith.mulf %270, %240 : vector<4x1xf32>
    %272 = arith.addf %268, %271 : vector<4x1xf32>
    %273 = vector.broadcast %272 : vector<4x1xf32> to vector<4x256xf32>
    %274 = arith.mulf %273, %265 : vector<4x256xf32>
    %275 = arith.addf %264, %274 : vector<4x256xf32>
    %c0_178 = arith.constant 0 : index
    %c125 = arith.constant 125 : index
    %276 = vector.load %arg14[%c0_178, %c125] : memref<64x512xf32, #tpu.memory_space<vmem>>, vector<4x256xf32>
    %c21 = arith.constant 21 : index
    %277 = memref.load %arg11[%c21] : memref<98xf32, #tpu.memory_space<smem>>
    %278 = vector.broadcast %277 : f32 to vector<4x1xf32>
    %279 = arith.mulf %278, %238 : vector<4x1xf32>
    %c70 = arith.constant 70 : index
    %280 = memref.load %arg11[%c70] : memref<98xf32, #tpu.memory_space<smem>>
    %281 = vector.broadcast %280 : f32 to vector<4x1xf32>
    %282 = arith.mulf %281, %240 : vector<4x1xf32>
    %283 = arith.addf %279, %282 : vector<4x1xf32>
    %284 = vector.broadcast %283 : vector<4x1xf32> to vector<4x256xf32>
    %285 = arith.mulf %284, %276 : vector<4x256xf32>
    %286 = arith.addf %275, %285 : vector<4x256xf32>
    %c0_179 = arith.constant 0 : index
    %c141 = arith.constant 141 : index
    %287 = vector.load %arg14[%c0_179, %c141] : memref<64x512xf32, #tpu.memory_space<vmem>>, vector<4x256xf32>
    %c28 = arith.constant 28 : index
    %288 = memref.load %arg11[%c28] : memref<98xf32, #tpu.memory_space<smem>>
    %289 = vector.broadcast %288 : f32 to vector<4x1xf32>
    %290 = arith.mulf %289, %238 : vector<4x1xf32>
    %c77_180 = arith.constant 77 : index
    %291 = memref.load %arg11[%c77_180] : memref<98xf32, #tpu.memory_space<smem>>
    %292 = vector.broadcast %291 : f32 to vector<4x1xf32>
    %293 = arith.mulf %292, %240 : vector<4x1xf32>
    %294 = arith.addf %290, %293 : vector<4x1xf32>
    %295 = vector.broadcast %294 : vector<4x1xf32> to vector<4x256xf32>
    %296 = arith.mulf %295, %287 : vector<4x256xf32>
    %297 = arith.addf %286, %296 : vector<4x256xf32>
    %c0_181 = arith.constant 0 : index
    %c157 = arith.constant 157 : index
    %298 = vector.load %arg14[%c0_181, %c157] : memref<64x512xf32, #tpu.memory_space<vmem>>, vector<4x256xf32>
    %c35 = arith.constant 35 : index
    %299 = memref.load %arg11[%c35] : memref<98xf32, #tpu.memory_space<smem>>
    %300 = vector.broadcast %299 : f32 to vector<4x1xf32>
    %301 = arith.mulf %300, %238 : vector<4x1xf32>
    %c84 = arith.constant 84 : index
    %302 = memref.load %arg11[%c84] : memref<98xf32, #tpu.memory_space<smem>>
    %303 = vector.broadcast %302 : f32 to vector<4x1xf32>
    %304 = arith.mulf %303, %240 : vector<4x1xf32>
    %305 = arith.addf %301, %304 : vector<4x1xf32>
    %306 = vector.broadcast %305 : vector<4x1xf32> to vector<4x256xf32>
    %307 = arith.mulf %306, %298 : vector<4x256xf32>
    %308 = arith.addf %297, %307 : vector<4x256xf32>
    %c0_182 = arith.constant 0 : index
    %c173 = arith.constant 173 : index
    %309 = vector.load %arg14[%c0_182, %c173] : memref<64x512xf32, #tpu.memory_space<vmem>>, vector<4x256xf32>
    %c42 = arith.constant 42 : index
    %310 = memref.load %arg11[%c42] : memref<98xf32, #tpu.memory_space<smem>>
    %311 = vector.broadcast %310 : f32 to vector<4x1xf32>
    %312 = arith.mulf %311, %238 : vector<4x1xf32>
    %c91 = arith.constant 91 : index
    %313 = memref.load %arg11[%c91] : memref<98xf32, #tpu.memory_space<smem>>
    %314 = vector.broadcast %313 : f32 to vector<4x1xf32>
    %315 = arith.mulf %314, %240 : vector<4x1xf32>
    %316 = arith.addf %312, %315 : vector<4x1xf32>
    %317 = vector.broadcast %316 : vector<4x1xf32> to vector<4x256xf32>
    %318 = arith.mulf %317, %309 : vector<4x256xf32>
    %319 = arith.addf %308, %318 : vector<4x256xf32>
    %c0_183 = arith.constant 0 : index
    %c0_184 = arith.constant 0 : index
    %320 = vector.load %arg10[%c0_183, %c0_184] : memref<7x256xf32, #tpu.memory_space<vmem>>, vector<1x256xf32>
    %321 = vector.broadcast %320 : vector<1x256xf32> to vector<4x256xf32>
    %322 = arith.mulf %319, %321 : vector<4x256xf32>
    %323 = arith.addf %241, %322 : vector<4x256xf32>
    %cst_185 = arith.constant 0.000000e+00 : f32
    %324 = vector.broadcast %cst_185 : f32 to vector<4x256xf32>
    %c0_186 = arith.constant 0 : index
    %c78 = arith.constant 78 : index
    %325 = vector.load %arg14[%c0_186, %c78] : memref<64x512xf32, #tpu.memory_space<vmem>>, vector<4x256xf32>
    %c1_187 = arith.constant 1 : index
    %326 = memref.load %arg11[%c1_187] : memref<98xf32, #tpu.memory_space<smem>>
    %327 = vector.broadcast %326 : f32 to vector<4x1xf32>
    %328 = arith.mulf %327, %238 : vector<4x1xf32>
    %c50 = arith.constant 50 : index
    %329 = memref.load %arg11[%c50] : memref<98xf32, #tpu.memory_space<smem>>
    %330 = vector.broadcast %329 : f32 to vector<4x1xf32>
    %331 = arith.mulf %330, %240 : vector<4x1xf32>
    %332 = arith.addf %328, %331 : vector<4x1xf32>
    %333 = vector.broadcast %332 : vector<4x1xf32> to vector<4x256xf32>
    %334 = arith.mulf %333, %325 : vector<4x256xf32>
    %335 = arith.addf %324, %334 : vector<4x256xf32>
    %c0_188 = arith.constant 0 : index
    %c94 = arith.constant 94 : index
    %336 = vector.load %arg14[%c0_188, %c94] : memref<64x512xf32, #tpu.memory_space<vmem>>, vector<4x256xf32>
    %c8 = arith.constant 8 : index
    %337 = memref.load %arg11[%c8] : memref<98xf32, #tpu.memory_space<smem>>
    %338 = vector.broadcast %337 : f32 to vector<4x1xf32>
    %339 = arith.mulf %338, %238 : vector<4x1xf32>
    %c57 = arith.constant 57 : index
    %340 = memref.load %arg11[%c57] : memref<98xf32, #tpu.memory_space<smem>>
    %341 = vector.broadcast %340 : f32 to vector<4x1xf32>
    %342 = arith.mulf %341, %240 : vector<4x1xf32>
    %343 = arith.addf %339, %342 : vector<4x1xf32>
    %344 = vector.broadcast %343 : vector<4x1xf32> to vector<4x256xf32>
    %345 = arith.mulf %344, %336 : vector<4x256xf32>
    %346 = arith.addf %335, %345 : vector<4x256xf32>
    %c0_189 = arith.constant 0 : index
    %c110 = arith.constant 110 : index
    %347 = vector.load %arg14[%c0_189, %c110] : memref<64x512xf32, #tpu.memory_space<vmem>>, vector<4x256xf32>
    %c15 = arith.constant 15 : index
    %348 = memref.load %arg11[%c15] : memref<98xf32, #tpu.memory_space<smem>>
    %349 = vector.broadcast %348 : f32 to vector<4x1xf32>
    %350 = arith.mulf %349, %238 : vector<4x1xf32>
    %c64_190 = arith.constant 64 : index
    %351 = memref.load %arg11[%c64_190] : memref<98xf32, #tpu.memory_space<smem>>
    %352 = vector.broadcast %351 : f32 to vector<4x1xf32>
    %353 = arith.mulf %352, %240 : vector<4x1xf32>
    %354 = arith.addf %350, %353 : vector<4x1xf32>
    %355 = vector.broadcast %354 : vector<4x1xf32> to vector<4x256xf32>
    %356 = arith.mulf %355, %347 : vector<4x256xf32>
    %357 = arith.addf %346, %356 : vector<4x256xf32>
    %c0_191 = arith.constant 0 : index
    %c126 = arith.constant 126 : index
    %358 = vector.load %arg14[%c0_191, %c126] : memref<64x512xf32, #tpu.memory_space<vmem>>, vector<4x256xf32>
    %c22 = arith.constant 22 : index
    %359 = memref.load %arg11[%c22] : memref<98xf32, #tpu.memory_space<smem>>
    %360 = vector.broadcast %359 : f32 to vector<4x1xf32>
    %361 = arith.mulf %360, %238 : vector<4x1xf32>
    %c71 = arith.constant 71 : index
    %362 = memref.load %arg11[%c71] : memref<98xf32, #tpu.memory_space<smem>>
    %363 = vector.broadcast %362 : f32 to vector<4x1xf32>
    %364 = arith.mulf %363, %240 : vector<4x1xf32>
    %365 = arith.addf %361, %364 : vector<4x1xf32>
    %366 = vector.broadcast %365 : vector<4x1xf32> to vector<4x256xf32>
    %367 = arith.mulf %366, %358 : vector<4x256xf32>
    %368 = arith.addf %357, %367 : vector<4x256xf32>
    %c0_192 = arith.constant 0 : index
    %c142 = arith.constant 142 : index
    %369 = vector.load %arg14[%c0_192, %c142] : memref<64x512xf32, #tpu.memory_space<vmem>>, vector<4x256xf32>
    %c29 = arith.constant 29 : index
    %370 = memref.load %arg11[%c29] : memref<98xf32, #tpu.memory_space<smem>>
    %371 = vector.broadcast %370 : f32 to vector<4x1xf32>
    %372 = arith.mulf %371, %238 : vector<4x1xf32>
    %c78_193 = arith.constant 78 : index
    %373 = memref.load %arg11[%c78_193] : memref<98xf32, #tpu.memory_space<smem>>
    %374 = vector.broadcast %373 : f32 to vector<4x1xf32>
    %375 = arith.mulf %374, %240 : vector<4x1xf32>
    %376 = arith.addf %372, %375 : vector<4x1xf32>
    %377 = vector.broadcast %376 : vector<4x1xf32> to vector<4x256xf32>
    %378 = arith.mulf %377, %369 : vector<4x256xf32>
    %379 = arith.addf %368, %378 : vector<4x256xf32>
    %c0_194 = arith.constant 0 : index
    %c158 = arith.constant 158 : index
    %380 = vector.load %arg14[%c0_194, %c158] : memref<64x512xf32, #tpu.memory_space<vmem>>, vector<4x256xf32>
    %c36 = arith.constant 36 : index
    %381 = memref.load %arg11[%c36] : memref<98xf32, #tpu.memory_space<smem>>
    %382 = vector.broadcast %381 : f32 to vector<4x1xf32>
    %383 = arith.mulf %382, %238 : vector<4x1xf32>
    %c85 = arith.constant 85 : index
    %384 = memref.load %arg11[%c85] : memref<98xf32, #tpu.memory_space<smem>>
    %385 = vector.broadcast %384 : f32 to vector<4x1xf32>
    %386 = arith.mulf %385, %240 : vector<4x1xf32>
    %387 = arith.addf %383, %386 : vector<4x1xf32>
    %388 = vector.broadcast %387 : vector<4x1xf32> to vector<4x256xf32>
    %389 = arith.mulf %388, %380 : vector<4x256xf32>
    %390 = arith.addf %379, %389 : vector<4x256xf32>
    %c0_195 = arith.constant 0 : index
    %c174 = arith.constant 174 : index
    %391 = vector.load %arg14[%c0_195, %c174] : memref<64x512xf32, #tpu.memory_space<vmem>>, vector<4x256xf32>
    %c43 = arith.constant 43 : index
    %392 = memref.load %arg11[%c43] : memref<98xf32, #tpu.memory_space<smem>>
    %393 = vector.broadcast %392 : f32 to vector<4x1xf32>
    %394 = arith.mulf %393, %238 : vector<4x1xf32>
    %c92 = arith.constant 92 : index
    %395 = memref.load %arg11[%c92] : memref<98xf32, #tpu.memory_space<smem>>
    %396 = vector.broadcast %395 : f32 to vector<4x1xf32>
    %397 = arith.mulf %396, %240 : vector<4x1xf32>
    %398 = arith.addf %394, %397 : vector<4x1xf32>
    %399 = vector.broadcast %398 : vector<4x1xf32> to vector<4x256xf32>
    %400 = arith.mulf %399, %391 : vector<4x256xf32>
    %401 = arith.addf %390, %400 : vector<4x256xf32>
    %c1_196 = arith.constant 1 : index
    %c0_197 = arith.constant 0 : index
    %402 = vector.load %arg10[%c1_196, %c0_197] : memref<7x256xf32, #tpu.memory_space<vmem>>, vector<1x256xf32>
    %403 = vector.broadcast %402 : vector<1x256xf32> to vector<4x256xf32>
    %404 = arith.mulf %401, %403 : vector<4x256xf32>
    %405 = arith.addf %323, %404 : vector<4x256xf32>
    %cst_198 = arith.constant 0.000000e+00 : f32
    %406 = vector.broadcast %cst_198 : f32 to vector<4x256xf32>
    %c0_199 = arith.constant 0 : index
    %c79 = arith.constant 79 : index
    %407 = vector.load %arg14[%c0_199, %c79] : memref<64x512xf32, #tpu.memory_space<vmem>>, vector<4x256xf32>
    %c2_200 = arith.constant 2 : index
    %408 = memref.load %arg11[%c2_200] : memref<98xf32, #tpu.memory_space<smem>>
    %409 = vector.broadcast %408 : f32 to vector<4x1xf32>
    %410 = arith.mulf %409, %238 : vector<4x1xf32>
    %c51 = arith.constant 51 : index
    %411 = memref.load %arg11[%c51] : memref<98xf32, #tpu.memory_space<smem>>
    %412 = vector.broadcast %411 : f32 to vector<4x1xf32>
    %413 = arith.mulf %412, %240 : vector<4x1xf32>
    %414 = arith.addf %410, %413 : vector<4x1xf32>
    %415 = vector.broadcast %414 : vector<4x1xf32> to vector<4x256xf32>
    %416 = arith.mulf %415, %407 : vector<4x256xf32>
    %417 = arith.addf %406, %416 : vector<4x256xf32>
    %c0_201 = arith.constant 0 : index
    %c95 = arith.constant 95 : index
    %418 = vector.load %arg14[%c0_201, %c95] : memref<64x512xf32, #tpu.memory_space<vmem>>, vector<4x256xf32>
    %c9 = arith.constant 9 : index
    %419 = memref.load %arg11[%c9] : memref<98xf32, #tpu.memory_space<smem>>
    %420 = vector.broadcast %419 : f32 to vector<4x1xf32>
    %421 = arith.mulf %420, %238 : vector<4x1xf32>
    %c58 = arith.constant 58 : index
    %422 = memref.load %arg11[%c58] : memref<98xf32, #tpu.memory_space<smem>>
    %423 = vector.broadcast %422 : f32 to vector<4x1xf32>
    %424 = arith.mulf %423, %240 : vector<4x1xf32>
    %425 = arith.addf %421, %424 : vector<4x1xf32>
    %426 = vector.broadcast %425 : vector<4x1xf32> to vector<4x256xf32>
    %427 = arith.mulf %426, %418 : vector<4x256xf32>
    %428 = arith.addf %417, %427 : vector<4x256xf32>
    %c0_202 = arith.constant 0 : index
    %c111_203 = arith.constant 111 : index
    %429 = vector.load %arg14[%c0_202, %c111_203] : memref<64x512xf32, #tpu.memory_space<vmem>>, vector<4x256xf32>
    %c16 = arith.constant 16 : index
    %430 = memref.load %arg11[%c16] : memref<98xf32, #tpu.memory_space<smem>>
    %431 = vector.broadcast %430 : f32 to vector<4x1xf32>
    %432 = arith.mulf %431, %238 : vector<4x1xf32>
    %c65 = arith.constant 65 : index
    %433 = memref.load %arg11[%c65] : memref<98xf32, #tpu.memory_space<smem>>
    %434 = vector.broadcast %433 : f32 to vector<4x1xf32>
    %435 = arith.mulf %434, %240 : vector<4x1xf32>
    %436 = arith.addf %432, %435 : vector<4x1xf32>
    %437 = vector.broadcast %436 : vector<4x1xf32> to vector<4x256xf32>
    %438 = arith.mulf %437, %429 : vector<4x256xf32>
    %439 = arith.addf %428, %438 : vector<4x256xf32>
    %c0_204 = arith.constant 0 : index
    %c127_205 = arith.constant 127 : index
    %440 = vector.load %arg14[%c0_204, %c127_205] : memref<64x512xf32, #tpu.memory_space<vmem>>, vector<4x256xf32>
    %c23 = arith.constant 23 : index
    %441 = memref.load %arg11[%c23] : memref<98xf32, #tpu.memory_space<smem>>
    %442 = vector.broadcast %441 : f32 to vector<4x1xf32>
    %443 = arith.mulf %442, %238 : vector<4x1xf32>
    %c72 = arith.constant 72 : index
    %444 = memref.load %arg11[%c72] : memref<98xf32, #tpu.memory_space<smem>>
    %445 = vector.broadcast %444 : f32 to vector<4x1xf32>
    %446 = arith.mulf %445, %240 : vector<4x1xf32>
    %447 = arith.addf %443, %446 : vector<4x1xf32>
    %448 = vector.broadcast %447 : vector<4x1xf32> to vector<4x256xf32>
    %449 = arith.mulf %448, %440 : vector<4x256xf32>
    %450 = arith.addf %439, %449 : vector<4x256xf32>
    %c0_206 = arith.constant 0 : index
    %c143_207 = arith.constant 143 : index
    %451 = vector.load %arg14[%c0_206, %c143_207] : memref<64x512xf32, #tpu.memory_space<vmem>>, vector<4x256xf32>
    %c30 = arith.constant 30 : index
    %452 = memref.load %arg11[%c30] : memref<98xf32, #tpu.memory_space<smem>>
    %453 = vector.broadcast %452 : f32 to vector<4x1xf32>
    %454 = arith.mulf %453, %238 : vector<4x1xf32>
    %c79_208 = arith.constant 79 : index
    %455 = memref.load %arg11[%c79_208] : memref<98xf32, #tpu.memory_space<smem>>
    %456 = vector.broadcast %455 : f32 to vector<4x1xf32>
    %457 = arith.mulf %456, %240 : vector<4x1xf32>
    %458 = arith.addf %454, %457 : vector<4x1xf32>
    %459 = vector.broadcast %458 : vector<4x1xf32> to vector<4x256xf32>
    %460 = arith.mulf %459, %451 : vector<4x256xf32>
    %461 = arith.addf %450, %460 : vector<4x256xf32>
    %c0_209 = arith.constant 0 : index
    %c159 = arith.constant 159 : index
    %462 = vector.load %arg14[%c0_209, %c159] : memref<64x512xf32, #tpu.memory_space<vmem>>, vector<4x256xf32>
    %c37 = arith.constant 37 : index
    %463 = memref.load %arg11[%c37] : memref<98xf32, #tpu.memory_space<smem>>
    %464 = vector.broadcast %463 : f32 to vector<4x1xf32>
    %465 = arith.mulf %464, %238 : vector<4x1xf32>
    %c86 = arith.constant 86 : index
    %466 = memref.load %arg11[%c86] : memref<98xf32, #tpu.memory_space<smem>>
    %467 = vector.broadcast %466 : f32 to vector<4x1xf32>
    %468 = arith.mulf %467, %240 : vector<4x1xf32>
    %469 = arith.addf %465, %468 : vector<4x1xf32>
    %470 = vector.broadcast %469 : vector<4x1xf32> to vector<4x256xf32>
    %471 = arith.mulf %470, %462 : vector<4x256xf32>
    %472 = arith.addf %461, %471 : vector<4x256xf32>
    %c0_210 = arith.constant 0 : index
    %c175 = arith.constant 175 : index
    %473 = vector.load %arg14[%c0_210, %c175] : memref<64x512xf32, #tpu.memory_space<vmem>>, vector<4x256xf32>
    %c44 = arith.constant 44 : index
    %474 = memref.load %arg11[%c44] : memref<98xf32, #tpu.memory_space<smem>>
    %475 = vector.broadcast %474 : f32 to vector<4x1xf32>
    %476 = arith.mulf %475, %238 : vector<4x1xf32>
    %c93_211 = arith.constant 93 : index
    %477 = memref.load %arg11[%c93_211] : memref<98xf32, #tpu.memory_space<smem>>
    %478 = vector.broadcast %477 : f32 to vector<4x1xf32>
    %479 = arith.mulf %478, %240 : vector<4x1xf32>
    %480 = arith.addf %476, %479 : vector<4x1xf32>
    %481 = vector.broadcast %480 : vector<4x1xf32> to vector<4x256xf32>
    %482 = arith.mulf %481, %473 : vector<4x256xf32>
    %483 = arith.addf %472, %482 : vector<4x256xf32>
    %c2_212 = arith.constant 2 : index
    %c0_213 = arith.constant 0 : index
    %484 = vector.load %arg10[%c2_212, %c0_213] : memref<7x256xf32, #tpu.memory_space<vmem>>, vector<1x256xf32>
    %485 = vector.broadcast %484 : vector<1x256xf32> to vector<4x256xf32>
    %486 = arith.mulf %483, %485 : vector<4x256xf32>
    %487 = arith.addf %405, %486 : vector<4x256xf32>
    %cst_214 = arith.constant 0.000000e+00 : f32
    %488 = vector.broadcast %cst_214 : f32 to vector<4x256xf32>
    %c0_215 = arith.constant 0 : index
    %c80 = arith.constant 80 : index
    %489 = vector.load %arg14[%c0_215, %c80] : memref<64x512xf32, #tpu.memory_space<vmem>>, vector<4x256xf32>
    %c3 = arith.constant 3 : index
    %490 = memref.load %arg11[%c3] : memref<98xf32, #tpu.memory_space<smem>>
    %491 = vector.broadcast %490 : f32 to vector<4x1xf32>
    %492 = arith.mulf %491, %238 : vector<4x1xf32>
    %c52 = arith.constant 52 : index
    %493 = memref.load %arg11[%c52] : memref<98xf32, #tpu.memory_space<smem>>
    %494 = vector.broadcast %493 : f32 to vector<4x1xf32>
    %495 = arith.mulf %494, %240 : vector<4x1xf32>
    %496 = arith.addf %492, %495 : vector<4x1xf32>
    %497 = vector.broadcast %496 : vector<4x1xf32> to vector<4x256xf32>
    %498 = arith.mulf %497, %489 : vector<4x256xf32>
    %499 = arith.addf %488, %498 : vector<4x256xf32>
    %c0_216 = arith.constant 0 : index
    %c96_217 = arith.constant 96 : index
    %500 = vector.load %arg14[%c0_216, %c96_217] : memref<64x512xf32, #tpu.memory_space<vmem>>, vector<4x256xf32>
    %c10 = arith.constant 10 : index
    %501 = memref.load %arg11[%c10] : memref<98xf32, #tpu.memory_space<smem>>
    %502 = vector.broadcast %501 : f32 to vector<4x1xf32>
    %503 = arith.mulf %502, %238 : vector<4x1xf32>
    %c59 = arith.constant 59 : index
    %504 = memref.load %arg11[%c59] : memref<98xf32, #tpu.memory_space<smem>>
    %505 = vector.broadcast %504 : f32 to vector<4x1xf32>
    %506 = arith.mulf %505, %240 : vector<4x1xf32>
    %507 = arith.addf %503, %506 : vector<4x1xf32>
    %508 = vector.broadcast %507 : vector<4x1xf32> to vector<4x256xf32>
    %509 = arith.mulf %508, %500 : vector<4x256xf32>
    %510 = arith.addf %499, %509 : vector<4x256xf32>
    %c0_218 = arith.constant 0 : index
    %c112_219 = arith.constant 112 : index
    %511 = vector.load %arg14[%c0_218, %c112_219] : memref<64x512xf32, #tpu.memory_space<vmem>>, vector<4x256xf32>
    %c17 = arith.constant 17 : index
    %512 = memref.load %arg11[%c17] : memref<98xf32, #tpu.memory_space<smem>>
    %513 = vector.broadcast %512 : f32 to vector<4x1xf32>
    %514 = arith.mulf %513, %238 : vector<4x1xf32>
    %c66 = arith.constant 66 : index
    %515 = memref.load %arg11[%c66] : memref<98xf32, #tpu.memory_space<smem>>
    %516 = vector.broadcast %515 : f32 to vector<4x1xf32>
    %517 = arith.mulf %516, %240 : vector<4x1xf32>
    %518 = arith.addf %514, %517 : vector<4x1xf32>
    %519 = vector.broadcast %518 : vector<4x1xf32> to vector<4x256xf32>
    %520 = arith.mulf %519, %511 : vector<4x256xf32>
    %521 = arith.addf %510, %520 : vector<4x256xf32>
    %c0_220 = arith.constant 0 : index
    %c128_221 = arith.constant 128 : index
    %522 = vector.load %arg14[%c0_220, %c128_221] : memref<64x512xf32, #tpu.memory_space<vmem>>, vector<4x256xf32>
    %c24 = arith.constant 24 : index
    %523 = memref.load %arg11[%c24] : memref<98xf32, #tpu.memory_space<smem>>
    %524 = vector.broadcast %523 : f32 to vector<4x1xf32>
    %525 = arith.mulf %524, %238 : vector<4x1xf32>
    %c73 = arith.constant 73 : index
    %526 = memref.load %arg11[%c73] : memref<98xf32, #tpu.memory_space<smem>>
    %527 = vector.broadcast %526 : f32 to vector<4x1xf32>
    %528 = arith.mulf %527, %240 : vector<4x1xf32>
    %529 = arith.addf %525, %528 : vector<4x1xf32>
    %530 = vector.broadcast %529 : vector<4x1xf32> to vector<4x256xf32>
    %531 = arith.mulf %530, %522 : vector<4x256xf32>
    %532 = arith.addf %521, %531 : vector<4x256xf32>
    %c0_222 = arith.constant 0 : index
    %c144_223 = arith.constant 144 : index
    %533 = vector.load %arg14[%c0_222, %c144_223] : memref<64x512xf32, #tpu.memory_space<vmem>>, vector<4x256xf32>
    %c31 = arith.constant 31 : index
    %534 = memref.load %arg11[%c31] : memref<98xf32, #tpu.memory_space<smem>>
    %535 = vector.broadcast %534 : f32 to vector<4x1xf32>
    %536 = arith.mulf %535, %238 : vector<4x1xf32>
    %c80_224 = arith.constant 80 : index
    %537 = memref.load %arg11[%c80_224] : memref<98xf32, #tpu.memory_space<smem>>
    %538 = vector.broadcast %537 : f32 to vector<4x1xf32>
    %539 = arith.mulf %538, %240 : vector<4x1xf32>
    %540 = arith.addf %536, %539 : vector<4x1xf32>
    %541 = vector.broadcast %540 : vector<4x1xf32> to vector<4x256xf32>
    %542 = arith.mulf %541, %533 : vector<4x256xf32>
    %543 = arith.addf %532, %542 : vector<4x256xf32>
    %c0_225 = arith.constant 0 : index
    %c160_226 = arith.constant 160 : index
    %544 = vector.load %arg14[%c0_225, %c160_226] : memref<64x512xf32, #tpu.memory_space<vmem>>, vector<4x256xf32>
    %c38 = arith.constant 38 : index
    %545 = memref.load %arg11[%c38] : memref<98xf32, #tpu.memory_space<smem>>
    %546 = vector.broadcast %545 : f32 to vector<4x1xf32>
    %547 = arith.mulf %546, %238 : vector<4x1xf32>
    %c87 = arith.constant 87 : index
    %548 = memref.load %arg11[%c87] : memref<98xf32, #tpu.memory_space<smem>>
    %549 = vector.broadcast %548 : f32 to vector<4x1xf32>
    %550 = arith.mulf %549, %240 : vector<4x1xf32>
    %551 = arith.addf %547, %550 : vector<4x1xf32>
    %552 = vector.broadcast %551 : vector<4x1xf32> to vector<4x256xf32>
    %553 = arith.mulf %552, %544 : vector<4x256xf32>
    %554 = arith.addf %543, %553 : vector<4x256xf32>
    %c0_227 = arith.constant 0 : index
    %c176 = arith.constant 176 : index
    %555 = vector.load %arg14[%c0_227, %c176] : memref<64x512xf32, #tpu.memory_space<vmem>>, vector<4x256xf32>
    %c45 = arith.constant 45 : index
    %556 = memref.load %arg11[%c45] : memref<98xf32, #tpu.memory_space<smem>>
    %557 = vector.broadcast %556 : f32 to vector<4x1xf32>
    %558 = arith.mulf %557, %238 : vector<4x1xf32>
    %c94_228 = arith.constant 94 : index
    %559 = memref.load %arg11[%c94_228] : memref<98xf32, #tpu.memory_space<smem>>
    %560 = vector.broadcast %559 : f32 to vector<4x1xf32>
    %561 = arith.mulf %560, %240 : vector<4x1xf32>
    %562 = arith.addf %558, %561 : vector<4x1xf32>
    %563 = vector.broadcast %562 : vector<4x1xf32> to vector<4x256xf32>
    %564 = arith.mulf %563, %555 : vector<4x256xf32>
    %565 = arith.addf %554, %564 : vector<4x256xf32>
    %566 = arith.addf %487, %565 : vector<4x256xf32>
    %cst_229 = arith.constant 0.000000e+00 : f32
    %567 = vector.broadcast %cst_229 : f32 to vector<4x256xf32>
    %c0_230 = arith.constant 0 : index
    %c81 = arith.constant 81 : index
    %568 = vector.load %arg14[%c0_230, %c81] : memref<64x512xf32, #tpu.memory_space<vmem>>, vector<4x256xf32>
    %c4_231 = arith.constant 4 : index
    %569 = memref.load %arg11[%c4_231] : memref<98xf32, #tpu.memory_space<smem>>
    %570 = vector.broadcast %569 : f32 to vector<4x1xf32>
    %571 = arith.mulf %570, %238 : vector<4x1xf32>
    %c53 = arith.constant 53 : index
    %572 = memref.load %arg11[%c53] : memref<98xf32, #tpu.memory_space<smem>>
    %573 = vector.broadcast %572 : f32 to vector<4x1xf32>
    %574 = arith.mulf %573, %240 : vector<4x1xf32>
    %575 = arith.addf %571, %574 : vector<4x1xf32>
    %576 = vector.broadcast %575 : vector<4x1xf32> to vector<4x256xf32>
    %577 = arith.mulf %576, %568 : vector<4x256xf32>
    %578 = arith.addf %567, %577 : vector<4x256xf32>
    %c0_232 = arith.constant 0 : index
    %c97 = arith.constant 97 : index
    %579 = vector.load %arg14[%c0_232, %c97] : memref<64x512xf32, #tpu.memory_space<vmem>>, vector<4x256xf32>
    %c11 = arith.constant 11 : index
    %580 = memref.load %arg11[%c11] : memref<98xf32, #tpu.memory_space<smem>>
    %581 = vector.broadcast %580 : f32 to vector<4x1xf32>
    %582 = arith.mulf %581, %238 : vector<4x1xf32>
    %c60 = arith.constant 60 : index
    %583 = memref.load %arg11[%c60] : memref<98xf32, #tpu.memory_space<smem>>
    %584 = vector.broadcast %583 : f32 to vector<4x1xf32>
    %585 = arith.mulf %584, %240 : vector<4x1xf32>
    %586 = arith.addf %582, %585 : vector<4x1xf32>
    %587 = vector.broadcast %586 : vector<4x1xf32> to vector<4x256xf32>
    %588 = arith.mulf %587, %579 : vector<4x256xf32>
    %589 = arith.addf %578, %588 : vector<4x256xf32>
    %c0_233 = arith.constant 0 : index
    %c113_234 = arith.constant 113 : index
    %590 = vector.load %arg14[%c0_233, %c113_234] : memref<64x512xf32, #tpu.memory_space<vmem>>, vector<4x256xf32>
    %c18 = arith.constant 18 : index
    %591 = memref.load %arg11[%c18] : memref<98xf32, #tpu.memory_space<smem>>
    %592 = vector.broadcast %591 : f32 to vector<4x1xf32>
    %593 = arith.mulf %592, %238 : vector<4x1xf32>
    %c67 = arith.constant 67 : index
    %594 = memref.load %arg11[%c67] : memref<98xf32, #tpu.memory_space<smem>>
    %595 = vector.broadcast %594 : f32 to vector<4x1xf32>
    %596 = arith.mulf %595, %240 : vector<4x1xf32>
    %597 = arith.addf %593, %596 : vector<4x1xf32>
    %598 = vector.broadcast %597 : vector<4x1xf32> to vector<4x256xf32>
    %599 = arith.mulf %598, %590 : vector<4x256xf32>
    %600 = arith.addf %589, %599 : vector<4x256xf32>
    %c0_235 = arith.constant 0 : index
    %c129_236 = arith.constant 129 : index
    %601 = vector.load %arg14[%c0_235, %c129_236] : memref<64x512xf32, #tpu.memory_space<vmem>>, vector<4x256xf32>
    %c25 = arith.constant 25 : index
    %602 = memref.load %arg11[%c25] : memref<98xf32, #tpu.memory_space<smem>>
    %603 = vector.broadcast %602 : f32 to vector<4x1xf32>
    %604 = arith.mulf %603, %238 : vector<4x1xf32>
    %c74 = arith.constant 74 : index
    %605 = memref.load %arg11[%c74] : memref<98xf32, #tpu.memory_space<smem>>
    %606 = vector.broadcast %605 : f32 to vector<4x1xf32>
    %607 = arith.mulf %606, %240 : vector<4x1xf32>
    %608 = arith.addf %604, %607 : vector<4x1xf32>
    %609 = vector.broadcast %608 : vector<4x1xf32> to vector<4x256xf32>
    %610 = arith.mulf %609, %601 : vector<4x256xf32>
    %611 = arith.addf %600, %610 : vector<4x256xf32>
    %c0_237 = arith.constant 0 : index
    %c145_238 = arith.constant 145 : index
    %612 = vector.load %arg14[%c0_237, %c145_238] : memref<64x512xf32, #tpu.memory_space<vmem>>, vector<4x256xf32>
    %c32_239 = arith.constant 32 : index
    %613 = memref.load %arg11[%c32_239] : memref<98xf32, #tpu.memory_space<smem>>
    %614 = vector.broadcast %613 : f32 to vector<4x1xf32>
    %615 = arith.mulf %614, %238 : vector<4x1xf32>
    %c81_240 = arith.constant 81 : index
    %616 = memref.load %arg11[%c81_240] : memref<98xf32, #tpu.memory_space<smem>>
    %617 = vector.broadcast %616 : f32 to vector<4x1xf32>
    %618 = arith.mulf %617, %240 : vector<4x1xf32>
    %619 = arith.addf %615, %618 : vector<4x1xf32>
    %620 = vector.broadcast %619 : vector<4x1xf32> to vector<4x256xf32>
    %621 = arith.mulf %620, %612 : vector<4x256xf32>
    %622 = arith.addf %611, %621 : vector<4x256xf32>
    %c0_241 = arith.constant 0 : index
    %c161 = arith.constant 161 : index
    %623 = vector.load %arg14[%c0_241, %c161] : memref<64x512xf32, #tpu.memory_space<vmem>>, vector<4x256xf32>
    %c39 = arith.constant 39 : index
    %624 = memref.load %arg11[%c39] : memref<98xf32, #tpu.memory_space<smem>>
    %625 = vector.broadcast %624 : f32 to vector<4x1xf32>
    %626 = arith.mulf %625, %238 : vector<4x1xf32>
    %c88 = arith.constant 88 : index
    %627 = memref.load %arg11[%c88] : memref<98xf32, #tpu.memory_space<smem>>
    %628 = vector.broadcast %627 : f32 to vector<4x1xf32>
    %629 = arith.mulf %628, %240 : vector<4x1xf32>
    %630 = arith.addf %626, %629 : vector<4x1xf32>
    %631 = vector.broadcast %630 : vector<4x1xf32> to vector<4x256xf32>
    %632 = arith.mulf %631, %623 : vector<4x256xf32>
    %633 = arith.addf %622, %632 : vector<4x256xf32>
    %c0_242 = arith.constant 0 : index
    %c177 = arith.constant 177 : index
    %634 = vector.load %arg14[%c0_242, %c177] : memref<64x512xf32, #tpu.memory_space<vmem>>, vector<4x256xf32>
    %c46 = arith.constant 46 : index
    %635 = memref.load %arg11[%c46] : memref<98xf32, #tpu.memory_space<smem>>
    %636 = vector.broadcast %635 : f32 to vector<4x1xf32>
    %637 = arith.mulf %636, %238 : vector<4x1xf32>
    %c95_243 = arith.constant 95 : index
    %638 = memref.load %arg11[%c95_243] : memref<98xf32, #tpu.memory_space<smem>>
    %639 = vector.broadcast %638 : f32 to vector<4x1xf32>
    %640 = arith.mulf %639, %240 : vector<4x1xf32>
    %641 = arith.addf %637, %640 : vector<4x1xf32>
    %642 = vector.broadcast %641 : vector<4x1xf32> to vector<4x256xf32>
    %643 = arith.mulf %642, %634 : vector<4x256xf32>
    %644 = arith.addf %633, %643 : vector<4x256xf32>
    %c4_244 = arith.constant 4 : index
    %c0_245 = arith.constant 0 : index
    %645 = vector.load %arg10[%c4_244, %c0_245] : memref<7x256xf32, #tpu.memory_space<vmem>>, vector<1x256xf32>
    %646 = vector.broadcast %645 : vector<1x256xf32> to vector<4x256xf32>
    %647 = arith.mulf %644, %646 : vector<4x256xf32>
    %648 = arith.addf %566, %647 : vector<4x256xf32>
    %cst_246 = arith.constant 0.000000e+00 : f32
    %649 = vector.broadcast %cst_246 : f32 to vector<4x256xf32>
    %c0_247 = arith.constant 0 : index
    %c82 = arith.constant 82 : index
    %650 = vector.load %arg14[%c0_247, %c82] : memref<64x512xf32, #tpu.memory_space<vmem>>, vector<4x256xf32>
    %c5 = arith.constant 5 : index
    %651 = memref.load %arg11[%c5] : memref<98xf32, #tpu.memory_space<smem>>
    %652 = vector.broadcast %651 : f32 to vector<4x1xf32>
    %653 = arith.mulf %652, %238 : vector<4x1xf32>
    %c54 = arith.constant 54 : index
    %654 = memref.load %arg11[%c54] : memref<98xf32, #tpu.memory_space<smem>>
    %655 = vector.broadcast %654 : f32 to vector<4x1xf32>
    %656 = arith.mulf %655, %240 : vector<4x1xf32>
    %657 = arith.addf %653, %656 : vector<4x1xf32>
    %658 = vector.broadcast %657 : vector<4x1xf32> to vector<4x256xf32>
    %659 = arith.mulf %658, %650 : vector<4x256xf32>
    %660 = arith.addf %649, %659 : vector<4x256xf32>
    %c0_248 = arith.constant 0 : index
    %c98 = arith.constant 98 : index
    %661 = vector.load %arg14[%c0_248, %c98] : memref<64x512xf32, #tpu.memory_space<vmem>>, vector<4x256xf32>
    %c12 = arith.constant 12 : index
    %662 = memref.load %arg11[%c12] : memref<98xf32, #tpu.memory_space<smem>>
    %663 = vector.broadcast %662 : f32 to vector<4x1xf32>
    %664 = arith.mulf %663, %238 : vector<4x1xf32>
    %c61 = arith.constant 61 : index
    %665 = memref.load %arg11[%c61] : memref<98xf32, #tpu.memory_space<smem>>
    %666 = vector.broadcast %665 : f32 to vector<4x1xf32>
    %667 = arith.mulf %666, %240 : vector<4x1xf32>
    %668 = arith.addf %664, %667 : vector<4x1xf32>
    %669 = vector.broadcast %668 : vector<4x1xf32> to vector<4x256xf32>
    %670 = arith.mulf %669, %661 : vector<4x256xf32>
    %671 = arith.addf %660, %670 : vector<4x256xf32>
    %c0_249 = arith.constant 0 : index
    %c114 = arith.constant 114 : index
    %672 = vector.load %arg14[%c0_249, %c114] : memref<64x512xf32, #tpu.memory_space<vmem>>, vector<4x256xf32>
    %c19 = arith.constant 19 : index
    %673 = memref.load %arg11[%c19] : memref<98xf32, #tpu.memory_space<smem>>
    %674 = vector.broadcast %673 : f32 to vector<4x1xf32>
    %675 = arith.mulf %674, %238 : vector<4x1xf32>
    %c68 = arith.constant 68 : index
    %676 = memref.load %arg11[%c68] : memref<98xf32, #tpu.memory_space<smem>>
    %677 = vector.broadcast %676 : f32 to vector<4x1xf32>
    %678 = arith.mulf %677, %240 : vector<4x1xf32>
    %679 = arith.addf %675, %678 : vector<4x1xf32>
    %680 = vector.broadcast %679 : vector<4x1xf32> to vector<4x256xf32>
    %681 = arith.mulf %680, %672 : vector<4x256xf32>
    %682 = arith.addf %671, %681 : vector<4x256xf32>
    %c0_250 = arith.constant 0 : index
    %c130 = arith.constant 130 : index
    %683 = vector.load %arg14[%c0_250, %c130] : memref<64x512xf32, #tpu.memory_space<vmem>>, vector<4x256xf32>
    %c26 = arith.constant 26 : index
    %684 = memref.load %arg11[%c26] : memref<98xf32, #tpu.memory_space<smem>>
    %685 = vector.broadcast %684 : f32 to vector<4x1xf32>
    %686 = arith.mulf %685, %238 : vector<4x1xf32>
    %c75 = arith.constant 75 : index
    %687 = memref.load %arg11[%c75] : memref<98xf32, #tpu.memory_space<smem>>
    %688 = vector.broadcast %687 : f32 to vector<4x1xf32>
    %689 = arith.mulf %688, %240 : vector<4x1xf32>
    %690 = arith.addf %686, %689 : vector<4x1xf32>
    %691 = vector.broadcast %690 : vector<4x1xf32> to vector<4x256xf32>
    %692 = arith.mulf %691, %683 : vector<4x256xf32>
    %693 = arith.addf %682, %692 : vector<4x256xf32>
    %c0_251 = arith.constant 0 : index
    %c146 = arith.constant 146 : index
    %694 = vector.load %arg14[%c0_251, %c146] : memref<64x512xf32, #tpu.memory_space<vmem>>, vector<4x256xf32>
    %c33 = arith.constant 33 : index
    %695 = memref.load %arg11[%c33] : memref<98xf32, #tpu.memory_space<smem>>
    %696 = vector.broadcast %695 : f32 to vector<4x1xf32>
    %697 = arith.mulf %696, %238 : vector<4x1xf32>
    %c82_252 = arith.constant 82 : index
    %698 = memref.load %arg11[%c82_252] : memref<98xf32, #tpu.memory_space<smem>>
    %699 = vector.broadcast %698 : f32 to vector<4x1xf32>
    %700 = arith.mulf %699, %240 : vector<4x1xf32>
    %701 = arith.addf %697, %700 : vector<4x1xf32>
    %702 = vector.broadcast %701 : vector<4x1xf32> to vector<4x256xf32>
    %703 = arith.mulf %702, %694 : vector<4x256xf32>
    %704 = arith.addf %693, %703 : vector<4x256xf32>
    %c0_253 = arith.constant 0 : index
    %c162 = arith.constant 162 : index
    %705 = vector.load %arg14[%c0_253, %c162] : memref<64x512xf32, #tpu.memory_space<vmem>>, vector<4x256xf32>
    %c40 = arith.constant 40 : index
    %706 = memref.load %arg11[%c40] : memref<98xf32, #tpu.memory_space<smem>>
    %707 = vector.broadcast %706 : f32 to vector<4x1xf32>
    %708 = arith.mulf %707, %238 : vector<4x1xf32>
    %c89 = arith.constant 89 : index
    %709 = memref.load %arg11[%c89] : memref<98xf32, #tpu.memory_space<smem>>
    %710 = vector.broadcast %709 : f32 to vector<4x1xf32>
    %711 = arith.mulf %710, %240 : vector<4x1xf32>
    %712 = arith.addf %708, %711 : vector<4x1xf32>
    %713 = vector.broadcast %712 : vector<4x1xf32> to vector<4x256xf32>
    %714 = arith.mulf %713, %705 : vector<4x256xf32>
    %715 = arith.addf %704, %714 : vector<4x256xf32>
    %c0_254 = arith.constant 0 : index
    %c178 = arith.constant 178 : index
    %716 = vector.load %arg14[%c0_254, %c178] : memref<64x512xf32, #tpu.memory_space<vmem>>, vector<4x256xf32>
    %c47 = arith.constant 47 : index
    %717 = memref.load %arg11[%c47] : memref<98xf32, #tpu.memory_space<smem>>
    %718 = vector.broadcast %717 : f32 to vector<4x1xf32>
    %719 = arith.mulf %718, %238 : vector<4x1xf32>
    %c96_255 = arith.constant 96 : index
    %720 = memref.load %arg11[%c96_255] : memref<98xf32, #tpu.memory_space<smem>>
    %721 = vector.broadcast %720 : f32 to vector<4x1xf32>
    %722 = arith.mulf %721, %240 : vector<4x1xf32>
    %723 = arith.addf %719, %722 : vector<4x1xf32>
    %724 = vector.broadcast %723 : vector<4x1xf32> to vector<4x256xf32>
    %725 = arith.mulf %724, %716 : vector<4x256xf32>
    %726 = arith.addf %715, %725 : vector<4x256xf32>
    %c5_256 = arith.constant 5 : index
    %c0_257 = arith.constant 0 : index
    %727 = vector.load %arg10[%c5_256, %c0_257] : memref<7x256xf32, #tpu.memory_space<vmem>>, vector<1x256xf32>
    %728 = vector.broadcast %727 : vector<1x256xf32> to vector<4x256xf32>
    %729 = arith.mulf %726, %728 : vector<4x256xf32>
    %730 = arith.addf %648, %729 : vector<4x256xf32>
    %cst_258 = arith.constant 0.000000e+00 : f32
    %731 = vector.broadcast %cst_258 : f32 to vector<4x256xf32>
    %c0_259 = arith.constant 0 : index
    %c83 = arith.constant 83 : index
    %732 = vector.load %arg14[%c0_259, %c83] : memref<64x512xf32, #tpu.memory_space<vmem>>, vector<4x256xf32>
    %c6 = arith.constant 6 : index
    %733 = memref.load %arg11[%c6] : memref<98xf32, #tpu.memory_space<smem>>
    %734 = vector.broadcast %733 : f32 to vector<4x1xf32>
    %735 = arith.mulf %734, %238 : vector<4x1xf32>
    %c55 = arith.constant 55 : index
    %736 = memref.load %arg11[%c55] : memref<98xf32, #tpu.memory_space<smem>>
    %737 = vector.broadcast %736 : f32 to vector<4x1xf32>
    %738 = arith.mulf %737, %240 : vector<4x1xf32>
    %739 = arith.addf %735, %738 : vector<4x1xf32>
    %740 = vector.broadcast %739 : vector<4x1xf32> to vector<4x256xf32>
    %741 = arith.mulf %740, %732 : vector<4x256xf32>
    %742 = arith.addf %731, %741 : vector<4x256xf32>
    %c0_260 = arith.constant 0 : index
    %c99 = arith.constant 99 : index
    %743 = vector.load %arg14[%c0_260, %c99] : memref<64x512xf32, #tpu.memory_space<vmem>>, vector<4x256xf32>
    %c13 = arith.constant 13 : index
    %744 = memref.load %arg11[%c13] : memref<98xf32, #tpu.memory_space<smem>>
    %745 = vector.broadcast %744 : f32 to vector<4x1xf32>
    %746 = arith.mulf %745, %238 : vector<4x1xf32>
    %c62 = arith.constant 62 : index
    %747 = memref.load %arg11[%c62] : memref<98xf32, #tpu.memory_space<smem>>
    %748 = vector.broadcast %747 : f32 to vector<4x1xf32>
    %749 = arith.mulf %748, %240 : vector<4x1xf32>
    %750 = arith.addf %746, %749 : vector<4x1xf32>
    %751 = vector.broadcast %750 : vector<4x1xf32> to vector<4x256xf32>
    %752 = arith.mulf %751, %743 : vector<4x256xf32>
    %753 = arith.addf %742, %752 : vector<4x256xf32>
    %c0_261 = arith.constant 0 : index
    %c115 = arith.constant 115 : index
    %754 = vector.load %arg14[%c0_261, %c115] : memref<64x512xf32, #tpu.memory_space<vmem>>, vector<4x256xf32>
    %c20 = arith.constant 20 : index
    %755 = memref.load %arg11[%c20] : memref<98xf32, #tpu.memory_space<smem>>
    %756 = vector.broadcast %755 : f32 to vector<4x1xf32>
    %757 = arith.mulf %756, %238 : vector<4x1xf32>
    %c69 = arith.constant 69 : index
    %758 = memref.load %arg11[%c69] : memref<98xf32, #tpu.memory_space<smem>>
    %759 = vector.broadcast %758 : f32 to vector<4x1xf32>
    %760 = arith.mulf %759, %240 : vector<4x1xf32>
    %761 = arith.addf %757, %760 : vector<4x1xf32>
    %762 = vector.broadcast %761 : vector<4x1xf32> to vector<4x256xf32>
    %763 = arith.mulf %762, %754 : vector<4x256xf32>
    %764 = arith.addf %753, %763 : vector<4x256xf32>
    %c0_262 = arith.constant 0 : index
    %c131 = arith.constant 131 : index
    %765 = vector.load %arg14[%c0_262, %c131] : memref<64x512xf32, #tpu.memory_space<vmem>>, vector<4x256xf32>
    %c27 = arith.constant 27 : index
    %766 = memref.load %arg11[%c27] : memref<98xf32, #tpu.memory_space<smem>>
    %767 = vector.broadcast %766 : f32 to vector<4x1xf32>
    %768 = arith.mulf %767, %238 : vector<4x1xf32>
    %c76 = arith.constant 76 : index
    %769 = memref.load %arg11[%c76] : memref<98xf32, #tpu.memory_space<smem>>
    %770 = vector.broadcast %769 : f32 to vector<4x1xf32>
    %771 = arith.mulf %770, %240 : vector<4x1xf32>
    %772 = arith.addf %768, %771 : vector<4x1xf32>
    %773 = vector.broadcast %772 : vector<4x1xf32> to vector<4x256xf32>
    %774 = arith.mulf %773, %765 : vector<4x256xf32>
    %775 = arith.addf %764, %774 : vector<4x256xf32>
    %c0_263 = arith.constant 0 : index
    %c147 = arith.constant 147 : index
    %776 = vector.load %arg14[%c0_263, %c147] : memref<64x512xf32, #tpu.memory_space<vmem>>, vector<4x256xf32>
    %c34 = arith.constant 34 : index
    %777 = memref.load %arg11[%c34] : memref<98xf32, #tpu.memory_space<smem>>
    %778 = vector.broadcast %777 : f32 to vector<4x1xf32>
    %779 = arith.mulf %778, %238 : vector<4x1xf32>
    %c83_264 = arith.constant 83 : index
    %780 = memref.load %arg11[%c83_264] : memref<98xf32, #tpu.memory_space<smem>>
    %781 = vector.broadcast %780 : f32 to vector<4x1xf32>
    %782 = arith.mulf %781, %240 : vector<4x1xf32>
    %783 = arith.addf %779, %782 : vector<4x1xf32>
    %784 = vector.broadcast %783 : vector<4x1xf32> to vector<4x256xf32>
    %785 = arith.mulf %784, %776 : vector<4x256xf32>
    %786 = arith.addf %775, %785 : vector<4x256xf32>
    %c0_265 = arith.constant 0 : index
    %c163 = arith.constant 163 : index
    %787 = vector.load %arg14[%c0_265, %c163] : memref<64x512xf32, #tpu.memory_space<vmem>>, vector<4x256xf32>
    %c41 = arith.constant 41 : index
    %788 = memref.load %arg11[%c41] : memref<98xf32, #tpu.memory_space<smem>>
    %789 = vector.broadcast %788 : f32 to vector<4x1xf32>
    %790 = arith.mulf %789, %238 : vector<4x1xf32>
    %c90 = arith.constant 90 : index
    %791 = memref.load %arg11[%c90] : memref<98xf32, #tpu.memory_space<smem>>
    %792 = vector.broadcast %791 : f32 to vector<4x1xf32>
    %793 = arith.mulf %792, %240 : vector<4x1xf32>
    %794 = arith.addf %790, %793 : vector<4x1xf32>
    %795 = vector.broadcast %794 : vector<4x1xf32> to vector<4x256xf32>
    %796 = arith.mulf %795, %787 : vector<4x256xf32>
    %797 = arith.addf %786, %796 : vector<4x256xf32>
    %c0_266 = arith.constant 0 : index
    %c179 = arith.constant 179 : index
    %798 = vector.load %arg14[%c0_266, %c179] : memref<64x512xf32, #tpu.memory_space<vmem>>, vector<4x256xf32>
    %c48 = arith.constant 48 : index
    %799 = memref.load %arg11[%c48] : memref<98xf32, #tpu.memory_space<smem>>
    %800 = vector.broadcast %799 : f32 to vector<4x1xf32>
    %801 = arith.mulf %800, %238 : vector<4x1xf32>
    %c97_267 = arith.constant 97 : index
    %802 = memref.load %arg11[%c97_267] : memref<98xf32, #tpu.memory_space<smem>>
    %803 = vector.broadcast %802 : f32 to vector<4x1xf32>
    %804 = arith.mulf %803, %240 : vector<4x1xf32>
    %805 = arith.addf %801, %804 : vector<4x1xf32>
    %806 = vector.broadcast %805 : vector<4x1xf32> to vector<4x256xf32>
    %807 = arith.mulf %806, %798 : vector<4x256xf32>
    %808 = arith.addf %797, %807 : vector<4x256xf32>
    %c6_268 = arith.constant 6 : index
    %c0_269 = arith.constant 0 : index
    %809 = vector.load %arg10[%c6_268, %c0_269] : memref<7x256xf32, #tpu.memory_space<vmem>>, vector<1x256xf32>
    %810 = vector.broadcast %809 : vector<1x256xf32> to vector<4x256xf32>
    %811 = arith.mulf %808, %810 : vector<4x256xf32>
    %812 = arith.addf %730, %811 : vector<4x256xf32>
    %813 = vector.extract_strided_slice %812 {offsets = [0, 0], sizes = [2, 256], strides = [1, 1]} : vector<4x256xf32> to vector<2x256xf32>
    %814 = vector.extract_strided_slice %812 {offsets = [2, 0], sizes = [2, 256], strides = [1, 1]} : vector<4x256xf32> to vector<2x256xf32>
    %815 = arith.addf %813, %814 : vector<2x256xf32>
    %816 = arith.negf %815 : vector<2x256xf32>
    %817 = math.exp %816 : vector<2x256xf32>
    %cst_270 = arith.constant 1.000000e+00 : f32
    %818 = vector.broadcast %cst_270 : f32 to vector<2x256xf32>
    %819 = arith.addf %818, %817 : vector<2x256xf32>
    %820 = arith.divf %818, %819 : vector<2x256xf32>
    %821 = vector.extract_strided_slice %820 {offsets = [0, 0], sizes = [1, 256], strides = [1, 1]} : vector<2x256xf32> to vector<1x256xf32>
    %822 = vector.broadcast %821 : vector<1x256xf32> to vector<32x256xf32>
    %823 = arith.mulf %208, %822 : vector<32x256xf32>
    %c0_271 = arith.constant 0 : index
    %c0_272 = arith.constant 0 : index
    %c0_273 = arith.constant 0 : index
    %824 = vector.load %arg1[%c0_271, %c0_272, %c0_273] : memref<2x32x256xf32, #tpu.memory_space<vmem>>, vector<1x32x256xf32>
    %825 = vector.shape_cast %824 : vector<1x32x256xf32> to vector<32x256xf32>
    %826 = arith.addf %823, %825 : vector<32x256xf32>
    %cst_274 = arith.constant 0.000000e+00 : f32
    %827 = vector.broadcast %cst_274 : f32 to vector<32x256xf32>
    %828 = arith.maximumf %826, %827 : vector<32x256xf32>
    %c0_275 = arith.constant 0 : index
    %c0_276 = arith.constant 0 : index
    %c0_277 = arith.constant 0 : index
    %829 = vector.load %arg12[%c0_275, %c0_276, %c0_277] : memref<2x32x256xf32, #tpu.memory_space<vmem>>, vector<1x32x256xf32>
    %830 = vector.shape_cast %829 : vector<1x32x256xf32> to vector<32x256xf32>
    %831 = vector.shape_cast %828 : vector<32x256xf32> to vector<1x32x256xf32>
    tpu.vector_store %arg12[%c0_275, %c0_276, %c0_277], %831 {strides = array<i32>} : memref<2x32x256xf32, #tpu.memory_space<vmem>>, vector<1x32x256xf32>,
    %832 = vector.extract_strided_slice %820 {offsets = [1, 0], sizes = [1, 256], strides = [1, 1]} : vector<2x256xf32> to vector<1x256xf32>
    %833 = vector.broadcast %832 : vector<1x256xf32> to vector<32x256xf32>
    %834 = arith.mulf %225, %833 : vector<32x256xf32>
    %c1_278 = arith.constant 1 : index
    %c0_279 = arith.constant 0 : index
    %c0_280 = arith.constant 0 : index
    %835 = vector.load %arg1[%c1_278, %c0_279, %c0_280] : memref<2x32x256xf32, #tpu.memory_space<vmem>>, vector<1x32x256xf32>
    %836 = vector.shape_cast %835 : vector<1x32x256xf32> to vector<32x256xf32>
    %837 = arith.addf %834, %836 : vector<32x256xf32>
    %cst_281 = arith.constant 0.000000e+00 : f32
    %838 = vector.broadcast %cst_281 : f32 to vector<32x256xf32>
    %839 = arith.maximumf %837, %838 : vector<32x256xf32>
    %c1_282 = arith.constant 1 : index
    %c0_283 = arith.constant 0 : index
    %c0_284 = arith.constant 0 : index
    %840 = vector.load %arg12[%c1_282, %c0_283, %c0_284] : memref<2x32x256xf32, #tpu.memory_space<vmem>>, vector<1x32x256xf32>
    %841 = vector.shape_cast %840 : vector<1x32x256xf32> to vector<32x256xf32>
    %842 = vector.shape_cast %839 : vector<32x256xf32> to vector<1x32x256xf32>
    tpu.vector_store %arg12[%c1_282, %c0_283, %c0_284], %842 {strides = array<i32>} : memref<2x32x256xf32, #tpu.memory_space<vmem>>, vector<1x32x256xf32>,
    return
  }
  func.func @transform_0(%arg0: i32) -> (i32, i32, i32) {
    %c0_i32 = arith.constant 0 : i32
    %c0_i32_0 = arith.constant 0 : i32
    %c0_i32_1 = arith.constant 0 : i32
    return %arg0, %c0_i32, %c0_i32_0 : i32, i32, i32
  }
  func.func @transform_1(%arg0: i32) -> (i32, i32) {
    %c0_i32 = arith.constant 0 : i32
    %c0_i32_0 = arith.constant 0 : i32
    %c0_i32_1 = arith.constant 0 : i32
    return %c0_i32, %c0_i32_0 : i32, i32
  }
  func.func @transform_2(%arg0: i32) -> (i32, i32) {
    %c0_i32 = arith.constant 0 : i32
    %c0_i32_0 = arith.constant 0 : i32
    %c0_i32_1 = arith.constant 0 : i32
    return %c0_i32, %c0_i32_0 : i32, i32
  }
  func.func @transform_3(%arg0: i32) -> (i32, i32) {
    %c0_i32 = arith.constant 0 : i32
    %c0_i32_0 = arith.constant 0 : i32
    %c0_i32_1 = arith.constant 0 : i32
    return %c0_i32, %c0_i32_0 : i32, i32
  }
  func.func @transform_4(%arg0: i32) -> (i32, i32) {
    %c0_i32 = arith.constant 0 : i32
    %c0_i32_0 = arith.constant 0 : i32
    %c0_i32_1 = arith.constant 0 : i32
    return %c0_i32, %c0_i32_0 : i32, i32
  }
  func.func @transform_5(%arg0: i32) -> (i32, i32) {
    %c0_i32 = arith.constant 0 : i32
    %c0_i32_0 = arith.constant 0 : i32
    %c0_i32_1 = arith.constant 0 : i32
    return %c0_i32, %c0_i32_0 : i32, i32
  }
  func.func @transform_6(%arg0: i32) -> (i32, i32) {
    %c0_i32 = arith.constant 0 : i32
    %c0_i32_0 = arith.constant 0 : i32
    %c0_i32_1 = arith.constant 0 : i32
    return %c0_i32, %c0_i32_0 : i32, i32
  }
  func.func @transform_7(%arg0: i32) -> (i32, i32) {
    %c0_i32 = arith.constant 0 : i32
    %c0_i32_0 = arith.constant 0 : i32
    %c0_i32_1 = arith.constant 0 : i32
    return %c0_i32, %c0_i32_0 : i32, i32
  }
  func.func @transform_8(%arg0: i32) -> (i32, i32) {
    %c0_i32 = arith.constant 0 : i32
    %c0_i32_0 = arith.constant 0 : i32
    %c0_i32_1 = arith.constant 0 : i32
    return %c0_i32, %c0_i32_0 : i32, i32
  }
  func.func @transform_9(%arg0: i32) -> (i32, i32) {
    %c0_i32 = arith.constant 0 : i32
    %c0_i32_0 = arith.constant 0 : i32
    %c0_i32_1 = arith.constant 0 : i32
    return %c0_i32, %c0_i32_0 : i32, i32
  }
  func.func @transform_10(%arg0: i32) -> i32 {
    %c0_i32 = arith.constant 0 : i32
    %c0_i32_0 = arith.constant 0 : i32
    return %c0_i32 : i32
  }
  func.func @transform_11(%arg0: i32) -> (i32, i32, i32) {
    %c0_i32 = arith.constant 0 : i32
    %c0_i32_0 = arith.constant 0 : i32
    %c0_i32_1 = arith.constant 0 : i32
    return %arg0, %c0_i32, %c0_i32_0 : i32, i32, i32
  }
}

</mosaic_0001>

<bundles_post_ra>
// kernel: rescbam_forward.1
= control target key start
LH: loop header
LB: loop body
LE: loop exit
PB: predicated region body
PF: predicated region fallthrough
CT: control target
= control target key end

     0   :  { %16 = vsyncpa [#allocation5], 0  ;;  %s6057_s17 = smov 0   ;;  %s9672_s0 = inlined_call_operand.vmem [shape: f32[4,32,256], index: 0, kind: input, shape index: {}]   ;;  %s9673_s1 = inlined_call_operand.vmem [shape: bf16[32,288], index: 1, kind: input, shape index: {}]   ;;  %s9674_s2 = inlined_call_operand.vmem [shape: f32[32,1], index: 2, kind: input, shape index: {}]   ;;  %s9675_s3 = inlined_call_operand.vmem [shape: f32[32,1], index: 3, kind: input, shape index: {}]   ;;  %s9676_s4 = inlined_call_operand.vmem [shape: bf16[32,288], index: 4, kind: input, shape index: {}]   ;;  %s9677_s5 = inlined_call_operand.vmem [shape: f32[32,1], index: 5, kind: input, shape index: {}]   ;;  %s9678_s6 = inlined_call_operand.vmem [shape: f32[32,1], index: 6, kind: input, shape index: {}]   ;;  %s9679_s7 = inlined_call_operand.vmem [shape: f32[2,32], index: 7, kind: input, shape index: {}]   ;;  %s9680_s8 = inlined_call_operand.vmem [shape: f32[32,2], index: 8, kind: input, shape index: {}]   ;;  %s9681_s9 = inlined_call_operand.vmem [shape: f32[7,256], index: 9, kind: input, shape index: {}]   ;;  %s9682_s10 = inlined_call_operand.vmem [shape: f32[98], index: 10, kind: input, shape index: {}]   ;;  %s9683_s11 = inlined_call_operand.vmem [shape: f32[4,32,256], index: 11, kind: output, shape index: {}]  }
   0x1 LB: > { %s5576_s18 = sadd.s32 4294967295, %s5964_s17   ;;  %p5578_p0 = scmp.ge.s32.totalorder %s5964_s17, 1  ;;  %s5964_s17 = sphi %s6057_s17, %s22_s17  }
   0x2   : > { %p289_p1 = scmp.lt.s32.totalorder %s5964_s17, 3  ;;  %s329_s21 = sshll.u32 %s9682_s10, 4  ;;  %s330_s21 = int_to_ptr.vmem [resolvable:$true] %s329_s21 }
   0x3   : > { %p6074_p3 = scmp.eq.s32.totalorder %s5576_s18, 0  ;;  %s5939_s24 = scalar_lea.vmem %s330_s21, 16 }
   0x4   : > { %p6068_p2 = pnand %p5578_p0, %p289_p1  ;;  %p5940_p6 = scmp.ne.s32.totalorder %s330_s21, %s5939_s24 }
   0x5   : > { %p5947_p10 = scmp.lt.s32.totalorder %s330_s21, %s330_s21  ;;  %p5948_p11 = scmp.lt.s32.totalorder %s5939_s24, %s5939_s24 }
   0x6   : > { %p5836_p4 = pneg %p6068_p2 }
   0x7   : > { %p5949_p12 = por %p5948_p11, %p5947_p10 }
   0x8   : > { %p5837_p5 = pnand %p6074_p3, %p5836_p4 }
   0xa   : > { %p5941_p7 = pneg %p5837_p5 }
   0xc   : > { %p5942_p8 = pnand %p5941_p7, %p5940_p6 }
   0xe   : > { %p5943_p9 = pneg %p5942_p8 }
  0x10   : > { %p5950_p13 = pnand %p5949_p12, %p5943_p9 }
  0x12   : > { %5953 = shalt.err (!%p5950_p13)
}
  0x13   : > { %s5966_s25 = smov [#allocation4]   ;;  %352 = sbr.rel (%p6068_p2) target bundleno = 2656 (0xa60), region = 64 }
  0x14   : > { %5839 = dma.vmem_to_smem (!%p5837_p5), %s330_s21, 16, %s5966_s25, [#allocation5]  }
  0x1a   : > { %5959 = dma.done.wait (%p6074_p3), [#allocation5], 16  }
  0x1b   : > { %5961 = vsyncadd (%p6074_p3), [#allocation5], 4294967280 }
  0x1c   : > { %358 = sfence }
  0x1d   : > { %v486_v0 = vlaneseq  ;;  %v5967_v1 = vmov 0.0   ;;  %v5597_v2 = vld [vmem:[%s9681_s9 + $0x2] ss:$8 sm:$0x3]  ;;  %s5583_s30 = sshll.u32 %s5576_s18, 1  ;;  %s5968_s14 = smov 111  }
  0x1e   : > { %410 = vst [vmem:[#allocation3] sm:$0xff] %v5967_v1  ;;  %418 = vst [vmem:[#allocation3 + $0x18] sm:$0xff] %v5967_v1  ;;  %v5598_v4 = vld [vmem:[%s9681_s9 + $0x4] ss:$8 sm:$0x3]  ;;  %p396_p0 = scmp.lt.s32.totalorder %s5583_s30, 3 }
  0x1f   : > { %v6091_v3 = vshrl.u32 %v486_v0, 7  ;;  %v5599_v9 = vld [vmem:[%s9681_s9 + $0x2] ss:$8 sm:$0x3]  ;;  %s5969_s15 = smov 113   ;;  %s9725_s23 = smov 127  }
  0x20   : > { %s10120_s30 = smov (!%p396_p0, %s5583_s30), 3  ;;  %v5600_v15 = vld [vmem:[%s9681_s9 + $0x4] ss:$8 sm:$0x3]  ;;  %s5971_s26 = smov 1   ;;  %v9684_v40 = vmov 0.0|0.0  }
  0x21   : > { %9809 = vst [vmem:[#allocation7_spill] sm:$0xff] %v6091_v3  ;;  %v6099_v5 = vsub.s32 0, %v6091_v3  ;;  %v6102_v6 = vsub.s32 1, %v6091_v3  ;;  %s9724_s16 = sshll.u32 %s10120_s30, 6  ;;  %s5972_s27 = smov 15   ;;  %vm498_vm0 = vcmask 908288  }
  0x22   : > { %s6121_s20 = scalar_lea.vmem %s9672_s0, %s9724_s16  ;;  %v5601_v33 = vld [vmem:[%s9681_s9 + $0x2] ss:$8 sm:$0x3]  ;;  %s5973_s28 = smov 16   ;;  %vm736_vm1 = vcmask 924672   ;;  %vm876_vm2 = vcmask 1039360  }
  0x23   : > { %9810 = vst [vmem:[#allocation8_spill] sm:$0xff] %v6099_v5  ;;  %9811 = vst [vmem:[#allocation9_spill] sm:$0xff] %v6102_v6  ;;  %v489_v7 = vrot.slane %v5597_v2, %v6099_v5  ;;  %v727_v8 = vrot.slane %v5598_v4, %v6099_v5  ;;  %v493_v10 = vrot.slane %v5597_v2, %v6102_v6  ;;  %v6124_v12 = vld [vmem:[%s6121_s20 + $0x8] sm:$0xff]  ;;  %v6127_v13 = vld [vmem:[%s6121_s20 + $0x18] sm:$0xff]  ;;  %s5975_s13 = smov 17   ;;  %vm935_vm3 = vcmask 7168  }
  0x24   : > { %v731_v11 = vrot.slane %v5598_v4, %v6102_v6  ;;  %v6130_v14 = vld [vmem:[%s6121_s20] sm:$0xff]  ;;  %435 = vst [vmem:[#allocation3 + $0x10] sm:$0xff] %v6124_v12  ;;  %437 = vst [vmem:[#allocation3 + $0x30] sm:$0xff] %v6127_v13  ;;  %v6138_v16 = vld [vmem:[%s6121_s20 + $0x10] sm:$0xff]  ;;  %v867_v19 = vrot.slane %v5599_v9, %v6099_v5  ;;  %v871_v20 = vrot.slane %v5599_v9, %v6102_v6  ;;  %vm795_vm4 = vcmask 121856   ;;  %s9729_s18 = smov 112  }
  0x25   : > { %494 = vrot.lane.b32.xlu0 %v489_v7, %s5968_s14  ;;  %732 = vrot.lane.b32.xlu1 %v727_v8, %s5969_s15  ;;  %434 = vst [vmem:[#allocation3 + $0x8] sm:$0xff] %v6130_v14  ;;  %v6142_v17 = vld [vmem:[%s6121_s20 + $0x40] sm:$0xff]  ;;  %v6145_v18 = vld [vmem:[%s6121_s20 + $0x50] sm:$0xff]  ;;  %436 = vst [vmem:[#allocation3 + $0x28] sm:$0xff] %v6138_v16  ;;  %v1039_v31 = vrot.slane %v5600_v15, %v6099_v5  ;;  %v1043_v32 = vrot.slane %v5600_v15, %v6102_v6  ;;  %vm557_vm5 = vcmask 138240   ;;  %vm654_vm6 = vcmask 130048  }
  0x26   : > { %451 = vst [vmem:[#allocation3 + $0x88] sm:$0xff] %v6142_v17  ;;  %453 = vst [vmem:[#allocation3 + $0xa8] sm:$0xff] %v6145_v18  ;;  %v6155_v21 = vld [vmem:[%s6121_s20 + $0x48] sm:$0xff]  ;;  %v6158_v22 = vld [vmem:[%s6121_s20 + $0x58] sm:$0xff]  ;;  %v1183_v34 = vrot.slane %v5601_v33, %v6102_v6  ;;  %v1179_v35 = vrot.slane %v5601_v33, %v6099_v5  ;;  %v6209_v36 = vpack.c.bf16 %v6127_v13, %v6124_v12  ;;  %vm1344_vm7 = vcmask 916480   ;;  %s5643_s12 = sld [smem:[#allocation4 + $0xe]] }
  0x27   : > { %452 = vst [vmem:[#allocation3 + $0x90] sm:$0xff] %v6155_v21  ;;  %454 = vst [vmem:[#allocation3 + $0xb0] sm:$0xff] %v6158_v22  ;;  %v6163_v23 = vld [vmem:[%s6121_s20 + $0x20] sm:$0xff]  ;;  %v6166_v24 = vld [vmem:[%s6121_s20 + $0x30] sm:$0xff]  ;;  %v6213_v37 = vpack.c.bf16 %v6138_v16, %v6130_v14  ;;  %v6221_v38 = vpack.c.bf16 %v6145_v18, %v6142_v17  ;;  %v6233_v42 = vpack.c.bf16 %v6158_v22, %v6155_v21  ;;  %vm1637_vm8 = vcmask 261120   ;;  %s5644_s19 = sld [smem:[#allocation4 + $0x3f]] }
  0x28   : > { %v6169_v25 = vld [vmem:[%s6121_s20 + $0x28] sm:$0xff]  ;;  %438 = vst [vmem:[#allocation3 + $0x48] sm:$0xff] %v6163_v23  ;;  %440 = vst [vmem:[#allocation3 + $0x68] sm:$0xff] %v6166_v24  ;;  %v6174_v26 = vld [vmem:[%s6121_s20 + $0x38] sm:$0xff]  ;;  %v6244_v44 = vpack.c.bf16 %v6166_v24, %v6163_v23  ;;  %vm5978_vm9 = vmmov 0   ;;  %vm3489_vm10 = vcmask 15360  }
  0x29   : > { %496 = vrot.lane.b32.xlu0 %v493_v10, %s5968_s14  ;;  %734 = vrot.lane.b32.xlu1 %v731_v11, %s5969_s15  ;;  %439 = vst [vmem:[#allocation3 + $0x50] sm:$0xff] %v6169_v25  ;;  %v6178_v27 = vld [vmem:[%s6121_s20 + $0x60] sm:$0xff]  ;;  %v6181_v28 = vld [vmem:[%s6121_s20 + $0x70] sm:$0xff]  ;;  %441 = vst [vmem:[#allocation3 + $0x70] sm:$0xff] %v6174_v26  ;;  %v6248_v45 = vpack.c.bf16 %v6174_v26, %v6169_v25  ;;  %vm3494_vm11 = vcmask 23552   ;;  %s5641_s21 = sld [smem:[#allocation4 + $0x7]] }
  0x2a   : > { %455 = vst [vmem:[#allocation3 + $0xc8] sm:$0xff] %v6178_v27  ;;  %457 = vst [vmem:[#allocation3 + $0xe8] sm:$0xff] %v6181_v28  ;;  %v6187_v29 = vld [vmem:[%s6121_s20 + $0x68] sm:$0xff]  ;;  %v6190_v30 = vld [vmem:[%s6121_s20 + $0x78] sm:$0xff]  ;;  %v6256_v46 = vpack.c.bf16 %v6181_v28, %v6178_v27  ;;  %s5642_s22 = sld [smem:[#allocation4 + $0x38]]  ;;  %s5648_s24 = sld [smem:[#allocation4 + $0x4d]] }
  0x2b   : > { %456 = vst [vmem:[#allocation3 + $0xd0] sm:$0xff] %v6187_v29  ;;  %458 = vst [vmem:[#allocation3 + $0xf0] sm:$0xff] %v6190_v30  ;;  %v5602_v39 = vld [vmem:[%s9681_s9 + $0x4] ss:$8 sm:$0x3]  ;;  %v6264_v47 = vpack.c.bf16 %v6190_v30, %v6187_v29  ;;  %s5645_s25 = sld [smem:[#allocation4 + $0x15]] }
  0x2c   : > { %v1416_v41 = vrot.slane %v5602_v39, %v6099_v5  ;;  %v1420_v43 = vrot.slane %v5602_v39, %v6102_v6  ;;  %s8185_s29 = sld [smem:[#allocation4 + $0xf]]  ;;  %s5980_s16 = smov 64   ;;  %vm3590_vm13 = vcmask 1041408   ;;  %vm3852_vm14 = vcmask 1040384  }
  0x2d   : > { %872 = vrot.lane.b32.xlu0 %v867_v19, %s9725_s23  ;;  %874 = vrot.lane.b32.xlu1 %v871_v20, %s9725_s23  ;;  %vm3857_vm15 = vcmask 1042432  }
  0x31   : > { %1044 = vrot.lane.b32.xlu0 %v1039_v31, %s5971_s26  ;;  %1046 = vrot.lane.b32.xlu1 %v1043_v32, %s5971_s26 }
  0x35   : > { %1186 = vrot.lane.b32.xlu1 %v1183_v34, %s5972_s27  ;;  %1184 = vrot.lane.b32.xlu0 %v1179_v35, %s5972_s27 }
  0x39   : > { %646 = vrot.lane.b32.xlu1 %v6209_v36, %s5973_s28  ;;  %644 = vrot.lane.b32.xlu0 %v6213_v37, %s5973_s28 }
  0x3d   : > { %675 = vrot.lane.b32.xlu1 %v6221_v38, %s5973_s28  ;;  %642 = vrot.lane.b32.xlu0 %v9684_v40, %s5973_s28 }
  0x41   : > { %1421 = vrot.lane.b32.xlu1 %v1416_v41, %s5975_s13  ;;  %677 = vrot.lane.b32.xlu0 %v6233_v42, %s5973_s28 }
  0x45   : > { %673 = vrot.lane.b32.xlu1 %v9684_v40, %s5973_s28  ;;  %1423 = vrot.lane.b32.xlu0 %v1420_v43, %s5975_s13 }
  0x49   : > { %650 = vrot.lane.b32.xlu0 %v6244_v44, %s5973_s28  ;;  %652 = vrot.lane.b32.xlu1 %v6248_v45, %s5973_s28 }
  0x4d   : > { %648 = vrot.lane.b32.xlu0 %v9684_v40, %s5973_s28  ;;  %681 = vrot.lane.b32.xlu1 %v6256_v46, %s5973_s28 }
  0x51   : > { %679 = vrot.lane.b32.xlu1 %v9684_v40, %s5973_s28  ;;  %683 = vrot.lane.b32.xlu0 %v6264_v47, %s5973_s28 }
  0x97   : > { %v6270_v48 = vpop.permute.xlu0 %494  ;;  %v6286_v58 = vpop.permute.xlu1 %732 }
  0x98   : > { %v503_v49 = vmul.f32 0.0, %v6270_v48  ;;  %v741_v63 = vmul.f32 0.0, %v6286_v58 }
  0x9a   : > { %v527_v50 = vpack.c.bf16 %v503_v49, %v503_v49  ;;  %v765_v4 = vpack.c.bf16 %v741_v63, %v741_v63 }
  0x9b   : > { %v6273_v51 = vpop.permute.xlu0 %496  ;;  %v6299_v0 = vpop.permute.xlu1 %734 }
  0x9c   : > { %545 = vrot.lane.b32.xlu0 %v527_v50, %s5975_s13  ;;  %v505_v52 = vmul.f32 %v6273_v51, %v6124_v12  ;;  %v508_v53 = vmul.f32 %v6273_v51, %v6127_v13  ;;  %v517_v54 = vmul.f32 %v6155_v21, %v6273_v51  ;;  %v520_v55 = vmul.f32 %v6158_v22, %v6273_v51 }
  0x9d   : > { %v511_v59 = vmul.f32 %v6273_v51, %v6169_v25  ;;  %v514_v60 = vmul.f32 %v6273_v51, %v6174_v26  ;;  %v523_v61 = vmul.f32 %v6187_v29, %v6273_v51  ;;  %v526_v62 = vmul.f32 %v6190_v30, %v6273_v51 }
  0x9e   : > { %v529_v56 = vpack.c.bf16 %v508_v53, %v505_v52  ;;  %v535_v57 = vpack.c.bf16 %v520_v55, %v517_v54  ;;  %v743_v7 = vmul.f32 %v6299_v0, %v6124_v12  ;;  %v746_v8 = vmul.f32 %v6299_v0, %v6127_v13 }
  0x9f   : > { %v532_v1 = vpack.c.bf16 %v514_v60, %v511_v59  ;;  %v538_v2 = vpack.c.bf16 %v526_v62, %v523_v61  ;;  %v755_v9 = vmul.f32 %v6155_v21, %v6299_v0  ;;  %v758_v10 = vmul.f32 %v6158_v22, %v6299_v0  ;;  %v6315_v19 = vpop.permute.xlu0 %872  ;;  %v6327_v34 = vpop.permute.xlu1 %874 }
  0xa0   : > { %549 = vrot.lane.b32.xlu1 %v529_v56, %s5975_s13  ;;  %580 = vrot.lane.b32.xlu0 %v535_v57, %s5975_s13  ;;  %v767_v11 = vpack.c.bf16 %v746_v8, %v743_v7  ;;  %v749_v20 = vmul.f32 %v6299_v0, %v6169_v25  ;;  %v752_v31 = vmul.f32 %v6299_v0, %v6174_v26  ;;  %v881_v35 = vmul.f32 0.0, %v6315_v19 }
  0xa1   : > { %v773_v15 = vpack.c.bf16 %v758_v10, %v755_v9  ;;  %v761_v32 = vmul.f32 %v6187_v29, %v6299_v0  ;;  %v764_v33 = vmul.f32 %v6190_v30, %v6299_v0  ;;  %v883_v43 = vmul.f32 %v6327_v34, %v6124_v12 }
  0xa2   : > { %v770_v39 = vpack.c.bf16 %v752_v31, %v749_v20  ;;  %v886_v49 = vmul.f32 %v6327_v34, %v6127_v13  ;;  %v895_v52 = vmul.f32 %v6155_v21, %v6327_v34  ;;  %v898_v53 = vmul.f32 %v6158_v22, %v6327_v34 }
  0xa3   : > { %v776_v41 = vpack.c.bf16 %v764_v33, %v761_v32  ;;  %v6344_v56 = vpop.permute.xlu0 %1044  ;;  %v889_v57 = vmul.f32 %v6327_v34, %v6169_v25  ;;  %v892_v59 = vmul.f32 %v6327_v34, %v6174_v26  ;;  %v901_v60 = vmul.f32 %v6187_v29, %v6327_v34 }
  0xa4   : > { %576 = vrot.lane.b32.xlu1 %v527_v50, %s5975_s13  ;;  %551 = vrot.lane.b32.xlu0 %v527_v50, %s5975_s13  ;;  %v907_v54 = vpack.c.bf16 %v886_v49, %v883_v43  ;;  %v913_v55 = vpack.c.bf16 %v898_v53, %v895_v52  ;;  %v904_v61 = vmul.f32 %v6190_v30, %v6327_v34 }
  0xa5   : > { %v1053_v62 = vmul.f32 %v6344_v56, %v6130_v14  ;;  %v1056_v63 = vmul.f32 %v6344_v56, %v6138_v16  ;;  %v499_v9 = vsel %vm498_vm0, %v6270_v48, %v6273_v51 }
  0xa6   : > { %v504_v20 = vmul.f32 %v499_v9, %v6130_v14  ;;  %v507_v31 = vmul.f32 %v499_v9, %v6138_v16  ;;  %v516_v51 = vmul.f32 %v6142_v17, %v499_v9  ;;  %v519_v33 = vmul.f32 %v6145_v18, %v499_v9 }
  0xa7   : > { %v1077_v7 = vpack.c.bf16 %v1056_v63, %v1053_v62  ;;  %v522_v43 = vmul.f32 %v6178_v27, %v499_v9  ;;  %v525_v49 = vmul.f32 %v6181_v28, %v499_v9 }
  0xa8   : > { %555 = vrot.lane.b32.xlu1 %v532_v1, %s5975_s13  ;;  %586 = vrot.lane.b32.xlu0 %v538_v2, %s5975_s13  ;;  %v6360_v1 = vpop.permute.xlu1 %1046  ;;  %v910_v2 = vpack.c.bf16 %v892_v59, %v889_v57  ;;  %v528_v32 = vpack.c.bf16 %v507_v31, %v504_v20 }
  0xa9   : > { %v1055_v8 = vmul.f32 0.0, %v6360_v1 }
  0xab   : > { %v6370_v10 = vpack.c.bf16 %v1055_v8, %v1055_v8 }
  0xac   : > { %582 = vrot.lane.b32.xlu1 %v527_v50, %s5975_s13  ;;  %783 = vrot.lane.b32.xlu0 %v765_v4, %s5972_s27  ;;  %v905_v50 = vpack.c.bf16 %v881_v35, %v881_v35  ;;  %v510_v35 = vmul.f32 %v499_v9, %v6163_v23 }
  0xb0   : > { %787 = vrot.lane.b32.xlu1 %v767_v11, %s5972_s27  ;;  %818 = vrot.lane.b32.xlu0 %v773_v15, %s5972_s27  ;;  %v1065_v11 = vmul.f32 %v6142_v17, %v6344_v56  ;;  %v1068_v15 = vmul.f32 %v6145_v18, %v6344_v56 }
  0xb2   : > { %v1083_v48 = vpack.c.bf16 %v1068_v15, %v1065_v11 }
  0xb4   : > { %814 = vrot.lane.b32.xlu1 %v765_v4, %s5972_s27  ;;  %789 = vrot.lane.b32.xlu0 %v765_v4, %s5972_s27 }
  0xb8   : > { %793 = vrot.lane.b32.xlu1 %v770_v39, %s5972_s27  ;;  %824 = vrot.lane.b32.xlu0 %v776_v41, %s5972_s27  ;;  %v513_v39 = vmul.f32 %v499_v9, %v6166_v24  ;;  %v737_v41 = vsel %vm736_vm1, %v6286_v58, %v6299_v0  ;;  %v537_v58 = vpack.c.bf16 %v525_v49, %v522_v43  ;;  %v6410_v9 = vpop.permute.xlu0 %1184 }
  0xb9   : > { %v742_v53 = vmul.f32 %v737_v41, %v6130_v14  ;;  %v754_v0 = vmul.f32 %v6142_v17, %v737_v41  ;;  %v757_v57 = vmul.f32 %v6145_v18, %v737_v41  ;;  %v748_v59 = vmul.f32 %v737_v41, %v6163_v23 }
  0xba   : > { %v531_v52 = vpack.c.bf16 %v513_v39, %v510_v35  ;;  %v760_v62 = vmul.f32 %v6178_v27, %v737_v41  ;;  %v763_v63 = vmul.f32 %v6181_v28, %v737_v41 }
  0xbc   : > { %820 = vrot.lane.b32.xlu1 %v765_v4, %s5972_s27  ;;  %923 = vrot.lane.b32.xlu0 %v905_v50, %s5971_s26  ;;  %v916_v4 = vpack.c.bf16 %v904_v61, %v901_v60  ;;  %v751_v60 = vmul.f32 %v737_v41, %v6166_v24  ;;  %v877_v61 = vsel %vm876_vm2, %v6315_v19, %v6327_v34 }
  0xbd   : > { %v885_v8 = vmul.f32 %v877_v61, %v6138_v16  ;;  %v775_v19 = vpack.c.bf16 %v763_v63, %v760_v62  ;;  %v894_v34 = vmul.f32 %v6142_v17, %v877_v61  ;;  %v897_v15 = vmul.f32 %v6145_v18, %v877_v61 }
  0xbe   : > { %v888_v20 = vmul.f32 %v877_v61, %v6163_v23  ;;  %v891_v31 = vmul.f32 %v877_v61, %v6166_v24 }
  0xbf   : > { %v912_v35 = vpack.c.bf16 %v897_v15, %v894_v34  ;;  %v1074_v34 = vmul.f32 %v6181_v28, %v6344_v56 }
  0xc0   : > { %927 = vrot.lane.b32.xlu1 %v907_v54, %s5971_s26  ;;  %958 = vrot.lane.b32.xlu0 %v913_v55, %s5971_s26  ;;  %v745_v54 = vmul.f32 %v737_v41, %v6138_v16  ;;  %v909_v39 = vpack.c.bf16 %v891_v31, %v888_v20  ;;  %v1187_v41 = vpop.permute.xlu1 %1186 }
  0xc2   : > { %v766_v55 = vpack.c.bf16 %v745_v54, %v742_v53 }
  0xc4   : > { %954 = vrot.lane.b32.xlu1 %v905_v50, %s5971_s26  ;;  %929 = vrot.lane.b32.xlu0 %v905_v50, %s5971_s26 }
  0xc8   : > { %933 = vrot.lane.b32.xlu1 %v910_v2, %s5971_s26  ;;  %964 = vrot.lane.b32.xlu0 %v916_v4, %s5971_s26  ;;  %v772_v2 = vpack.c.bf16 %v757_v57, %v754_v0  ;;  %v769_v4 = vpack.c.bf16 %v751_v60, %v748_v59  ;;  %v1059_v60 = vmul.f32 %v6344_v56, %v6163_v23 }
  0xcc   : > { %960 = vrot.lane.b32.xlu1 %v905_v50, %s5971_s26  ;;  %1095 = vrot.lane.b32.xlu0 %v1077_v7, %s9725_s23  ;;  %v534_v50 = vpack.c.bf16 %v519_v33, %v516_v51  ;;  %v882_v7 = vmul.f32 %v877_v61, %v6130_v14  ;;  %v6423_v51 = vpop.permute.xlu0 %644  ;;  %v903_v33 = vmul.f32 %v6181_v28, %v877_v61 }
  0xce   : > { %v906_v11 = vpack.c.bf16 %v885_v8, %v882_v7  ;;  %v1189_v8 = vsel %vm795_vm4, %v6410_v9, %v1187_v41 }
  0xcf   : > { %v1194_v15 = vmul.f32 %v1189_v8, %v6124_v12  ;;  %v1197_v20 = vmul.f32 %v1189_v8, %v6127_v13 }
  0xd0   : > { %1099 = vrot.lane.b32.xlu1 %v6370_v10, %s9725_s23  ;;  %1130 = vrot.lane.b32.xlu0 %v6370_v10, %s9725_s23  ;;  %v6435_v0 = vpop.permute.xlu0 %642 }
  0xd4   : > { %1126 = vrot.lane.b32.xlu1 %v1083_v48, %s9725_s23  ;;  %547 = vrot.lane.b32.xlu0 %v528_v32, %s5975_s13  ;;  %v1049_v48 = vsel %vm935_vm3, %v6344_v56, %v6360_v1  ;;  %v900_v32 = vmul.f32 %v6178_v27, %v877_v61  ;;  %v1062_v61 = vmul.f32 %v6344_v56, %v6166_v24  ;;  %v6447_v62 = vpop.permute.xlu0 %677 }
  0xd5   : > { %v1054_v43 = vmul.f32 %v1049_v48, %v6124_v12  ;;  %v1057_v49 = vmul.f32 %v1049_v48, %v6127_v13  ;;  %v1069_v53 = vmul.f32 %v6158_v22, %v1049_v48  ;;  %v1060_v54 = vmul.f32 %v1049_v48, %v6169_v25 }
  0xd6   : > { %v915_v1 = vpack.c.bf16 %v903_v33, %v900_v32  ;;  %v1075_v7 = vmul.f32 %v6190_v30, %v1049_v48  ;;  %v1218_v33 = vpack.c.bf16 %v1197_v20, %v1194_v15  ;;  %v1196_v12 = vmul.f32 %v6410_v9, %v6138_v16 }
  0xd7   : > { %v1208_v16 = vmul.f32 %v6145_v18, %v6410_v9 }
  0xd8   : > { %578 = vrot.lane.b32.xlu1 %v534_v50, %s5975_s13  ;;  %553 = vrot.lane.b32.xlu0 %v531_v52, %s5975_s13  ;;  %v1066_v50 = vmul.f32 %v6155_v21, %v1049_v48  ;;  %v1078_v52 = vpack.c.bf16 %v1057_v49, %v1054_v43  ;;  %v6464_v31 = vpop.permute.xlu0 %1423 }
  0xda   : > { %v1084_v57 = vpack.c.bf16 %v1069_v53, %v1066_v50  ;;  %v1200_v53 = vmul.f32 %v1189_v8, %v6169_v25 }
  0xdc   : > { %584 = vrot.lane.b32.xlu1 %v537_v58, %s5975_s13  ;;  %785 = vrot.lane.b32.xlu0 %v766_v55, %s5972_s27  ;;  %v1063_v58 = vmul.f32 %v1049_v48, %v6174_v26  ;;  %v6439_v55 = vpop.permute.xlu1 %646  ;;  %v6477_v13 = vpop.permute.xlu0 %650 }
  0xde   : > { %v1081_v59 = vpack.c.bf16 %v1063_v58, %v1060_v54  ;;  %v1199_v54 = vmul.f32 %v6410_v9, %v6163_v23  ;;  %v1202_v58 = vmul.f32 %v6410_v9, %v6166_v24 }
  0xe0   : > { %816 = vrot.lane.b32.xlu1 %v772_v2, %s5972_s27  ;;  %791 = vrot.lane.b32.xlu0 %v769_v4, %s5972_s27  ;;  %v6449_v63 = vpop.permute.xlu1 %675  ;;  %v1080_v2 = vpack.c.bf16 %v1062_v61, %v1059_v60  ;;  %v1072_v4 = vmul.f32 %v6187_v29, %v1049_v48  ;;  %v1215_v60 = vmul.f32 %v6190_v30, %v1189_v8 }
  0xe4   : > { %822 = vrot.lane.b32.xlu1 %v775_v19, %s5972_s27  ;;  %925 = vrot.lane.b32.xlu0 %v906_v11, %s5971_s26  ;;  %v1071_v19 = vmul.f32 %v6178_v27, %v6344_v56  ;;  %v1087_v11 = vpack.c.bf16 %v1075_v7, %v1072_v4  ;;  %v6466_v48 = vpop.permute.xlu1 %1421  ;;  %v1193_v56 = vmul.f32 %v6410_v9, %v6130_v14 }
  0xe5   : > { %v1205_v14 = vmul.f32 %v6142_v17, %v6410_v9  ;;  %v1214_v4 = vmul.f32 %v6181_v28, %v6410_v9  ;;  %v1426_v15 = vsel %vm557_vm5, %v6466_v48, %v6464_v31 }
  0xe6   : > { %v1086_v32 = vpack.c.bf16 %v1074_v34, %v1071_v19  ;;  %v1217_v49 = vpack.c.bf16 %v1196_v12, %v1193_v56  ;;  %v6580_v56 = vld [vmem:[#allocation3 + $0x28] sm:$0xff] }
  0xe7   : > { %v1223_v17 = vpack.c.bf16 %v1208_v16, %v1205_v14  ;;  %v6595_v14 = vld [vmem:[#allocation3 + $0x90] sm:$0xff] }
  0xe8   : > { %956 = vrot.lane.b32.xlu1 %v912_v35, %s5971_s26  ;;  %931 = vrot.lane.b32.xlu0 %v909_v39, %s5971_s26  ;;  %v1195_v35 = vmul.f32 0.0, %v1187_v41  ;;  %v6479_v39 = vpop.permute.xlu1 %673  ;;  %v1209_v41 = vmul.f32 %v6158_v22, %v1189_v8  ;;  %v9686_v22 = vmov 0   ;;  %v6597_v16 = vld [vmem:[#allocation3 + $0xb0] sm:$0xff] }
  0xe9   : > { %5882 = vset.pattern.permute.xlu1 %v9686_v22  ;;  %5881 = vset.pattern.permute.xlu0 %v9686_v22  ;;  %v6656_v22 = vld [vmem:[#allocation3 + $0xe8] sm:$0xff] }
  0xea   : > { %v1219_v43 = vpack.c.bf16 %v1195_v35, %v1195_v35  ;;  %v6578_v35 = vld [vmem:[#allocation3 + $0x8] sm:$0xff] }
  0xec   : > { %962 = vrot.lane.b32.xlu1 %v915_v1, %s5971_s26  ;;  %1097 = vrot.lane.b32.xlu0 %v1078_v52, %s9725_s23  ;;  %v6489_v1 = vpop.permute.xlu1 %652  ;;  %v6491_v52 = vpop.permute.xlu0 %648 }
  0xf0   : > { %1128 = vrot.lane.b32.xlu1 %v1084_v57, %s9725_s23  ;;  %1103 = vrot.lane.b32.xlu0 %v1081_v59, %s9725_s23  ;;  %v6503_v25 = vpop.permute.xlu1 %681  ;;  %v1220_v57 = vpack.c.bf16 %v1202_v58, %v1199_v54  ;;  %v1212_v59 = vmul.f32 %v6187_v29, %v1189_v8  ;;  %v6610_v54 = vld [vmem:[#allocation3 + $0xa8] sm:$0xff]  ;;  %v6612_v58 = vld [vmem:[#allocation3 + $0x50] sm:$0xff] }
  0xf2   : > { %v1227_v61 = vpack.c.bf16 %v1215_v60, %v1212_v59 }
  0xf4   : > { %1105 = vrot.lane.b32.xlu1 %v6370_v10, %s9725_s23  ;;  %1101 = vrot.lane.b32.xlu0 %v1080_v2, %s9725_s23  ;;  %v6513_v23 = vpop.permute.xlu1 %679  ;;  %v1211_v2 = vmul.f32 %v6178_v27, %v6410_v9 }
  0xf6   : > { %v1226_v7 = vpack.c.bf16 %v1214_v4, %v1211_v2  ;;  %v1445_v2 = vmul.f32 %v6466_v48, %v6610_v54  ;;  %v1437_v4 = vmul.f32 %v1426_v15, %v6612_v58 }
  0xf8   : > { %1134 = vrot.lane.b32.xlu1 %v1087_v11, %s9725_s23  ;;  %1136 = vrot.lane.b32.xlu0 %v6370_v10, %s9725_s23  ;;  %v1206_v10 = vmul.f32 %v6155_v21, %v1189_v8  ;;  %v1203_v21 = vmul.f32 %v1189_v8, %v6174_v26  ;;  %v6507_v26 = vpop.permute.xlu0 %683  ;;  %v6558_v11 = vld [vmem:[#allocation3 + $0x10] sm:$0xff] }
  0xfa   : > { %v1224_v50 = vpack.c.bf16 %v1209_v41, %v1206_v10  ;;  %v1221_v18 = vpack.c.bf16 %v1203_v21, %v1200_v53  ;;  %v1430_v10 = vmul.f32 %v6466_v48, %v6578_v35  ;;  %v1433_v41 = vmul.f32 %v6466_v48, %v6580_v56 }
  0xfb   : > { %v1443_v21 = vmul.f32 %v1426_v15, %v6595_v14 }
  0xfc   : > { %1132 = vrot.lane.b32.xlu1 %v1086_v32, %s9725_s23  ;;  %1237 = vrot.lane.b32.xlu0 %v1218_v33, %s5969_s15  ;;  %v1431_v32 = vmul.f32 %v1426_v15, %v6558_v11  ;;  %v1454_v53 = vpack.c.bf16 %v1433_v41, %v1430_v10 }
 0x100   : > { %1239 = vrot.lane.b32.xlu1 %v1219_v43, %s5969_s15  ;;  %1235 = vrot.lane.b32.xlu0 %v1217_v49, %s5969_s15  ;;  %v1432_v49 = vmul.f32 0.0, %v6464_v31 }
 0x102   : > { %v1456_v31 = vpack.c.bf16 %v1432_v49, %v1432_v49 }
 0x104   : > { %1268 = vrot.lane.b32.xlu1 %v1224_v50, %s5969_s15  ;;  %1270 = vrot.lane.b32.xlu0 %v1219_v43, %s5969_s15 }
 0x108   : > { %1266 = vrot.lane.b32.xlu1 %v1223_v17, %s5969_s15  ;;  %1243 = vrot.lane.b32.xlu0 %v1221_v18, %s5969_s15  ;;  %v1446_v17 = vmul.f32 %v1426_v15, %v6597_v16  ;;  %v6608_v18 = vld [vmem:[#allocation3 + $0x88] sm:$0xff] }
 0x10c   : > { %1245 = vrot.lane.b32.xlu1 %v1219_v43, %s5969_s15  ;;  %1241 = vrot.lane.b32.xlu0 %v1220_v57, %s5969_s15  ;;  %v6614_v57 = vld [vmem:[#allocation3 + $0x70] sm:$0xff] }
 0x10e   : > { %v6515_v24 = vpop.permute.xlu0 %545 }
 0x110   : > { %1274 = vrot.lane.b32.xlu1 %v1227_v61, %s5969_s15  ;;  %1276 = vrot.lane.b32.xlu0 %v1219_v43, %s5969_s15  ;;  %v1461_v61 = vpack.c.bf16 %v1446_v17, %v1443_v21  ;;  %v6642_v21 = vld [vmem:[#allocation3 + $0xd0] sm:$0xff] }
 0x111   : > { %v6644_v17 = vld [vmem:[#allocation3 + $0xf0] sm:$0xff] }
 0x112   : > { %v6523_v29 = vpop.permute.xlu1 %549  ;;  %v6525_v30 = vpop.permute.xlu0 %580  ;;  %9812 = vst [vmem:[#allocation10_spill] sm:$0xff] %v6644_v17 }
 0x114   : > { %1272 = vrot.lane.b32.xlu1 %v1226_v7, %s5969_s15  ;;  %1334 = vrot.lane.b32.xlu0 %v6209_v36, %s9729_s18  ;;  %v1440_v7 = vmul.f32 %v1426_v15, %v6614_v57 }
 0x116   : > { %v6530_v8 = vpop.permute.xlu1 %576  ;;  %v6532_v27 = vpop.permute.xlu0 %551  ;;  %v1458_v10 = vpack.c.bf16 %v1440_v7, %v1437_v4  ;;  %v1452_v4 = vmul.f32 %v1426_v15, %v6644_v17  ;;  %v6654_v7 = vld [vmem:[#allocation3 + $0xc8] sm:$0xff] }
 0x118   : > { %1336 = vrot.lane.b32.xlu1 %v9684_v40, %s9729_s18  ;;  %1332 = vrot.lane.b32.xlu0 %v6213_v37, %s9729_s18 }
 0x11a   : > { %v6538_v28 = vpop.permute.xlu1 %555  ;;  %v6540_v9 = vpop.permute.xlu0 %586 }
 0x11c   : > { %1365 = vrot.lane.b32.xlu1 %v6233_v42, %s9729_s18  ;;  %1367 = vrot.lane.b32.xlu0 %v9684_v40, %s9729_s18  ;;  %v6560_v42 = vld [vmem:[#allocation3 + $0x30] sm:$0xff] }
 0x11d   : > { %v1434_v33 = vmul.f32 %v1426_v15, %v6560_v42 }
 0x11e   : > { %v6546_v36 = vpop.permute.xlu1 %582  ;;  %v6548_v19 = vpop.permute.xlu0 %783 }
 0x11f   : > { %v1455_v43 = vpack.c.bf16 %v1434_v33, %v1431_v32  ;;  %v6630_v32 = vld [vmem:[#allocation3 + $0x68] sm:$0xff] }
 0x120   : > { %1363 = vrot.lane.b32.xlu1 %v6221_v38, %s9729_s18  ;;  %1340 = vrot.lane.b32.xlu0 %v6248_v45, %s9729_s18  ;;  %v5893_v38 = vld [vmem:[%s9673_s1 + $0x4] ss:$12 sps:$4 sm:$0xff]  }
 0x121   : > { %1676 = vmatprep.mubr.bf16.mxu0 %v5893_v38  ;;  %1782 = vmatprep.mubr.bf16.mxu1 %v5893_v38  ;;  %v6628_v38 = vld [vmem:[#allocation3 + $0x48] sm:$0xff] }
 0x122   : > { %v6554_v37 = vpop.permute.xlu1 %787  ;;  %v6556_v34 = vpop.permute.xlu0 %818  ;;  %v1436_v41 = vmul.f32 %v6466_v48, %v6628_v38 }
 0x124   : > { %1342 = vrot.lane.b32.xlu1 %v9684_v40, %s9729_s18  ;;  %1338 = vrot.lane.b32.xlu0 %v6244_v44, %s9729_s18 }
 0x126   : > { %v6572_v45 = vpop.permute.xlu1 %814  ;;  %v6574_v20 = vpop.permute.xlu0 %789 }
 0x128   : > { %1371 = vrot.lane.b32.xlu1 %v6264_v47, %s9729_s18  ;;  %1373 = vrot.lane.b32.xlu0 %v9684_v40, %s9729_s18 }
 0x12a   : > { %v6586_v44 = vpop.permute.xlu1 %793  ;;  %v6588_v12 = vpop.permute.xlu0 %824 }
 0x12c   : > { %1369 = vrot.lane.b32.xlu1 %v6256_v46, %s9729_s18  ;;  %1474 = vrot.lane.b32.xlu0 %v1455_v43, %s5968_s14  ;;  %v1442_v46 = vmul.f32 %v6466_v48, %v6608_v18 }
 0x12e   : > { %v6602_v47 = vpop.permute.xlu1 %820  ;;  %v6604_v50 = vpop.permute.xlu0 %923  ;;  %v1460_v49 = vpack.c.bf16 %v1445_v2, %v1442_v46  ;;  %v1449_v2 = vmul.f32 %v1426_v15, %v6642_v21 }
 0x130   : > { %1476 = vrot.lane.b32.xlu1 %v1456_v31, %s5968_s14  ;;  %1472 = vrot.lane.b32.xlu0 %v1454_v53, %s5968_s14  ;;  %v1439_v53 = vmul.f32 %v6466_v48, %v6630_v32  ;;  %v1464_v3 = vpack.c.bf16 %v1452_v4, %v1449_v2 }
 0x132   : > { %v6620_v59 = vpop.permute.xlu1 %927  ;;  %v6622_v60 = vpop.permute.xlu0 %958  ;;  %v1457_v46 = vpack.c.bf16 %v1439_v53, %v1436_v41  ;;  %v1448_v41 = vmul.f32 %v6466_v48, %v6654_v7  ;;  %v1451_v53 = vmul.f32 %v6466_v48, %v6656_v22  ;;  %v1857_v48 = vld [vmem:[%s9674_s2 + $0x8] sm:$0xff] }
 0x134   : > { %1505 = vrot.lane.b32.xlu1 %v1461_v61, %s5968_s14  ;;  %1507 = vrot.lane.b32.xlu0 %v1456_v31, %s5968_s14 }
 0x136   : > { %v6634_v33 = vpop.permute.xlu1 %954  ;;  %v6636_v43 = vpop.permute.xlu0 %929 }
 0x138   : > { %1503 = vrot.lane.b32.xlu1 %v1460_v49, %s5968_s14  ;;  %1480 = vrot.lane.b32.xlu0 %v1458_v10, %s5968_s14 }
 0x13a   : > { %v6648_v61 = vpop.permute.xlu1 %933  ;;  %v6650_v40 = vpop.permute.xlu0 %964 }
 0x13c   : > { %1482 = vrot.lane.b32.xlu1 %v1456_v31, %s5968_s14  ;;  %1478 = vrot.lane.b32.xlu0 %v1457_v46, %s5968_s14  ;;  %v1463_v46 = vpack.c.bf16 %v1451_v53, %v1448_v41 }
 0x13e   : > { %v6660_v49 = vpop.permute.xlu1 %960  ;;  %v6662_v10 = vpop.permute.xlu0 %1095 }
 0x13f   : > { %9813 = vst [vmem:[#allocation11_spill] sm:$0xff] %v6662_v10  ;;  %v1856_v10 = vld [vmem:[%s9674_s2] sm:$0xff] }
 0x140   : > { %1511 = vrot.lane.b32.xlu1 %v1464_v3, %s5968_s14  ;;  %1513 = vrot.lane.b32.xlu0 %v1456_v31, %s5968_s14  ;;  %v1897_v31 = vld [vmem:[%s9675_s3 + $0x8] sm:$0xff] }
 0x142   : > { %v6670_v15 = vpop.permute.xlu1 %1099  ;;  %v6672_v17 = vpop.permute.xlu0 %1130 }
 0x143   : > { %9814 = vst [vmem:[#allocation12_spill] sm:$0xff] %v6672_v17 }
 0x144   : > { %1509 = vrot.lane.b32.xlu1 %v1463_v46, %s5968_s14  ;;  %1862 = vperm.xlu0 %5881, %v1856_v10  }
 0x146   : > { %v6681_v2 = vpop.permute.xlu1 %1126  ;;  %v548_v3 = vpop.permute.xlu0 %547 }
 0x147   : > { %9815 = vst [vmem:[#allocation13_spill] sm:$0xff] %v6681_v2  ;;  %v559_v4 = vsel %vm557_vm5, %v548_v3, %v6523_v29  ;;  %v558_v41 = vsel %vm557_vm5, %v6515_v24, %v548_v3  ;;  %v1896_v24 = vld [vmem:[%s9675_s3] sm:$0xff]  ;;  %v658_v3 = vsel %vm654_vm6, %v6477_v13, %v6489_v1  ;;  %v657_v1 = vsel %vm654_vm6, %v6491_v52, %v6477_v13 }
 0x148   : > { %1644 = vmatprep.subr.bf16.mxu0 %v559_v4  ;;  %1867 = vperm.xlu1 %5882, %v1857_v48   ;;  %v1859_v48 = vld [vmem:[%s9674_s2 + $0x18] sm:$0xff]  ;;  %v1898_v4 = vld [vmem:[%s9675_s3 + $0x10] sm:$0xff]  ;;  %v688_v13 = vsel %vm654_vm6, %v6503_v25, %v6507_v26 }
 0x149   : > { %1645 = vmatpush1.bf16.msra.mxu0 %v558_v41  ;;  %1907 = vperm.xlu0 %5881, %v1897_v31  }
 0x14a   : > { %v579_v10 = vpop.permute.xlu1 %578  ;;  %v554_v53 = vpop.permute.xlu0 %553 }
 0x14b   : > { %v561_v46 = vsel %vm557_vm5, %v554_v53, %v6538_v28  ;;  %v589_v2 = vsel %vm557_vm5, %v579_v10, %v6525_v30  ;;  %v560_v17 = vsel %vm557_vm5, %v6532_v27, %v554_v53  ;;  %v588_v29 = vsel %vm557_vm5, %v6530_v8, %v579_v10  ;;  %v5614_v53 = vld [vmem:[%s9681_s9 + $0x4] ss:$8 sm:$0x3] }
 0x14c   : > { %1646 = vmatprep.subr.bf16.mxu0 %v561_v46  ;;  %1750 = vmatprep.subr.bf16.mxu1 %v589_v2  ;;  %v656_v30 = vsel %vm654_vm6, %v6423_v51, %v6439_v55  ;;  %v1858_v55 = vld [vmem:[%s9674_s2 + $0x10] sm:$0xff]  ;;  %v2235_v26 = vrot.slane %v5614_v53, %v6102_v6 }
 0x14d   : > { %1647 = vmatpush1.bf16.msra.mxu0 %v560_v17  ;;  %1751 = vmatpush1.bf16.msra.mxu1 %v588_v29  ;;  %v655_v17 = vsel %vm654_vm6, %v6435_v0, %v6423_v51  ;;  %v5613_v0 = vld [vmem:[%s9681_s9 + $0x2] ss:$8 sm:$0x3] }
 0x14e   : > { %v585_v27 = vpop.permute.xlu1 %584  ;;  %1648 = vmatprep.subr.bf16.mxu0 %v656_v30  ;;  %v786_v28 = vpop.permute.xlu0 %785  ;;  %1902 = vperm.xlu1 %5882, %v1896_v24   ;;  %v2001_v41 = vrot.slane %v5613_v0, %v6102_v6 }
 0x14f   : > { %v591_v8 = vsel %vm557_vm5, %v585_v27, %v6540_v9  ;;  %v590_v2 = vsel %vm557_vm5, %v6546_v36, %v585_v27  ;;  %1877 = vperm.xlu0 %5881, %v1859_v48   ;;  %v686_v9 = vsel %vm654_vm6, %v6449_v63, %v6447_v62  ;;  %v1899_v36 = vld [vmem:[%s9675_s3 + $0x18] sm:$0xff]  ;;  %v685_v62 = vsel %vm654_vm6, %v6479_v39, %v6449_v63 }
 0x150   : > { %1752 = vmatprep.subr.bf16.mxu1 %v591_v8  ;;  %v797_v10 = vsel %vm795_vm4, %v786_v28, %v6554_v37  ;;  %v1997_v39 = vrot.slane %v5613_v0, %v6099_v5  ;;  %v796_v46 = vsel %vm795_vm4, %v6548_v19, %v786_v28  ;;  %v687_v37 = vsel %vm654_vm6, %v6513_v23, %v6503_v25  ;;  %v5615_v23 = vld [vmem:[%s9681_s9 + $0x2] ss:$8 sm:$0x3] }
 0x151   : > { %1649 = vmatpush1.bf16.msra.mxu0 %v655_v17  ;;  %1753 = vmatpush1.bf16.msra.mxu1 %v590_v2  ;;  %v2231_v25 = vrot.slane %v5614_v53, %v6099_v5 }
 0x152   : > { %v817_v31 = vpop.permute.xlu1 %816  ;;  %1650 = vmatprep.subr.bf16.mxu0 %v658_v3  ;;  %1754 = vmatprep.subr.bf16.mxu1 %v686_v9  ;;  %v792_v51 = vpop.permute.xlu0 %791 }
 0x153   : > { %1872 = vperm.xlu1 %5882, %v1858_v55   ;;  %1917 = vperm.xlu0 %5881, %v1899_v36   ;;  %v799_v29 = vsel %vm795_vm4, %v792_v51, %v6586_v44  ;;  %v827_v24 = vsel %vm795_vm4, %v817_v31, %v6556_v34  ;;  %v798_v30 = vsel %vm795_vm4, %v6574_v20, %v792_v51  ;;  %v5616_v20 = vld [vmem:[%s9681_s9 + $0x4] ss:$8 sm:$0x3] }
 0x154   : > { %v826_v44 = vsel %vm795_vm4, %v6572_v45, %v817_v31  ;;  %v2373_v34 = vrot.slane %v5615_v23, %v6102_v6  ;;  %v2369_v45 = vrot.slane %v5615_v23, %v6099_v5  ;;  %v5617_v31 = vld [vmem:[%s9681_s9 + $0x2] ss:$8 sm:$0x3] }
 0x155   : > { %1651 = vmatpush1.bf16.msra.mxu0 %v657_v1  ;;  %1755 = vmatpush1.bf16.msra.mxu1 %v685_v62  ;;  %v2681_v51 = vrot.slane %v5617_v31, %v6102_v6  ;;  %v2677_v62 = vrot.slane %v5617_v31, %v6099_v5 }
 0x156   : > { %v823_v52 = vpop.permute.xlu1 %822  ;;  %1652 = vmatprep.subr.bf16.mxu0 %v797_v10  ;;  %1756 = vmatprep.subr.bf16.mxu1 %v688_v13  ;;  %v926_v63 = vpop.permute.xlu0 %925 }
 0x157   : > { %1912 = vperm.xlu1 %5882, %v1898_v4   ;;  %2004 = vrot.lane.b32.xlu0 %v2001_v41, %s5968_s14  ;;  %v937_v27 = vsel %vm935_vm3, %v926_v63, %v6620_v59  ;;  %v829_v28 = vsel %vm795_vm4, %v823_v52, %v6588_v12  ;;  %v936_v17 = vsel %vm935_vm3, %v6604_v50, %v926_v63  ;;  %v9818_v41 = vld [vmem:[#allocation12_spill] sm:$0xff] }
 0x158   : > { %v828_v59 = vsel %vm795_vm4, %v6602_v47, %v823_v52  ;;  %v2543_v12 = vrot.slane %v5616_v20, %v6102_v6  ;;  %v995_v50 = vpack.c.bf16 %v6560_v42, %v6558_v11  ;;  %v2539_v47 = vrot.slane %v5616_v20, %v6099_v5 }
 0x159   : > { %1653 = vmatpush1.bf16.msra.mxu0 %v796_v46  ;;  %1757 = vmatpush1.bf16.msra.mxu1 %v687_v37  ;;  %v994_v42 = vpack.c.bf16 %v6580_v56, %v6578_v35  ;;  %v996_v35 = vpack.c.bf16 %v6630_v32, %v6628_v38  ;;  %v998_v56 = vpack.c.bf16 %v6610_v54, %v6608_v18  ;;  %v9817_v54 = vld [vmem:[#allocation11_spill] sm:$0xff] }
 0x15a   : > { %v957_v48 = vpop.permute.xlu1 %956  ;;  %1654 = vmatprep.subr.bf16.mxu0 %v799_v29  ;;  %1758 = vmatprep.subr.bf16.mxu1 %v827_v24  ;;  %v932_v19 = vpop.permute.xlu0 %931  ;;  %v1000_v38 = vpack.c.bf16 %v6656_v22, %v6654_v7  ;;  %v9819_v7 = vld [vmem:[#allocation13_spill] sm:$0xff] }
 0x15b   : > { %2002 = vrot.lane.b32.xlu1 %v1997_v39, %s5968_s14  ;;  %2238 = vrot.lane.b32.xlu0 %v2235_v26, %s5969_s15  ;;  %v939_v55 = vsel %vm935_vm3, %v932_v19, %v6648_v61  ;;  %v967_v3 = vsel %vm935_vm3, %v957_v48, %v6622_v60  ;;  %v938_v61 = vsel %vm935_vm3, %v6636_v43, %v932_v19 }
 0x15c   : > { %v966_v60 = vsel %vm935_vm3, %v6634_v33, %v957_v48  ;;  %v997_v43 = vpack.c.bf16 %v6614_v57, %v6612_v58  ;;  %v999_v33 = vpack.c.bf16 %v6597_v16, %v6595_v14  ;;  %v9816_v14 = vld [vmem:[#allocation10_spill] sm:$0xff] }
 0x15d   : > { %1655 = vmatpush1.bf16.msra.mxu0 %v798_v30  ;;  %1759 = vmatpush1.bf16.msra.mxu1 %v826_v44  ;;  %v1001_v16 = vpack.c.bf16 %v9816_v14, %v6642_v21 }
 0x15e   : > { %v963_v8 = vpop.permute.xlu1 %962  ;;  %1656 = vmatprep.subr.bf16.mxu0 %v937_v27  ;;  %1760 = vmatprep.subr.bf16.mxu1 %v829_v28  ;;  %v1098_v2 = vpop.permute.xlu0 %1097 }
 0x15f   : > { %2236 = vrot.lane.b32.xlu1 %v2231_v25, %s5969_s15  ;;  %2376 = vrot.lane.b32.xlu0 %v2373_v34, %s9725_s23  ;;  %v969_v11 = vsel %vm935_vm3, %v963_v8, %v6650_v40  ;;  %v968_v40 = vsel %vm935_vm3, %v6660_v49, %v963_v8  ;;  %v1109_v49 = vsel %vm876_vm2, %v1098_v2, %v6670_v15 }
 0x160   : > { %v1108_v4 = vsel %vm876_vm2, %v9817_v54, %v1098_v2 }
 0x161   : > { %1657 = vmatpush1.bf16.msra.mxu0 %v936_v17  ;;  %1761 = vmatpush1.bf16.msra.mxu1 %v828_v59 }
 0x162   : > { %v1129_v9 = vpop.permute.xlu1 %1128  ;;  %1658 = vmatprep.subr.bf16.mxu0 %v939_v55  ;;  %1762 = vmatprep.subr.bf16.mxu1 %v967_v3  ;;  %v1104_v36 = vpop.permute.xlu0 %1103 }
 0x163   : > { %2374 = vrot.lane.b32.xlu1 %v2369_v45, %s9725_s23  ;;  %2546 = vrot.lane.b32.xlu0 %v2543_v12, %s5971_s26  ;;  %v1139_v10 = vsel %vm876_vm2, %v1129_v9, %v9818_v41  ;;  %v1138_v52 = vsel %vm876_vm2, %v9819_v7, %v1129_v9 }
 0x165   : > { %1659 = vmatpush1.bf16.msra.mxu0 %v938_v61  ;;  %1763 = vmatpush1.bf16.msra.mxu1 %v966_v60 }
 0x166   : > { %v1106_v0 = vpop.permute.xlu1 %1105  ;;  %1764 = vmatprep.subr.bf16.mxu1 %v969_v11  ;;  %v1102_v1 = vpop.permute.xlu0 %1101  ;;  %1660 = vmatprep.subr.bf16.mxu0 %v995_v50  ;;  %v5891_v11 = vld [vmem:[%s9673_s1] ss:$12 sps:$4 sm:$0xff]  }
 0x167   : > { %2544 = vrot.lane.b32.xlu1 %v2539_v47, %s5971_s26  ;;  %2684 = vrot.lane.b32.xlu0 %v2681_v51, %s5972_s27  ;;  %v1111_v21 = vsel %vm876_vm2, %v1104_v36, %v1106_v0  ;;  %v1110_v22 = vsel %vm876_vm2, %v1102_v1, %v1104_v36 }
 0x169   : > { %1661 = vmatpush1.bf16.msra.mxu0 %v994_v42  ;;  %1765 = vmatpush1.bf16.msra.mxu1 %v968_v40  ;;  %v5894_v42 = vld [vmem:[%s9673_s1 + $0x1c] ss:$12 sps:$4 sm:$0xff]  }
 0x16a   : > { %v1135_v58 = vpop.permute.xlu1 %1134  ;;  %v1137_v57 = vpop.permute.xlu0 %1136  ;;  %1662 = vmatprep.subr.bf16.mxu0 %v997_v43  ;;  %1766 = vmatprep.subr.bf16.mxu1 %v999_v33 }
 0x16b   : > { %2682 = vrot.lane.b32.xlu1 %v2677_v62, %s5972_s27  ;;  %v1141_v39 = vsel %vm876_vm2, %v1135_v58, %v1137_v57 }
 0x16d   : > { %1663 = vmatpush1.bf16.msra.mxu0 %v996_v35  ;;  %1767 = vmatpush1.bf16.msra.mxu1 %v998_v56  ;;  %v5896_v35 = vld [vmem:[%s9673_s1 + $0x18] ss:$12 sps:$4 sm:$0xff]  }
 0x16e   : > { %v1133_v32 = vpop.permute.xlu1 %1132  ;;  %1664 = vmatprep.subr.bf16.mxu0 %v1109_v49  ;;  %v1238_v18 = vpop.permute.xlu0 %1237  ;;  %1768 = vmatprep.subr.bf16.mxu1 %v1001_v16 }
 0x16f   : > { %v1140_v26 = vsel %vm876_vm2, %v1133_v32, %v1135_v58 }
 0x171   : > { %1665 = vmatpush1.bf16.msra.mxu0 %v1108_v4  ;;  %1769 = vmatpush1.bf16.msra.mxu1 %v1000_v38  ;;  %v9820_v38 = vmov 0  }
 0x172   : > { %v1240_v13 = vpop.permute.xlu1 %1239  ;;  %1666 = vmatprep.subr.bf16.mxu0 %v1111_v21  ;;  %1770 = vmatprep.subr.bf16.mxu1 %v1139_v10  ;;  %v1236_v15 = vpop.permute.xlu0 %1235 }
 0x173   : > { %v1249_v63 = vsel %vm736_vm1, %v1238_v18, %v1240_v13  ;;  %v1248_v37 = vsel %vm736_vm1, %v1236_v15, %v1238_v18  ;;  %v5897_v15 = vld [vmem:[%s9673_s1 + $0x8] ss:$12 sps:$4 sm:$0xff]  }
 0x175   : > { %1667 = vmatpush1.bf16.msra.mxu0 %v1110_v22  ;;  %1771 = vmatpush1.bf16.msra.mxu1 %v1138_v52 }
 0x176   : > { %v1269_v53 = vpop.permute.xlu1 %1268  ;;  %1668 = vmatprep.subr.bf16.mxu0 %v1249_v63  ;;  %1772 = vmatprep.subr.bf16.mxu1 %v1141_v39  ;;  %v1271_v46 = vpop.permute.xlu0 %1270 }
 0x177   : > { %v1279_v29 = vsel %vm736_vm1, %v1269_v53, %v1271_v46 }
 0x179   : > { %1669 = vmatpush1.bf16.msra.mxu0 %v1248_v37  ;;  %1773 = vmatpush1.bf16.msra.mxu1 %v1140_v26 }
 0x17a   : > { %v1267_v24 = vpop.permute.xlu1 %1266  ;;  %1774 = vmatprep.subr.bf16.mxu1 %v1279_v29  ;;  %v1244_v48 = vpop.permute.xlu0 %1243 }
 0x17b   : > { %v1278_v19 = vsel %vm736_vm1, %v1267_v24, %v1269_v53  ;;  %v5898_v53 = vld [vmem:[%s9673_s1 + $0x20] ss:$12 sps:$4 sm:$0xff]  }
 0x17d   : > { %1775 = vmatpush1.bf16.msra.mxu1 %v1278_v19 }
 0x17e   : > { %v1246_v25 = vpop.permute.xlu1 %1245  ;;  %v1242_v23 = vpop.permute.xlu0 %1241 }
 0x17f   : > { %v1251_v30 = vsel %vm736_vm1, %v1244_v48, %v1246_v25  ;;  %v1250_v44 = vsel %vm736_vm1, %v1242_v23, %v1244_v48  ;;  %v6893_v48 = vld [vmem:[#allocation3] sm:$0xff] }
 0x180   : > { %1670 = vmatprep.subr.bf16.mxu0 %v1251_v30  ;;  %9821 = vst [vmem:[#allocation10_spill] sm:$0xff] %v6893_v48  ;;  %v5618_v23 = vld [vmem:[%s9681_s9 + $0x4] ss:$8 sm:$0x3] }
 0x181   : > { %1671 = vmatpush1.bf16.msra.mxu0 %v1250_v44  ;;  %v2911_v30 = vrot.slane %v5618_v23, %v6099_v5 }
 0x182   : > { %v1275_v34 = vpop.permute.xlu1 %1274  ;;  %v1277_v27 = vpop.permute.xlu0 %1276 }
 0x183   : > { %v1281_v28 = vsel %vm736_vm1, %v1275_v34, %v1277_v27  ;;  %v2915_v27 = vrot.slane %v5618_v23, %v6102_v6 }
 0x184   : > { %1776 = vmatprep.subr.bf16.mxu1 %v1281_v28 }
 0x186   : > { %v1273_v8 = vpop.permute.xlu1 %1272  ;;  %v1335_v2 = vpop.permute.xlu0 %1334 }
 0x187   : > { %v1280_v45 = vsel %vm736_vm1, %v1273_v8, %v1275_v34  ;;  %v9822_v34 = vmov 0.0|0.0  }
 0x188   : > { %1777 = vmatpush1.bf16.msra.mxu1 %v1280_v45 }
 0x18a   : > { %v1337_v20 = vpop.permute.xlu1 %1336  ;;  %v1333_v17 = vpop.permute.xlu0 %1332 }
 0x18b   : > { %v1346_v59 = vsel %vm1344_vm7, %v1335_v2, %v1337_v20  ;;  %v1345_v12 = vsel %vm1344_vm7, %v1333_v17, %v1335_v2 }
 0x18c   : > { %1672 = vmatprep.subr.bf16.mxu0 %v1346_v59 }
 0x18d   : > { %1673 = vmatpush1.bf16.msra.mxu0 %v1345_v12 }
 0x18e   : > { %v1366_v55 = vpop.permute.xlu1 %1365  ;;  %v1368_v3 = vpop.permute.xlu0 %1367 }
 0x18f   : > { %v1376_v9 = vsel %vm1344_vm7, %v1366_v55, %v1368_v3 }
 0x190   : > { %1778 = vmatprep.subr.bf16.mxu1 %v1376_v9 }
 0x192   : > { %v1364_v36 = vpop.permute.xlu1 %1363  ;;  %v1341_v50 = vpop.permute.xlu0 %1340 }
 0x193   : > { %v1375_v47 = vsel %vm1344_vm7, %v1364_v36, %v1366_v55 }
 0x194   : > { %1779 = vmatpush1.bf16.msra.mxu1 %v1375_v47 }
 0x196   : > { %v1343_v31 = vpop.permute.xlu1 %1342  ;;  %v1339_v61 = vpop.permute.xlu0 %1338 }
 0x197   : > { %v1348_v60 = vsel %vm1344_vm7, %v1341_v50, %v1343_v31  ;;  %v1347_v51 = vsel %vm1344_vm7, %v1339_v61, %v1341_v50 }
 0x198   : > { %1674 = vmatprep.subr.bf16.mxu0 %v1348_v60 }
 0x199   : > { %1675 = vmatpush1.bf16.msra.mxu0 %v1347_v51 }
 0x19a   : > { %v1372_v0 = vpop.permute.xlu1 %1371  ;;  %v1374_v1 = vpop.permute.xlu0 %1373 }
 0x19b   : > { %v1378_v43 = vsel %vm1344_vm7, %v1372_v0, %v1374_v1 }
 0x19c   : > { %1780 = vmatprep.subr.bf16.mxu1 %v1378_v43  ;;  %1677 = vmatmul.mubr.bf16.vlgmr.msra.gmra.mrb[0].mxu0 %v5891_v11 }
 0x19d   : > { %1686 = vmatprep.mubr.bf16.mxu0 %v5894_v42 }
 0x19e   : > { %v1370_v33 = vpop.permute.xlu1 %1369  ;;  %v1475_v62 = vpop.permute.xlu0 %1474 }
 0x19f   : > { %v1377_v40 = vsel %vm1344_vm7, %v1370_v33, %v1372_v0 }
 0x1a0   : > { %1781 = vmatpush1.bf16.msra.mxu1 %v1377_v40 }
 0x1a2   : > { %v1477_v56 = vpop.permute.xlu1 %1476  ;;  %v1473_v58 = vpop.permute.xlu0 %1472 }
 0x1a3   : > { %v1485_v57 = vsel %vm498_vm0, %v1473_v58, %v1475_v62  ;;  %v1486_v14 = vsel %vm498_vm0, %v1475_v62, %v1477_v56  ;;  %1783 = vmatmul.mubr.bf16.vlgmr.msra.gmra.mrb[0].mxu1 %v5891_v11 }
 0x1a4   : > { %1697 = vmatprep.subr.bf16.mxu0 %v1486_v14  ;;  %1687 = vmatmul.mubr.bf16.gmra.mrb[4].mxu0 %v5896_v35 }
 0x1a5   : > { %1698 = vmatpush1.bf16.msra.mxu0 %v1485_v57  ;;  %1792 = vmatprep.mubr.bf16.mxu1 %v5894_v42 }
 0x1a6   : > { %v1506_v16 = vpop.permute.xlu1 %1505  ;;  %v1508_v49 = vpop.permute.xlu0 %1507  ;;  %1729 = vmatprep.mubr.bf16.mxu0 %v9820_v38 }
 0x1a7   : > { %v1516_v32 = vsel %vm498_vm0, %v1506_v16, %v1508_v49 }
 0x1a8   : > { %1803 = vmatprep.subr.bf16.mxu1 %v1516_v32 }
 0x1aa   : > { %v1504_v18 = vpop.permute.xlu1 %1503  ;;  %v1481_v54 = vpop.permute.xlu0 %1480 }
 0x1ab   : > { %v1515_v4 = vsel %vm498_vm0, %v1504_v18, %v1506_v16  ;;  %1793 = vmatmul.mubr.bf16.gmra.mrb[4].mxu1 %v5896_v35 }
 0x1ac   : > { %1804 = vmatpush1.bf16.msra.mxu1 %v1515_v4  ;;  %1835 = vmatprep.mubr.bf16.mxu1 %v9820_v38 }
 0x1ae   : > { %v1483_v21 = vpop.permute.xlu1 %1482  ;;  %v1479_v41 = vpop.permute.xlu0 %1478 }
 0x1af   : > { %v1487_v10 = vsel %vm498_vm0, %v1479_v41, %v1481_v54  ;;  %v1488_v13 = vsel %vm498_vm0, %v1481_v54, %v1483_v21 }
 0x1b0   : > { %1699 = vmatprep.subr.bf16.mxu0 %v1488_v13 }
 0x1b1   : > { %1700 = vmatpush1.bf16.msra.mxu0 %v1487_v10 }
 0x1b2   : > { %v1512_v22 = vpop.permute.xlu1 %1511  ;;  %v1514_v7 = vpop.permute.xlu0 %1513 }
 0x1b3   : > { %v1518_v52 = vsel %vm498_vm0, %v1512_v22, %v1514_v7 }
 0x1b4   : > { %5609 = vmatmul.mubr.msk.bf16.vlgmr.msra.gmra.mrb[0].mxu0 %vm1637_vm8, %v5897_v15  ;;  %1805 = vmatprep.subr.bf16.mxu1 %v1518_v52 }
 0x1b5   : > { %1739 = vmatprep.mubr.bf16.mxu0 %v9820_v38 }
 0x1b6   : > { %v1510_v63 = vpop.permute.xlu1 %1509 }
 0x1b7   : > { %v1517_v39 = vsel %vm498_vm0, %v1510_v63, %v1512_v22 }
 0x1b8   : > { %1806 = vmatpush1.bf16.msra.mxu1 %v1517_v39 }
 0x1bb   : > { %5611 = vmatmul.mubr.msk.bf16.vlgmr.msra.gmra.mrb[0].mxu1 %vm1637_vm8, %v5897_v15 }
 0x1bc   : > { %5610 = vmatmul.mubr.msk.bf16.gmra.mrb[4].mxu0 %vm1637_vm8, %v5898_v53  ;;  %1845 = vmatprep.mubr.bf16.mxu1 %v9820_v38 }
 0x1c3   : > { %5612 = vmatmul.mubr.msk.bf16.gmra.mrb[4].mxu1 %vm1637_vm8, %v5898_v53  ;;  %v6905_v44 = vpop.permute.xlu0 %1862 }
 0x1c7   : > { %v6883_v46 = vpop.permute.xlu1 %1867 }
 0x1c8   : > { %v6915_v2 = vpop.permute.xlu0 %1907 }
 0x1cd   : > { %v6885_v37 = vpop.permute.xlu1 %1902 }
 0x1ce   : > { %v6921_v20 = vpop.permute.xlu0 %1877 }
 0x1d2   : > { %v6887_v26 = vpop.permute.xlu1 %1872  ;;  %v6928_v55 = vpop.permute.xlu0 %1917 }
 0x1d6   : > { %v6889_v29 = vpop.permute.xlu1 %1912  ;;  %v6932_v3 = vpop.permute.xlu0 %2004 }
 0x1da   : > { %v6891_v24 = vpop.permute.xlu1 %2002  ;;  %v6936_v9 = vpop.permute.xlu0 %2238 }
 0x1db   : > { %v2010_v19 = vmul.f32 %v6893_v48, %v6891_v24  ;;  %v6979_v21 = vsel %vm498_vm0, %v6891_v24, %v6932_v3 }
 0x1dd   : > { %v2034_v25 = vpack.c.bf16 %v2010_v19, %v2010_v19 }
 0x1de   : > { %v2237_v28 = vpop.permute.xlu1 %2236  ;;  %v6938_v36 = vpop.permute.xlu0 %2376 }
 0x1df   : > { %2052 = vrot.lane.b32.xlu1 %v2034_v25, %s5975_s13  ;;  %2082 = vrot.lane.b32.xlu0 %v2034_v25, %s5975_s13  ;;  %v2244_v8 = vmul.f32 %v6893_v48, %v2237_v28  ;;  %v6983_v41 = vsel %vm736_vm1, %v2237_v28, %v6936_v9 }
 0x1e1   : > { %v2268_v45 = vpack.c.bf16 %v2244_v8, %v2244_v8 }
 0x1e2   : > { %v2375_v17 = vpop.permute.xlu1 %2374  ;;  %v2547_v50 = vpop.permute.xlu0 %2546 }
 0x1e3   : > { %2058 = vrot.lane.b32.xlu1 %v2034_v25, %s5975_s13  ;;  %2088 = vrot.lane.b32.xlu0 %v2034_v25, %s5975_s13  ;;  %v2382_v59 = vmul.f32 %v6893_v48, %v2375_v17  ;;  %v2566_v47 = vmul.f32 %v6893_v48, %v2547_v50  ;;  %v6990_v15 = vsel %vm876_vm2, %v2375_v17, %v6938_v36 }
 0x1e5   : > { %v2406_v12 = vpack.c.bf16 %v2382_v59, %v2382_v59  ;;  %v2584_v31 = vpack.c.bf16 %v2566_v47, %v2566_v47 }
 0x1e6   : > { %v2685_v61 = vpop.permute.xlu0 %2684  ;;  %v6952_v11 = vpop.permute.xlu1 %2544 }
 0x1e7   : > { %2148 = vrot.lane.b32.xlu1 %v9822_v34, %s5973_s28  ;;  %2916 = vrot.lane.b32.xlu0 %v2911_v30, %s5975_s13  ;;  %v2704_v60 = vmul.f32 %v6893_v48, %v2685_v61  ;;  %v6994_v22 = vsel %vm935_vm3, %v6952_v11, %v2547_v50 }
 0x1e9   : > { %v6946_v51 = vpack.c.bf16 %v2704_v60, %v2704_v60 }
 0x1ea   : > { %v6954_v42 = vpop.permute.xlu1 %2682 }
 0x1eb   : > { %2918 = vrot.lane.b32.xlu1 %v2915_v27, %s5975_s13  ;;  %2178 = vrot.lane.b32.xlu0 %v9822_v34, %s5973_s28  ;;  %9823 = vst [vmem:[#allocation11_spill] sm:$0xff] %v6946_v51  ;;  %v7001_v63 = vsel %vm795_vm4, %v6954_v42, %v2685_v61 }
 0x1ef   : > { %2154 = vrot.lane.b32.xlu1 %v9822_v34, %s5973_s28  ;;  %2184 = vrot.lane.b32.xlu0 %v9822_v34, %s5973_s28 }
 0x1f3   : > { %2286 = vrot.lane.b32.xlu1 %v2268_v45, %s5972_s27  ;;  %2316 = vrot.lane.b32.xlu0 %v2268_v45, %s5972_s27 }
 0x1f7   : > { %2292 = vrot.lane.b32.xlu1 %v2268_v45, %s5972_s27  ;;  %2322 = vrot.lane.b32.xlu0 %v2268_v45, %s5972_s27 }
 0x1fb   : > { %2424 = vrot.lane.b32.xlu1 %v2406_v12, %s5971_s26  ;;  %2454 = vrot.lane.b32.xlu0 %v2406_v12, %s5971_s26 }
 0x1ff   : > { %2430 = vrot.lane.b32.xlu1 %v2406_v12, %s5971_s26  ;;  %2460 = vrot.lane.b32.xlu0 %v2406_v12, %s5971_s26 }
 0x203   : > { %2628 = vrot.lane.b32.xlu1 %v2584_v31, %s9725_s23  ;;  %2598 = vrot.lane.b32.xlu0 %v2584_v31, %s9725_s23 }
 0x207   : > { %2634 = vrot.lane.b32.xlu1 %v2584_v31, %s9725_s23  ;;  %2604 = vrot.lane.b32.xlu0 %v2584_v31, %s9725_s23 }
 0x20b   : > { %2766 = vrot.lane.b32.xlu1 %v6946_v51, %s5969_s15  ;;  %2736 = vrot.lane.b32.xlu0 %v6946_v51, %s5969_s15 }
 0x251   : > { %v6956_v0 = vpop.permute.xlu1 %2052  ;;  %v6958_v1 = vpop.permute.xlu0 %2082 }
 0x252   : > { %9824 = vst [vmem:[#allocation12_spill] sm:$0xff] %v6956_v0  ;;  %9825 = vst [vmem:[#allocation13_spill] sm:$0xff] %v6958_v1 }
 0x255   : > { %v6960_v43 = vpop.permute.xlu1 %2058  ;;  %v6962_v33 = vpop.permute.xlu0 %2088 }
 0x256   : > { %9826 = vst [vmem:[#allocation14_spill] sm:$0xff] %v6960_v43  ;;  %9827 = vst [vmem:[#allocation15_spill] sm:$0xff] %v6962_v33 }
 0x259   : > { %v6964_v62 = vpop.permute.xlu1 %2148  ;;  %v6968_v14 = vpop.permute.xlu0 %2916 }
 0x25a   : > { %9828 = vst [vmem:[#allocation16_spill] sm:$0xff] %v6964_v62 }
 0x25d   : > { %v6972_v18 = vpop.permute.xlu1 %2918 }
 0x25e   : > { %9829 = vst [vmem:[#allocation17_spill] sm:$0xff] %v6972_v18  ;;  %v7006_v39 = vsel %vm557_vm5, %v6968_v14, %v6972_v18 }
 0x287   : > { %v1731_v40 = vpop.f32.mrb[0].mxu0 }
 0x288   : > { %v1880_v35 = vmul.f32 %v6905_v44, %v1731_v40  ;;  %v1733_v56 = vpop.f32.mrb[1].mxu0 }
 0x289   : > { %v1881_v58 = vmul.f32 %v6905_v44, %v1733_v56  ;;  %v1735_v57 = vpop.f32.mrb[2].mxu0 }
 0x28a   : > { %v1920_v16 = vadd.f32 %v6885_v37, %v1880_v35  ;;  %v1884_v49 = vmul.f32 %v6883_v46, %v1735_v57  ;;  %v1737_v32 = vpop.f32.mrb[3].mxu0 }
 0x28b   : > { %v1921_v54 = vadd.f32 %v6885_v37, %v1881_v58  ;;  %v1885_v4 = vmul.f32 %v6883_v46, %v1737_v32 }
 0x28c   : > { %v6985_v10 = vmax.f32 %v1920_v16, 0.0  ;;  %v1924_v13 = vadd.f32 %v6915_v2, %v1884_v49 }
 0x28d   : > { %v6996_v7 = vmax.f32 %v1921_v54, 0.0  ;;  %v1925_v52 = vadd.f32 %v6915_v2, %v1885_v4 }
 0x28e   : > { %1952 = vst [vmem:[#allocation3 + $0x8] sm:$0xff] %v6985_v10  ;;  %v7009_v53 = vmax.f32 %v1924_v13, 0.0  ;;  %v1837_v24 = vpop.f32.mrb[0].mxu1  ;;  %v7013_v19 = vmul.f32 %v6979_v21, %v6985_v10  ;;  %v7017_v25 = vmul.f32 %v6983_v41, %v6985_v10  ;;  %v7021_v23 = vmul.f32 %v6990_v15, %v6985_v10 }
 0x28f   : > { %1953 = vst [vmem:[#allocation3 + $0x10] sm:$0xff] %v6996_v7  ;;  %v7024_v30 = vmax.f32 %v1925_v52, 0.0  ;;  %v1882_v27 = vmul.f32 %v6905_v44, %v1837_v24  ;;  %v1741_v28 = vpop.f32.mrb[4].mxu0  ;;  %v1839_v8 = vpop.f32.mrb[1].mxu1  ;;  %v7029_v45 = vmul.f32 %v6952_v11, %v6985_v10  ;;  %v7033_v17 = vmul.f32 %v6954_v42, %v6985_v10 }
 0x290   : > { %1954 = vst [vmem:[#allocation3 + $0x28] sm:$0xff] %v7009_v53  ;;  %v1888_v59 = vmul.f32 %v6887_v26, %v1741_v28  ;;  %v1883_v12 = vmul.f32 %v6905_v44, %v1839_v8  ;;  %v1743_v50 = vpop.f32.mrb[5].mxu0  ;;  %v1841_v47 = vpop.f32.mrb[2].mxu1  ;;  %v7040_v31 = vpack.c.bf16 %v7009_v53, %v6985_v10  ;;  %v7044_v61 = vmul.f32 %v6979_v21, %v7009_v53 }
 0x291   : > { %1955 = vst [vmem:[#allocation3 + $0x30] sm:$0xff] %v7024_v30  ;;  %v1922_v60 = vadd.f32 %v6885_v37, %v1882_v27  ;;  %v1889_v40 = vmul.f32 %v6887_v26, %v1743_v50  ;;  %v1886_v35 = vmul.f32 %v6883_v46, %v1841_v47  ;;  %v1745_v56 = vpop.f32.mrb[6].mxu0  ;;  %v1843_v44 = vpop.f32.mrb[3].mxu1  ;;  %v7052_v58 = vpack.c.bf16 %v7024_v30, %v6996_v7 }
 0x292   : > { %9830 = vst [vmem:[#allocation18_spill] sm:$0xff] %v7040_v31  ;;  %v1928_v57 = vadd.f32 %v6889_v29, %v1888_v59  ;;  %v1923_v16 = vadd.f32 %v6885_v37, %v1883_v12  ;;  %v1892_v49 = vmul.f32 %v6921_v20, %v1745_v56  ;;  %v1887_v32 = vmul.f32 %v6883_v46, %v1843_v44  ;;  %v1747_v54 = vpop.f32.mrb[7].mxu0 }
 0x293   : > { %9831 = vst [vmem:[#allocation19_spill] sm:$0xff] %v7052_v58  ;;  %2150 = vrot.lane.b32.xlu1 %v7040_v31, %s5973_s28  ;;  %v7060_v4 = vmax.f32 %v1922_v60, 0.0  ;;  %v1929_v13 = vadd.f32 %v6889_v29, %v1889_v40  ;;  %v1926_v52 = vadd.f32 %v6915_v2, %v1886_v35  ;;  %v1893_v24 = vmul.f32 %v6921_v20, %v1747_v54 }
 0x294   : > { %v7065_v27 = vmax.f32 %v1928_v57, 0.0  ;;  %v7067_v28 = vmax.f32 %v1923_v16, 0.0  ;;  %v1932_v37 = vadd.f32 %v6928_v55, %v1892_v49  ;;  %v1927_v46 = vadd.f32 %v6915_v2, %v1887_v32 }
 0x295   : > { %1960 = vst [vmem:[#allocation3 + $0x88] sm:$0xff] %v7060_v4  ;;  %v7072_v8 = vmax.f32 %v1929_v13, 0.0  ;;  %v7074_v59 = vmax.f32 %v1926_v52, 0.0  ;;  %v1933_v12 = vadd.f32 %v6928_v55, %v1893_v24  ;;  %v2035_v50 = vpack.c.bf16 %v7044_v61, %v7013_v19 }
 0x296   : > { %1956 = vst [vmem:[#allocation3 + $0x48] sm:$0xff] %v7065_v27  ;;  %1961 = vst [vmem:[#allocation3 + $0x90] sm:$0xff] %v7067_v28  ;;  %v7081_v47 = vmax.f32 %v1932_v37, 0.0  ;;  %v7083_v60 = vmax.f32 %v1927_v46, 0.0  ;;  %v1847_v2 = vpop.f32.mrb[4].mxu1  ;;  %v2023_v40 = vmul.f32 %v6979_v21, %v7060_v4  ;;  %v2248_v35 = vmul.f32 %v6983_v41, %v7009_v53 }
 0x297   : > { %1957 = vst [vmem:[#allocation3 + $0x50] sm:$0xff] %v7072_v8  ;;  %1962 = vst [vmem:[#allocation3 + $0xa8] sm:$0xff] %v7074_v59  ;;  %v7091_v19 = vmax.f32 %v1933_v12, 0.0  ;;  %v1890_v61 = vmul.f32 %v6887_v26, %v1847_v2  ;;  %v1849_v56 = vpop.f32.mrb[5].mxu1  ;;  %v7096_v44 = vpack.c.bf16 %v7074_v59, %v7060_v4  ;;  %v2026_v57 = vmul.f32 %v6979_v21, %v7074_v59 }
 0x298   : > { %1958 = vst [vmem:[#allocation3 + $0x68] sm:$0xff] %v7081_v47  ;;  %1963 = vst [vmem:[#allocation3 + $0xb0] sm:$0xff] %v7083_v60  ;;  %v1891_v16 = vmul.f32 %v6887_v26, %v1849_v56  ;;  %v1851_v49 = vpop.f32.mrb[6].mxu1  ;;  %v7105_v32 = vpack.c.bf16 %v7083_v60, %v7067_v28  ;;  %v2269_v54 = vpack.c.bf16 %v2248_v35, %v7017_v25 }
 0x299   : > { %9832 = vst [vmem:[#allocation20_spill] sm:$0xff] %v7096_v44  ;;  %v2257_v13 = vmul.f32 %v6983_v41, %v7060_v4  ;;  %1959 = vst [vmem:[#allocation3 + $0x70] sm:$0xff] %v7091_v19  ;;  %v1930_v52 = vadd.f32 %v6889_v29, %v1890_v61  ;;  %v1894_v24 = vmul.f32 %v6921_v20, %v1851_v49  ;;  %v1853_v37 = vpop.f32.mrb[7].mxu1  ;;  %2180 = vrot.lane.b32.xlu0 %v7096_v44, %s5973_s28 }
 0x29a   : > { %9833 = vst [vmem:[#allocation21_spill] sm:$0xff] %v7105_v32  ;;  %v2041_v26 = vpack.c.bf16 %v2026_v57, %v2023_v40  ;;  %v2260_v46 = vmul.f32 %v6983_v41, %v7074_v59  ;;  %v1931_v12 = vadd.f32 %v6889_v29, %v1891_v16  ;;  %v1895_v25 = vmul.f32 %v6921_v20, %v1853_v37 }
 0x29b   : > { %2182 = vrot.lane.b32.xlu1 %v7105_v32, %s5973_s28  ;;  %v2386_v2 = vmul.f32 %v6990_v15, %v7009_v53  ;;  %v7125_v35 = vmul.f32 %v6990_v15, %v7060_v4  ;;  %v7127_v61 = vmax.f32 %v1930_v52, 0.0  ;;  %v1934_v40 = vadd.f32 %v6928_v55, %v1894_v24 }
 0x29c   : > { %v2275_v56 = vpack.c.bf16 %v2260_v46, %v2257_v13  ;;  %v7132_v29 = vmul.f32 %v6990_v15, %v7074_v59  ;;  %v7134_v20 = vmax.f32 %v1931_v12, 0.0  ;;  %v1935_v57 = vadd.f32 %v6928_v55, %v1895_v25 }
 0x29d   : > { %v2407_v16 = vpack.c.bf16 %v2386_v2, %v7021_v23  ;;  %v7140_v49 = vmul.f32 %v6952_v11, %v7009_v53  ;;  %1964 = vst [vmem:[#allocation3 + $0xc8] sm:$0xff] %v7127_v61  ;;  %v7143_v52 = vmax.f32 %v1934_v40, 0.0  ;;  %2152 = vrot.lane.b32.xlu0 %v7052_v58, %s5973_s28  ;;  %v7151_v24 = vmul.f32 %v6952_v11, %v7060_v4 }
 0x29e   : > { %v2413_v13 = vpack.c.bf16 %v7132_v29, %v7125_v35  ;;  %v7155_v55 = vmul.f32 %v6952_v11, %v7074_v59  ;;  %1965 = vst [vmem:[#allocation3 + $0xd0] sm:$0xff] %v7134_v20  ;;  %v7158_v23 = vmax.f32 %v1935_v57, 0.0  ;;  %v7165_v46 = vmul.f32 %v6954_v42, %v7009_v53 }
 0x29f   : > { %2054 = vrot.lane.b32.xlu1 %v2035_v50, %s5975_s13  ;;  %v2576_v37 = vpack.c.bf16 %v7140_v49, %v7029_v45  ;;  %v7169_v12 = vmul.f32 %v6932_v3, %v6996_v7  ;;  %1966 = vst [vmem:[#allocation3 + $0xe8] sm:$0xff] %v7143_v52  ;;  %v7176_v2 = vmul.f32 %v6932_v3, %v7024_v30 }
 0x2a0   : > { %v7180_v45 = vmul.f32 %v6932_v3, %v7067_v28  ;;  %v7184_v50 = vmul.f32 %v6932_v3, %v7083_v60  ;;  %1967 = vst [vmem:[#allocation3 + $0xf0] sm:$0xff] %v7158_v23  ;;  %v7191_v40 = vmul.f32 %v6936_v9, %v6996_v7  ;;  %v7195_v29 = vmul.f32 %v6936_v9, %v7024_v30 }
 0x2a1   : > { %v7199_v57 = vmul.f32 %v6936_v9, %v7067_v28  ;;  %2084 = vrot.lane.b32.xlu0 %v2041_v26, %s5975_s13  ;;  %v7208_v25 = vmul.f32 %v6936_v9, %v7083_v60  ;;  %v7212_v5 = vmul.f32 %v6938_v36, %v6996_v7  ;;  %v7219_v26 = vmul.f32 %v6938_v36, %v7024_v30 }
 0x2a2   : > { %v7223_v35 = vmul.f32 %v6938_v36, %v7067_v28  ;;  %v7227_v49 = vmul.f32 %v6938_v36, %v7083_v60  ;;  %v7237_v6 = vmul.f32 %v6994_v22, %v7083_v60  ;;  %v7241_v38 = vmul.f32 %v6994_v22, %v6996_v7 }
 0x2a3   : > { %2288 = vrot.lane.b32.xlu1 %v2269_v54, %s5972_s27  ;;  %v7233_v54 = vmul.f32 %v6994_v22, %v7067_v28  ;;  %v7249_v34 = vmul.f32 %v6994_v22, %v7024_v30  ;;  %v7253_v43 = vmul.f32 %v7001_v63, %v7067_v28  ;;  %v7260_v0 = vmul.f32 %v7001_v63, %v7083_v60 }
 0x2a4   : > { %v7264_v33 = vmul.f32 %v7001_v63, %v6996_v7  ;;  %v7268_v62 = vmul.f32 %v7001_v63, %v7024_v30  ;;  %v7275_v1 = vpack.c.bf16 %v7143_v52, %v7127_v61  ;;  %v7279_v18 = vpack.c.bf16 %v7081_v47, %v7065_v27 }
 0x2a5   : > { %2318 = vrot.lane.b32.xlu0 %v2275_v56, %s5972_s27  ;;  %v7283_v44 = vpack.c.bf16 %v7091_v19, %v7072_v8  ;;  %v7291_v56 = vpack.c.bf16 %v7158_v23, %v7134_v20  ;;  %v7295_v31 = vmul.f32 %v6979_v21, %v7127_v61  ;;  %v7299_v48 = vmul.f32 %v6979_v21, %v7143_v52 }
 0x2a6   : > { %9834 = vst [vmem:[#allocation22_spill] sm:$0xff] %v7264_v33  ;;  %9835 = vst [vmem:[#allocation23_spill] sm:$0xff] %v7275_v1  ;;  %v7303_v58 = vmul.f32 %v6979_v21, %v7065_v27  ;;  %v7307_v32 = vmul.f32 %v6979_v21, %v7081_v47  ;;  %v7316_v51 = vmul.f32 %v6983_v41, %v7143_v52 }
 0x2a7   : > { %2426 = vrot.lane.b32.xlu1 %v2407_v16, %s5971_s26  ;;  %9836 = vst [vmem:[#allocation24_spill] sm:$0xff] %v7279_v18  ;;  %9837 = vst [vmem:[#allocation25_spill] sm:$0xff] %v7283_v44  ;;  %v7311_v16 = vmul.f32 %v6983_v41, %v7127_v61  ;;  %v7324_v44 = vmul.f32 %v6983_v41, %v7081_v47  ;;  %v7328_v21 = vmul.f32 %v6990_v15, %v7127_v61 }
 0x2a8   : > { %9838 = vst [vmem:[#allocation26_spill] sm:$0xff] %v7291_v56  ;;  %9839 = vst [vmem:[#allocation27_spill] sm:$0xff] %v7303_v58  ;;  %v7320_v56 = vmul.f32 %v6983_v41, %v7065_v27  ;;  %v7337_v1 = vmul.f32 %v6990_v15, %v7143_v52  ;;  %v7341_v41 = vmul.f32 %v6990_v15, %v7065_v27 }
 0x2a9   : > { %9840 = vst [vmem:[#allocation28_spill] sm:$0xff] %v7307_v32  ;;  %2456 = vrot.lane.b32.xlu0 %v2413_v13, %s5971_s26  ;;  %9841 = vst [vmem:[#allocation29_spill] sm:$0xff] %v7328_v21  ;;  %v7349_v13 = vmul.f32 %v6990_v15, %v7081_v47  ;;  %v7353_v18 = vmul.f32 %v6952_v11, %v7127_v61  ;;  %v7359_v32 = vmul.f32 %v6952_v11, %v7143_v52 }
 0x2aa   : > { %9842 = vst [vmem:[#allocation30_spill] sm:$0xff] %v7337_v1  ;;  %9843 = vst [vmem:[#allocation31_spill] sm:$0xff] %v7341_v41  ;;  %v7363_v33 = vmul.f32 %v6952_v11, %v7065_v27  ;;  %v9845_v15 = vpack.c.bf16 %v7155_v55, %v7151_v24  ;;  %v7377_v21 = vmul.f32 %v6932_v3, %v7072_v8 }
 0x2ab   : > { %2594 = vrot.lane.b32.xlu1 %v2576_v37, %s9725_s23  ;;  %9844 = vst [vmem:[#allocation32_spill] sm:$0xff] %v7349_v13  ;;  %v7367_v37 = vmul.f32 %v6952_v11, %v7081_v47  ;;  %v7381_v1 = vmul.f32 %v6932_v3, %v7091_v19  ;;  %v7385_v11 = vmul.f32 %v6932_v3, %v7134_v20 }
 0x2ac   : > { %9846 = vst [vmem:[#allocation33_spill] sm:$0xff] %v7377_v21  ;;  %v9849_v24 = vpack.c.bf16 %v7165_v46, %v7033_v17  ;;  %v7397_v58 = vmul.f32 %v6932_v3, %v7158_v23  ;;  %v7401_v41 = vmul.f32 %v6954_v42, %v7060_v4  ;;  %v7407_v17 = vmul.f32 %v6954_v42, %v7074_v59 }
 0x2ad   : > { %2624 = vrot.lane.b32.xlu0 %v9845_v15, %s9725_s23  ;;  %9847 = vst [vmem:[#allocation34_spill] sm:$0xff] %v7381_v1  ;;  %9848 = vst [vmem:[#allocation35_spill] sm:$0xff] %v7385_v11  ;;  %v7411_v46 = vmul.f32 %v6954_v42, %v7065_v27  ;;  %v7421_v15 = vmul.f32 %v6954_v42, %v7127_v61  ;;  %v7425_v13 = vmul.f32 %v6954_v42, %v7143_v52 }
 0x2ae   : > { %9850 = vst [vmem:[#allocation36_spill] sm:$0xff] %v7397_v58  ;;  %v7429_v55 = vmul.f32 %v6936_v9, %v7072_v8  ;;  %v9852_v21 = vpack.c.bf16 %v7176_v2, %v7169_v12  ;;  %v7441_v58 = vmul.f32 %v6936_v9, %v7091_v19  ;;  %v9854_v1 = vpack.c.bf16 %v7184_v50, %v7180_v45 }
 0x2af   : > { %2732 = vrot.lane.b32.xlu1 %v9849_v24, %s5969_s15  ;;  %v7415_v24 = vmul.f32 %v6954_v42, %v7081_v47  ;;  %v7445_v42 = vmul.f32 %v6936_v9, %v7134_v20  ;;  %v7455_v2 = vmul.f32 %v6936_v9, %v7158_v23  ;;  %v7463_v11 = vmul.f32 %v6938_v36, %v7091_v19 }
 0x2b0   : > { %9851 = vst [vmem:[#allocation37_spill] sm:$0xff] %v7429_v55  ;;  %9853 = vst [vmem:[#allocation38_spill] sm:$0xff] %v7441_v58  ;;  %v7473_v45 = vmul.f32 %v6938_v36, %v7158_v23  ;;  %v7477_v9 = vmul.f32 %v6994_v22, %v7072_v8  ;;  %v7485_v3 = vmul.f32 %v6994_v22, %v7091_v19 }
 0x2b1   : > { %2056 = vrot.lane.b32.xlu0 %v9852_v21, %s5975_s13  ;;  %v7459_v21 = vmul.f32 %v6938_v36, %v7072_v8  ;;  %v7489_v55 = vmul.f32 %v6994_v22, %v7134_v20  ;;  %v7499_v50 = vmul.f32 %v6994_v22, %v7158_v23  ;;  %v7503_v12 = vmul.f32 %v7001_v63, %v7072_v8 }
 0x2b2   : > { %v7517_v22 = vmul.f32 %v7001_v63, %v7134_v20  ;;  %v7543_v58 = vmul.f32 %v6968_v14, %v7009_v53  ;;  %v7561_v53 = vmul.f32 %v6968_v14, %v7060_v4  ;;  %v7579_v4 = vmul.f32 %v6968_v14, %v7081_v47 }
 0x2b3   : > { %2086 = vrot.lane.b32.xlu1 %v9854_v1, %s5975_s13  ;;  %9855 = vst [vmem:[#allocation39_spill] sm:$0xff] %v7459_v21  ;;  %v7469_v1 = vmul.f32 %v6938_v36, %v7134_v20  ;;  %v9857_v36 = vpack.c.bf16 %v7195_v29, %v7191_v40  ;;  %v7507_v21 = vmul.f32 %v7001_v63, %v7091_v19 }
 0x2b4   : > { %v9858_v40 = vpack.c.bf16 %v7208_v25, %v7199_v57  ;;  %v2580_v29 = vpack.c.bf16 %v7485_v3, %v7477_v9  ;;  %v7529_v25 = vmul.f32 %v7006_v39, %v6996_v7  ;;  %v7533_v57 = vmul.f32 %v7006_v39, %v7024_v30 }
 0x2b5   : > { %9856 = vst [vmem:[#allocation40_spill] sm:$0xff] %v7469_v1  ;;  %2290 = vrot.lane.b32.xlu0 %v9857_v36, %s5972_s27  ;;  %v7521_v36 = vmul.f32 %v7001_v63, %v7158_v23  ;;  %v7539_v63 = vmul.f32 %v6968_v14, %v6985_v10  ;;  %v9859_v7 = vpack.c.bf16 %v7219_v26, %v7212_v5 }
 0x2b6   : > { %v2949_v30 = vpack.c.bf16 %v7533_v57, %v7529_v25  ;;  %v7553_v1 = vmul.f32 %v7006_v39, %v7067_v28  ;;  %v7557_v10 = vmul.f32 %v7006_v39, %v7083_v60  ;;  %v9860_v5 = vpack.c.bf16 %v7227_v49, %v7223_v35 }
 0x2b7   : > { %2320 = vrot.lane.b32.xlu1 %v9858_v40, %s5972_s27  ;;  %v2724_v40 = vpack.c.bf16 %v7521_v36, %v7517_v22  ;;  %v2948_v26 = vpack.c.bf16 %v7543_v58, %v7539_v63  ;;  %v7571_v28 = vmul.f32 %v6968_v14, %v7074_v59  ;;  %v7575_v60 = vmul.f32 %v6968_v14, %v7065_v27 }
 0x2b8   : > { %v7585_v35 = vmul.f32 %v7006_v39, %v7072_v8  ;;  %v7589_v49 = vmul.f32 %v7006_v39, %v7091_v19  ;;  %v7597_v47 = vmul.f32 %v7006_v39, %v7134_v20  ;;  %v9861_v8 = vpack.c.bf16 %v7237_v6, %v7233_v54  ;;  %v9866_v54 = vld [vmem:[#allocation23_spill] sm:$0xff] }
 0x2b9   : > { %2428 = vrot.lane.b32.xlu0 %v9859_v7, %s5971_s26  ;;  %v2955_v7 = vpack.c.bf16 %v7557_v10, %v7553_v1  ;;  %v2951_v27 = vpack.c.bf16 %v7579_v4, %v7575_v60  ;;  %v7611_v59 = vmul.f32 %v6968_v14, %v7127_v61  ;;  %v7615_v20 = vmul.f32 %v6968_v14, %v7143_v52  ;;  %v9864_v14 = vld [vmem:[#allocation22_spill] sm:$0xff]  ;;  %v9912_v4 = vld [vmem:[#allocation13_spill] sm:$0xff] }
 0x2ba   : > { %v2952_v19 = vpack.c.bf16 %v7589_v49, %v7585_v35  ;;  %v9863_v61 = vpack.c.bf16 %v7260_v0, %v7253_v43  ;;  %v9865_v52 = vpack.c.bf16 %v7268_v62, %v9864_v14  ;;  %v9870_v0 = vpack.c.bf16 %v7299_v48, %v7295_v31  ;;  %v9871_v43 = vld [vmem:[#allocation28_spill] sm:$0xff]  ;;  %v9872_v62 = vld [vmem:[#allocation27_spill] sm:$0xff] }
 0x2bb   : > { %2458 = vrot.lane.b32.xlu1 %v9860_v5, %s5971_s26  ;;  %v7601_v5 = vmul.f32 %v7006_v39, %v7158_v23  ;;  %v9862_v39 = vpack.c.bf16 %v7249_v34, %v7241_v38  ;;  %v9867_v38 = vld [vmem:[#allocation24_spill] sm:$0xff]  ;;  %v9868_v34 = vld [vmem:[#allocation25_spill] sm:$0xff]  ;;  %v9875_v14 = vpack.c.bf16 %v7324_v44, %v7320_v56  ;;  %v9883_v44 = vpack.c.bf16 %v7367_v37, %v7363_v33  ;;  %v9884_v56 = vld [vmem:[#allocation34_spill] sm:$0xff] }
 0x2bc   : > { %v9877_v23 = vld [vmem:[#allocation29_spill] sm:$0xff]  ;;  %v9879_v31 = vld [vmem:[#allocation32_spill] sm:$0xff]  ;;  %v9891_v33 = vpack.c.bf16 %v7415_v24, %v7411_v46  ;;  %v9894_v46 = vld [vmem:[#allocation19_spill] sm:$0xff]  ;;  %v9908_v3 = vpack.c.bf16 %v7507_v21, %v7503_v12  ;;  %v9910_v58 = vpack.c.bf16 %v7571_v28, %v7561_v53 }
 0x2bd   : > { %2626 = vrot.lane.b32.xlu0 %v9861_v8, %s9725_s23  ;;  %v2958_v6 = vpack.c.bf16 %v7601_v5, %v7597_v47  ;;  %v9869_v8 = vld [vmem:[#allocation26_spill] sm:$0xff]  ;;  %v9909_v12 = vld [vmem:[#allocation17_spill] sm:$0xff]  ;;  %v3348_v49 = vld [vmem:[%s9677_s5] sm:$0xff]  ;;  %v9913_v47 = vpack.c.bf16 %v7615_v20, %v7611_v59 }
 0x2be   : > { %v3349_v5 = vld [vmem:[%s9677_s5 + $0x8] sm:$0xff] }
 0x2bf   : > { %2596 = vrot.lane.b32.xlu1 %v9862_v39, %s9725_s23  ;;  %v9873_v39 = vpack.c.bf16 %v9871_v43, %v9872_v62  ;;  %v7665_v62 = vpop.permute.xlu0 %2178  ;;  %v3389_v59 = vld [vmem:[%s9678_s6 + $0x8] sm:$0xff] }
 0x2c1   : > { %2764 = vrot.lane.b32.xlu0 %v9863_v61, %s5969_s15  ;;  %v9874_v61 = vpack.c.bf16 %v7316_v51, %v7311_v16  ;;  %v9882_v51 = vpack.c.bf16 %v7359_v32, %v7353_v18  ;;  %v9885_v16 = vld [vmem:[#allocation33_spill] sm:$0xff]  ;;  %v9890_v18 = vpack.c.bf16 %v7407_v17, %v7401_v41  ;;  %v9893_v41 = vpack.c.bf16 %v7425_v13, %v7421_v15 }
 0x2c2   : > { %v9899_v13 = vpack.c.bf16 %v7455_v2, %v7445_v42  ;;  %v9903_v42 = vld [vmem:[#allocation40_spill] sm:$0xff] }
 0x2c3   : > { %2734 = vrot.lane.b32.xlu1 %v9865_v52, %s5969_s15  ;;  %v9876_v52 = vld [vmem:[#allocation30_spill] sm:$0xff]  ;;  %v9904_v2 = vpack.c.bf16 %v7473_v45, %v9903_v42 }
 0x2c4   : > { %v9878_v48 = vpack.c.bf16 %v9876_v52, %v9877_v23  ;;  %v9886_v23 = vpack.c.bf16 %v9884_v56, %v9885_v16  ;;  %v9888_v52 = vld [vmem:[#allocation35_spill] sm:$0xff]  ;;  %v9898_v56 = vld [vmem:[#allocation10_spill] sm:$0xff] }
 0x2c5   : > { %2186 = vrot.lane.b32.xlu0 %v9866_v54, %s5973_s28  ;;  %v2812_v16 = vpack.c.bf16 %v9898_v56, %v9898_v56  ;;  %v2926_v21 = vmul.f32 %v9898_v56, %v9909_v12 }
 0x2c7   : > { %2156 = vrot.lane.b32.xlu1 %v9867_v38, %s5973_s28  ;;  %v2950_v36 = vpack.c.bf16 %v2926_v21, %v2926_v21 }
 0x2c9   : > { %2158 = vrot.lane.b32.xlu0 %v9868_v34, %s5973_s28 }
 0x2cb   : > { %2188 = vrot.lane.b32.xlu1 %v9869_v8, %s5973_s28  ;;  %s8174_s28 = sld [smem:[#allocation4 + $0x23]] }
 0x2cd   : > { %2090 = vrot.lane.b32.xlu0 %v9870_v0, %s5975_s13  ;;  %v9880_v0 = vld [vmem:[#allocation31_spill] sm:$0xff] }
 0x2ce   : > { %v9881_v43 = vpack.c.bf16 %v9879_v31, %v9880_v0  ;;  %v9892_v0 = vld [vmem:[#allocation11_spill] sm:$0xff] }
 0x2cf   : > { %2060 = vrot.lane.b32.xlu1 %v9873_v39, %s5975_s13  ;;  %v7667_v39 = vpop.permute.xlu1 %2154 }
 0x2d1   : > { %2324 = vrot.lane.b32.xlu0 %v9874_v61, %s5972_s27  ;;  %v7681_v61 = vpop.permute.xlu0 %2184 }
 0x2d3   : > { %2294 = vrot.lane.b32.xlu1 %v9875_v14, %s5972_s27  ;;  %v9887_v14 = vld [vmem:[#allocation36_spill] sm:$0xff]  ;;  %v7687_v31 = vpop.permute.xlu1 %2286 }
 0x2d5   : > { %2462 = vrot.lane.b32.xlu0 %v9878_v48, %s5971_s26  ;;  %v9889_v48 = vpack.c.bf16 %v9887_v14, %v9888_v52  ;;  %v7697_v32 = vpop.permute.xlu0 %2316  ;;  %v9900_v14 = vld [vmem:[#allocation18_spill] sm:$0xff]  ;;  %v9901_v52 = vld [vmem:[#allocation39_spill] sm:$0xff] }
 0x2d7   : > { %2432 = vrot.lane.b32.xlu1 %v9881_v43, %s5971_s26  ;;  %v7699_v37 = vpop.permute.xlu1 %2292  ;;  %v9895_v43 = vld [vmem:[#allocation38_spill] sm:$0xff] }
 0x2d9   : > { %2630 = vrot.lane.b32.xlu0 %v9882_v51, %s9725_s23  ;;  %v7709_v17 = vpop.permute.xlu0 %2322  ;;  %v9896_v51 = vld [vmem:[#allocation37_spill] sm:$0xff] }
 0x2db   : > { %2600 = vrot.lane.b32.xlu1 %v9883_v44, %s9725_s23  ;;  %v7713_v24 = vpop.permute.xlu1 %2424  ;;  %v9897_v44 = vpack.c.bf16 %v9895_v43, %v9896_v51  ;;  %v9907_v51 = vpack.c.bf16 %v7499_v50, %v7489_v55  ;;  %v5901_v55 = vld [vmem:[%s9676_s4 + $0x4] ss:$12 sps:$4 sm:$0xff]  }
 0x2dc   : > { %3168 = vmatprep.mubr.bf16.mxu0 %v5901_v55  ;;  %3274 = vmatprep.mubr.bf16.mxu1 %v5901_v55 }
 0x2dd   : > { %2062 = vrot.lane.b32.xlu0 %v9886_v23, %s5975_s13  ;;  %v7725_v15 = vpop.permute.xlu0 %2454 }
 0x2df   : > { %2092 = vrot.lane.b32.xlu1 %v9889_v48, %s5975_s13  ;;  %v7727_v23 = vpop.permute.xlu1 %2430  ;;  %v9902_v48 = vpack.c.bf16 %v7463_v11, %v9901_v52  ;;  %v9906_v11 = vld [vmem:[#allocation20_spill] sm:$0xff]  ;;  %s8176_s13 = sld [smem:[#allocation4 + $0x54]] }
 0x2e1   : > { %2762 = vrot.lane.b32.xlu0 %v9890_v18, %s5969_s15  ;;  %v7736_v18 = vpop.permute.xlu0 %2460 }
 0x2e3   : > { %2738 = vrot.lane.b32.xlu1 %v9891_v33, %s5969_s15  ;;  %v7742_v33 = vpop.permute.xlu1 %2628 }
 0x2e5   : > { %2742 = vrot.lane.b32.xlu0 %v9892_v0, %s5969_s15 }
 0x2e7   : > { %2772 = vrot.lane.b32.xlu1 %v9892_v0, %s5969_s15  ;;  %v9905_v0 = vld [vmem:[#allocation21_spill] sm:$0xff] }
 0x2e9   : > { %2768 = vrot.lane.b32.xlu0 %v9893_v41, %s5969_s15  ;;  %v7747_v41 = vpop.permute.xlu0 %2598 }
 0x2eb   : > { %2830 = vrot.lane.b32.xlu1 %v9894_v46, %s9729_s18  ;;  %v7749_v46 = vpop.permute.xlu1 %2634 }
 0x2ed   : > { %2296 = vrot.lane.b32.xlu0 %v9897_v44, %s5972_s27  ;;  %v7755_v43 = vpop.permute.xlu0 %2604 }
 0x2ef   : > { %2326 = vrot.lane.b32.xlu1 %v9899_v13, %s5972_s27  ;;  %v7758_v45 = vpop.permute.xlu1 %2766  ;;  %s8168_s27 = sld [smem:[#allocation4 + $0x2a]] }
 0x2f1   : > { %2832 = vrot.lane.b32.xlu0 %v2812_v16, %s9729_s18  ;;  %v7768_v44 = vpop.permute.xlu0 %2736 }
 0x2f3   : > { %2828 = vrot.lane.b32.xlu1 %v9900_v14, %s9729_s18  ;;  %v3351_v14 = vld [vmem:[%s9677_s5 + $0x18] sm:$0xff] }
 0x2f5   : > { %2434 = vrot.lane.b32.xlu0 %v9902_v48, %s5971_s26  ;;  %v3390_v48 = vld [vmem:[%s9678_s6 + $0x10] sm:$0xff] }
 0x2f7   : > { %2464 = vrot.lane.b32.xlu1 %v9904_v2, %s5971_s26  ;;  %v3391_v2 = vld [vmem:[%s9678_s6 + $0x18] sm:$0xff]  ;;  %s5646_s26 = sld [smem:[#allocation4 + $0x46]] }
 0x2f9   : > { %2860 = vrot.lane.b32.xlu0 %v9905_v0, %s9729_s18 }
 0x2fb   : > { %2862 = vrot.lane.b32.xlu1 %v2812_v16, %s9729_s18 }
 0x2fd   : > { %2858 = vrot.lane.b32.xlu0 %v9906_v11, %s9729_s18 }
 0x2ff   : > { %2836 = vrot.lane.b32.xlu1 %v9868_v34, %s9729_s18 }
 0x301   : > { %2838 = vrot.lane.b32.xlu0 %v2812_v16, %s9729_s18 }
 0x303   : > { %2602 = vrot.lane.b32.xlu1 %v2580_v29, %s9725_s23 }
 0x305   : > { %2632 = vrot.lane.b32.xlu0 %v9907_v51, %s9725_s23  ;;  %v7772_v34 = vpop.permute.xlu1 %2150  ;;  %s8316_s23 = sld [smem:[#allocation4 + $0x3c]] }
 0x307   : > { %2834 = vrot.lane.b32.xlu1 %v9867_v38, %s9729_s18 }
 0x309   : > { %2866 = vrot.lane.b32.xlu0 %v9869_v8, %s9729_s18 }
 0x30b   : > { %2740 = vrot.lane.b32.xlu1 %v9908_v3, %s5969_s15  ;;  %v7780_v9 = vpop.permute.xlu0 %2180 }
 0x30d   : > { %v7785_v50 = vpop.permute.xlu1 %2182  ;;  %2770 = vrot.lane.b32.xlu0 %v2724_v40, %s5969_s15  ;;  %s8170_s15 = sld [smem:[#allocation4 + $0x5b]] }
 0x30f   : > { %2868 = vrot.lane.b32.xlu1 %v2812_v16, %s9729_s18  ;;  %v7792_v29 = vpop.permute.xlu0 %2152  ;;  %v3350_v16 = vld [vmem:[%s9677_s5 + $0x10] sm:$0xff] }
 0x311   : > { %v2055_v38 = vpop.permute.xlu1 %2054  ;;  %2864 = vrot.lane.b32.xlu0 %v9866_v54, %s9729_s18 }
 0x313   : > { %2968 = vrot.lane.b32.xlu1 %v2949_v30, %s5968_s14  ;;  %v2085_v22 = vpop.permute.xlu0 %2084 }
 0x315   : > { %v7802_v40 = vpop.permute.xlu1 %2288  ;;  %2970 = vrot.lane.b32.xlu0 %v2950_v36, %s5968_s14 }
 0x317   : > { %2966 = vrot.lane.b32.xlu1 %v2948_v26, %s5968_s14  ;;  %v7809_v8 = vpop.permute.xlu0 %2318  ;;  %v9911_v26 = vld [vmem:[#allocation12_spill] sm:$0xff] }
 0x318   : > { %v2064_v28 = vsel %vm557_vm5, %v9911_v26, %v2055_v38 }
 0x319   : > { %v7811_v56 = vpop.permute.xlu1 %2426  ;;  %2998 = vrot.lane.b32.xlu0 %v2955_v7, %s5968_s14  ;;  %v2094_v7 = vsel %vm557_vm5, %v9912_v4, %v2085_v22 }
 0x31b   : > { %3000 = vrot.lane.b32.xlu1 %v2950_v36, %s5968_s14  ;;  %v7818_v25 = vpop.permute.xlu0 %2456 }
 0x31d   : > { %v7820_v57 = vpop.permute.xlu1 %2594  ;;  %2996 = vrot.lane.b32.xlu0 %v9910_v58, %s5968_s14 }
 0x31f   : > { %2972 = vrot.lane.b32.xlu1 %v2951_v27, %s5968_s14  ;;  %v7830_v63 = vpop.permute.xlu0 %2624 }
 0x321   : > { %v7832_v1 = vpop.permute.xlu1 %2732  ;;  %2976 = vrot.lane.b32.xlu0 %v2950_v36, %s5968_s14 }
 0x323   : > { %2974 = vrot.lane.b32.xlu1 %v2952_v19, %s5968_s14  ;;  %v2057_v30 = vpop.permute.xlu0 %2056 }
 0x324   : > { %v2065_v53 = vsel %vm557_vm5, %v2055_v38, %v2057_v30 }
 0x325   : > { %v2087_v10 = vpop.permute.xlu1 %2086  ;;  %3004 = vrot.lane.b32.xlu0 %v2958_v6, %s5968_s14  ;;  %3136 = vmatprep.subr.bf16.mxu0 %v2065_v53  ;;  %v3388_v6 = vld [vmem:[%s9678_s6] sm:$0xff] }
 0x326   : > { %v2095_v60 = vsel %vm557_vm5, %v2085_v22, %v2087_v10  ;;  %3137 = vmatpush1.bf16.msra.mxu0 %v2064_v28  ;;  %v9914_v28 = vld [vmem:[#allocation14_spill] sm:$0xff] }
 0x327   : > { %3006 = vrot.lane.b32.xlu1 %v2950_v36, %s5968_s14  ;;  %3242 = vmatprep.subr.bf16.mxu1 %v2095_v60  ;;  %v7850_v35 = vpop.permute.xlu0 %2290 }
 0x328   : > { %3243 = vmatpush1.bf16.msra.mxu1 %v2094_v7  ;;  %v2161_v7 = vsel %vm654_vm6, %v7772_v34, %v7792_v29 }
 0x329   : > { %v7855_v27 = vpop.permute.xlu1 %2320  ;;  %3002 = vrot.lane.b32.xlu0 %v9913_v47, %s5968_s14  ;;  %s5647_s14 = sld [smem:[#allocation4 + $0x1c]] }
 0x32b   : > { %3354 = vperm.xlu1 %5882, %v3348_v49   ;;  %v7864_v19 = vpop.permute.xlu0 %2428  ;;  %v9915_v49 = vld [vmem:[#allocation15_spill] sm:$0xff] }
 0x32d   : > { %v7869_v54 = vpop.permute.xlu1 %2458  ;;  %3359 = vperm.xlu0 %5881, %v3349_v5  }
 0x32f   : > { %3394 = vperm.xlu1 %5882, %v3388_v6   ;;  %v7874_v20 = vpop.permute.xlu0 %2626  ;;  %v2191_v6 = vsel %vm654_vm6, %v7780_v9, %v7785_v50 }
 0x331   : > { %v7879_v13 = vpop.permute.xlu1 %2596  ;;  %3399 = vperm.xlu0 %5881, %v3389_v59  }
 0x333   : > { %3364 = vperm.xlu1 %5882, %v3350_v16   ;;  %v7884_v52 = vpop.permute.xlu0 %2764  ;;  %v9916_v16 = vld [vmem:[#allocation16_spill] sm:$0xff] }
 0x335   : > { %v7889_v42 = vpop.permute.xlu1 %2734  ;;  %3369 = vperm.xlu0 %5881, %v3351_v14   ;;  %v2160_v14 = vsel %vm654_vm6, %v9916_v16, %v7772_v34  ;;  %v2299_v34 = vsel %vm795_vm4, %v7802_v40, %v7850_v35 }
 0x337   : > { %3404 = vperm.xlu1 %5882, %v3390_v48   ;;  %v2187_v0 = vpop.permute.xlu0 %2186  ;;  %v2190_v48 = vsel %vm654_vm6, %v7665_v62, %v7780_v9 }
 0x338   : > { %v2192_v62 = vsel %vm654_vm6, %v7681_v61, %v2187_v0  ;;  %v2328_v61 = vsel %vm795_vm4, %v7697_v32, %v7809_v8 }
 0x339   : > { %v2157_v11 = vpop.permute.xlu1 %2156  ;;  %3409 = vperm.xlu0 %5881, %v3391_v2  }
 0x33b   : > { %v2159_v51 = vpop.permute.xlu0 %2158 }
 0x33c   : > { %v2163_v29 = vsel %vm654_vm6, %v2157_v11, %v2159_v51  ;;  %v2329_v51 = vsel %vm795_vm4, %v7809_v8, %v7855_v27  ;;  %v2467_v8 = vsel %vm935_vm3, %v7818_v25, %v7869_v54 }
 0x33d   : > { %v2189_v3 = vpop.permute.xlu1 %2188 }
 0x33e   : > { %v2193_v50 = vsel %vm654_vm6, %v2187_v0, %v2189_v3 }
 0x33f   : > { %v2091_v55 = vpop.permute.xlu0 %2090 }
 0x340   : > { %v2096_v47 = vsel %vm557_vm5, %v9915_v49, %v2091_v55  ;;  %v2485_v49 = vld [vmem:[#allocation3 + $0x70] sm:$0xff] }
 0x341   : > { %v2061_v12 = vpop.permute.xlu1 %2060 }
 0x342   : > { %v2066_v60 = vsel %vm557_vm5, %v9914_v28, %v2061_v12  ;;  %v2479_v28 = vld [vmem:[#allocation3 + $0x10] sm:$0xff] }
 0x343   : > { %v2325_v21 = vpop.permute.xlu0 %2324 }
 0x344   : > { %v2330_v32 = vsel %vm795_vm4, %v7709_v17, %v2325_v21  ;;  %v2466_v17 = vsel %vm935_vm3, %v7725_v15, %v7818_v25  ;;  %v2480_v15 = vld [vmem:[#allocation3 + $0x28] sm:$0xff] }
 0x345   : > { %v2295_v38 = vpop.permute.xlu1 %2294 }
 0x346   : > { %v2300_v27 = vsel %vm795_vm4, %v7699_v37, %v2295_v38 }
 0x347   : > { %v7894_v22 = vpop.permute.xlu0 %2462 }
 0x348   : > { %v2468_v25 = vsel %vm935_vm3, %v7736_v18, %v7894_v22 }
 0x349   : > { %v7896_v36 = vpop.permute.xlu1 %2432 }
 0x34b   : > { %v7898_v58 = vpop.permute.xlu0 %2630 }
 0x34d   : > { %v7900_v30 = vpop.permute.xlu1 %2600 }
 0x34f   : > { %v2063_v10 = vpop.permute.xlu0 %2062 }
 0x350   : > { %v2067_v26 = vsel %vm557_vm5, %v2061_v12, %v2063_v10  ;;  %v2162_v12 = vsel %vm654_vm6, %v7667_v39, %v2157_v11  ;;  %v2298_v39 = vsel %vm795_vm4, %v7687_v31, %v7802_v40  ;;  %v2437_v31 = vsel %vm935_vm3, %v7811_v56, %v7864_v19  ;;  %v2481_v19 = vld [vmem:[#allocation3 + $0x30] sm:$0xff] }
 0x351   : > { %v2093_v53 = vpop.permute.xlu1 %2092  ;;  %3138 = vmatprep.subr.bf16.mxu0 %v2067_v26  ;;  %vm4483_vm6 = vcmask 646144  }
 0x352   : > { %v2097_v4 = vsel %vm557_vm5, %v2091_v55, %v2093_v53  ;;  %3139 = vmatpush1.bf16.msra.mxu0 %v2066_v60  ;;  %v2489_v53 = vld [vmem:[#allocation3 + $0xb0] sm:$0xff]  ;;  %v2438_v60 = vsel %vm935_vm3, %v7727_v23, %v7896_v36  ;;  %v2478_v23 = vld [vmem:[#allocation3 + $0x8] sm:$0xff]  ;;  %vm4269_vm5 = vcmask 637952  }
 0x353   : > { %3244 = vmatprep.subr.bf16.mxu1 %v2097_v4  ;;  %3140 = vmatprep.subr.bf16.mxu0 %v2161_v7  ;;  %v7911_v5 = vpop.permute.xlu0 %2762  ;;  %v2487_v4 = vld [vmem:[#allocation3 + $0x90] sm:$0xff] }
 0x354   : > { %3245 = vmatpush1.bf16.msra.mxu1 %v2096_v47  ;;  %v2499_v7 = vpack.c.bf16 %v2489_v53, %v2487_v4  ;;  %v2488_v47 = vld [vmem:[#allocation3 + $0xa8] sm:$0xff] }
 0x355   : > { %v7916_v59 = vpop.permute.xlu1 %2738  ;;  %3246 = vmatprep.subr.bf16.mxu1 %v2191_v6  ;;  %v5902_v4 = vld [vmem:[%s9676_s4 + $0x1c] ss:$12 sps:$4 sm:$0xff]  }
 0x356   : > { %3141 = vmatpush1.bf16.msra.mxu0 %v2160_v14  ;;  %v2494_v14 = vpack.c.bf16 %v2480_v15, %v2478_v23  ;;  %v5904_v23 = vld [vmem:[%s9676_s4 + $0x18] ss:$12 sps:$4 sm:$0xff]  }
 0x357   : > { %3142 = vmatprep.subr.bf16.mxu0 %v2163_v29  ;;  %v7925_v2 = vpop.permute.xlu0 %2742  ;;  %v2483_v29 = vld [vmem:[#allocation3 + $0x50] sm:$0xff] }
 0x358   : > { %3247 = vmatpush1.bf16.msra.mxu1 %v2190_v48  ;;  %v2486_v48 = vld [vmem:[#allocation3 + $0x88] sm:$0xff] }
 0x359   : > { %v7928_v55 = vpop.permute.xlu1 %2772  ;;  %3248 = vmatprep.subr.bf16.mxu1 %v2193_v50  ;;  %v2497_v50 = vpack.c.bf16 %v2485_v49, %v2483_v29 }
 0x35a   : > { %3143 = vmatpush1.bf16.msra.mxu0 %v2162_v12  ;;  %v2498_v12 = vpack.c.bf16 %v2488_v47, %v2486_v48  ;;  %v9917_v48 = vmov 0  }
 0x35b   : > { %3144 = vmatprep.subr.bf16.mxu0 %v2299_v34  ;;  %v7937_v9 = vpop.permute.xlu0 %2768  ;;  %v2491_v34 = vld [vmem:[#allocation3 + $0xd0] sm:$0xff] }
 0x35c   : > { %3249 = vmatpush1.bf16.msra.mxu1 %v2192_v62  ;;  %v2484_v62 = vld [vmem:[#allocation3 + $0x68] sm:$0xff] }
 0x35d   : > { %v7942_v3 = vpop.permute.xlu1 %2830  ;;  %3250 = vmatprep.subr.bf16.mxu1 %v2329_v51 }
 0x35e   : > { %3145 = vmatpush1.bf16.msra.mxu0 %v2298_v39  ;;  %v2482_v39 = vld [vmem:[#allocation3 + $0x48] sm:$0xff] }
 0x35f   : > { %v2297_v35 = vpop.permute.xlu0 %2296 }
 0x360   : > { %3251 = vmatpush1.bf16.msra.mxu1 %v2328_v61  ;;  %v2301_v11 = vsel %vm795_vm4, %v2295_v38, %v2297_v35  ;;  %v2436_v38 = vsel %vm935_vm3, %v7713_v24, %v7811_v56  ;;  %v2495_v56 = vpack.c.bf16 %v2481_v19, %v2479_v28  ;;  %v2496_v35 = vpack.c.bf16 %v2484_v62, %v2482_v39  ;;  %v5905_v62 = vld [vmem:[%s9676_s4 + $0x8] ss:$12 sps:$4 sm:$0xff]  }
 0x361   : > { %v2327_v0 = vpop.permute.xlu1 %2326  ;;  %3146 = vmatprep.subr.bf16.mxu0 %v2301_v11 }
 0x362   : > { %v2331_v10 = vsel %vm795_vm4, %v2325_v21, %v2327_v0  ;;  %3147 = vmatpush1.bf16.msra.mxu0 %v2300_v27  ;;  %v2490_v0 = vld [vmem:[#allocation3 + $0xc8] sm:$0xff]  ;;  %v2607_v27 = vsel %vm876_vm2, %v7879_v13, %v7747_v41  ;;  %v2636_v41 = vsel %vm876_vm2, %v7830_v63, %v7874_v20  ;;  %vm4018_vm4 = vcmask 392192  }
 0x363   : > { %3252 = vmatprep.subr.bf16.mxu1 %v2331_v10  ;;  %3148 = vmatprep.subr.bf16.mxu0 %v2437_v31  ;;  %v7959_v40 = vpop.permute.xlu0 %2832  ;;  %v2637_v31 = vsel %vm876_vm2, %v7874_v20, %v7742_v33  ;;  %v2775_v20 = vsel %vm736_vm1, %v7884_v52, %v7758_v45 }
 0x364   : > { %3253 = vmatpush1.bf16.msra.mxu1 %v2330_v32 }
 0x365   : > { %v7964_v37 = vpop.permute.xlu1 %2828  ;;  %3254 = vmatprep.subr.bf16.mxu1 %v2467_v8  ;;  %v2606_v8 = vsel %vm876_vm2, %v7820_v57, %v7879_v13  ;;  %v2744_v13 = vsel %vm736_vm1, %v7832_v1, %v7889_v42  ;;  %v2841_v1 = vsel %vm1344_vm7, %v7942_v3, %v7959_v40 }
 0x366   : > { %3149 = vmatpush1.bf16.msra.mxu0 %v2436_v38 }
 0x367   : > { %v2435_v21 = vpop.permute.xlu0 %2434 }
 0x368   : > { %3255 = vmatpush1.bf16.msra.mxu1 %v2466_v17  ;;  %v2439_v54 = vsel %vm935_vm3, %v7896_v36, %v2435_v21  ;;  %v2493_v36 = vld [vmem:[#allocation3 + $0xf0] sm:$0xff] }
 0x369   : > { %v2465_v26 = vpop.permute.xlu1 %2464  ;;  %3150 = vmatprep.subr.bf16.mxu0 %v2439_v54  ;;  %v2501_v18 = vpack.c.bf16 %v2493_v36, %v2491_v34 }
 0x36a   : > { %v2469_v24 = vsel %vm935_vm3, %v7894_v22, %v2465_v26  ;;  %3151 = vmatpush1.bf16.msra.mxu0 %v2438_v60  ;;  %v2492_v22 = vld [vmem:[#allocation3 + $0xe8] sm:$0xff] }
 0x36b   : > { %3256 = vmatprep.subr.bf16.mxu1 %v2469_v24  ;;  %3152 = vmatprep.subr.bf16.mxu0 %v2495_v56  ;;  %v7982_v6 = vpop.permute.xlu0 %2860  ;;  %v2500_v11 = vpack.c.bf16 %v2492_v22, %v2490_v0 }
 0x36c   : > { %3257 = vmatpush1.bf16.msra.mxu1 %v2468_v25 }
 0x36d   : > { %v7984_v16 = vpop.permute.xlu1 %2862  ;;  %3258 = vmatprep.subr.bf16.mxu1 %v2499_v7 }
 0x36e   : > { %3153 = vmatpush1.bf16.msra.mxu0 %v2494_v14 }
 0x36f   : > { %3154 = vmatprep.subr.bf16.mxu0 %v2497_v50  ;;  %v2859_v51 = vpop.permute.xlu0 %2858 }
 0x370   : > { %3259 = vmatpush1.bf16.msra.mxu1 %v2498_v12 }
 0x371   : > { %v7986_v61 = vpop.permute.xlu1 %2836  ;;  %3260 = vmatprep.subr.bf16.mxu1 %v2501_v18 }
 0x372   : > { %3155 = vmatpush1.bf16.msra.mxu0 %v2496_v35 }
 0x373   : > { %3156 = vmatprep.subr.bf16.mxu0 %v2607_v27  ;;  %v2839_v10 = vpop.permute.xlu0 %2838 }
 0x374   : > { %3261 = vmatpush1.bf16.msra.mxu1 %v2500_v11 }
 0x375   : > { %v2603_v32 = vpop.permute.xlu1 %2602  ;;  %3262 = vmatprep.subr.bf16.mxu1 %v2637_v31 }
 0x376   : > { %v2609_v38 = vsel %vm876_vm2, %v2603_v32, %v7755_v43  ;;  %3157 = vmatpush1.bf16.msra.mxu0 %v2606_v8  ;;  %v2608_v21 = vsel %vm876_vm2, %v7900_v30, %v2603_v32  ;;  %v2745_v43 = vsel %vm736_vm1, %v7889_v42, %v7768_v44  ;;  %v2774_v44 = vsel %vm736_vm1, %v7911_v5, %v7884_v52 }
 0x377   : > { %3158 = vmatprep.subr.bf16.mxu0 %v2609_v38  ;;  %v2633_v17 = vpop.permute.xlu0 %2632  ;;  %v2871_v5 = vsel %vm1344_vm7, %v7982_v6, %v7984_v16 }
 0x378   : > { %3263 = vmatpush1.bf16.msra.mxu1 %v2636_v41  ;;  %v2639_v33 = vsel %vm876_vm2, %v2633_v17, %v7749_v46  ;;  %v2638_v57 = vsel %vm876_vm2, %v7898_v58, %v2633_v17 }
 0x379   : > { %v2835_v19 = vpop.permute.xlu1 %2834  ;;  %3264 = vmatprep.subr.bf16.mxu1 %v2639_v33 }
 0x37a   : > { %3159 = vmatpush1.bf16.msra.mxu0 %v2608_v21  ;;  %v2842_v60 = vsel %vm1344_vm7, %v2835_v19, %v7986_v61 }
 0x37b   : > { %3160 = vmatprep.subr.bf16.mxu0 %v2745_v43  ;;  %v2867_v63 = vpop.permute.xlu0 %2866 }
 0x37c   : > { %3265 = vmatpush1.bf16.msra.mxu1 %v2638_v57 }
 0x37d   : > { %v2741_v46 = vpop.permute.xlu1 %2740  ;;  %3266 = vmatprep.subr.bf16.mxu1 %v2775_v20 }
 0x37e   : > { %v2747_v30 = vsel %vm736_vm1, %v2741_v46, %v7925_v2  ;;  %3161 = vmatpush1.bf16.msra.mxu0 %v2744_v13  ;;  %v2746_v26 = vsel %vm736_vm1, %v7916_v59, %v2741_v46  ;;  %v2840_v59 = vsel %vm1344_vm7, %v7964_v37, %v7942_v3  ;;  %v5899_v3 = vld [vmem:[%s9676_s4] ss:$12 sps:$4 sm:$0xff]  }
 0x37f   : > { %3162 = vmatprep.subr.bf16.mxu0 %v2747_v30  ;;  %v2771_v58 = vpop.permute.xlu0 %2770 }
 0x380   : > { %3267 = vmatpush1.bf16.msra.mxu1 %v2774_v44  ;;  %v2777_v45 = vsel %vm736_vm1, %v2771_v58, %v7928_v55  ;;  %v2776_v52 = vsel %vm736_vm1, %v7937_v9, %v2771_v58  ;;  %v2870_v55 = vsel %vm1344_vm7, %v2859_v51, %v7982_v6  ;;  %v2843_v9 = vsel %vm1344_vm7, %v7986_v61, %v2839_v10  ;;  %v5906_v51 = vld [vmem:[%s9676_s4 + $0x20] ss:$12 sps:$4 sm:$0xff]  }
 0x381   : > { %v2869_v53 = vpop.permute.xlu1 %2868  ;;  %3268 = vmatprep.subr.bf16.mxu1 %v2777_v45  ;;  %vm3959_vm1 = vcmask 654336  }
 0x382   : > { %3163 = vmatpush1.bf16.msra.mxu0 %v2746_v26  ;;  %v2873_v54 = vsel %vm1344_vm7, %v2867_v63, %v2869_v53 }
 0x383   : > { %3164 = vmatprep.subr.bf16.mxu0 %v2841_v1  ;;  %v2865_v42 = vpop.permute.xlu0 %2864 }
 0x384   : > { %3269 = vmatpush1.bf16.msra.mxu1 %v2776_v52  ;;  %v2872_v37 = vsel %vm1344_vm7, %v2865_v42, %v2867_v63 }
 0x385   : > { %v2969_v2 = vpop.permute.xlu1 %2968  ;;  %3270 = vmatprep.subr.bf16.mxu1 %v2871_v5 }
 0x386   : > { %3165 = vmatpush1.bf16.msra.mxu0 %v2840_v59 }
 0x387   : > { %3166 = vmatprep.subr.bf16.mxu0 %v2843_v9  ;;  %v2971_v40 = vpop.permute.xlu0 %2970 }
 0x388   : > { %3271 = vmatpush1.bf16.msra.mxu1 %v2870_v55  ;;  %v2979_v24 = vsel %vm498_vm0, %v2969_v2, %v2971_v40 }
 0x389   : > { %v2967_v28 = vpop.permute.xlu1 %2966  ;;  %3272 = vmatprep.subr.bf16.mxu1 %v2873_v54 }
 0x38a   : > { %3167 = vmatpush1.bf16.msra.mxu0 %v2842_v60  ;;  %v2978_v25 = vsel %vm498_vm0, %v2967_v28, %v2969_v2 }
 0x38b   : > { %3189 = vmatprep.subr.bf16.mxu0 %v2979_v24  ;;  %v2999_v56 = vpop.permute.xlu0 %2998 }
 0x38c   : > { %3273 = vmatpush1.bf16.msra.mxu1 %v2872_v37 }
 0x38d   : > { %v3001_v15 = vpop.permute.xlu1 %3000  ;;  %3169 = vmatmul.mubr.bf16.vlgmr.msra.gmra.mrb[8].mxu0 %v5899_v3 }
 0x38e   : > { %v3009_v7 = vsel %vm498_vm0, %v2999_v56, %v3001_v15  ;;  %3190 = vmatpush1.bf16.msra.mxu0 %v2978_v25  ;;  %3178 = vmatprep.mubr.bf16.mxu0 %v5902_v4 }
 0x38f   : > { %3295 = vmatprep.subr.bf16.mxu1 %v3009_v7  ;;  %v2997_v49 = vpop.permute.xlu0 %2996  ;;  %3275 = vmatmul.mubr.bf16.vlgmr.msra.gmra.mrb[8].mxu1 %v5899_v3 }
 0x390   : > { %v3008_v47 = vsel %vm498_vm0, %v2997_v49, %v2999_v56  ;;  %3284 = vmatprep.mubr.bf16.mxu1 %v5902_v4 }
 0x391   : > { %v2973_v6 = vpop.permute.xlu1 %2972  ;;  %3296 = vmatpush1.bf16.msra.mxu1 %v3008_v47 }
 0x393   : > { %v2977_v36 = vpop.permute.xlu0 %2976 }
 0x395   : > { %v2975_v16 = vpop.permute.xlu1 %2974  ;;  %3179 = vmatmul.mubr.bf16.gmra.mrb[12].mxu0 %v5904_v23 }
 0x396   : > { %v2981_v14 = vsel %vm498_vm0, %v2975_v16, %v2977_v36  ;;  %v2980_v29 = vsel %vm498_vm0, %v2973_v6, %v2975_v16  ;;  %3221 = vmatprep.mubr.bf16.mxu0 %v9917_v48 }
 0x397   : > { %3191 = vmatprep.subr.bf16.mxu0 %v2981_v14  ;;  %v3005_v50 = vpop.permute.xlu0 %3004  ;;  %3285 = vmatmul.mubr.bf16.gmra.mrb[12].mxu1 %v5904_v23 }
 0x398   : > { %3192 = vmatpush1.bf16.msra.mxu0 %v2980_v29  ;;  %3327 = vmatprep.mubr.bf16.mxu1 %v9917_v48 }
 0x399   : > { %v3007_v12 = vpop.permute.xlu1 %3006 }
 0x39a   : > { %v3011_v34 = vsel %vm498_vm0, %v3005_v50, %v3007_v12 }
 0x39b   : > { %3297 = vmatprep.subr.bf16.mxu1 %v3011_v34  ;;  %v3003_v18 = vpop.permute.xlu0 %3002 }
 0x39c   : > { %v3010_v22 = vsel %vm498_vm0, %v3003_v18, %v3005_v50  ;;  %vm3931_vm0 = vcmask 785408  }
 0x39d   : > { %5625 = vmatmul.mubr.msk.bf16.vlgmr.msra.gmra.mrb[8].mxu0 %vm1637_vm8, %v5905_v62  ;;  %3298 = vmatpush1.bf16.msra.mxu1 %v3010_v22 }
 0x39e   : > { %3231 = vmatprep.mubr.bf16.mxu0 %v9917_v48 }
 0x3a0   : > { %5627 = vmatmul.mubr.msk.bf16.vlgmr.msra.gmra.mrb[8].mxu1 %vm1637_vm8, %v5905_v62 }
 0x3a1   : > { %3337 = vmatprep.mubr.bf16.mxu1 %v9917_v48 }
 0x3a5   : > { %5626 = vmatmul.mubr.msk.bf16.gmra.mrb[12].mxu0 %vm1637_vm8, %v5906_v51 }
 0x3a8   : > { %5628 = vmatmul.mubr.msk.bf16.gmra.mrb[12].mxu1 %vm1637_vm8, %v5906_v51 }
 0x3aa   : > { %v3355_v39 = vpop.permute.xlu1 %3354 }
 0x3ac   : > { %v3360_v61 = vpop.permute.xlu0 %3359 }
 0x3ae   : > { %v3395_v27 = vpop.permute.xlu1 %3394 }
 0x3b0   : > { %v3400_v43 = vpop.permute.xlu0 %3399 }
 0x3b2   : > { %v3365_v3 = vpop.permute.xlu1 %3364 }
 0x3b4   : > { %v3370_v40 = vpop.permute.xlu0 %3369 }
 0x3b6   : > { %v3405_v14 = vpop.permute.xlu1 %3404 }
 0x3b8   : > { %v3410_v49 = vpop.permute.xlu0 %3409 }
 0x470   : > { %v3223_v35 = vpop.f32.mrb[8].mxu0 }
 0x471   : > { %v3372_v0 = vmul.f32 %v3355_v39, %v3223_v35  ;;  %v3225_v11 = vpop.f32.mrb[9].mxu0 }
 0x472   : > { %v3373_v10 = vmul.f32 %v3355_v39, %v3225_v11  ;;  %v3227_v31 = vpop.f32.mrb[10].mxu0 }
 0x473   : > { %v8076_v32 = vadd.f32 %v3395_v27, %v3372_v0  ;;  %v3229_v8 = vpop.f32.mrb[11].mxu0  ;;  %v3329_v38 = vpop.f32.mrb[8].mxu1  ;;  %v3376_v13 = vmul.f32 %v3360_v61, %v3227_v31 }
 0x474   : > { %v8078_v41 = vadd.f32 %v3395_v27, %v3373_v10  ;;  %v3374_v17 = vmul.f32 %v3355_v39, %v3329_v38  ;;  %v3331_v19 = vpop.f32.mrb[9].mxu1  ;;  %v3377_v30 = vmul.f32 %v3360_v61, %v3229_v8  ;;  %v9918_v38 = vmov 0.0|0.0  }
 0x475   : > { %v3375_v33 = vmul.f32 %v3355_v39, %v3331_v19  ;;  %v3333_v21 = vpop.f32.mrb[10].mxu1  ;;  %v8092_v5 = vadd.f32 %v3400_v43, %v3376_v13  ;;  %5794 = vmatprep.subr.bf16.mxu0 %v9918_v38 }
 0x476   : > { %v8080_v57 = vadd.f32 %v3395_v27, %v3374_v17  ;;  %v3378_v63 = vmul.f32 %v3360_v61, %v3333_v21  ;;  %v3335_v20 = vpop.f32.mrb[11].mxu1  ;;  %v3428_v46 = vadd.f32 %v8078_v41, %v8076_v32  ;;  %v8094_v2 = vadd.f32 %v3400_v43, %v3377_v30  ;;  %v5936_v17 = vld [vmem:[#allocation3] sm:$0xff] }
 0x477   : > { %v8084_v44 = vadd.f32 %v3395_v27, %v3375_v33  ;;  %v3379_v58 = vmul.f32 %v3360_v61, %v3335_v20  ;;  %v3445_v60 = vmax.f32 %v8076_v32, %v8078_v41  ;;  %5783 = vmatprep.mubr.msk.f32.mxu0 %vm5978_vm9, %v5936_v17  ;;  %vm4886_vm9 = vcmask 662528  }
 0x478   : > { %v8086_v53 = vadd.f32 %v3400_v43, %v3378_v63  ;;  %3429 = vadd.xlane.f32.xlu1 %v3428_v46  ;;  %v3233_v45 = vpop.f32.mrb[12].mxu0  ;;  %v3448_v4 = vmax.f32 %v8092_v5, %v8094_v2  ;;  %v3431_v29 = vadd.f32 %v8094_v2, %v8092_v5 }
 0x479   : > { %v8088_v26 = vadd.f32 %v3400_v43, %v3379_v58  ;;  %v3235_v1 = vpop.f32.mrb[13].mxu0  ;;  %v3457_v52 = vadd.f32 %v8084_v44, %v8080_v57  ;;  %v3380_v15 = vmul.f32 %v3365_v3, %v3233_v45  ;;  %v3473_v7 = vmax.f32 %v8080_v57, %v8084_v44 }
 0x47a   : > { %v3237_v42 = vpop.f32.mrb[14].mxu0  ;;  %v3381_v25 = vmul.f32 %v3365_v3, %v3235_v1 }
 0x47b   : > { %v3239_v59 = vpop.f32.mrb[15].mxu0  ;;  %3458 = vadd.xlane.f32.xlu0 %v3457_v52  ;;  %v3339_v55 = vpop.f32.mrb[12].mxu1  ;;  %v3460_v9 = vadd.f32 %v8088_v26, %v8086_v53  ;;  %v3384_v24 = vmul.f32 %v3370_v40, %v3237_v42  ;;  %v3476_v47 = vmax.f32 %v8086_v53, %v8088_v26  ;;  %v8112_v50 = vadd.f32 %v3405_v14, %v3380_v15 }
 0x47c   : > { %v3341_v54 = vpop.f32.mrb[13].mxu1  ;;  %v3385_v56 = vmul.f32 %v3370_v40, %v3239_v59  ;;  %v8114_v12 = vadd.f32 %v3405_v14, %v3381_v25  ;;  %v3382_v34 = vmul.f32 %v3365_v3, %v3339_v55 }
 0x47d   : > { %v3343_v28 = vpop.f32.mrb[14].mxu1  ;;  %3461 = vadd.xlane.f32.xlu1 %v3460_v9  ;;  %v8106_v6 = vadd.f32 %v3410_v49, %v3384_v24  ;;  %v3383_v62 = vmul.f32 %v3365_v3, %v3341_v54 }
 0x47e   : > { %v3345_v37 = vpop.f32.mrb[15].mxu1  ;;  %v8108_v23 = vadd.f32 %v3410_v49, %v3385_v56  ;;  %v3386_v36 = vmul.f32 %v3370_v40, %v3343_v28  ;;  %v8122_v39 = vadd.f32 %v3405_v14, %v3382_v34  ;;  %v3434_v35 = vadd.f32 %v8114_v12, %v8112_v50 }
 0x47f   : > { %3446 = vmax.xlane.f32.xlu0 %v3445_v60  ;;  %v3387_v16 = vmul.f32 %v3370_v40, %v3345_v37  ;;  %v8124_v61 = vadd.f32 %v3405_v14, %v3383_v62  ;;  %v3451_v10 = vmax.f32 %v8112_v50, %v8114_v12 }
 0x480   : > { %v8116_v18 = vadd.f32 %v3410_v49, %v3386_v36  ;;  %v3437_v51 = vadd.f32 %v8108_v23, %v8106_v6  ;;  %v3454_v27 = vmax.f32 %v8106_v6, %v8108_v23 }
 0x481   : > { %3449 = vmax.xlane.f32.xlu1 %v3448_v4  ;;  %v8118_v22 = vadd.f32 %v3410_v49, %v3387_v16  ;;  %v3463_v11 = vadd.f32 %v8124_v61, %v8122_v39  ;;  %v3479_v8 = vmax.f32 %v8122_v39, %v8124_v61 }
 0x483   : > { %3474 = vmax.xlane.f32.xlu0 %v3473_v7  ;;  %v3466_v0 = vadd.f32 %v8118_v22, %v8116_v18  ;;  %v3482_v31 = vmax.f32 %v8116_v18, %v8118_v22 }
 0x485   : > { %3477 = vmax.xlane.f32.xlu1 %v3476_v47 }
 0x487   : > { %3432 = vadd.xlane.f32.xlu0 %v3431_v29 }
 0x489   : > { %3438 = vadd.xlane.f32.xlu1 %v3437_v51 }
 0x48b   : > { %3435 = vadd.xlane.f32.xlu0 %v3434_v35  ;;  %v3499_v35 = vld [vmem:[%s9679_s7] sm:$0x3] }
 0x48d   : > { %3467 = vadd.xlane.f32.xlu1 %v3466_v0  ;;  %v3574_v0 = vld [vmem:[%s9680_s8] sm:$0xff] }
 0x48e   : > { %5788 = vmatprep.mubr.msk.f32.mxu1 %vm3489_vm10, %v3574_v0  ;;  %v4054_v0 = vld [vmem:[%s9681_s9] ss:$8 sm:$0x3] }
 0x48f   : > { %3464 = vadd.xlane.f32.xlu0 %v3463_v11  ;;  %v9919_v11 = vld [vmem:[#allocation7_spill] sm:$0xff] }
 0x490   : > { %vm3864_vm12 = vcmp.lt.s32.totalorder %v9919_v11, 2 }
 0x491   : > { %3455 = vmax.xlane.f32.xlu1 %v3454_v27  ;;  %v8163_v27 = vsel %vm3864_vm12, 1.0, %v5936_v17  ;;  %vm4688_vm12 = vcmask 1022976  }
 0x493   : > { %3452 = vmax.xlane.f32.xlu0 %v3451_v10  ;;  %v8166_v10 = vsub.f32 1.0, %v8163_v27 }
 0x495   : > { %3483 = vmax.xlane.f32.xlu1 %v3482_v31  ;;  %v3913_v31 = vstv %s5643_s12  ;;  %s8187_s12 = sld [smem:[#allocation4 + $0x40]] }
 0x497   : > { %3480 = vmax.xlane.f32.xlu0 %v3479_v8  ;;  %v3916_v8 = vstv %s5644_s19  ;;  %s8190_s19 = sld [smem:[#allocation4 + $0x8]] }
 0x498   : > { %v3917_v17 = vmul.f32 %v3916_v8, %v8166_v10 }
 0x505   : > { %v3430_v19 = vpop.xlane.xlu1 %3429 }
 0x506   : > { %v3441_v13 = vmul.f32 0.00390625, %v3430_v19  ;;  %v3885_v19 = vstv %s5641_s21  ;;  %s8192_s21 = sld [smem:[#allocation4 + $0x39]] }
 0x508   : > { %v3459_v33 = vpop.xlane.xlu0 %3458 }
 0x509   : > { %v3469_v1 = vmul.f32 0.00390625, %v3459_v33  ;;  %v8178_v33 = vld [vmem:[#allocation3] sm:$0xf] }
 0x50a   : > { %v3462_v21 = vpop.xlane.xlu1 %3461 }
 0x50b   : > { %v3470_v52 = vmul.f32 0.00390625, %v3462_v21  ;;  %v3886_v21 = vmul.f32 %v8163_v27, %v3885_v19 }
 0x50c   : > { %v3447_v43 = vpop.xlane.xlu0 %3446 }
 0x50d   : > { %v3485_v58 = vsel %vm935_vm3, %v3441_v13, %v3447_v43  ;;  %v3888_v43 = vstv %s5642_s22  ;;  %s8202_s22 = sld [smem:[#allocation4 + $0x1d]] }
 0x50e   : > { %v3450_v63 = vpop.xlane.xlu1 %3449  ;;  %v3490_v55 = vsel %vm3489_vm10, %v3485_v58, %v3469_v1  ;;  %v3944_v1 = vstv %s5646_s26  ;;  %s9727_s26 = smov 96  }
 0x510   : > { %v3475_v20 = vpop.xlane.xlu0 %3474 }
 0x511   : > { %v3495_v54 = vsel %vm3494_vm11, %v3490_v55, %v3475_v20 }
 0x512   : > { %v3478_v46 = vpop.xlane.xlu1 %3477 }
 0x513   : > { %v4174_v11 = vstv %s8202_s22  ;;  %s8271_s22 = sld [smem:[#allocation4 + $0x9]] }
 0x514   : > { %v3433_v30 = vpop.xlane.xlu0 %3432 }
 0x515   : > { %v3442_v45 = vmul.f32 0.00390625, %v3433_v30  ;;  %v3975_v30 = vstv %s5648_s24  ;;  %s8210_s24 = sld [smem:[#allocation4 + $0x16]] }
 0x516   : > { %v3439_v42 = vpop.xlane.xlu1 %3438  ;;  %v3976_v58 = vmul.f32 %v3975_v30, %v8166_v10 }
 0x517   : > { %v3486_v59 = vsel %vm935_vm3, %v3442_v45, %v3450_v63  ;;  %v3444_v56 = vmul.f32 0.00390625, %v3439_v42  ;;  %v3972_v63 = vstv %s5647_s14  ;;  %v3941_v45 = vstv %s5645_s25  ;;  %s8204_s14 = sld [smem:[#allocation4 + $0x4e]]  ;;  %s8212_s25 = sld [smem:[#allocation4 + $0x47]] }
 0x518   : > { %v3491_v9 = vsel %vm3489_vm10, %v3486_v59, %v3470_v52  ;;  %v3436_v40 = vpop.xlane.xlu0 %3435  ;;  %v3973_v13 = vmul.f32 %v8163_v27, %v3972_v63  ;;  %v8194_v52 = vld [vmem:[#allocation3 + $0x18] sm:$0xf]  ;;  %v3942_v55 = vmul.f32 %v8163_v27, %v3941_v45 }
 0x519   : > { %v3496_v28 = vsel %vm3494_vm11, %v3491_v9, %v3478_v46  ;;  %v3443_v4 = vmul.f32 0.00390625, %v3436_v40  ;;  %v3889_v46 = vmul.f32 %v3888_v43, %v8166_v10  ;;  %v3945_v9 = vmul.f32 %v3944_v1, %v8166_v10  ;;  %v9920_v43 = vld [vmem:[#allocation9_spill] sm:$0xff]  ;;  %v9921_v1 = vld [vmem:[#allocation8_spill] sm:$0xff] }
 0x51a   : > { %v3468_v60 = vpop.xlane.xlu1 %3467  ;;  %v5795_v3 = vpack.c.bf16 %v3496_v28, %v3495_v54  ;;  %v8206_v40 = vadd.f32 %v3976_v58, %v3973_v13  ;;  %v4028_v54 = vstv %s8168_s27  ;;  %v4031_v28 = vstv %s8170_s15  ;;  %s8225_s27 = sld [smem:[#allocation4 + $0x2b]]  ;;  %s8227_s15 = sld [smem:[#allocation4 + $0x5c]] }
 0x51b   : > { %v3472_v49 = vmul.f32 0.00390625, %v3468_v60  ;;  %v8198_v59 = vadd.f32 %v3889_v46, %v3886_v21  ;;  %v4147_v19 = vstv %s8210_s24  ;;  %v4063_v63 = vrot.slane %v4054_v0, %v9920_v43  ;;  %s9733_s24 = smov 48  }
 0x51c   : > { %5796 = vmatpush3.bf16.msra.mxu0 %v5795_v3  ;;  %v3465_v37 = vpop.xlane.xlu0 %3464  ;;  %v8217_v3 = vadd.f32 %v3945_v9, %v3942_v55  ;;  %v4175_v13 = vmul.f32 %v8163_v27, %v4174_v11  ;;  %v4148_v9 = vmul.f32 %v8163_v27, %v4147_v19 }
 0x51d   : > { %5797 = vmatprep.subr.bf16.mxu0 %v9918_v38  ;;  %v3471_v47 = vmul.f32 0.00390625, %v3465_v37  ;;  %v3914_v38 = vmul.f32 %v8163_v27, %v3913_v31  ;;  %v3891_v60 = vmul.f32 %v8198_v59, %v8178_v33  ;;  %v4029_v37 = vmul.f32 %v8163_v27, %v4028_v54 }
 0x51e   : > { %v3456_v24 = vpop.xlane.xlu1 %3455  ;;  %v4177_v31 = vstv %s8204_s14  ;;  %v4150_v21 = vstv %s8212_s25  ;;  %s8273_s14 = sld [smem:[#allocation4 + $0x3a]]  ;;  %s8283_s25 = sld [smem:[#allocation4 + $0x10]] }
 0x51f   : > { %v3488_v25 = vsel %vm935_vm3, %v3444_v56, %v3456_v24  ;;  %v8181_v20 = vadd.f32 %v3917_v17, %v3914_v38  ;;  %v4032_v24 = vmul.f32 %v4031_v28, %v8166_v10  ;;  %v3980_v56 = vmul.f32 %v8206_v40, %v8194_v52  ;;  %3897 = vrot.lane.b32.xlu1 %v3891_v60, %s9729_s18 }
 0x520   : > { %v3453_v15 = vpop.xlane.xlu0 %3452  ;;  %v3493_v16 = vsel %vm3489_vm10, %v3488_v25, %v3472_v49  ;;  %v3947_v25 = vmul.f32 %v8217_v3, %v8178_v33  ;;  %v4178_v30 = vmul.f32 %v4177_v31, %v8166_v10  ;;  %v4228_v58 = vstv %s8225_s27  ;;  %s8285_s27 = sld [smem:[#allocation4 + $0x41]]  ;;  %v5667_v31 = vld [vmem:[%s9681_s9 + $0x1] ss:$8 sm:$0x3] }
 0x521   : > { %v3487_v7 = vsel %vm935_vm3, %v3443_v4, %v3453_v15  ;;  %v3919_v42 = vmul.f32 %v8181_v20, %v8178_v33  ;;  %v4000_v4 = vstv %s8174_s28  ;;  %v4003_v15 = vstv %s8176_s13  ;;  %s8240_s28 = sld [smem:[#allocation4 + $0x24]]  ;;  %s8242_s13 = sld [smem:[#allocation4 + $0x55]] }
 0x522   : > { %v3484_v36 = vpop.xlane.xlu1 %3483  ;;  %v3492_v14 = vsel %vm3489_vm10, %v3487_v7, %v3471_v47  ;;  %v8232_v7 = vadd.f32 %v4032_v24, %v4029_v37  ;;  %v4001_v49 = vmul.f32 %v8163_v27, %v4000_v4  ;;  %v4004_v47 = vmul.f32 %v4003_v15, %v8166_v10 }
 0x523   : > { %v3498_v34 = vsel %vm3494_vm11, %v3493_v16, %v3484_v36  ;;  %3925 = vrot.lane.b32.xlu0 %v3919_v42, %s9727_s26  ;;  %v4120_v36 = vstv %s8185_s29  ;;  %v4123_v16 = vstv %s8187_s12  ;;  %v4231_v45 = vstv %s8227_s15  ;;  %s5984_s15 = smov 77   ;;  %s8293_s29 = sld [smem:[#allocation4 + $0x17]] }
 0x524   : > { %v3481_v29 = vpop.xlane.xlu0 %3480  ;;  %v4059_v42 = vrot.slane %v4054_v0, %v9921_v1  ;;  %v4151_v54 = vmul.f32 %v4150_v21, %v8166_v10  ;;  %v8289_v24 = vadd.f32 %v4178_v30, %v4175_v13  ;;  %v4232_v4 = vmul.f32 %v4231_v45, %v8166_v10  ;;  %s8305_s12 = sld [smem:[#allocation4 + $0x3b]] }
 0x525   : > { %v3497_v62 = vsel %vm3494_vm11, %v3492_v14, %v3481_v29  ;;  %v4093_v14 = vstv %s8190_s19  ;;  %v4096_v29 = vstv %s8192_s21  ;;  %s5981_s19 = smov 80   ;;  %s9735_s21 = smov 32   ;;  %v4264_v45 = vrot.slane %v5667_v31, %v9920_v43 }
 0x526   : > { %v5798_v51 = vpack.c.bf16 %v3498_v34, %v3497_v62  ;;  %v4036_v34 = vmul.f32 %v8232_v7, %v8194_v52  ;;  %v8247_v62 = vadd.f32 %v4004_v47, %v4001_v49  ;;  %3953 = vrot.lane.b32.xlu1 %v3947_v25, %s5981_s19  ;;  %v4094_v38 = vmul.f32 %v8163_v27, %v4093_v14 }
 0x527   : > { %3988 = vrot.lane.b32.xlu0 %v3980_v56, %s5980_s16  ;;  %v4097_v17 = vmul.f32 %v4096_v29, %v8166_v10  ;;  %v4201_v28 = vstv %s8240_s28  ;;  %v4204_v60 = vstv %s8242_s13  ;;  %v4229_v56 = vmul.f32 %v8163_v27, %v4228_v58  ;;  %s8295_s28 = sld [smem:[#allocation4 + $0x48]]  ;;  %s8303_s13 = sld [smem:[#allocation4 + $0xa]] }
 0x528   : > { %5799 = vmatpush3.bf16.msra.mxu0 %v5798_v51  ;;  %v4121_v51 = vmul.f32 %v8163_v27, %v4120_v36  ;;  %v4008_v8 = vmul.f32 %v8247_v62, %v8194_v52  ;;  %v8299_v25 = vadd.f32 %v4151_v54, %v4148_v9  ;;  %v4202_v49 = vmul.f32 %v8163_v27, %v4201_v28 }
 0x529   : > { %v8277_v55 = vadd.f32 %v4097_v17, %v4094_v38  ;;  %v4205_v47 = vmul.f32 %v4204_v60, %v8166_v10  ;;  %v4182_v36 = vmul.f32 %v8289_v24, %v8194_v52  ;;  %v4308_v14 = vstv %s8271_s22  ;;  %s8327_s22 = sld [smem:[#allocation4 + $0x4f]] }
 0x52a   : > { %4016 = vrot.lane.b32.xlu1 %v4008_v8, %s9733_s24  ;;  %v4311_v29 = vstv %s8273_s14  ;;  %v4338_v0 = vstv %s8285_s27  ;;  %v4309_v8 = vmul.f32 %v8163_v27, %v4308_v14  ;;  %v4362_v17 = vstv %s8293_s29  ;;  %s8341_s27 = sld [smem:[#allocation4 + $0x42]]  ;;  %s8352_s29 = sld [smem:[#allocation4 + $0x43]] }
 0x52b   : > { %5784 = vmatmul.mubr.msk.f32.vlgmr.msra.gmra.mrb[16].mxu0 %vm1637_vm8, %v3499_v35  ;;  %v4124_v35 = vmul.f32 %v4123_v16, %v8166_v10  ;;  %4044 = vrot.lane.b32.xlu0 %v4036_v34, %s9735_s21  ;;  %v4099_v15 = vmul.f32 %v8277_v55, %v8178_v33  ;;  %v8310_v16 = vadd.f32 %v4232_v4, %v4229_v56  ;;  %v4526_v58 = vstv %s8305_s12  ;;  %s8374_s12 = sld [smem:[#allocation4 + $0x25]]  ;;  %s8398_s14 = sld [smem:[#allocation4 + $0x13]] }
 0x52c   : > { %v4153_v34 = vmul.f32 %v8299_v25, %v8178_v33  ;;  %v4312_v38 = vmul.f32 %v4311_v29, %v8166_v10  ;;  %v4339_v13 = vmul.f32 %v4338_v0, %v8166_v10  ;;  %v4363_v9 = vmul.f32 %v8163_v27, %v4362_v17 }
 0x52d   : > { %v8265_v46 = vadd.f32 %v4124_v35, %v4121_v51  ;;  %v8321_v51 = vadd.f32 %v4205_v47, %v4202_v49  ;;  %v4335_v35 = vstv %s8283_s25  ;;  %v4236_v11 = vmul.f32 %v8310_v16, %v8194_v52  ;;  %s8339_s25 = sld [smem:[#allocation4 + $0x11]] }
 0x52e   : > { %4064 = vrot.lane.b32.xlu1 %v4059_v42, %s5984_s15  ;;  %v4365_v19 = vstv %s8295_s28  ;;  %v4523_v30 = vstv %s8303_s13  ;;  %v8356_v42 = vadd.f32 %v4312_v38, %v4309_v8  ;;  %v4714_v60 = vstv %s8316_s23  ;;  %s8362_s28 = sld [smem:[#allocation4 + $0xc]]  ;;  %s8364_s13 = sld [smem:[#allocation4 + $0x3d]] }
 0x52f   : > { %4066 = vrot.lane.b32.xlu0 %v4063_v63, %s5984_s15  ;;  %v4126_v37 = vmul.f32 %v8265_v46, %v8178_v33  ;;  %s8314_s15 = sld [smem:[#allocation4 + $0xb]]  ;;  %v4209_v21 = vmul.f32 %v8321_v51, %v8194_v52  ;;  %v4336_v63 = vmul.f32 %v8163_v27, %v4335_v35  ;;  %v4366_v54 = vmul.f32 %v4365_v19, %v8166_v10  ;;  %s8376_s23 = sld [smem:[#allocation4 + $0x56]] }
 0x530   : > { %v4524_v4 = vmul.f32 %v8163_v27, %v4523_v30  ;;  %v4392_v47 = vstv %s8327_s22  ;;  %v4553_v0 = vstv %s8341_s27  ;;  %s8388_s22 = sld [smem:[#allocation4 + $0x4a]]  ;;  %v4741_v19 = vstv %s8352_s29  ;;  %s9922_s27 = smov 112  }
 0x531   : > { %v8368_v56 = vadd.f32 %v4339_v13, %v4336_v63  ;;  %v8380_v14 = vadd.f32 %v4366_v54, %v4363_v9  ;;  %v4393_v38 = vmul.f32 %v4392_v47, %v8166_v10  ;;  %v4554_v30 = vmul.f32 %v4553_v0, %v8166_v10  ;;  %s8413_s29 = sld [smem:[#allocation4 + $0x3e]] }
 0x532   : > { %4105 = vrot.lane.b32.xlu1 %v4099_v15, %s9729_s18  ;;  %s8350_s18 = sld [smem:[#allocation4 + $0x12]]  ;;  %v4527_v15 = vmul.f32 %v4526_v58, %v8166_v10  ;;  %vm3990_vm3 = vcmask 523264   ;;  %vm5318_vm11 = vcmask 678912  }
 0x533   : > { %4132 = vrot.lane.b32.xlu0 %v4126_v37, %s9727_s26  ;;  %s8325_s26 = sld [smem:[#allocation4 + $0x1e]]  ;;  %v4260_v37 = vrot.slane %v5667_v31, %v9921_v1  ;;  %v4550_v35 = vstv %s8339_s25  ;;  %s8400_s25 = sld [smem:[#allocation4 + $0x44]] }
 0x534   : > { %v8392_v31 = vadd.f32 %v4527_v15, %v4524_v4  ;;  %v4551_v13 = vmul.f32 %v8163_v27, %v4550_v35  ;;  %v4926_v58 = vstv %s8362_s28  ;;  %s8424_s28 = sld [smem:[#allocation4 + $0x2c]] }
 0x535   : > { %v4711_v28 = vstv %s8314_s15  ;;  %s5985_s15 = smov 78   ;;  %v4419_v4 = vstv %s8376_s23  ;;  %v4927_v47 = vmul.f32 %v8163_v27, %v4926_v58  ;;  %s8439_s23 = sld [smem:[#allocation4 + $0x50]] }
 0x536   : > { %4159 = vrot.lane.b32.xlu1 %v4153_v34, %s5981_s19  ;;  %v4712_v29 = vmul.f32 %v8163_v27, %v4711_v28  ;;  %v4715_v34 = vmul.f32 %v4714_v60, %v8166_v10  ;;  %v4529_v9 = vmul.f32 %v8392_v31, %v8178_v33  ;;  %v4742_v60 = vmul.f32 %v4741_v19, %v8166_v10 }
 0x537   : > { %4190 = vrot.lane.b32.xlu0 %v4182_v36, %s5980_s16  ;;  %v4314_v36 = vmul.f32 %v8356_v42, %v8178_v33 }
 0x538   : > { %v4738_v17 = vstv %s8350_s18  ;;  %v8405_v63 = vadd.f32 %v4715_v34, %v4712_v29  ;;  %s8411_s18 = sld [smem:[#allocation4 + $0xd]]  ;;  %v4768_v34 = vstv %s8388_s22  ;;  %s8452_s22 = sld [smem:[#allocation4 + $0x51]] }
 0x539   : > { %v4389_v49 = vstv %s8325_s26  ;;  %s8386_s26 = sld [smem:[#allocation4 + $0x19]]  ;;  %v4739_v28 = vmul.f32 %v8163_v27, %v4738_v17  ;;  %v4956_v17 = vstv %s8400_s25  ;;  %s8465_s25 = sld [smem:[#allocation4 + $0x4b]] }
 0x53a   : > { %4217 = vrot.lane.b32.xlu1 %v4209_v21, %s9733_s24  ;;  %v4390_v8 = vmul.f32 %v8163_v27, %v4389_v49  ;;  %v4368_v21 = vmul.f32 %v8380_v14, %v8178_v33  ;;  %v4717_v15 = vmul.f32 %v8405_v63, %v8178_v33  ;;  %v8431_v49 = vadd.f32 %v4554_v30, %v4551_v13 }
 0x53b   : > { %4244 = vrot.lane.b32.xlu0 %v4236_v11, %s9735_s21  ;;  %v4341_v11 = vmul.f32 %v8368_v56, %v8178_v33  ;;  %v8444_v0 = vadd.f32 %v4742_v60, %v4739_v28  ;;  %v4769_v30 = vmul.f32 %v4768_v34, %v8166_v10 }
 0x53c   : > { %v8418_v54 = vadd.f32 %v4393_v38, %v4390_v8  ;;  %v4420_v8 = vmul.f32 %v4419_v4, %v8166_v10  ;;  %v4953_v38 = vstv %s8398_s14  ;;  %v4556_v19 = vmul.f32 %v8431_v49, %v8178_v33  ;;  %s8463_s14 = sld [smem:[#allocation4 + $0x1a]] }
 0x53d   : > { %v4954_v60 = vmul.f32 %v8163_v27, %v4953_v38  ;;  %v4443_v4 = vstv %s8424_s28  ;;  %s8507_s28 = sld [smem:[#allocation4 + $0x26]] }
 0x53e   : > { %4265 = vrot.lane.b32.xlu1 %v4260_v37, %s5985_s15  ;;  %v4416_v37 = vstv %s8374_s12  ;;  %s8437_s12 = sld [smem:[#allocation4 + $0x1f]]  ;;  %v4397_v35 = vmul.f32 %v8418_v54, %v8194_v52  ;;  %v5142_v58 = vstv %s8411_s18  ;;  %s8476_s18 = sld [smem:[#allocation4 + $0x14]] }
 0x53f   : > { %4267 = vrot.lane.b32.xlu0 %v4264_v45, %s5985_s15  ;;  %v4929_v45 = vstv %s8364_s13  ;;  %s9923_s15 = smov 96   ;;  %s8426_s13 = sld [smem:[#allocation4 + $0x5d]]  ;;  %v4765_v29 = vstv %s8386_s26 }
 0x540   : > { %s8450_s26 = sld [smem:[#allocation4 + $0x20]]  ;;  %v4766_v13 = vmul.f32 %v8163_v27, %v4765_v29  ;;  %v5143_v29 = vmul.f32 %v8163_v27, %v5142_v58 }
 0x542   : > { %4347 = vrot.lane.b32.xlu1 %v4341_v11, %s9923_s15  ;;  %v4417_v11 = vmul.f32 %v8163_v27, %v4416_v37  ;;  %v4957_v37 = vmul.f32 %v4956_v17, %v8166_v10  ;;  %v4444_v17 = vmul.f32 %v8163_v27, %v4443_v4 }
 0x543   : > { %4320 = vrot.lane.b32.xlu0 %v4314_v36, %s9922_s27  ;;  %v4930_v36 = vmul.f32 %v4929_v45, %v8166_v10  ;;  %v5145_v45 = vstv %s8413_s29  ;;  %s8478_s29 = sld [smem:[#allocation4 + $0x45]] }
 0x544   : > { %v8470_v28 = vadd.f32 %v4420_v8, %v4417_v11  ;;  %v5146_v34 = vmul.f32 %v5145_v45, %v8166_v10  ;;  %v4602_v11 = vstv %s8439_s23  ;;  %v8492_v38 = vadd.f32 %v4957_v37, %v4954_v60  ;;  %s8522_s23 = sld [smem:[#allocation4 + $0x58]] }
 0x545   : > { %v4603_v60 = vmul.f32 %v4602_v11, %v8166_v10  ;;  %v4980_v37 = vstv %s8463_s14  ;;  %s8542_s14 = sld [smem:[#allocation4 + $0x1b]] }
 0x546   : > { %4535 = vrot.lane.b32.xlu1 %v4529_v9, %s9922_s27  ;;  %v4744_v9 = vmul.f32 %v8444_v0, %v8178_v33  ;;  %9924 = vst [vmem:[#allocation22_spill] sm:$0xff] %v8470_v28  ;;  %v4424_v8 = vmul.f32 %v8470_v28, %v8194_v52  ;;  %9926 = vst [vmem:[#allocation24_spill] sm:$0xff] %v8492_v38  ;;  %v8501_v45 = vadd.f32 %v5146_v34, %v5143_v29 }
 0x547   : > { %4374 = vrot.lane.b32.xlu0 %v4368_v21, %s5981_s19  ;;  %v8457_v21 = vadd.f32 %v4930_v36, %v4927_v47  ;;  %v8483_v36 = vadd.f32 %v4769_v30, %v4766_v13  ;;  %v4792_v13 = vstv %s8450_s26  ;;  %v4795_v30 = vstv %s8452_s22  ;;  %s8531_s26 = sld [smem:[#allocation4 + $0x21]]  ;;  %s8533_s22 = sld [smem:[#allocation4 + $0x52]] }
 0x548   : > { %9927 = vst [vmem:[#allocation25_spill] sm:$0xff] %v8501_v45  ;;  %v4983_v28 = vstv %s8465_s25  ;;  %v4959_v4 = vmul.f32 %v8492_v38, %v8178_v33  ;;  %v4796_v29 = vmul.f32 %v4795_v30, %v8166_v10  ;;  %v5169_v34 = vstv %s8476_s18  ;;  %s8544_s25 = sld [smem:[#allocation4 + $0x4c]]  ;;  %s8553_s18 = sld [smem:[#allocation4 + $0x2d]] }
 0x549   : > { %v4932_v47 = vmul.f32 %v8457_v21, %v8178_v33  ;;  %9925 = vst [vmem:[#allocation23_spill] sm:$0xff] %v8483_v36  ;;  %v4773_v58 = vmul.f32 %v8483_v36, %v8194_v52  ;;  %v5148_v11 = vmul.f32 %v8501_v45, %v8178_v33 }
 0x54a   : > { %4405 = vrot.lane.b32.xlu1 %v4397_v35, %s5980_s16  ;;  %v4599_v35 = vstv %s8437_s12  ;;  %s8520_s12 = sld [smem:[#allocation4 + $0x27]] }
 0x54b   : > { %4723 = vrot.lane.b32.xlu0 %v4717_v15, %s9922_s27  ;;  %v4446_v15 = vstv %s8426_s13  ;;  %s8509_s13 = sld [smem:[#allocation4 + $0x57]] }
 0x54e   : > { %4750 = vrot.lane.b32.xlu1 %v4744_v9, %s9923_s15  ;;  %v4600_v9 = vmul.f32 %v8163_v27, %v4599_v35  ;;  %v5172_v35 = vstv %s8478_s29  ;;  %s8555_s29 = sld [smem:[#allocation4 + $0x5e]] }
 0x54f   : > { %4562 = vrot.lane.b32.xlu0 %v4556_v19, %s9923_s15  ;;  %v4447_v19 = vmul.f32 %v4446_v15, %v8166_v10 }
 0x551   : > { %v8514_v15 = vadd.f32 %v4447_v19, %v4444_v17  ;;  %v4981_v17 = vmul.f32 %v8163_v27, %v4980_v37  ;;  %v4984_v19 = vmul.f32 %v4983_v28, %v8166_v10  ;;  %v4626_v37 = vstv %s8507_s28  ;;  %s8566_s28 = sld [smem:[#allocation4 + $0x5f]] }
 0x552   : > { %4432 = vrot.lane.b32.xlu1 %v4424_v8, %s9733_s24  ;;  %v8527_v8 = vadd.f32 %v4603_v60, %v4600_v9  ;;  %v5173_v9 = vmul.f32 %v5172_v35, %v8166_v10  ;;  %v4822_v35 = vstv %s8522_s23  ;;  %s8564_s24 = sld [smem:[#allocation4 + $0x2e]]  ;;  %s8580_s23 = sld [smem:[#allocation4 + $0x59]] }
 0x553   : > { %4938 = vrot.lane.b32.xlu0 %v4932_v47, %s9922_s27  ;;  %9928 = vst [vmem:[#allocation26_spill] sm:$0xff] %v8514_v15  ;;  %v4793_v47 = vmul.f32 %v8163_v27, %v4792_v13  ;;  %v4451_v13 = vmul.f32 %v8514_v15, %v8194_v52  ;;  %v8549_v60 = vadd.f32 %v4984_v19, %v4981_v17  ;;  %v5682_v17 = vld [vmem:[%s9681_s9 + $0x2] ss:$8 sm:$0x3] }
 0x554   : > { %9929 = vst [vmem:[#allocation28_spill] sm:$0xff] %v8527_v8  ;;  %v4607_v28 = vmul.f32 %v8527_v8, %v8194_v52  ;;  %v4627_v19 = vmul.f32 %v8163_v27, %v4626_v37  ;;  %v4823_v37 = vmul.f32 %v4822_v35, %v8166_v10  ;;  %v4474_v8 = vrot.slane %v5682_v17, %v9921_v1 }
 0x555   : > { %v8538_v30 = vadd.f32 %v4796_v29, %v4793_v47  ;;  %9931 = vst [vmem:[#allocation30_spill] sm:$0xff] %v8549_v60  ;;  %v4478_v35 = vrot.slane %v5682_v17, %v9920_v43 }
 0x556   : > { %4965 = vrot.lane.b32.xlu1 %v4959_v4, %s9923_s15  ;;  %v4629_v4 = vstv %s8509_s13  ;;  %s9947_s13 = smov 127  }
 0x557   : > { %4781 = vrot.lane.b32.xlu0 %v4773_v58, %s5981_s19  ;;  %9930 = vst [vmem:[#allocation27_spill] sm:$0xff] %v8538_v30  ;;  %v5170_v58 = vmul.f32 %v8163_v27, %v5169_v34  ;;  %v4800_v47 = vmul.f32 %v8538_v30, %v8194_v52  ;;  %v4819_v34 = vstv %s8520_s12  ;;  %s8578_s12 = sld [smem:[#allocation4 + $0x28]]  ;;  %v5199_v30 = vstv %s8544_s25 }
 0x558   : > { %v5200_v38 = vmul.f32 %v5199_v30, %v8166_v10  ;;  %s5725_s25 = sld [smem:[#allocation4 + $0x60]] }
 0x559   : > { %v8560_v29 = vadd.f32 %v5173_v9, %v5170_v58  ;;  %v5007_v58 = vstv %s8531_s26  ;;  %v5010_v9 = vstv %s8533_s22  ;;  %s9941_s26 = smov 32   ;;  %s5736_s22 = sld [smem:[#allocation4 + $0x53]] }
 0x55a   : > { %4459 = vrot.lane.b32.xlu1 %v4451_v13, %s9735_s21  ;;  %v4630_v13 = vmul.f32 %v4629_v4, %v8166_v10  ;;  %v5196_v4 = vstv %s8542_s14  ;;  %v5008_v45 = vmul.f32 %v8163_v27, %v5007_v58  ;;  %s5986_s21 = smov 79   ;;  %s5724_s14 = sld [smem:[#allocation4 + $0x2f]] }
 0x55b   : > { %5154 = vrot.lane.b32.xlu0 %v5148_v11, %s9922_s27  ;;  %9932 = vst [vmem:[#allocation29_spill] sm:$0xff] %v8560_v29  ;;  %v4988_v11 = vmul.f32 %v8549_v60, %v8194_v52  ;;  %v4820_v60 = vmul.f32 %v8163_v27, %v4819_v34  ;;  %v4656_v34 = vstv %s8555_s29  ;;  %s5737_s29 = sld [smem:[#allocation4 + $0x29]] }
 0x55c   : > { %v8591_v15 = vadd.f32 %v4630_v13, %v4627_v19  ;;  %v4846_v19 = vstv %s8564_s24  ;;  %v4849_v13 = vstv %s8566_s28  ;;  %s9937_s24 = smov 48   ;;  %s5738_s28 = sld [smem:[#allocation4 + $0x5a]] }
 0x55d   : > { %v5034_v17 = vstv %s8578_s12  ;;  %s5739_s12 = sld [smem:[#allocation4 + $0x30]] }
 0x55e   : > { %4808 = vrot.lane.b32.xlu1 %v4800_v47, %s5980_s16  ;;  %9933 = vst [vmem:[#allocation32_spill] sm:$0xff] %v8591_v15  ;;  %v5011_v47 = vmul.f32 %v5010_v9, %v8166_v10  ;;  %v4634_v58 = vmul.f32 %v8591_v15, %v8194_v52 }
 0x55f   : > { %4615 = vrot.lane.b32.xlu0 %v4607_v28, %s5980_s16  ;;  %v5175_v28 = vmul.f32 %v8560_v29, %v8178_v33  ;;  %v4653_v33 = vstv %s8553_s18  ;;  %v8599_v29 = vadd.f32 %v4823_v37, %v4820_v60  ;;  %v5037_v60 = vstv %s8580_s23  ;;  %s5988_s18 = smov 81   ;;  %s5740_s23 = sld [smem:[#allocation4 + $0x61]] }
 0x560   : > { %v8607_v9 = vadd.f32 %v5011_v47, %v5008_v45  ;;  %v4654_v36 = vmul.f32 %v8163_v27, %v4653_v33  ;;  %v5035_v33 = vmul.f32 %v8163_v27, %v5034_v17 }
 0x561   : > { %9934 = vst [vmem:[#allocation31_spill] sm:$0xff] %v8599_v29  ;;  %v4827_v37 = vmul.f32 %v8599_v29, %v8194_v52 }
 0x562   : > { %5181 = vrot.lane.b32.xlu1 %v5175_v28, %s9923_s15  ;;  %9935 = vst [vmem:[#allocation34_spill] sm:$0xff] %v8607_v9  ;;  %v4657_v28 = vmul.f32 %v4656_v34, %v8166_v10  ;;  %v5015_v45 = vmul.f32 %v8607_v9, %v8194_v52  ;;  %v5038_v34 = vmul.f32 %v5037_v60, %v8166_v10  ;;  %v3575_v60 = vld [vmem:[%s9680_s8 + $0x8] sm:$0xff] }
 0x563   : > { %4996 = vrot.lane.b32.xlu0 %v4988_v11, %s5981_s19  ;;  %v5197_v11 = vmul.f32 %v8163_v27, %v5196_v4  ;;  %v4847_v4 = vmul.f32 %v8163_v27, %v4846_v19  ;;  %v5277_v29 = vstv %s5739_s12  ;;  %s9114_s12 = sld [smem:[#allocation4 + $0x32]] }
 0x564   : > { %v8622_v47 = vadd.f32 %v4657_v28, %v4654_v36  ;;  %v8634_v19 = vadd.f32 %v5038_v34, %v5035_v33 }
 0x565   : > { %v8615_v30 = vadd.f32 %v5200_v38, %v5197_v11 }
 0x566   : > { %4481 = vrot.lane.b32.xlu1 %v4478_v35, %s5986_s21  ;;  %9938 = vst [vmem:[#allocation36_spill] sm:$0xff] %v8622_v47  ;;  %v4661_v11 = vmul.f32 %v8622_v47, %v8194_v52  ;;  %9940 = vst [vmem:[#allocation11_spill] sm:$0xff] %v8634_v19  ;;  %v5253_v47 = vstv %s5738_s28  ;;  %s5640_s28 = sld [smem:[#allocation4 + $0x31]] }
 0x567   : > { %4479 = vrot.lane.b32.xlu0 %v4474_v8, %s5986_s21  ;;  %9936 = vst [vmem:[#allocation33_spill] sm:$0xff] %v8615_v30  ;;  %v4850_v8 = vmul.f32 %v4849_v13, %v8166_v10  ;;  %v5204_v38 = vmul.f32 %v8615_v30, %v8194_v52  ;;  %v5042_v13 = vmul.f32 %v8634_v19, %v8194_v52  ;;  %s5735_s21 = sld [smem:[#allocation4 + $0x22]] }
 0x569   : > { %v8629_v35 = vadd.f32 %v4850_v8, %v4847_v4  ;;  %v3577_v4 = vld [vmem:[%s9680_s8 + $0x18] sm:$0xff] }
 0x56a   : > { %4835 = vrot.lane.b32.xlu1 %v4827_v37, %s9937_s24  ;;  %v3576_v37 = vld [vmem:[%s9680_s8 + $0x10] sm:$0xff] }
 0x56b   : > { %4642 = vrot.lane.b32.xlu0 %v4634_v58, %s9937_s24  ;;  %9939 = vst [vmem:[#allocation35_spill] sm:$0xff] %v8629_v35  ;;  %v4854_v36 = vmul.f32 %v8629_v35, %v8194_v52  ;;  %v5064_v35 = vstv %s5725_s25  ;;  %s5689_s25 = sld [smem:[#allocation4 + $0x18]] }
 0x56e   : > { %5212 = vrot.lane.b32.xlu1 %v5204_v38, %s5981_s19 }
 0x56f   : > { %5023 = vrot.lane.b32.xlu0 %v5015_v45, %s5980_s16 }
 0x572   : > { %4862 = vrot.lane.b32.xlu1 %v4854_v36, %s9941_s26 }
 0x573   : > { %4669 = vrot.lane.b32.xlu0 %v4661_v11, %s9941_s26 }
 0x577   : > { %5050 = vrot.lane.b32.xlu0 %v5042_v13, %s9937_s24 }
 0x591   : > { %v8660_v45 = vpop.permute.xlu1 %3897 }
 0x592   : > { %9943 = vst [vmem:[#allocation38_spill] sm:$0xff] %v8660_v45  ;;  %v5061_v45 = vstv %s5724_s14  ;;  %s5989_s14 = smov 82  }
 0x595   : > { %v8658_v8 = vpop.permute.xlu0 %3925 }
 0x596   : > { %9942 = vst [vmem:[#allocation19_spill] sm:$0xff] %v8658_v8  ;;  %v5226_v8 = vstv %s5736_s22  ;;  %s9254_s22 = sld [smem:[#allocation4 + $0x35]] }
 0x598   : > { %v8664_v34 = vpop.permute.xlu1 %3953 }
 0x599   : > { %v8662_v33 = vpop.permute.xlu0 %3988  ;;  %9945 = vst [vmem:[#allocation10_spill] sm:$0xff] %v8664_v34 }
 0x59a   : > { %9944 = vst [vmem:[#allocation37_spill] sm:$0xff] %v8662_v33 }
 0x59c   : > { %v8674_v13 = vpop.permute.xlu1 %4016 }
 0x59d   : > { %v8666_v38 = vpop.permute.xlu0 %4044  ;;  %9948 = vst [vmem:[#allocation39_spill] sm:$0xff] %v8674_v13  ;;  %v9757_v13 = vmov 2  }
 0x59e   : > { %9946 = vst [vmem:[#allocation18_spill] sm:$0xff] %v8666_v38  ;;  %5883 = vset.pattern.permute.xlu1 %v9757_v13  ;;  %v5062_v13 = vmul.f32 %v8163_v27, %v5061_v45 }
 0x5fe   : > { %v3569_v58 = vpop.f32.mrb[16].mxu0 }
 0x5ff   : > { %v3573_v28 = vmax.f32 %v3569_v58, 0.0  ;;  %v5785_v17 = vpop.f32.mrb[17].mxu0  ;;  %v8678_v58 = vpop.permute.xlu0 %4066 }
 0x600   : > { %9949 = vst [vmem:[#allocation40_spill] sm:$0xff] %v8678_v58 }
 0x601   : > { %5786 = vmatprep.subr.msk.mxu1 %vm3590_vm13, %v3573_v28 }
 0x602   : > { %5787 = vmatpush3.msk.msra.mxu1 %vm3590_vm13, %v3573_v28 }
 0x603   : > { %5789 = vmatmul.mubr.msk.f32.vlgmr.msra.gmra.mrb[16].mxu1 %vm3489_vm10, %v3575_v60  ;;  %v8688_v60 = vpop.permute.xlu1 %4064 }
 0x604   : > { %5791 = vmatprep.mubr.msk.f32.mxu1 %vm3489_vm10, %v3576_v37  ;;  %9950 = vst [vmem:[#allocation21_spill] sm:$0xff] %v8688_v60  ;;  %v8690_v37 = vpop.permute.xlu0 %4132  ;;  %v5223_v60 = vstv %s5735_s21  ;;  %s9237_s21 = sld [smem:[#allocation4 + $0x34]] }
 0x605   : > { %9951 = vst [vmem:[#allocation20_spill] sm:$0xff] %v8690_v37  ;;  %v5224_v34 = vmul.f32 %v8163_v27, %v5223_v60  ;;  %v5227_v37 = vmul.f32 %v5226_v8, %v8166_v10  ;;  %v5254_v60 = vmul.f32 %v5253_v47, %v8166_v10  ;;  %v5278_v8 = vmul.f32 %v8163_v27, %v5277_v29 }
 0x607   : > { %5792 = vmatmul.mubr.msk.f32.gmra.mrb[18].mxu1 %vm3489_vm10, %v3577_v4  ;;  %v5711_v4 = vld [vmem:[%s9681_s9 + $0x4] ss:$8 sm:$0x3]  ;;  %v8696_v38 = vpop.permute.xlu1 %4105  ;;  %v8710_v30 = vadd.f32 %v5227_v37, %v5224_v34  ;;  %vm5102_vm10 = vcmask 670720  }
 0x608   : > { %v4877_v58 = vrot.slane %v5711_v4, %v9921_v1  ;;  %9952 = vst [vmem:[#allocation17_spill] sm:$0xff] %v8696_v38  ;;  %v8699_v33 = vpop.permute.xlu0 %4190  ;;  %v5250_v38 = vstv %s5737_s29  ;;  %v4881_v47 = vrot.slane %v5711_v4, %v9920_v43  ;;  %s3871_s29 = sld [smem:[#allocation4]] }
 0x609   : > { %9953 = vst [vmem:[#allocation12_spill] sm:$0xff] %v8699_v33  ;;  %v5251_v9 = vmul.f32 %v8163_v27, %v5250_v38  ;;  %v5231_v45 = vmul.f32 %v8710_v30, %v8194_v52 }
 0x60b   : > { %v8703_v19 = vpop.permute.xlu1 %4159  ;;  %v8729_v29 = vadd.f32 %v5254_v60, %v5251_v9 }
 0x60c   : > { %9954 = vst [vmem:[#allocation13_spill] sm:$0xff] %v8703_v19  ;;  %v8707_v33 = vpop.permute.xlu0 %4244  ;;  %v5280_v19 = vstv %s5740_s23  ;;  %s9235_s23 = sld [smem:[#allocation4 + $0x3]] }
 0x60d   : > { %9955 = vst [vmem:[#allocation14_spill] sm:$0xff] %v8707_v33  ;;  %v5281_v34 = vmul.f32 %v5280_v19, %v8166_v10  ;;  %v5258_v19 = vmul.f32 %v8729_v29, %v8194_v52 }
 0x60f   : > { %v8725_v37 = vpop.permute.xlu1 %4217  ;;  %v8735_v33 = vadd.f32 %v5281_v34, %v5278_v8 }
 0x611   : > { %v5285_v4 = vmul.f32 %v8735_v33, %v8194_v52 }
 0x613   : > { %v8742_v9 = vpop.permute.xlu1 %4265 }
 0x614   : > { %9957 = vst [vmem:[#allocation16_spill] sm:$0xff] %v8742_v9 }
 0x617   : > { %v8749_v8 = vpop.permute.xlu1 %4347 }
 0x618   : > { %9959 = vst [vmem:[#allocation41_spill] sm:$0xff] %v8749_v8 }
 0x6d6   : > { %v8668_v11 = vpop.f32.mrb[16].mxu1 }
 0x6d7   : > { %3685 = vrot.lane.b32.xlu1 %v8668_v11, %s9947_s13  ;;  %v8672_v36 = vpop.f32.mrb[17].mxu1 }
 0x6d8   : > { %3683 = vrot.lane.b32.xlu0 %v8672_v36, %s9947_s13 }
 0x6da   : > { %v8680_v28 = vpop.f32.mrb[18].mxu1 }
 0x6db   : > { %v8682_v17 = vpop.f32.mrb[19].mxu1 }
 0x6dc   : > { %3689 = vrot.lane.b32.xlu0 %v8680_v28, %s9947_s13  ;;  %3687 = vrot.lane.b32.xlu1 %v8682_v17, %s9947_s13 }
 0x6e0   : > { %4882 = vrot.lane.b32.xlu0 %v4877_v58, %s5988_s18  ;;  %v5065_v58 = vmul.f32 %v5064_v35, %v8166_v10  ;;  %v5726_v35 = vld [vmem:[%s9681_s9 + $0x5] ss:$8 sm:$0x3]  ;;  %5239 = vrot.lane.b32.xlu1 %v5231_v45, %s5980_s16 }
 0x6e1   : > { %v5097_v45 = vrot.slane %v5726_v35, %v9920_v43 }
 0x6e2   : > { %v8714_v15 = vadd.f32 %v5065_v58, %v5062_v13  ;;  %v8731_v13 = vpop.permute.xlu0 %4267  ;;  %v5093_v58 = vrot.slane %v5726_v35, %v9921_v1 }
 0x6e3   : > { %9956 = vst [vmem:[#allocation15_spill] sm:$0xff] %v8731_v13 }
 0x6e4   : > { %v5069_v38 = vmul.f32 %v8714_v15, %v8194_v52  ;;  %4884 = vrot.lane.b32.xlu1 %v4881_v47, %s5988_s18  ;;  %s5690_s18 = sld [smem:[#allocation4 + $0x49]] }
 0x6e6   : > { %5077 = vrot.lane.b32.xlu0 %v5069_v38, %s9941_s26  ;;  %v8744_v60 = vpop.permute.xlu0 %4320  ;;  %v8753_v38 = vpop.permute.xlu1 %4535 }
 0x6e7   : > { %9958 = vst [vmem:[#allocation7_spill] sm:$0xff] %v8744_v60  ;;  %9961 = vst [vmem:[#allocation43_spill] sm:$0xff] %v8753_v38 }
 0x6e8   : > { %5266 = vrot.lane.b32.xlu1 %v5258_v19, %s9937_s24 }
 0x6ea   : > { %5098 = vrot.lane.b32.xlu0 %v5093_v58, %s5989_s14  ;;  %v8751_v34 = vpop.permute.xlu0 %4374  ;;  %v8757_v52 = vpop.permute.xlu1 %4405 }
 0x6eb   : > { %9960 = vst [vmem:[#allocation42_spill] sm:$0xff] %v8751_v34  ;;  %9963 = vst [vmem:[#allocation45_spill] sm:$0xff] %v8757_v52 }
 0x6ec   : > { %5100 = vrot.lane.b32.xlu1 %v5097_v45, %s5989_s14 }
 0x6ee   : > { %5293 = vrot.lane.b32.xlu0 %v5285_v4, %s9941_s26  ;;  %v8755_v47 = vpop.permute.xlu0 %4723  ;;  %v8761_v9 = vpop.permute.xlu1 %4750 }
 0x6ef   : > { %9962 = vst [vmem:[#allocation44_spill] sm:$0xff] %v8755_v47  ;;  %9965 = vst [vmem:[#allocation47_spill] sm:$0xff] %v8761_v9 }
 0x6f2   : > { %v8759_v58 = vpop.permute.xlu0 %4562  ;;  %v8765_v35 = vpop.permute.xlu1 %4432 }
 0x6f3   : > { %9964 = vst [vmem:[#allocation46_spill] sm:$0xff] %v8759_v58  ;;  %9967 = vst [vmem:[#allocation49_spill] sm:$0xff] %v8765_v35 }
 0x6f6   : > { %v8763_v19 = vpop.permute.xlu0 %4938  ;;  %v8769_v13 = vpop.permute.xlu1 %4965 }
 0x6f7   : > { %9966 = vst [vmem:[#allocation48_spill] sm:$0xff] %v8763_v19  ;;  %9969 = vst [vmem:[#allocation51_spill] sm:$0xff] %v8769_v13 }
 0x6fa   : > { %v8767_v4 = vpop.permute.xlu0 %4781  ;;  %v8773_v34 = vpop.permute.xlu1 %4459 }
 0x6fb   : > { %9968 = vst [vmem:[#allocation50_spill] sm:$0xff] %v8767_v4  ;;  %9971 = vst [vmem:[#allocation53_spill] sm:$0xff] %v8773_v34 }
 0x6fe   : > { %v8771_v45 = vpop.permute.xlu0 %5154  ;;  %v8777_v47 = vpop.permute.xlu1 %4808 }
 0x6ff   : > { %9970 = vst [vmem:[#allocation52_spill] sm:$0xff] %v8771_v45  ;;  %9973 = vst [vmem:[#allocation55_spill] sm:$0xff] %v8777_v47 }
 0x702   : > { %v8775_v38 = vpop.permute.xlu0 %4615  ;;  %v8781_v58 = vpop.permute.xlu1 %5181 }
 0x703   : > { %9972 = vst [vmem:[#allocation54_spill] sm:$0xff] %v8775_v38  ;;  %9975 = vst [vmem:[#allocation57_spill] sm:$0xff] %v8781_v58 }
 0x706   : > { %v8779_v52 = vpop.permute.xlu0 %4996  ;;  %v8785_v19 = vpop.permute.xlu1 %4481 }
 0x707   : > { %9974 = vst [vmem:[#allocation56_spill] sm:$0xff] %v8779_v52  ;;  %9977 = vst [vmem:[#allocation59_spill] sm:$0xff] %v8785_v19 }
 0x70a   : > { %v8783_v9 = vpop.permute.xlu0 %4479  ;;  %v8789_v4 = vpop.permute.xlu1 %4835 }
 0x70b   : > { %9976 = vst [vmem:[#allocation58_spill] sm:$0xff] %v8783_v9  ;;  %9979 = vst [vmem:[#allocation61_spill] sm:$0xff] %v8789_v4 }
 0x70e   : > { %v8787_v35 = vpop.permute.xlu0 %4642  ;;  %v8793_v45 = vpop.permute.xlu1 %5212 }
 0x70f   : > { %9978 = vst [vmem:[#allocation60_spill] sm:$0xff] %v8787_v35  ;;  %9981 = vst [vmem:[#allocation63_spill] sm:$0xff] %v8793_v45 }
 0x712   : > { %v8791_v13 = vpop.permute.xlu0 %5023  ;;  %v8797_v38 = vpop.permute.xlu1 %4862 }
 0x713   : > { %9980 = vst [vmem:[#allocation62_spill] sm:$0xff] %v8791_v13  ;;  %9983 = vst [vmem:[#allocation65_spill] sm:$0xff] %v8797_v38 }
 0x716   : > { %v8795_v34 = vpop.permute.xlu0 %4669 }
 0x717   : > { %9982 = vst [vmem:[#allocation64_spill] sm:$0xff] %v8795_v34 }
 0x71a   : > { %v8799_v47 = vpop.permute.xlu0 %5050 }
 0x71b   : > { %9984 = vst [vmem:[#allocation66_spill] sm:$0xff] %v8799_v47 }
 0x749   : > { %v3686_v52 = vpop.permute.xlu1 %3685 }
 0x74a   : > { %v3696_v58 = vadd.f32 %v8668_v11, %v3686_v52  ;;  %v3684_v9 = vpop.permute.xlu0 %3683 }
 0x74b   : > { %v3695_v19 = vadd.f32 %v3684_v9, %v8672_v36 }
 0x74c   : > { %v5636_v8 = vmul.f32 -1.442695, %v3696_v58 }
 0x74d   : > { %v5635_v35 = vmul.f32 -1.442695, %v3695_v19 }
 0x74e   : > { %5907 = vpow2.f32 %v5636_v8  ;;  %v3688_v4 = vpop.permute.xlu1 %3687  ;;  %v3690_v43 = vpop.permute.xlu0 %3689 }
 0x74f   : > { %5909 = vpow2.f32 %v5635_v35  ;;  %v3698_v45 = vadd.f32 %v8680_v28, %v3690_v43  ;;  %v3697_v13 = vadd.f32 %v3688_v4, %v8682_v17  ;;  %v9985_v28 = vmov 2  }
 0x751   : > { %v5638_v34 = vmul.f32 -1.442695, %v3698_v45  ;;  %v5637_v38 = vmul.f32 -1.442695, %v3697_v13 }
 0x752   : > { %v8812_v13 = vpop.permute.xlu1 %5239 }
 0x753   : > { %5911 = vpow2.f32 %v5638_v34  ;;  %9986 = vst [vmem:[#allocation67_spill] sm:$0xff] %v8812_v13 }
 0x754   : > { %5913 = vpow2.f32 %v5637_v38 }
 0x756   : > { %v8816_v34 = vpop.permute.xlu1 %4884 }
 0x758   : > { %v5908_v47 = vpop.eup %5907 }
 0x759   : > { %v5910_v1 = vpop.eup %5909  ;;  %v3712_v60 = vadd.f32 1.0, %v5908_v47 }
 0x75a   : > { %v3711_v11 = vadd.f32 1.0, %v5910_v1  ;;  %v8820_v47 = vpop.permute.xlu1 %5266 }
 0x75b   : > { %5915 = vrcp.f32 %v3712_v60  ;;  %v8814_v60 = vpop.permute.xlu0 %4882  ;;  %9989 = vst [vmem:[#allocation70_spill] sm:$0xff] %v8820_v47 }
 0x75c   : > { %5917 = vrcp.f32 %v3711_v11  ;;  %9987 = vst [vmem:[#allocation68_spill] sm:$0xff] %v8814_v60 }
 0x75d   : > { %v5912_v36 = vpop.eup %5911 }
 0x75e   : > { %v3714_v9 = vadd.f32 1.0, %v5912_v36  ;;  %v5914_v8 = vpop.eup %5913 }
 0x75f   : > { %v3713_v58 = vadd.f32 1.0, %v5914_v8  ;;  %v8818_v38 = vpop.permute.xlu0 %5077 }
 0x760   : > { %5919 = vrcp.f32 %v3714_v9  ;;  %9988 = vst [vmem:[#allocation69_spill] sm:$0xff] %v8818_v38 }
 0x761   : > { %5921 = vrcp.f32 %v3713_v58 }
 0x763   : > { %v8822_v19 = vpop.permute.xlu0 %5098 }
 0x764   : > { %9990 = vst [vmem:[#allocation71_spill] sm:$0xff] %v8822_v19 }
 0x765   : > { %v5916_v52 = vpop.eup %5915 }
 0x766   : > { %3730 = vperm.xlu0 %5881, %v5916_v52   ;;  %3795 = vperm.xlu1 %5883, %v5916_v52   ;;  %v5918_v43 = vpop.eup %5917 }
 0x767   : > { %v8824_v35 = vpop.permute.xlu0 %5293 }
 0x768   : > { %9991 = vst [vmem:[#allocation72_spill] sm:$0xff] %v8824_v35 }
 0x76a   : > { %5885 = vset.pattern.permute.xlu0 %v9985_v28  ;;  %5884 = vset.pattern.permute.xlu1 %v9917_v48  ;;  %v5920_v17 = vpop.eup %5919 }
 0x76b   : > { %3791 = vperm.xlu0 %5885, %v5918_v43   ;;  %3725 = vperm.xlu1 %5884, %v5918_v43   ;;  %v5922_v1 = vpop.eup %5921 }
 0x76f   : > { %5886 = vset.pattern.permute.xlu0 %v9917_v48  ;;  %5887 = vset.pattern.permute.xlu1 %v9985_v28 }
 0x770   : > { %3803 = vperm.xlu1 %5887, %v5920_v17   ;;  %3740 = vperm.xlu0 %5886, %v5920_v17  }
 0x774   : > { %5888 = vset.pattern.permute.xlu1 %v9917_v48  ;;  %5890 = vset.pattern.permute.xlu0 %v9985_v28  ;;  %v8826_v48 = vpop.permute.xlu1 %5100 }
 0x775   : > { %3735 = vperm.xlu1 %5888, %v5922_v1   ;;  %9992 = vst [vmem:[#allocation73_spill] sm:$0xff] %v8826_v48 }
 0x779   : > { %5889 = vset.pattern.permute.xlu1 %v9985_v28 }
 0x77a   : > { %3799 = vperm.xlu1 %5889, %v5922_v1  }
 0x7e5   : > { %v3796_v4 = vpop.permute.xlu1 %3795  ;;  %v3731_v45 = vpop.permute.xlu0 %3730 }
 0x7e6   : > { %v8841_v17 = vmul.f32 %v3731_v45, %v8092_v5  ;;  %v8844_v1 = vmul.f32 %v3731_v45, %v8094_v2  ;;  %v8847_v35 = vmul.f32 %v3796_v4, %v8086_v53 }
 0x7e8   : > { %9997 = vst [vmem:[#allocation78_spill] sm:$0xff] %v8841_v17  ;;  %9998 = vst [vmem:[#allocation79_spill] sm:$0xff] %v8844_v1 }
 0x7e9   : > { %9999 = vst [vmem:[#allocation80_spill] sm:$0xff] %v8847_v35 }
 0x7ea   : > { %v3726_v11 = vpop.permute.xlu1 %3725  ;;  %v3792_v36 = vpop.permute.xlu0 %3791 }
 0x7eb   : > { %v8829_v52 = vmul.f32 %v3726_v11, %v8076_v32  ;;  %v8832_v58 = vmul.f32 %v3726_v11, %v8078_v41  ;;  %v8850_v32 = vmul.f32 %v3796_v4, %v8088_v26  ;;  %v8853_v41 = vmul.f32 %v3792_v36, %v8080_v57 }
 0x7ed   : > { %9993 = vst [vmem:[#allocation74_spill] sm:$0xff] %v8829_v52  ;;  %9994 = vst [vmem:[#allocation75_spill] sm:$0xff] %v8832_v58  ;;  %v3751_v5 = vadd.f32 %v8841_v17, %v8829_v52  ;;  %v3760_v2 = vadd.f32 %v8844_v1, %v8832_v58 }
 0x7ee   : > { %10000 = vst [vmem:[#allocation81_spill] sm:$0xff] %v8850_v32  ;;  %10001 = vst [vmem:[#allocation82_spill] sm:$0xff] %v8853_v41 }
 0x7ef   : > { %v3804_v9 = vpop.permute.xlu1 %3803  ;;  %v3741_v8 = vpop.permute.xlu0 %3740 }
 0x7f0   : > { %v8835_v43 = vmul.f32 %v3741_v8, %v8106_v6  ;;  %v8838_v28 = vmul.f32 %v3741_v8, %v8108_v23  ;;  %v8856_v6 = vmul.f32 %v3792_v36, %v8084_v44  ;;  %v8869_v26 = vmul.f32 %v3804_v9, %v8116_v18 }
 0x7f1   : > { %v8872_v57 = vmul.f32 %v3804_v9, %v8118_v22  ;;  %v3814_v22 = vadd.f32 %v8847_v35, %v8853_v41 }
 0x7f2   : > { %9995 = vst [vmem:[#allocation76_spill] sm:$0xff] %v8835_v43  ;;  %9996 = vst [vmem:[#allocation77_spill] sm:$0xff] %v8838_v28  ;;  %v3773_v44 = vmax.f32 %v8841_v17, %v8835_v43  ;;  %v3782_v4 = vmax.f32 %v8844_v1, %v8838_v28  ;;  %v3823_v36 = vadd.f32 %v8850_v32, %v8856_v6 }
 0x7f3   : > { %10002 = vst [vmem:[#allocation83_spill] sm:$0xff] %v8856_v6  ;;  %10005 = vst [vmem:[#allocation86_spill] sm:$0xff] %v8869_v26 }
 0x7f4   : > { %v3736_v23 = vpop.permute.xlu1 %3735  ;;  %10006 = vst [vmem:[#allocation87_spill] sm:$0xff] %v8872_v57 }
 0x7f5   : > { %v8863_v45 = vmul.f32 %v3736_v23, %v8112_v50  ;;  %v8866_v53 = vmul.f32 %v3736_v23, %v8114_v12 }
 0x7f7   : > { %10003 = vst [vmem:[#allocation84_spill] sm:$0xff] %v8863_v45  ;;  %10004 = vst [vmem:[#allocation85_spill] sm:$0xff] %v8866_v53  ;;  %v3752_v11 = vadd.f32 %v3751_v5, %v8863_v45  ;;  %v3761_v50 = vadd.f32 %v3760_v2, %v8866_v53  ;;  %v3772_v12 = vmax.f32 %v8829_v52, %v8863_v45 }
 0x7f8   : > { %v3781_v18 = vmax.f32 %v8832_v58, %v8866_v53  ;;  %v3835_v2 = vmax.f32 %v8847_v35, %v8869_v26  ;;  %v3844_v45 = vmax.f32 %v8850_v32, %v8872_v57 }
 0x7f9   : > { %v3753_v9 = vadd.f32 %v3752_v11, %v8835_v43  ;;  %v3762_v8 = vadd.f32 %v3761_v50, %v8838_v28  ;;  %v3774_v23 = vmax.f32 %v3772_v12, %v3773_v44  ;;  %v3800_v17 = vpop.permute.xlu1 %3799 }
 0x7fa   : > { %v3783_v5 = vmax.f32 %v3781_v18, %v3782_v4  ;;  %v8895_v52 = vmul.f32 %v3800_v17, %v8122_v39  ;;  %v8898_v53 = vmul.f32 %v3800_v17, %v8124_v61 }
 0x7fb   : > { %v3754_v1 = vrot.slane %v3753_v9, 4  ;;  %v3763_v58 = vrot.slane %v3762_v8, 4  ;;  %v3775_v11 = vrot.slane %v3774_v23, 4 }
 0x7fc   : > { %10007 = vst [vmem:[#allocation88_spill] sm:$0xff] %v8895_v52  ;;  %10008 = vst [vmem:[#allocation89_spill] sm:$0xff] %v8898_v53  ;;  %v3784_v43 = vrot.slane %v3783_v5, 4  ;;  %v3815_v44 = vadd.f32 %v3814_v22, %v8895_v52  ;;  %v3824_v4 = vadd.f32 %v3823_v36, %v8898_v53  ;;  %v3834_v50 = vmax.f32 %v8853_v41, %v8895_v52 }
 0x7fd   : > { %v3843_v12 = vmax.f32 %v8856_v6, %v8898_v53  ;;  %v3755_v18 = vadd.f32 %v3754_v1, %v3753_v9  ;;  %v3764_v39 = vadd.f32 %v3763_v58, %v3762_v8  ;;  %v3776_v32 = vmax.f32 %v3774_v23, %v3775_v11 }
 0x7fe   : > { %v3785_v35 = vmax.f32 %v3783_v5, %v3784_v43  ;;  %v3816_v61 = vadd.f32 %v3815_v44, %v8869_v26  ;;  %v3825_v17 = vadd.f32 %v3824_v4, %v8872_v57  ;;  %v3836_v28 = vmax.f32 %v3834_v50, %v3835_v2 }
 0x7ff   : > { %v3845_v47 = vmax.f32 %v3843_v12, %v3844_v45  ;;  %v3756_v19 = vrot.slane %v3755_v18, 2  ;;  %v3765_v22 = vrot.slane %v3764_v39, 2  ;;  %v3777_v38 = vrot.slane %v3776_v32, 2 }
 0x800   : > { %v3817_v13 = vrot.slane %v3816_v61, 4  ;;  %v3826_v36 = vrot.slane %v3825_v17, 4  ;;  %v3837_v60 = vrot.slane %v3836_v28, 4  ;;  %v3786_v53 = vrot.slane %v3785_v35, 2 }
 0x801   : > { %v3846_v48 = vrot.slane %v3845_v47, 4  ;;  %v3757_v52 = vadd.f32 %v3756_v19, %v3755_v18  ;;  %v3766_v41 = vadd.f32 %v3765_v22, %v3764_v39  ;;  %v3778_v44 = vmax.f32 %v3776_v32, %v3777_v38 }
 0x802   : > { %v3818_v1 = vadd.f32 %v3817_v13, %v3816_v61  ;;  %v3827_v58 = vadd.f32 %v3826_v36, %v3825_v17  ;;  %v3838_v9 = vmax.f32 %v3836_v28, %v3837_v60  ;;  %v3787_v4 = vmax.f32 %v3785_v35, %v3786_v53 }
 0x803   : > { %v3847_v43 = vmax.f32 %v3845_v47, %v3846_v48  ;;  %v3758_v8 = vrot.slane %v3757_v52, 1  ;;  %v3767_v23 = vrot.slane %v3766_v41, 1  ;;  %v3779_v13 = vrot.slane %v3778_v44, 1 }
 0x804   : > { %v3819_v5 = vrot.slane %v3818_v1, 2  ;;  %v3828_v11 = vrot.slane %v3827_v58, 2  ;;  %v3839_v2 = vrot.slane %v3838_v9, 2  ;;  %v3788_v61 = vrot.slane %v3787_v4, 1 }
 0x805   : > { %v3848_v45 = vrot.slane %v3847_v43, 2  ;;  %v3759_v19 = vadd.f32 %v3758_v8, %v3757_v52  ;;  %v3768_v18 = vadd.f32 %v3767_v23, %v3766_v41  ;;  %v3780_v35 = vmax.f32 %v3778_v44, %v3779_v13 }
 0x806   : > { %v3820_v50 = vadd.f32 %v3819_v5, %v3818_v1  ;;  %v3829_v12 = vadd.f32 %v3828_v11, %v3827_v58  ;;  %v3840_v57 = vmax.f32 %v3838_v9, %v3839_v2  ;;  %v3789_v32 = vmax.f32 %v3787_v4, %v3788_v61 }
 0x807   : > { %v3849_v6 = vmax.f32 %v3847_v43, %v3848_v45  ;;  %v3770_v17 = vmul.f32 0.03125, %v3759_v19  ;;  %v3771_v36 = vmul.f32 0.03125, %v3768_v18 }
 0x808   : > { %v3821_v39 = vrot.slane %v3820_v50, 1  ;;  %v3830_v22 = vrot.slane %v3829_v12, 1  ;;  %v3841_v48 = vrot.slane %v3840_v57, 1 }
 0x809   : > { %v3850_v28 = vrot.slane %v3849_v6, 1 }
 0x80a   : > { %v3822_v60 = vadd.f32 %v3821_v39, %v3820_v50  ;;  %v3831_v47 = vadd.f32 %v3830_v22, %v3829_v12  ;;  %v3842_v53 = vmax.f32 %v3840_v57, %v3841_v48 }
 0x80b   : > { %v3851_v1 = vmax.f32 %v3849_v6, %v3850_v28 }
 0x80c   : > { %v3832_v26 = vmul.f32 0.03125, %v3822_v60  ;;  %v3833_v38 = vmul.f32 0.03125, %v3831_v47 }
 0x80e   : > { %v3853_v52 = vsel %vm3852_vm14, %v3770_v17, %v3832_v26  ;;  %v3854_v41 = vsel %vm3852_vm14, %v3771_v36, %v3833_v38  ;;  %vm5335_vm14 = vcmask 998400  }
 0x80f   : > { %v3855_v58 = vsel %vm3590_vm13, %v3853_v52, %v3780_v35  ;;  %v3856_v9 = vsel %vm3590_vm13, %v3854_v41, %v3789_v32  ;;  %v4577_v32 = vstv %s5689_s25  ;;  %vm4903_vm13 = vcmask 1014784  }
 0x810   : > { %v3858_v43 = vsel %vm3857_vm15, %v3855_v58, %v3842_v53  ;;  %v3859_v8 = vsel %vm3857_vm15, %v3856_v9, %v3851_v1  ;;  %v4580_v53 = vstv %s5690_s18  ;;  %v4578_v52 = vmul.f32 %v8163_v27, %v4577_v32  ;;  %s5713_s18 = sld [smem:[#allocation4 + $0x36]] }
 0x811   : > { %3860 = vst [vmem:[#allocation3 + $0x8] sm:$0xf] %v3858_v43  ;;  %3861 = vst [vmem:[#allocation3 + $0x10] sm:$0xf] %v3859_v8  ;;  %v4581_v41 = vmul.f32 %v4580_v53, %v8166_v10  ;;  %vm5395_vm15 = vcmask 416768  }
 0x813   : > { %v4582_v43 = vadd.f32 %v4581_v41, %v4578_v52  ;;  %v10026_v41 = vld [vmem:[#allocation31_spill] sm:$0xff] }
 0x818   : > { %v8910_v23 = vld [vmem:[#allocation3 + $0x8] sm:$0xf]  ;;  %v8912_v5 = vld [vmem:[#allocation3 + $0x10] sm:$0xf] }
 0x819   : > { %v3893_v11 = vmul.f32 %v8198_v59, %v8912_v5  ;;  %v3892_v6 = vmul.f32 %v8198_v59, %v8910_v23  ;;  %v3920_v26 = vmul.f32 %v8181_v20, %v8910_v23  ;;  %v3921_v57 = vmul.f32 %v8181_v20, %v8912_v5  ;;  %v8930_v45 = vld [vmem:[#allocation3 + $0x8] sm:$0xf]  ;;  %v8932_v44 = vld [vmem:[#allocation3 + $0x10] sm:$0xf] }
 0x81a   : > { %v3949_v2 = vmul.f32 %v8217_v3, %v8912_v5  ;;  %v3948_v59 = vmul.f32 %v8217_v3, %v8910_v23  ;;  %v3979_v20 = vmul.f32 %v8206_v40, %v8932_v44  ;;  %v3978_v4 = vmul.f32 %v8206_v40, %v8930_v45 }
 0x81b   : > { %3901 = vrot.lane.b32.xlu1 %v3893_v11, %s9922_s27  ;;  %3899 = vrot.lane.b32.xlu0 %v3892_v6, %s9922_s27  ;;  %v4006_v3 = vmul.f32 %v8247_v62, %v8930_v45  ;;  %v4007_v50 = vmul.f32 %v8247_v62, %v8932_v44  ;;  %v4035_v12 = vmul.f32 %v8232_v7, %v8932_v44  ;;  %v10010_v11 = vld [vmem:[#allocation23_spill] sm:$0xff] }
 0x81c   : > { %v4034_v40 = vmul.f32 %v8232_v7, %v8930_v45  ;;  %v4101_v19 = vmul.f32 %v8277_v55, %v8912_v5  ;;  %v4100_v62 = vmul.f32 %v8277_v55, %v8910_v23  ;;  %v4127_v18 = vmul.f32 %v8265_v46, %v8910_v23 }
 0x81d   : > { %v4128_v7 = vmul.f32 %v8265_v46, %v8912_v5  ;;  %v4155_v39 = vmul.f32 %v8299_v25, %v8912_v5  ;;  %v4154_v55 = vmul.f32 %v8299_v25, %v8910_v23  ;;  %v4181_v22 = vmul.f32 %v8289_v24, %v8932_v44 }
 0x81e   : > { %v4180_v46 = vmul.f32 %v8289_v24, %v8930_v45  ;;  %v4207_v13 = vmul.f32 %v8321_v51, %v8930_v45  ;;  %v4208_v25 = vmul.f32 %v8321_v51, %v8932_v44  ;;  %v4235_v61 = vmul.f32 %v8310_v16, %v8932_v44 }
 0x81f   : > { %3927 = vrot.lane.b32.xlu1 %v3920_v26, %s9923_s15  ;;  %3929 = vrot.lane.b32.xlu0 %v3921_v57, %s9923_s15  ;;  %v4234_v24 = vmul.f32 %v8310_v16, %v8930_v45  ;;  %v4315_v60 = vmul.f32 %v8356_v42, %v8910_v23  ;;  %v4316_v51 = vmul.f32 %v8356_v42, %v8912_v5  ;;  %v10011_v57 = vld [vmem:[#allocation24_spill] sm:$0xff] }
 0x820   : > { %v4343_v47 = vmul.f32 %v8368_v56, %v8912_v5  ;;  %v4342_v16 = vmul.f32 %v8368_v56, %v8910_v23  ;;  %v4369_v48 = vmul.f32 %v8380_v14, %v8910_v23  ;;  %v4370_v42 = vmul.f32 %v8380_v14, %v8912_v5 }
 0x821   : > { %v4531_v28 = vmul.f32 %v8392_v31, %v8912_v5  ;;  %v4530_v56 = vmul.f32 %v8392_v31, %v8910_v23  ;;  %v4718_v17 = vmul.f32 %v8405_v63, %v8910_v23  ;;  %v4719_v14 = vmul.f32 %v8405_v63, %v8912_v5 }
 0x822   : > { %v4395_v36 = vmul.f32 %v8418_v54, %v8930_v45  ;;  %v4396_v31 = vmul.f32 %v8418_v54, %v8932_v44  ;;  %v4557_v38 = vmul.f32 %v8431_v49, %v8910_v23  ;;  %v4558_v63 = vmul.f32 %v8431_v49, %v8912_v5 }
 0x823   : > { %3957 = vrot.lane.b32.xlu1 %v3949_v2, %s5981_s19  ;;  %3955 = vrot.lane.b32.xlu0 %v3948_v59, %s5981_s19  ;;  %v4746_v35 = vmul.f32 %v8444_v0, %v8912_v5  ;;  %v4745_v54 = vmul.f32 %v8444_v0, %v8910_v23  ;;  %v4933_v1 = vmul.f32 %v8457_v21, %v8910_v23  ;;  %v10009_v0 = vld [vmem:[#allocation22_spill] sm:$0xff] }
 0x824   : > { %v4934_v49 = vmul.f32 %v8457_v21, %v8912_v5  ;;  %v4422_v58 = vmul.f32 %v10009_v0, %v8930_v45  ;;  %v4423_v9 = vmul.f32 %v10009_v0, %v8932_v44  ;;  %v4584_v21 = vmul.f32 %v4582_v43, %v8912_v5 }
 0x825   : > { %v4583_v8 = vmul.f32 %v4582_v43, %v8910_v23  ;;  %v4772_v6 = vmul.f32 %v10010_v11, %v8932_v44  ;;  %v4771_v26 = vmul.f32 %v10010_v11, %v8930_v45  ;;  %v4961_v2 = vmul.f32 %v10011_v57, %v8912_v5 }
 0x826   : > { %v4960_v59 = vmul.f32 %v10011_v57, %v8910_v23  ;;  %v4825_v0 = vmul.f32 %v10026_v41, %v8930_v45  ;;  %v4083_v43 = vstv %s9114_s12  ;;  %s5992_s12 = smov 126  }
 0x827   : > { %3986 = vrot.lane.b32.xlu1 %v3979_v20, %s5980_s16  ;;  %3984 = vrot.lane.b32.xlu0 %v3978_v4, %s5980_s16  ;;  %v10012_v20 = vld [vmem:[#allocation25_spill] sm:$0xff] }
 0x828   : > { %v5149_v4 = vmul.f32 %v10012_v20, %v8910_v23 }
 0x82b   : > { %4012 = vrot.lane.b32.xlu1 %v4006_v3, %s9937_s24  ;;  %4014 = vrot.lane.b32.xlu0 %v4007_v50, %s9937_s24  ;;  %v5150_v3 = vmul.f32 %v10012_v20, %v8912_v5  ;;  %v10013_v50 = vld [vmem:[#allocation26_spill] sm:$0xff] }
 0x82f   : > { %4042 = vrot.lane.b32.xlu1 %v4035_v12, %s9941_s26  ;;  %4040 = vrot.lane.b32.xlu0 %v4034_v40, %s9941_s26  ;;  %v4449_v12 = vmul.f32 %v10013_v50, %v8930_v45  ;;  %v4450_v40 = vmul.f32 %v10013_v50, %v8932_v44 }
 0x833   : > { %4109 = vrot.lane.b32.xlu1 %v4101_v19, %s9922_s27  ;;  %4107 = vrot.lane.b32.xlu0 %v4100_v62, %s9922_s27  ;;  %v10014_v19 = vld [vmem:[#allocation28_spill] sm:$0xff] }
 0x834   : > { %v4606_v62 = vmul.f32 %v10014_v19, %v8932_v44 }
 0x837   : > { %4134 = vrot.lane.b32.xlu1 %v4127_v18, %s9923_s15  ;;  %4136 = vrot.lane.b32.xlu0 %v4128_v7, %s9923_s15  ;;  %v4605_v18 = vmul.f32 %v10014_v19, %v8930_v45  ;;  %v10015_v7 = vld [vmem:[#allocation27_spill] sm:$0xff] }
 0x83b   : > { %4163 = vrot.lane.b32.xlu1 %v4155_v39, %s5981_s19  ;;  %4161 = vrot.lane.b32.xlu0 %v4154_v55, %s5981_s19  ;;  %v4798_v39 = vmul.f32 %v10015_v7, %v8930_v45  ;;  %v4799_v55 = vmul.f32 %v10015_v7, %v8932_v44 }
 0x83f   : > { %4188 = vrot.lane.b32.xlu1 %v4181_v22, %s5980_s16  ;;  %4186 = vrot.lane.b32.xlu0 %v4180_v46, %s5980_s16  ;;  %v3872_v22 = vstv %s3871_s29  ;;  %v3875_v46 = vstv %s5640_s28  ;;  %s5727_s29 = sld [smem:[#allocation4 + $0x6]]  ;;  %s5728_s28 = sld [smem:[#allocation4 + $0x37]] }
 0x843   : > { %4213 = vrot.lane.b32.xlu1 %v4207_v13, %s9937_s24  ;;  %4215 = vrot.lane.b32.xlu0 %v4208_v25, %s9937_s24 }
 0x847   : > { %4242 = vrot.lane.b32.xlu1 %v4235_v61, %s9941_s26  ;;  %4240 = vrot.lane.b32.xlu0 %v4234_v24, %s9941_s26  ;;  %v10017_v61 = vld [vmem:[#allocation30_spill] sm:$0xff] }
 0x848   : > { %v4987_v24 = vmul.f32 %v10017_v61, %v8932_v44 }
 0x84b   : > { %4322 = vrot.lane.b32.xlu1 %v4315_v60, %s9922_s27  ;;  %4324 = vrot.lane.b32.xlu0 %v4316_v51, %s9922_s27  ;;  %v4986_v60 = vmul.f32 %v10017_v61, %v8930_v45  ;;  %v3873_v51 = vmul.f32 %v8163_v27, %v3872_v22  ;;  %v9186_v61 = vld [vmem:[#allocation3] sm:$0xf] }
 0x84f   : > { %4351 = vrot.lane.b32.xlu1 %v4343_v47, %s9923_s15  ;;  %4349 = vrot.lane.b32.xlu0 %v4342_v16, %s9923_s15  ;;  %v3876_v47 = vmul.f32 %v3875_v46, %v8166_v10 }
 0x853   : > { %4376 = vrot.lane.b32.xlu1 %v4369_v48, %s5981_s19  ;;  %4378 = vrot.lane.b32.xlu0 %v4370_v42, %s5981_s19  ;;  %v10020_v42 = vld [vmem:[#allocation29_spill] sm:$0xff] }
 0x857   : > { %4539 = vrot.lane.b32.xlu1 %v4531_v28, %s9922_s27  ;;  %4537 = vrot.lane.b32.xlu0 %v4530_v56, %s9922_s27  ;;  %v5177_v28 = vmul.f32 %v10020_v42, %v8912_v5  ;;  %v5176_v56 = vmul.f32 %v10020_v42, %v8910_v23 }
 0x85b   : > { %4725 = vrot.lane.b32.xlu1 %v4718_v17, %s9922_s27  ;;  %4727 = vrot.lane.b32.xlu0 %v4719_v14, %s9922_s27  ;;  %v9116_v17 = vadd.f32 %v3876_v47, %v3873_v51  ;;  %v10034_v47 = vld [vmem:[#allocation36_spill] sm:$0xff] }
 0x85c   : > { %v4660_v42 = vmul.f32 %v10034_v47, %v8932_v44 }
 0x85f   : > { %4401 = vrot.lane.b32.xlu1 %v4395_v36, %s5980_s16  ;;  %4403 = vrot.lane.b32.xlu0 %v4396_v31, %s5980_s16  ;;  %v10023_v31 = vld [vmem:[#allocation32_spill] sm:$0xff] }
 0x863   : > { %4564 = vrot.lane.b32.xlu1 %v4557_v38, %s9923_s15  ;;  %4566 = vrot.lane.b32.xlu0 %v4558_v63, %s9923_s15  ;;  %v4633_v38 = vmul.f32 %v10023_v31, %v8932_v44  ;;  %v4632_v63 = vmul.f32 %v10023_v31, %v8930_v45  ;;  %v10035_v31 = vld [vmem:[#allocation17_spill] sm:$0xff] }
 0x867   : > { %4754 = vrot.lane.b32.xlu1 %v4746_v35, %s9923_s15  ;;  %4752 = vrot.lane.b32.xlu0 %v4745_v54, %s9923_s15  ;;  %v3879_v54 = vmul.f32 %v9116_v17, %v8910_v23 }
 0x86b   : > { %4940 = vrot.lane.b32.xlu1 %v4933_v1, %s9922_s27  ;;  %4942 = vrot.lane.b32.xlu0 %v4934_v49, %s9922_s27 }
 0x86f   : > { %4428 = vrot.lane.b32.xlu1 %v4422_v58, %s9937_s24  ;;  %4430 = vrot.lane.b32.xlu0 %v4423_v9, %s9937_s24  ;;  %v4826_v58 = vmul.f32 %v10026_v41, %v8932_v44  ;;  %v10036_v41 = vld [vmem:[#allocation35_spill] sm:$0xff] }
 0x873   : > { %4589 = vrot.lane.b32.xlu1 %v4584_v21, %s5981_s19  ;;  %4587 = vrot.lane.b32.xlu0 %v4583_v8, %s5981_s19 }
 0x877   : > { %4779 = vrot.lane.b32.xlu1 %v4772_v6, %s5981_s19  ;;  %4777 = vrot.lane.b32.xlu0 %v4771_v26, %s5981_s19 }
 0x87b   : > { %4969 = vrot.lane.b32.xlu1 %v4961_v2, %s9923_s15  ;;  %4967 = vrot.lane.b32.xlu0 %v4960_v59, %s9923_s15  ;;  %v10029_v2 = vld [vmem:[#allocation34_spill] sm:$0xff] }
 0x87c   : > { %v5014_v59 = vmul.f32 %v10029_v2, %v8932_v44  ;;  %v5013_v20 = vmul.f32 %v10029_v2, %v8930_v45 }
 0x87f   : > { %5156 = vrot.lane.b32.xlu1 %v5149_v4, %s9922_s27  ;;  %5158 = vrot.lane.b32.xlu0 %v5150_v3, %s9922_s27  ;;  %s9104_s27 = sld [smem:[#allocation4 + $0x1]]  ;;  %v4084_v4 = vmul.f32 %v4083_v43, %v8166_v10 }
 0x883   : > { %4455 = vrot.lane.b32.xlu1 %v4449_v12, %s9941_s26  ;;  %4457 = vrot.lane.b32.xlu0 %v4450_v40, %s9941_s26 }
 0x885   : > { %v4080_v53 = vstv %s9104_s27  ;;  %s5991_s27 = smov 125  }
 0x886   : > { %v4081_v11 = vmul.f32 %v8163_v27, %v4080_v53 }
 0x887   : > { %4613 = vrot.lane.b32.xlu1 %v4606_v62, %s5980_s16  ;;  %4611 = vrot.lane.b32.xlu0 %v4605_v18, %s5980_s16  ;;  %v10032_v62 = vld [vmem:[#allocation33_spill] sm:$0xff] }
 0x888   : > { %v5202_v18 = vmul.f32 %v10032_v62, %v8930_v45  ;;  %v5203_v7 = vmul.f32 %v10032_v62, %v8932_v44 }
 0x88b   : > { %4804 = vrot.lane.b32.xlu1 %v4798_v39, %s5980_s16  ;;  %4806 = vrot.lane.b32.xlu0 %v4799_v55, %s5980_s16  ;;  %v4085_v39 = vadd.f32 %v4084_v4, %v4081_v11 }
 0x88d   : > { %v9092_v13 = vpop.permute.xlu1 %3901  ;;  %v9094_v25 = vpop.permute.xlu0 %3899 }
 0x88e   : > { %10016 = vst [vmem:[#allocation22_spill] sm:$0xff] %v9092_v13  ;;  %v3905_v35 = vsel %vm1344_vm7, %v9094_v25, %v9092_v13 }
 0x88f   : > { %4994 = vrot.lane.b32.xlu1 %v4987_v24, %s5981_s19  ;;  %4992 = vrot.lane.b32.xlu0 %v4986_v60, %s5981_s19  ;;  %v3910_v1 = vadd.f32 %v3905_v35, %v3879_v54  ;;  %v4086_v24 = vmul.f32 %v9186_v61, %v4085_v39  ;;  %v4087_v60 = vmul.f32 %v4085_v39, %v8910_v23 }
 0x891   : > { %v9106_v16 = vpop.permute.xlu1 %3927  ;;  %v9108_v48 = vpop.permute.xlu0 %3929 }
 0x892   : > { %10018 = vst [vmem:[#allocation23_spill] sm:$0xff] %v9106_v16  ;;  %10019 = vst [vmem:[#allocation24_spill] sm:$0xff] %v9108_v48  ;;  %v3933_v32 = vsel %vm3931_vm0, %v9106_v16, %v9108_v48 }
 0x893   : > { %5185 = vrot.lane.b32.xlu1 %v5177_v28, %s9923_s15  ;;  %5183 = vrot.lane.b32.xlu0 %v5176_v56, %s9923_s15  ;;  %v3938_v21 = vadd.f32 %v3933_v32, %v3910_v1  ;;  %v4659_v28 = vmul.f32 %v10034_v47, %v8930_v45  ;;  %v4088_v56 = vmul.f32 %v4085_v39, %v8912_v5  ;;  %s9206_s15 = sld [smem:[#allocation4 + $0x33]] }
 0x895   : > { %v9120_v14 = vpop.permute.xlu1 %3957  ;;  %v9122_v36 = vpop.permute.xlu0 %3955 }
 0x896   : > { %10021 = vst [vmem:[#allocation25_spill] sm:$0xff] %v9120_v14  ;;  %10022 = vst [vmem:[#allocation26_spill] sm:$0xff] %v9122_v36  ;;  %v3961_v9 = vsel %vm3959_vm1, %v9122_v36, %v9120_v14  ;;  %v10056_v36 = vld [vmem:[#allocation50_spill] sm:$0xff] }
 0x897   : > { %4640 = vrot.lane.b32.xlu1 %v4633_v38, %s9937_s24  ;;  %4638 = vrot.lane.b32.xlu0 %v4632_v63, %s9937_s24  ;;  %v3966_v6 = vadd.f32 %v3961_v9, %v3938_v21  ;;  %v10037_v9 = vld [vmem:[#allocation20_spill] sm:$0xff] }
 0x899   : > { %v9139_v49 = vpop.permute.xlu1 %3986  ;;  %v9141_v52 = vpop.permute.xlu0 %3984  ;;  %v4298_v47 = vstv %s9206_s15  ;;  %s5995_s15 = smov 122  }
 0x89a   : > { %10024 = vst [vmem:[#allocation28_spill] sm:$0xff] %v9139_v49  ;;  %10025 = vst [vmem:[#allocation27_spill] sm:$0xff] %v9141_v52  ;;  %v3991_v8 = vsel %vm3990_vm3, %v9141_v52, %v9139_v49  ;;  %v10055_v52 = vld [vmem:[#allocation49_spill] sm:$0xff] }
 0x89b   : > { %4831 = vrot.lane.b32.xlu1 %v4825_v0, %s9937_s24  ;;  %4833 = vrot.lane.b32.xlu0 %v4826_v58, %s9937_s24  ;;  %v3997_v50 = vadd.f32 %v3991_v8, %v3966_v6  ;;  %v4852_v0 = vmul.f32 %v10036_v41, %v8930_v45  ;;  %v4853_v58 = vmul.f32 %v10036_v41, %v8932_v44 }
 0x89d   : > { %v9157_v26 = vpop.permute.xlu1 %4012  ;;  %v9159_v57 = vpop.permute.xlu0 %4014 }
 0x89e   : > { %10027 = vst [vmem:[#allocation30_spill] sm:$0xff] %v9157_v26  ;;  %10028 = vst [vmem:[#allocation29_spill] sm:$0xff] %v9159_v57  ;;  %v4019_v3 = vsel %vm4018_vm4, %v9157_v26, %v9159_v57 }
 0x89f   : > { %5021 = vrot.lane.b32.xlu1 %v5014_v59, %s5980_s16  ;;  %5019 = vrot.lane.b32.xlu0 %v5013_v20, %s5980_s16  ;;  %v4025_v12 = vadd.f32 %v4019_v3, %v3997_v50  ;;  %v10038_v20 = vld [vmem:[#allocation11_spill] sm:$0xff] }
 0x8a0   : > { %v5041_v4 = vmul.f32 %v10038_v20, %v8932_v44  ;;  %v5040_v3 = vmul.f32 %v10038_v20, %v8930_v45 }
 0x8a1   : > { %v9171_v40 = vpop.permute.xlu1 %4042  ;;  %v9173_v19 = vpop.permute.xlu0 %4040 }
 0x8a2   : > { %10030 = vst [vmem:[#allocation32_spill] sm:$0xff] %v9171_v40  ;;  %10031 = vst [vmem:[#allocation31_spill] sm:$0xff] %v9173_v19  ;;  %v4046_v55 = vsel %vm1637_vm8, %v9173_v19, %v9171_v40  ;;  %v10054_v19 = vld [vmem:[#allocation54_spill] sm:$0xff] }
 0x8a3   : > { %v9182_v22 = vadd.f32 %v4046_v55, %v4025_v12  ;;  %5208 = vrot.lane.b32.xlu1 %v5202_v18, %s5981_s19  ;;  %5210 = vrot.lane.b32.xlu0 %v5203_v7, %s5981_s19  ;;  %s9204_s19 = sld [smem:[#allocation4 + $0x2]]  ;;  %v10039_v12 = vld [vmem:[#allocation13_spill] sm:$0xff] }
 0x8a5   : > { %10033 = vst [vmem:[#allocation34_spill] sm:$0xff] %v9182_v22  ;;  %v4110_v46 = vpop.permute.xlu1 %4109  ;;  %v4108_v51 = vpop.permute.xlu0 %4107 }
 0x8a6   : > { %v4111_v38 = vsel %vm1344_vm7, %v10035_v31, %v4108_v51  ;;  %v4112_v63 = vsel %vm1344_vm7, %v4108_v51, %v4110_v46  ;;  %v4118_v54 = vadd.f32 %v4110_v46, %v4088_v56 }
 0x8a7   : > { %v4117_v35 = vadd.f32 %v4112_v63, %v4087_v60  ;;  %4667 = vrot.lane.b32.xlu1 %v4660_v42, %s9941_s26  ;;  %4665 = vrot.lane.b32.xlu0 %v4659_v28, %s9941_s26  ;;  %v4116_v32 = vadd.f32 %v4111_v38, %v4086_v24  ;;  %v5229_v24 = vmul.f32 %v8710_v30, %v8930_v45  ;;  %v10040_v42 = vld [vmem:[#allocation12_spill] sm:$0xff] }
 0x8a8   : > { %v5230_v60 = vmul.f32 %v8710_v30, %v8932_v44 }
 0x8a9   : > { %v4135_v53 = vpop.permute.xlu1 %4134  ;;  %v4137_v1 = vpop.permute.xlu0 %4136  ;;  %v4295_v51 = vstv %s9204_s19  ;;  %s5993_s19 = smov 124  }
 0x8aa   : > { %v4138_v43 = vsel %vm3931_vm0, %v10037_v9, %v4135_v53  ;;  %v4139_v21 = vsel %vm3931_vm0, %v4135_v53, %v4137_v1  ;;  %v4145_v8 = vadd.f32 %v4137_v1, %v4118_v54  ;;  %v4299_v54 = vmul.f32 %v4298_v47, %v8166_v10 }
 0x8ab   : > { %v4143_v11 = vadd.f32 %v4138_v43, %v4116_v32  ;;  %v4144_v6 = vadd.f32 %v4139_v21, %v4117_v35  ;;  %4858 = vrot.lane.b32.xlu1 %v4852_v0, %s9941_s26  ;;  %4860 = vrot.lane.b32.xlu0 %v4853_v58, %s9941_s26  ;;  %v4296_v35 = vmul.f32 %v8163_v27, %v4295_v51 }
 0x8ac   : > { %v5068_v53 = vmul.f32 %v8714_v15, %v8932_v44  ;;  %v5067_v1 = vmul.f32 %v8714_v15, %v8930_v45  ;;  %v5256_v15 = vmul.f32 %v8729_v29, %v8930_v45 }
 0x8ad   : > { %v4164_v2 = vpop.permute.xlu1 %4163  ;;  %v4162_v59 = vpop.permute.xlu0 %4161  ;;  %v4300_v21 = vadd.f32 %v4299_v54, %v4296_v35 }
 0x8ae   : > { %v4172_v50 = vadd.f32 %v4164_v2, %v4145_v8  ;;  %v4165_v62 = vsel %vm3959_vm1, %v10039_v12, %v4162_v59  ;;  %v4166_v18 = vsel %vm3959_vm1, %v4162_v59, %v4164_v2  ;;  %v4510_v12 = vstv %s9235_s23  ;;  %s5996_s23 = smov 51  }
 0x8af   : > { %v4170_v7 = vadd.f32 %v4165_v62, %v4143_v11  ;;  %v4171_v39 = vadd.f32 %v4166_v18, %v4144_v6  ;;  %5048 = vrot.lane.b32.xlu1 %v5041_v4, %s9937_s24  ;;  %5046 = vrot.lane.b32.xlu0 %v5040_v3, %s9937_s24  ;;  %v5257_v6 = vmul.f32 %v8729_v29, %v8932_v44  ;;  %v4513_v62 = vstv %s9237_s21  ;;  %s10106_s21 = sshll.u32 %s10120_s30, 6 }
 0x8b0   : > { %v4303_v29 = vmul.f32 %v4300_v21, %v8912_v5  ;;  %v4301_v18 = vmul.f32 %v9186_v61, %v4300_v21  ;;  %v4514_v35 = vmul.f32 %v4513_v62, %v8166_v10  ;;  %s9624_s14 = scalar_lea.vmem %s9683_s11, %s10106_s21 }
 0x8b1   : > { %v4189_v55 = vpop.permute.xlu1 %4188  ;;  %v4187_v46 = vpop.permute.xlu0 %4186 }
 0x8b2   : > { %v4193_v28 = vsel %vm3990_vm3, %v4189_v55, %v10040_v42  ;;  %v4192_v56 = vsel %vm3990_vm3, %v4187_v46, %v4189_v55  ;;  %v4197_v31 = vadd.f32 %v4187_v46, %v4170_v7  ;;  %v5284_v46 = vmul.f32 %v8735_v33, %v8932_v44 }
 0x8b3   : > { %v4199_v38 = vadd.f32 %v4193_v28, %v4172_v50  ;;  %v4198_v63 = vadd.f32 %v4192_v56, %v4171_v39  ;;  %5235 = vrot.lane.b32.xlu1 %v5229_v24, %s5980_s16  ;;  %5237 = vrot.lane.b32.xlu0 %v5230_v60, %s5980_s16  ;;  %s9252_s16 = sld [smem:[#allocation4 + $0x4]]  ;;  %v5741_v50 = vld [vmem:[%s9681_s9 + $0x6] ss:$8 sm:$0x3]  ;;  %v4302_v39 = vmul.f32 %v4300_v21, %v8910_v23 }
 0x8b4   : > { %v5283_v24 = vmul.f32 %v8735_v33, %v8930_v45  ;;  %v10042_v60 = vld [vmem:[#allocation7_spill] sm:$0xff]  ;;  %v10043_v56 = vld [vmem:[#allocation8_spill] sm:$0xff]  ;;  %v4511_v44 = vmul.f32 %v8163_v27, %v4510_v12 }
 0x8b5   : > { %v4214_v30 = vpop.permute.xlu1 %4213  ;;  %v4216_v32 = vpop.permute.xlu0 %4215 }
 0x8b6   : > { %v4224_v41 = vadd.f32 %v4214_v30, %v4197_v31  ;;  %v4219_v0 = vsel %vm4018_vm4, %v4214_v30, %v4216_v32  ;;  %v4220_v58 = vsel %vm4018_vm4, %v4216_v32, %v8725_v37  ;;  %v10041_v37 = vld [vmem:[#allocation14_spill] sm:$0xff]  ;;  %v5309_v31 = vrot.slane %v5741_v50, %v10043_v56 }
 0x8b7   : > { %v4225_v9 = vadd.f32 %v4219_v0, %v4198_v63  ;;  %v4226_v43 = vadd.f32 %v4220_v58, %v4199_v38  ;;  %5075 = vrot.lane.b32.xlu1 %v5068_v53, %s9941_s26  ;;  %5073 = vrot.lane.b32.xlu0 %v5067_v1, %s9941_s26  ;;  %v10044_v38 = vld [vmem:[#allocation9_spill] sm:$0xff]  ;;  %v4701_v32 = vstv %s9254_s22 }
 0x8b8   : > { %v5313_v63 = vrot.slane %v5741_v50, %v10044_v38  ;;  %v10045_v1 = vld [vmem:[#allocation41_spill] sm:$0xff] }
 0x8b9   : > { %v4243_v8 = vpop.permute.xlu1 %4242  ;;  %v4241_v11 = vpop.permute.xlu0 %4240  ;;  %v4698_v30 = vstv %s9252_s16 }
 0x8ba   : > { %v4247_v2 = vsel %vm1637_vm8, %v4243_v8, %v10041_v37  ;;  %v4246_v59 = vsel %vm1637_vm8, %v4241_v11, %v4243_v8  ;;  %v9259_v20 = vadd.f32 %v4241_v11, %v4224_v41  ;;  %v4699_v21 = vmul.f32 %v8163_v27, %v4698_v30  ;;  %v10047_v30 = vld [vmem:[#allocation43_spill] sm:$0xff] }
 0x8bb   : > { %v9261_v4 = vadd.f32 %v4247_v2, %v4226_v43  ;;  %v9263_v3 = vadd.f32 %v4246_v59, %v4225_v9  ;;  %5262 = vrot.lane.b32.xlu1 %v5256_v15, %s9937_s24  ;;  %5264 = vrot.lane.b32.xlu0 %v5257_v6, %s9937_s24  ;;  %s5990_s24 = smov 83   ;;  %v4515_v43 = vadd.f32 %v4514_v35, %v4511_v44  ;;  %v10046_v6 = vld [vmem:[#allocation42_spill] sm:$0xff] }
 0x8bc   : > { %v4702_v8 = vmul.f32 %v4701_v32, %v8166_v10 }
 0x8bd   : > { %v4323_v7 = vpop.permute.xlu1 %4322  ;;  %v4325_v55 = vpop.permute.xlu0 %4324  ;;  %v4518_v12 = vmul.f32 %v4515_v43, %v8912_v5  ;;  %v4516_v44 = vmul.f32 %v9186_v61, %v4515_v43 }
 0x8be   : > { %v4326_v51 = vsel %vm1344_vm7, %v10042_v60, %v4323_v7  ;;  %v4327_v47 = vsel %vm1344_vm7, %v4323_v7, %v4325_v55  ;;  %v4333_v42 = vadd.f32 %v4325_v55, %v4303_v29  ;;  %v4703_v62 = vadd.f32 %v4702_v8, %v4699_v21 }
 0x8bf   : > { %v4332_v28 = vadd.f32 %v4327_v47, %v4302_v39  ;;  %5291 = vrot.lane.b32.xlu1 %v5284_v46, %s9941_s26  ;;  %5289 = vrot.lane.b32.xlu0 %v5283_v24, %s9941_s26  ;;  %v4331_v33 = vadd.f32 %v4326_v51, %v4301_v18  ;;  %v4517_v7 = vmul.f32 %v4515_v43, %v8910_v23  ;;  %s5712_s26 = sld [smem:[#allocation4 + $0x5]] }
 0x8c0   : > { %v4706_v60 = vmul.f32 %v4703_v62, %v8912_v5  ;;  %v4705_v47 = vmul.f32 %v4703_v62, %v8910_v23 }
 0x8c1   : > { %v4352_v45 = vpop.permute.xlu1 %4351  ;;  %v4350_v54 = vpop.permute.xlu0 %4349 }
 0x8c2   : > { %v4360_v53 = vadd.f32 %v4352_v45, %v4333_v42  ;;  %v4353_v41 = vsel %vm3931_vm0, %v10045_v1, %v4350_v54  ;;  %v4354_v0 = vsel %vm3931_vm0, %v4350_v54, %v4352_v45  ;;  %v4916_v54 = vstv %s5713_s18 }
 0x8c3   : > { %v4358_v58 = vadd.f32 %v4353_v41, %v4331_v33  ;;  %v4359_v9 = vadd.f32 %v4354_v0, %v4332_v28  ;;  %5314 = vrot.lane.b32.xlu1 %v5309_v31, %s5990_s24  ;;  %5316 = vrot.lane.b32.xlu0 %v5313_v63, %s5990_s24  ;;  %v10048_v41 = vld [vmem:[#allocation45_spill] sm:$0xff]  ;;  %v4917_v43 = vmul.f32 %v4916_v54, %v8166_v10 }
 0x8c5   : > { %v4377_v11 = vpop.permute.xlu1 %4376  ;;  %v4379_v15 = vpop.permute.xlu0 %4378  ;;  %v4913_v45 = vstv %s5712_s26 }
 0x8c6   : > { %v4380_v37 = vsel %vm3959_vm1, %v10046_v6, %v4377_v11  ;;  %v4381_v2 = vsel %vm3959_vm1, %v4377_v11, %v4379_v15  ;;  %v4387_v59 = vadd.f32 %v4379_v15, %v4360_v53  ;;  %v4914_v21 = vmul.f32 %v8163_v27, %v4913_v45 }
 0x8c7   : > { %v4385_v29 = vadd.f32 %v4380_v37, %v4358_v58  ;;  %v4386_v50 = vadd.f32 %v4381_v2, %v4359_v9  ;;  %v4704_v11 = vmul.f32 %v9186_v61, %v4703_v62  ;;  %v10049_v37 = vld [vmem:[#allocation44_spill] sm:$0xff] }
 0x8c9   : > { %v4540_v18 = vpop.permute.xlu1 %4539  ;;  %v4538_v39 = vpop.permute.xlu0 %4537 }
 0x8ca   : > { %v9300_v55 = vadd.f32 %v4540_v18, %v4518_v12  ;;  %v4542_v46 = vsel %vm1344_vm7, %v4538_v39, %v4540_v18  ;;  %v4541_v32 = vsel %vm1344_vm7, %v10047_v30, %v4538_v39  ;;  %v4918_v12 = vadd.f32 %v4917_v43, %v4914_v21 }
 0x8cb   : > { %v9303_v24 = vadd.f32 %v4542_v46, %v4517_v7  ;;  %v4546_v8 = vadd.f32 %v4541_v32, %v4516_v44  ;;  %v10051_v46 = vld [vmem:[#allocation47_spill] sm:$0xff]  ;;  %v5129_v43 = vstv %s5727_s29 }
 0x8cc   : > { %v4920_v44 = vmul.f32 %v4918_v12, %v8910_v23 }
 0x8cd   : > { %v4726_v51 = vpop.permute.xlu1 %4725  ;;  %v4728_v42 = vpop.permute.xlu0 %4727 }
 0x8ce   : > { %v4730_v28 = vsel %vm1344_vm7, %v4726_v51, %v4728_v42  ;;  %v9308_v31 = vadd.f32 %v4728_v42, %v4706_v60  ;;  %v4729_v2 = vsel %vm1344_vm7, %v10049_v37, %v4726_v51  ;;  %v4921_v51 = vmul.f32 %v4918_v12, %v8912_v5 }
 0x8cf   : > { %v4735_v63 = vadd.f32 %v4730_v28, %v4705_v47  ;;  %v4734_v18 = vadd.f32 %v4729_v2, %v4704_v11  ;;  %v5130_v11 = vmul.f32 %v8163_v27, %v5129_v43  ;;  %v4919_v2 = vmul.f32 %v9186_v61, %v4918_v12 }
 0x8d1   : > { %v4402_v35 = vpop.permute.xlu1 %4401  ;;  %v4404_v33 = vpop.permute.xlu0 %4403 }
 0x8d2   : > { %v4412_v53 = vadd.f32 %v4402_v35, %v4385_v29  ;;  %v4407_v1 = vsel %vm3990_vm3, %v4402_v35, %v4404_v33  ;;  %v4408_v0 = vsel %vm3990_vm3, %v4404_v33, %v10048_v41  ;;  %v10050_v29 = vld [vmem:[#allocation46_spill] sm:$0xff] }
 0x8d3   : > { %v4413_v58 = vadd.f32 %v4407_v1, %v4386_v50  ;;  %v9316_v9 = vadd.f32 %v4408_v0, %v4387_v59 }
 0x8d5   : > { %v9321_v15 = vpop.permute.xlu1 %4564  ;;  %v9323_v6 = vpop.permute.xlu0 %4566 }
 0x8d6   : > { %v4568_v50 = vsel %vm3931_vm0, %v10050_v29, %v9321_v15  ;;  %v4575_v22 = vadd.f32 %v9323_v6, %v9300_v55 }
 0x8d7   : > { %v9330_v59 = vadd.f32 %v4568_v50, %v4546_v8  ;;  %v5132_v8 = vstv %s5728_s28 }
 0x8d8   : > { %v5133_v37 = vmul.f32 %v5132_v8, %v8166_v10  ;;  %v10053_v10 = vld [vmem:[#allocation51_spill] sm:$0xff] }
 0x8d9   : > { %v9332_v7 = vpop.permute.xlu1 %4754  ;;  %v4753_v39 = vpop.permute.xlu0 %4752 }
 0x8da   : > { %v4756_v62 = vsel %vm3931_vm0, %v10051_v46, %v4753_v39  ;;  %v4757_v60 = vsel %vm3931_vm0, %v4753_v39, %v9332_v7 }
 0x8db   : > { %v4761_v47 = vadd.f32 %v4756_v62, %v4734_v18  ;;  %v4762_v42 = vadd.f32 %v4757_v60, %v4735_v63  ;;  %v10052_v18 = vld [vmem:[#allocation48_spill] sm:$0xff]  ;;  %v9360_v62 = vadd.f32 %v5133_v37, %v5130_v11 }
 0x8dd   : > { %v4941_v28 = vpop.permute.xlu1 %4940  ;;  %v4943_v35 = vpop.permute.xlu0 %4942 }
 0x8de   : > { %v4945_v33 = vsel %vm1344_vm7, %v4941_v28, %v4943_v35  ;;  %v9341_v45 = vadd.f32 %v4943_v35, %v4921_v51 }
 0x8df   : > { %v9343_v54 = vadd.f32 %v4945_v33, %v4920_v44 }
 0x8e1   : > { %v4429_v30 = vpop.permute.xlu1 %4428  ;;  %v4431_v32 = vpop.permute.xlu0 %4430 }
 0x8e2   : > { %v9345_v1 = vadd.f32 %v4429_v30, %v4412_v53  ;;  %v4434_v63 = vsel %vm4018_vm4, %v4429_v30, %v4431_v32  ;;  %v4944_v53 = vsel %vm1344_vm7, %v10052_v18, %v4941_v28  ;;  %v5137_v28 = vmul.f32 %v9360_v62, %v8912_v5 }
 0x8e3   : > { %v9348_v41 = vadd.f32 %v4434_v63, %v4413_v58  ;;  %v4949_v60 = vadd.f32 %v4944_v53, %v4919_v2  ;;  %v4435_v57 = vsel %vm4018_vm4, %v4431_v32, %v10055_v52  ;;  %v10059_v32 = vld [vmem:[#allocation55_spill] sm:$0xff] }
 0x8e5   : > { %v4590_v0 = vpop.permute.xlu1 %4589  ;;  %v4588_v21 = vpop.permute.xlu0 %4587 }
 0x8e6   : > { %v4591_v38 = vsel %vm3959_vm1, %v4588_v21, %v4590_v0 }
 0x8e9   : > { %v4780_v29 = vpop.permute.xlu1 %4779  ;;  %v4778_v50 = vpop.permute.xlu0 %4777 }
 0x8ea   : > { %v4783_v39 = vsel %vm3959_vm1, %v4778_v50, %v4780_v29  ;;  %v9356_v46 = vadd.f32 %v4778_v50, %v4761_v47 }
 0x8eb   : > { %v9358_v58 = vadd.f32 %v4783_v39, %v4762_v42 }
 0x8ed   : > { %v9362_v51 = vpop.permute.xlu1 %4969  ;;  %v9364_v27 = vpop.permute.xlu0 %4967 }
 0x8ee   : > { %v4971_v12 = vsel %vm3931_vm0, %v10053_v10, %v9364_v27  ;;  %v4569_v10 = vsel %vm3931_vm0, %v9321_v15, %v9323_v6  ;;  %v4597_v15 = vadd.f32 %v4590_v0, %v4575_v22  ;;  %v4595_v0 = vadd.f32 %v4588_v21, %v9330_v59 }
 0x8ef   : > { %v9369_v44 = vadd.f32 %v4971_v12, %v4949_v60  ;;  %v4574_v56 = vadd.f32 %v4569_v10, %v9303_v24  ;;  %v4784_v24 = vsel %vm3959_vm1, %v4780_v29, %v10056_v36  ;;  %v10057_v10 = vld [vmem:[#allocation60_spill] sm:$0xff] }
 0x8f1   : > { %v9373_v47 = vpop.permute.xlu1 %5156  ;;  %v9375_v42 = vpop.permute.xlu0 %5158  ;;  %v4596_v14 = vadd.f32 %v4591_v38, %v4574_v56  ;;  %v4441_v38 = vadd.f32 %v4435_v57, %v9316_v9 }
 0x8f2   : > { %v9378_v35 = vadd.f32 %v9375_v42, %v5137_v28 }
 0x8f5   : > { %v9380_v33 = vpop.permute.xlu1 %4455  ;;  %v9382_v30 = vpop.permute.xlu0 %4457 }
 0x8f9   : > { %v4614_v63 = vpop.permute.xlu1 %4613  ;;  %v4612_v43 = vpop.permute.xlu0 %4611 }
 0x8fa   : > { %v4618_v26 = vsel %vm3990_vm3, %v4614_v63, %v10054_v19  ;;  %v4617_v40 = vsel %vm3990_vm3, %v4612_v43, %v4614_v63  ;;  %v4763_v19 = vadd.f32 %v9332_v7, %v9308_v31  ;;  %v10058_v63 = vld [vmem:[#allocation53_spill] sm:$0xff] }
 0x8fb   : > { %v4462_v52 = vsel %vm1637_vm8, %v9382_v30, %v10058_v63  ;;  %v4624_v22 = vadd.f32 %v4618_v26, %v4597_v15  ;;  %v4623_v56 = vadd.f32 %v4617_v40, %v4596_v14  ;;  %v10060_v7 = vld [vmem:[#allocation61_spill] sm:$0xff]  ;;  %v10061_v26 = vld [vmem:[#allocation64_spill] sm:$0xff]  ;;  %v4622_v40 = vadd.f32 %v4612_v43, %v4595_v0  ;;  %v10065_v0 = vld [vmem:[#allocation15_spill] sm:$0xff] }
 0x8fc   : > { %v4790_v29 = vadd.f32 %v4784_v24, %v4763_v19  ;;  %v4468_v31 = vadd.f32 %v4462_v52, %v4441_v38  ;;  %v10063_v52 = vld [vmem:[#allocation59_spill] sm:$0xff] }
 0x8fd   : > { %v9384_v8 = vpop.permute.xlu1 %4804  ;;  %v9386_v11 = vpop.permute.xlu0 %4806 }
 0x8fe   : > { %v4811_v36 = vsel %vm3990_vm3, %v9386_v11, %v10059_v32 }
 0x8ff   : > { %v4817_v9 = vadd.f32 %v4811_v36, %v4790_v29  ;;  %v4276_v29 = vmul.f32 %v10065_v0, %v9261_v4 }
 0x901   : > { %v9388_v37 = vpop.permute.xlu1 %4994  ;;  %v9390_v5 = vpop.permute.xlu0 %4992 }
 0x905   : > { %v9392_v2 = vpop.permute.xlu1 %5185  ;;  %v9394_v50 = vpop.permute.xlu0 %5183 }
 0x909   : > { %v4641_v18 = vpop.permute.xlu1 %4640  ;;  %v4639_v53 = vpop.permute.xlu0 %4638 }
 0x90a   : > { %v4645_v55 = vsel %vm4018_vm4, %v4641_v18, %v10057_v10  ;;  %v4644_v6 = vsel %vm4018_vm4, %v4639_v53, %v4641_v18  ;;  %v4649_v59 = vadd.f32 %v4639_v53, %v4622_v40  ;;  %v10064_v53 = vld [vmem:[#allocation56_spill] sm:$0xff]  ;;  %v4972_v40 = vsel %vm3931_vm0, %v9364_v27, %v9362_v51 }
 0x90b   : > { %v4651_v10 = vadd.f32 %v4645_v55, %v4624_v22  ;;  %v4650_v18 = vadd.f32 %v4644_v6, %v4623_v56  ;;  %v10062_v6 = vld [vmem:[#allocation65_spill] sm:$0xff]  ;;  %v4490_v22 = vmul.f32 %v10063_v52, %v4468_v31  ;;  %v4999_v36 = vsel %vm3959_vm1, %v9388_v37, %v10064_v53 }
 0x90c   : > { %v4461_v27 = vsel %vm1637_vm8, %v9380_v33, %v9382_v30  ;;  %v4977_v53 = vadd.f32 %v4972_v40, %v9343_v54 }
 0x90d   : > { %v9396_v39 = vpop.permute.xlu1 %4831  ;;  %v9398_v60 = vpop.permute.xlu0 %4833  ;;  %v4467_v54 = vadd.f32 %v4461_v27, %v9348_v41 }
 0x90e   : > { %v4838_v63 = vsel %vm4018_vm4, %v9398_v60, %v10060_v7 }
 0x90f   : > { %v4844_v21 = vadd.f32 %v4838_v63, %v4817_v9  ;;  %v5135_v9 = vmul.f32 %v9186_v61, %v9360_v62 }
 0x911   : > { %v9403_v12 = vpop.permute.xlu1 %5021  ;;  %v9405_v28 = vpop.permute.xlu0 %5019 }
 0x915   : > { %v9416_v49 = vpop.permute.xlu1 %5208  ;;  %v9418_v48 = vpop.permute.xlu0 %5210 }
 0x919   : > { %v4668_v13 = vpop.permute.xlu1 %4667  ;;  %v4666_v16 = vpop.permute.xlu0 %4665 }
 0x91a   : > { %v4672_v14 = vsel %vm1637_vm8, %v4668_v13, %v10061_v26  ;;  %v4671_v57 = vsel %vm1637_vm8, %v4666_v16, %v4668_v13  ;;  %v4676_v56 = vadd.f32 %v4666_v16, %v4649_v59  ;;  %v10067_v26 = vld [vmem:[#allocation66_spill] sm:$0xff] }
 0x91b   : > { %v4678_v15 = vadd.f32 %v4672_v14, %v4651_v10  ;;  %v4677_v32 = vadd.f32 %v4671_v57, %v4650_v18  ;;  %v4978_v10 = vadd.f32 %v9362_v51, %v9341_v45  ;;  %v10066_v18 = vld [vmem:[#allocation62_spill] sm:$0xff]  ;;  %v10068_v14 = vld [vmem:[#allocation16_spill] sm:$0xff] }
 0x91c   : > { %v5026_v31 = vsel %vm3990_vm3, %v9403_v12, %v10066_v18  ;;  %v4274_v57 = vmul.f32 %v10068_v14, %v9259_v20  ;;  %v10069_v59 = vld [vmem:[#allocation58_spill] sm:$0xff]  ;;  %v5136_v20 = vmul.f32 %v9360_v62, %v8910_v23  ;;  %v4466_v23 = vadd.f32 %v9380_v33, %v9345_v1  ;;  %v10071_v62 = vld [vmem:[#allocation69_spill] sm:$0xff] }
 0x91d   : > { %v9441_v24 = vpop.permute.xlu1 %4858  ;;  %4686 = vrot.lane.b32.xlu0 %v4678_v15, %s5991_s27  ;;  %4684 = vrot.lane.b32.xlu1 %v4677_v32, %s5991_s27  ;;  %v4861_v55 = vpop.permute.xlu0 %4860  ;;  %v5005_v7 = vadd.f32 %v4999_v36, %v4978_v10  ;;  %v4270_v32 = vsel %vm4269_vm5, %v10068_v14, %v10065_v0  ;;  %v4815_v0 = vadd.f32 %v9384_v8, %v9356_v46 }
 0x91e   : > { %v4865_v19 = vsel %vm1637_vm8, %v4861_v55, %v10062_v6  ;;  %v10070_v6 = vld [vmem:[#allocation52_spill] sm:$0xff]  ;;  %v4275_v51 = vmul.f32 %v4270_v32, %v9263_v3  ;;  %v4998_v3 = vsel %vm3959_vm1, %v9390_v5, %v9388_v37  ;;  %v4837_v33 = vsel %vm4018_vm4, %v9396_v39, %v9398_v60 }
 0x91f   : > { %v4871_v38 = vadd.f32 %v4865_v19, %v4844_v21  ;;  %v5032_v15 = vadd.f32 %v5026_v31, %v5005_v7  ;;  %v4484_v21 = vsel %vm4483_vm6, %v10069_v59, %v10063_v52  ;;  %v5160_v19 = vsel %vm1344_vm7, %v10070_v6, %v9373_v47  ;;  %v10075_v6 = vld [vmem:[#allocation68_spill] sm:$0xff] }
 0x920   : > { %v5165_v36 = vadd.f32 %v5160_v19, %v5135_v9  ;;  %v5025_v37 = vsel %vm3990_vm3, %v9405_v28, %v9403_v12  ;;  %v5004_v10 = vadd.f32 %v4998_v3, %v4977_v53  ;;  %v4842_v46 = vadd.f32 %v9396_v39, %v4815_v0  ;;  %v10077_v53 = vld [vmem:[#allocation71_spill] sm:$0xff]  ;;  %v10078_v3 = vld [vmem:[#allocation70_spill] sm:$0xff] }
 0x921   : > { %v5049_v13 = vpop.permute.xlu1 %5048  ;;  %4682 = vrot.lane.b32.xlu0 %v4676_v56, %s5991_s27  ;;  %4498 = vrot.lane.b32.xlu1 %v4490_v22, %s5992_s12  ;;  %v9447_v43 = vpop.permute.xlu0 %5046  ;;  %v4893_v16 = vmul.f32 %v8816_v34, %v4871_v38  ;;  %v4810_v22 = vsel %vm3990_vm3, %v9384_v8, %v9386_v11  ;;  %v5161_v11 = vsel %vm1344_vm7, %v9373_v47, %v9375_v42  ;;  %v10073_v42 = vld [vmem:[#allocation73_spill] sm:$0xff] }
 0x922   : > { %v5053_v45 = vsel %vm4018_vm4, %v5049_v13, %v10067_v26  ;;  %v4816_v1 = vadd.f32 %v4810_v22, %v9358_v58  ;;  %v4488_v18 = vmul.f32 %v10069_v59, %v4466_v23  ;;  %v5003_v60 = vadd.f32 %v9390_v5, %v9369_v44  ;;  %v10074_v59 = vld [vmem:[#allocation63_spill] sm:$0xff] }
 0x923   : > { %v5059_v56 = vadd.f32 %v5053_v45, %v5032_v15  ;;  %v4864_v12 = vsel %vm1637_vm8, %v9441_v24, %v4861_v55  ;;  %v5052_v31 = vsel %vm4018_vm4, %v9447_v43, %v5049_v13  ;;  %v5188_v39 = vsel %vm3931_vm0, %v9394_v50, %v9392_v2 }
 0x924   : > { %v4843_v7 = vadd.f32 %v4837_v33, %v4816_v1  ;;  %v5031_v26 = vadd.f32 %v5025_v37, %v5004_v10  ;;  %v4869_v45 = vadd.f32 %v9441_v24, %v4842_v46  ;;  %v5166_v14 = vadd.f32 %v5161_v11, %v5136_v20 }
 0x925   : > { %v9460_v63 = vpop.permute.xlu1 %5235  ;;  %4284 = vrot.lane.b32.xlu0 %v4276_v29, %s9947_s13  ;;  %4901 = vrot.lane.b32.xlu1 %v4893_v16, %s5993_s19  ;;  %v9464_v4 = vpop.permute.xlu0 %5237  ;;  %v10072_v16 = vld [vmem:[#allocation57_spill] sm:$0xff]  ;;  %v5030_v55 = vadd.f32 %v9405_v28, %v5003_v60  ;;  %v5214_v13 = vsel %vm3959_vm1, %v9416_v49, %v9418_v48  ;;  %v5194_v15 = vadd.f32 %v9392_v2, %v9378_v35  ;;  %v10076_v2 = vld [vmem:[#allocation67_spill] sm:$0xff]  ;;  %v10080_v60 = vld [vmem:[#allocation38_spill] sm:$0xff] }
 0x926   : > { %v5187_v47 = vsel %vm3931_vm0, %v10072_v16, %v9394_v50  ;;  %v4870_v40 = vadd.f32 %v4864_v12, %v4843_v7  ;;  %v5058_v50 = vadd.f32 %v5052_v31, %v5031_v26  ;;  %v5193_v32 = vadd.f32 %v5188_v39, %v5166_v14  ;;  %v5938_v39 = vld [vmem:[#allocation3 + $0x10] sm:$0xf]  ;;  %v10081_v26 = vld [vmem:[#allocation23_spill] sm:$0xff] }
 0x927   : > { %v5192_v44 = vadd.f32 %v5187_v47, %v5165_v36  ;;  %v4891_v19 = vmul.f32 %v10075_v6, %v4869_v45  ;;  %v5057_v20 = vadd.f32 %v9447_v43, %v5030_v55  ;;  %v4887_v27 = vsel %vm4886_vm9, %v10075_v6, %v8816_v34  ;;  %v10082_v45 = vld [vmem:[#allocation19_spill] sm:$0xff] }
 0x928   : > { %v5220_v22 = vadd.f32 %v5214_v13, %v5193_v32  ;;  %v5241_v35 = vsel %vm3990_vm3, %v9460_v63, %v9464_v4  ;;  %v5103_v34 = vsel %vm5102_vm10, %v10077_v53, %v10073_v42  ;;  %v3904_v12 = vsel %vm1344_vm7, %v10080_v60, %v9094_v25  ;;  %v10084_v13 = vld [vmem:[#allocation26_spill] sm:$0xff]  ;;  %v10088_v32 = vld [vmem:[#allocation28_spill] sm:$0xff] }
 0x929   : > { %v5076_v52 = vpop.permute.xlu1 %5075  ;;  %4280 = vrot.lane.b32.xlu1 %v4274_v57, %s9947_s13  ;;  %v5074_v38 = vpop.permute.xlu0 %5073  ;;  %v4489_v57 = vmul.f32 %v4484_v21, %v4467_v54  ;;  %v5215_v21 = vsel %vm3959_vm1, %v9418_v48, %v10074_v59  ;;  %v5219_v28 = vadd.f32 %v9416_v49, %v5192_v44  ;;  %v5242_v48 = vsel %vm3990_vm3, %v9464_v4, %v10076_v2  ;;  %v10093_v2 = vld [vmem:[#allocation18_spill] sm:$0xff] }
 0x92a   : > { %v5080_v30 = vsel %vm1637_vm8, %v5076_v52, %v10071_v62  ;;  %v5079_v5 = vsel %vm1637_vm8, %v5074_v38, %v5076_v52  ;;  %v5221_v49 = vadd.f32 %v5215_v21, %v5194_v15  ;;  %v5084_v52 = vadd.f32 %v5074_v38, %v5057_v20  ;;  %v10087_v15 = vld [vmem:[#allocation37_spill] sm:$0xff] }
 0x92b   : > { %v5086_v29 = vadd.f32 %v5080_v30, %v5059_v56  ;;  %v4892_v56 = vmul.f32 %v4887_v27, %v4870_v40  ;;  %v5246_v43 = vadd.f32 %v9460_v63, %v5219_v28  ;;  %v5247_v30 = vadd.f32 %v5241_v35, %v5220_v22  ;;  %v10079_v63 = vld [vmem:[#allocation72_spill] sm:$0xff]  ;;  %v10085_v40 = vld [vmem:[#allocation10_spill] sm:$0xff]  ;;  %v10089_v28 = vld [vmem:[#allocation25_spill] sm:$0xff] }
 0x92c   : > { %v5248_v36 = vadd.f32 %v5242_v48, %v5221_v49  ;;  %v5107_v1 = vmul.f32 %v10077_v53, %v5084_v52  ;;  %v3880_v7 = vmul.f32 %v5938_v39, %v9116_v17  ;;  %v3932_v14 = vsel %vm3931_vm0, %v10082_v45, %v10081_v26  ;;  %v10091_v20 = vld [vmem:[#allocation29_spill] sm:$0xff]  ;;  %v10092_v22 = vld [vmem:[#allocation27_spill] sm:$0xff]  ;;  %v10094_v48 = vld [vmem:[#allocation32_spill] sm:$0xff] }
 0x92d   : > { %v5109_v8 = vmul.f32 %v10073_v42, %v5086_v29  ;;  %v5263_v41 = vpop.permute.xlu1 %5262  ;;  %4282 = vrot.lane.b32.xlu1 %v4275_v51, %s9947_s13  ;;  %v5265_v58 = vpop.permute.xlu0 %5264  ;;  %s5994_s13 = smov 123   ;;  %v5085_v51 = vadd.f32 %v5079_v5, %v5058_v50  ;;  %v10083_v5 = vld [vmem:[#allocation22_spill] sm:$0xff]  ;;  %v4047_v49 = vsel %vm1637_vm8, %v10094_v48, %v10093_v2  ;;  %vm4068_vm7 = vcmask 629760  }
 0x92e   : > { %v5268_v23 = vsel %vm4018_vm4, %v5263_v41, %v5265_v58  ;;  %v5269_v62 = vsel %vm4018_vm4, %v5265_v58, %v10078_v3  ;;  %v5273_v11 = vadd.f32 %v5263_v41, %v5246_v43  ;;  %v3878_v58 = vmul.f32 %v9186_v61, %v9116_v17  ;;  %v10095_v52 = vld [vmem:[#allocation30_spill] sm:$0xff]  ;;  %v10096_v3 = vld [vmem:[#allocation31_spill] sm:$0xff] }
 0x92f   : > { %5117 = vrot.lane.b32.xlu0 %v5109_v8, %s5994_s13  ;;  %v5108_v4 = vmul.f32 %v5103_v34, %v5085_v51  ;;  %v5274_v33 = vadd.f32 %v5268_v23, %v5247_v30  ;;  %v5275_v37 = vadd.f32 %v5269_v62, %v5248_v36  ;;  %v3911_v55 = vadd.f32 %v10083_v5, %v3880_v7 }
 0x930   : > { %v3960_v61 = vsel %vm3959_vm1, %v10085_v40, %v10084_v13  ;;  %v3992_v17 = vsel %vm3990_vm3, %v10088_v32, %v10087_v15 }
 0x931   : > { %v5292_v9 = vpop.permute.xlu1 %5291  ;;  %4494 = vrot.lane.b32.xlu1 %v4488_v18, %s5992_s12  ;;  %v5290_v24 = vpop.permute.xlu0 %5289 }
 0x932   : > { %v5296_v38 = vsel %vm1637_vm8, %v5292_v9, %v10079_v63  ;;  %v5295_v54 = vsel %vm1637_vm8, %v5290_v24, %v5292_v9  ;;  %v5300_v10 = vadd.f32 %v5290_v24, %v5273_v11  ;;  %v10086_v9 = vld [vmem:[#allocation24_spill] sm:$0xff]  ;;  %v10098_v11 = vld [vmem:[#allocation21_spill] sm:$0xff]  ;;  %vm4500_vm8 = vcmask 1031168  }
 0x933   : > { %4496 = vrot.lane.b32.xlu0 %v4489_v57, %s5992_s12  ;;  %v5302_v47 = vadd.f32 %v5296_v38, %v5275_v37  ;;  %v5301_v46 = vadd.f32 %v5295_v54, %v5274_v33  ;;  %v3909_v57 = vadd.f32 %v3904_v12, %v3878_v58  ;;  %v3939_v24 = vadd.f32 %v10086_v9, %v3911_v55 }
 0x935   : > { %4897 = vrot.lane.b32.xlu1 %v4891_v19, %s5993_s19  ;;  %v5315_v0 = vpop.permute.xlu1 %5314  ;;  %v5317_v29 = vpop.permute.xlu0 %5316  ;;  %v3937_v50 = vadd.f32 %v3932_v14, %v3909_v57  ;;  %v3967_v6 = vadd.f32 %v10089_v28, %v3939_v24  ;;  %v10090_v19 = vld [vmem:[#allocation39_spill] sm:$0xff] }
 0x936   : > { %v5319_v16 = vsel %vm5318_vm11, %v5315_v0, %v5317_v29  ;;  %v5323_v42 = vmul.f32 %v5315_v0, %v5300_v10  ;;  %v5325_v41 = vmul.f32 %v5317_v29, %v5302_v47  ;;  %v4020_v51 = vsel %vm4018_vm4, %v10091_v20, %v10090_v19 }
 0x937   : > { %4899 = vrot.lane.b32.xlu0 %v4892_v56, %s5993_s19  ;;  %v5324_v8 = vmul.f32 %v5319_v16, %v5301_v46  ;;  %v3965_v25 = vadd.f32 %v3960_v61, %v3937_v50  ;;  %v3998_v27 = vadd.f32 %v3992_v17, %v3967_v6 }
 0x939   : > { %5115 = vrot.lane.b32.xlu1 %v5108_v4, %s5994_s13  ;;  %v3996_v35 = vadd.f32 %v10092_v22, %v3965_v25  ;;  %v4026_v43 = vadd.f32 %v4020_v51, %v3998_v27  ;;  %v10097_v4 = vld [vmem:[#allocation40_spill] sm:$0xff] }
 0x93a   : > { %v4069_v0 = vsel %vm4068_vm7, %v10098_v11, %v10097_v4 }
 0x93b   : > { %5113 = vrot.lane.b32.xlu0 %v5107_v1, %s5994_s13  ;;  %v4024_v53 = vadd.f32 %v10095_v52, %v3996_v35  ;;  %v4053_v23 = vadd.f32 %v4047_v49, %v4026_v43  ;;  %v10099_v1 = vld [vmem:[#allocation34_spill] sm:$0xff] }
 0x93c   : > { %v4074_v33 = vmul.f32 %v4069_v0, %v10099_v1 }
 0x93d   : > { %5329 = vrot.lane.b32.xlu1 %v5323_v42, %s5995_s15  ;;  %v4051_v62 = vadd.f32 %v10096_v3, %v4024_v53  ;;  %v4075_v29 = vmul.f32 %v10097_v4, %v4053_v23 }
 0x93f   : > { %5331 = vrot.lane.b32.xlu0 %v5324_v8, %s5995_s15  ;;  %v4073_v54 = vmul.f32 %v10098_v11, %v4051_v62 }
 0x941   : > { %5333 = vrot.lane.b32.xlu1 %v5325_v41, %s5995_s15 }
 0x98f   : > { %v4685_v18 = vpop.permute.xlu1 %4684  ;;  %v4687_v31 = vpop.permute.xlu0 %4686 }
 0x990   : > { %v4690_v7 = vsel %vm4688_vm12, %v4685_v18, %v4687_v31 }
 0x993   : > { %v4499_v44 = vpop.permute.xlu1 %4498  ;;  %v4683_v59 = vpop.permute.xlu0 %4682 }
 0x994   : > { %v4689_v26 = vsel %vm4688_vm12, %v4683_v59, %v4685_v18 }
 0x997   : > { %v4902_v21 = vpop.permute.xlu1 %4901  ;;  %v4285_v34 = vpop.permute.xlu0 %4284 }
 0x998   : > { %v4293_v10 = vadd.f32 %v4285_v34, %v4075_v29 }
 0x99a   : > { %v4508_v12 = vadd.f32 %v4499_v44, %v4293_v10 }
 0x99b   : > { %v4281_v56 = vpop.permute.xlu1 %4280 }
 0x99c   : > { %v4696_v5 = vadd.f32 %v4687_v31, %v4508_v12  ;;  %v10104_v12 = vld [vmem:[#allocation85_spill] sm:$0xff] }
 0x99e   : > { %v4911_v25 = vadd.f32 %v4902_v21, %v4696_v5 }
 0x99f   : > { %v4283_v30 = vpop.permute.xlu1 %4282 }
 0x9a0   : > { %v4286_v63 = vsel %vm876_vm2, %v4281_v56, %v4283_v30  ;;  %v4287_v38 = vsel %vm876_vm2, %v4283_v30, %v4285_v34  ;;  %vm5119_vm2 = vcmask 1006592  }
 0x9a1   : > { %v5118_v36 = vpop.permute.xlu0 %5117  ;;  %v4291_v16 = vadd.f32 %v4286_v63, %v4073_v54  ;;  %v4292_v47 = vadd.f32 %v4287_v38, %v4074_v33  ;;  %v10101_v63 = vld [vmem:[#allocation9_spill] sm:$0xff] }
 0x9a2   : > { %v5127_v17 = vadd.f32 %v5118_v36, %v4911_v25 }
 0x9a3   : > { %v4495_v37 = vpop.permute.xlu1 %4494 }
 0x9a5   : > { %v4497_v46 = vpop.permute.xlu0 %4496 }
 0x9a6   : > { %v4501_v42 = vsel %vm4500_vm8, %v4495_v37, %v4497_v46  ;;  %v4502_v8 = vsel %vm4500_vm8, %v4497_v46, %v4499_v44  ;;  %v5409_v37 = vld [vmem:[%s6121_s20 + $0x8] sm:$0xff]  ;;  %v5415_v46 = vld [vmem:[%s6121_s20 + $0x38] sm:$0xff] }
 0x9a7   : > { %v4506_v41 = vadd.f32 %v4501_v42, %v4291_v16  ;;  %v4507_v58 = vadd.f32 %v4502_v8, %v4292_v47  ;;  %v4898_v60 = vpop.permute.xlu1 %4897  ;;  %v5411_v16 = vld [vmem:[%s6121_s20 + $0x18] sm:$0xff]  ;;  %v5413_v47 = vld [vmem:[%s6121_s20 + $0x28] sm:$0xff]  ;;  %v10102_v8 = vld [vmem:[#allocation75_spill] sm:$0xff] }
 0x9a9   : > { %v4900_v39 = vpop.permute.xlu0 %4899  ;;  %v4694_v45 = vadd.f32 %v4689_v26, %v4506_v41  ;;  %v4695_v14 = vadd.f32 %v4690_v7, %v4507_v58  ;;  %v10103_v58 = vld [vmem:[#allocation79_spill] sm:$0xff]  ;;  %v10105_v7 = vld [vmem:[#allocation77_spill] sm:$0xff] }
 0x9aa   : > { %v4904_v55 = vsel %vm4903_vm13, %v4898_v60, %v4900_v39  ;;  %v4905_v13 = vsel %vm4903_vm13, %v4900_v39, %v4902_v21 }
 0x9ab   : > { %v5116_v57 = vpop.permute.xlu1 %5115  ;;  %v4909_v50 = vadd.f32 %v4904_v55, %v4694_v45  ;;  %v4910_v9 = vadd.f32 %v4905_v13, %v4695_v14 }
 0x9ac   : > { %v5121_v15 = vsel %vm5119_vm2, %v5116_v57, %v5118_v36  ;;  %v10100_v36 = vld [vmem:[#allocation8_spill] sm:$0xff] }
 0x9ad   : > { %v5114_v40 = vpop.permute.xlu0 %5113  ;;  %v5126_v18 = vadd.f32 %v5121_v15, %v4910_v9 }
 0x9ae   : > { %v5120_v61 = vsel %vm5119_vm2, %v5114_v40, %v5116_v57  ;;  %v5408_v40 = vld [vmem:[%s6121_s20] sm:$0xff] }
 0x9af   : > { %v5330_v24 = vpop.permute.xlu1 %5329  ;;  %v5125_v44 = vadd.f32 %v5120_v61, %v4909_v50  ;;  %v5410_v61 = vld [vmem:[%s6121_s20 + $0x10] sm:$0xff] }
 0x9b1   : > { %v5332_v32 = vpop.permute.xlu0 %5331 }
 0x9b2   : > { %v5336_v28 = vsel %vm5335_vm14, %v5330_v24, %v5332_v32 }
 0x9b3   : > { %v5341_v59 = vadd.f32 %v5336_v28, %v5125_v44  ;;  %v5334_v6 = vpop.permute.xlu1 %5333  ;;  %v5412_v44 = vld [vmem:[%s6121_s20 + $0x20] sm:$0xff] }
 0x9b4   : > { %v5337_v19 = vsel %vm5335_vm14, %v5332_v32, %v5334_v6  ;;  %v5343_v31 = vadd.f32 %v5334_v6, %v5127_v17  ;;  %v5414_v32 = vld [vmem:[%s6121_s20 + $0x30] sm:$0xff]  ;;  %v10107_v17 = vld [vmem:[#allocation74_spill] sm:$0xff]  ;;  %v10109_v6 = vld [vmem:[#allocation84_spill] sm:$0xff] }
 0x9b5   : > { %v5347_v20 = vrot.slane %v5341_v59, 2  ;;  %v5342_v51 = vadd.f32 %v5337_v19, %v5126_v18  ;;  %v10108_v18 = vld [vmem:[#allocation78_spill] sm:$0xff] }
 0x9b6   : > { %v5349_v27 = vrot.slane %v5343_v31, 2 }
 0x9b7   : > { %v5353_v22 = vadd.f32 %v5347_v20, %v5341_v59  ;;  %v5348_v35 = vrot.slane %v5342_v51, 2 }
 0x9b8   : > { %v5355_v2 = vadd.f32 %v5349_v27, %v5343_v31  ;;  %v10110_v31 = vld [vmem:[#allocation76_spill] sm:$0xff]  ;;  %v5745_v27 = vld [vmem:[%s6121_s20 + $0x40] sm:$0xff] }
 0x9b9   : > { %v5742_v48 = vmul.f32 -1.442695, %v5353_v22  ;;  %v5354_v49 = vadd.f32 %v5348_v35, %v5342_v51 }
 0x9ba   : > { %v5744_v56 = vmul.f32 -1.442695, %v5355_v2 }
 0x9bb   : > { %5923 = vpow2.f32 %v5742_v48  ;;  %v5743_v21 = vmul.f32 -1.442695, %v5354_v49 }
 0x9bc   : > { %5925 = vpow2.f32 %v5744_v56  ;;  %v5747_v56 = vld [vmem:[%s6121_s20 + $0x50] sm:$0xff] }
 0x9bd   : > { %5927 = vpow2.f32 %v5743_v21  ;;  %v5749_v21 = vld [vmem:[%s6121_s20 + $0x60] sm:$0xff] }
 0x9c5   : > { %v5924_v43 = vpop.eup %5923 }
 0x9c6   : > { %v5926_v52 = vpop.eup %5925  ;;  %v5365_v34 = vadd.f32 1.0, %v5924_v43  ;;  %v5751_v43 = vld [vmem:[%s6121_s20 + $0x70] sm:$0xff] }
 0x9c7   : > { %v5928_v53 = vpop.eup %5927  ;;  %v5367_v23 = vadd.f32 1.0, %v5926_v52  ;;  %v10111_v52 = vld [vmem:[#allocation82_spill] sm:$0xff] }
 0x9c8   : > { %v5366_v3 = vadd.f32 1.0, %v5928_v53 }
 0x9c9   : > { %5929 = vrcp.f32 %v5367_v23 }
 0x9ca   : > { %5931 = vrcp.f32 %v5366_v3  ;;  %v10113_v3 = vld [vmem:[#allocation88_spill] sm:$0xff] }
 0x9cb   : > { %5933 = vrcp.f32 %v5365_v34  ;;  %v10112_v34 = vld [vmem:[#allocation80_spill] sm:$0xff] }
 0x9d3   : > { %v5930_v62 = vpop.eup %5929 }
 0x9d4   : > { %v5932_v30 = vpop.eup %5931  ;;  %v5385_v4 = vrot.slane %v5930_v62, %v10100_v36  ;;  %v5451_v1 = vrot.slane %v5930_v62, %v10101_v63 }
 0x9d5   : > { %v5934_v11 = vpop.eup %5933  ;;  %v5381_v0 = vrot.slane %v5932_v30, %v10100_v36  ;;  %v5447_v54 = vrot.slane %v5932_v30, %v10101_v63  ;;  %v10114_v30 = vld [vmem:[#allocation86_spill] sm:$0xff] }
 0x9d6   : > { %5393 = vrot.lane.b32.xlu0 %v5385_v4, %s5996_s23  ;;  %v5377_v29 = vrot.slane %v5934_v11, %v10100_v36  ;;  %v5443_v38 = vrot.slane %v5934_v11, %v10101_v63 }
 0x9d7   : > { %5391 = vrot.lane.b32.xlu1 %v5381_v0, %s5996_s23 }
 0x9da   : > { %5389 = vrot.lane.b32.xlu0 %v5377_v29, %s5996_s23 }
 0x9db   : > { %5455 = vrot.lane.b32.xlu1 %v5443_v38, %s5996_s23 }
 0x9de   : > { %5457 = vrot.lane.b32.xlu0 %v5447_v54, %s5996_s23 }
 0x9df   : > { %5459 = vrot.lane.b32.xlu1 %v5451_v1, %s5996_s23 }
 0xa48   : > { %v5394_v33 = vpop.permute.xlu0 %5393 }
 0xa49   : > { %v5392_v10 = vpop.permute.xlu1 %5391 }
 0xa4a   : > { %v5397_v42 = vsel %vm5395_vm15, %v5392_v10, %v5394_v33 }
 0xa4b   : > { %v5401_v41 = vmul.f32 %v5397_v42, %v10102_v8  ;;  %v5403_v60 = vmul.f32 %v5397_v42, %v10103_v58  ;;  %v5405_v39 = vmul.f32 %v5397_v42, %v10104_v12  ;;  %v5407_v26 = vmul.f32 %v5397_v42, %v10105_v7  ;;  %v5752_v58 = vld [vmem:[%s6121_s20 + $0x78] sm:$0xff] }
 0xa4c   : > { %v5390_v45 = vpop.permute.xlu0 %5389 }
 0xa4d   : > { %v5417_v14 = vadd.f32 %v5409_v37, %v5401_v41  ;;  %v5419_v57 = vadd.f32 %v5411_v16, %v5403_v60  ;;  %v5421_v5 = vadd.f32 %v5413_v47, %v5405_v39  ;;  %v5423_v55 = vadd.f32 %v5415_v46, %v5407_v26  ;;  %v5456_v13 = vpop.permute.xlu1 %5455  ;;  %v5746_v37 = vld [vmem:[%s6121_s20 + $0x48] sm:$0xff]  ;;  %v10115_v60 = vld [vmem:[#allocation83_spill] sm:$0xff]  ;;  %v10116_v39 = vld [vmem:[#allocation81_spill] sm:$0xff] }
 0xa4e   : > { %v5396_v50 = vsel %vm5395_vm15, %v5390_v45, %v5392_v10  ;;  %v5748_v10 = vld [vmem:[%s6121_s20 + $0x58] sm:$0xff]  ;;  %v5750_v41 = vld [vmem:[%s6121_s20 + $0x68] sm:$0xff]  ;;  %v10117_v26 = vld [vmem:[#allocation89_spill] sm:$0xff] }
 0xa4f   : > { %v5425_v9 = vmax.f32 %v5417_v14, 0.0  ;;  %v5427_v24 = vmax.f32 %v5419_v57, 0.0  ;;  %v5429_v25 = vmax.f32 %v5421_v5, 0.0  ;;  %v5431_v15 = vmax.f32 %v5423_v55, 0.0  ;;  %v10118_v14 = vld [vmem:[#allocation87_spill] sm:$0xff] }
 0xa50   : > { %v5400_v28 = vmul.f32 %v5396_v50, %v10107_v17  ;;  %v5402_v59 = vmul.f32 %v5396_v50, %v10108_v18  ;;  %v5404_v19 = vmul.f32 %v5396_v50, %v10109_v6  ;;  %v5406_v20 = vmul.f32 %v5396_v50, %v10110_v31  ;;  %v5458_v51 = vpop.permute.xlu0 %5457 }
 0xa51   : > { %5433 = vst [vmem:[%s9624_s14 + $0x8] sm:$0xff] %v5425_v9  ;;  %5435 = vst [vmem:[%s9624_s14 + $0x18] sm:$0xff] %v5427_v24  ;;  %v5461_v22 = vsel %vm5395_vm15, %v5456_v13, %v5458_v51  ;;  %v5460_v4 = vpop.permute.xlu1 %5459 }
 0xa52   : > { %5437 = vst [vmem:[%s9624_s14 + $0x28] sm:$0xff] %v5429_v25  ;;  %5439 = vst [vmem:[%s9624_s14 + $0x38] sm:$0xff] %v5431_v15  ;;  %v5416_v35 = vadd.f32 %v5408_v40, %v5400_v28  ;;  %v5418_v2 = vadd.f32 %v5410_v61, %v5402_v59  ;;  %v5420_v48 = vadd.f32 %v5412_v44, %v5404_v19 }
 0xa53   : > { %v5422_v49 = vadd.f32 %v5414_v32, %v5406_v20  ;;  %v5465_v53 = vmul.f32 %v5461_v22, %v10111_v52  ;;  %v5467_v23 = vmul.f32 %v5461_v22, %v10112_v34  ;;  %v5469_v62 = vmul.f32 %v5461_v22, %v10113_v3 }
 0xa54   : > { %v5471_v36 = vmul.f32 %v5461_v22, %v10114_v30  ;;  %v5424_v11 = vmax.f32 %v5416_v35, 0.0  ;;  %v5426_v0 = vmax.f32 %v5418_v2, 0.0  ;;  %v5428_v29 = vmax.f32 %v5420_v48, 0.0 }
 0xa55   : > { %v5430_v63 = vmax.f32 %v5422_v49, 0.0  ;;  %v5481_v38 = vadd.f32 %v5745_v27, %v5465_v53  ;;  %v5483_v54 = vadd.f32 %v5747_v56, %v5467_v23  ;;  %v5485_v1 = vadd.f32 %v5749_v21, %v5469_v62 }
 0xa56   : > { %v5487_v33 = vadd.f32 %v5751_v43, %v5471_v36  ;;  %5432 = vst [vmem:[%s9624_s14] sm:$0xff] %v5424_v11  ;;  %5434 = vst [vmem:[%s9624_s14 + $0x10] sm:$0xff] %v5426_v0  ;;  %v5462_v16 = vsel %vm5395_vm15, %v5458_v51, %v5460_v4 }
 0xa57   : > { %5436 = vst [vmem:[%s9624_s14 + $0x20] sm:$0xff] %v5428_v29  ;;  %5438 = vst [vmem:[%s9624_s14 + $0x30] sm:$0xff] %v5430_v63  ;;  %v5489_v47 = vmax.f32 %v5481_v38, 0.0  ;;  %v5491_v46 = vmax.f32 %v5483_v54, 0.0  ;;  %v5493_v42 = vmax.f32 %v5485_v1, 0.0  ;;  %v5466_v12 = vmul.f32 %v5462_v16, %v10115_v60 }
 0xa58   : > { %v5495_v8 = vmax.f32 %v5487_v33, 0.0  ;;  %v5468_v7 = vmul.f32 %v5462_v16, %v10116_v39  ;;  %v5470_v45 = vmul.f32 %v5462_v16, %v10117_v26  ;;  %v5472_v57 = vmul.f32 %v5462_v16, %v10118_v14 }
 0xa59   : > { %5753 = vst [vmem:[%s9624_s14 + $0x40] sm:$0xff] %v5489_v47  ;;  %5755 = vst [vmem:[%s9624_s14 + $0x50] sm:$0xff] %v5491_v46  ;;  %v5482_v5 = vadd.f32 %v5746_v37, %v5466_v12 }
 0xa5a   : > { %5757 = vst [vmem:[%s9624_s14 + $0x60] sm:$0xff] %v5493_v42  ;;  %5759 = vst [vmem:[%s9624_s14 + $0x70] sm:$0xff] %v5495_v8  ;;  %v5484_v55 = vadd.f32 %v5748_v10, %v5468_v7  ;;  %v5486_v13 = vadd.f32 %v5750_v41, %v5470_v45  ;;  %v5488_v40 = vadd.f32 %v5752_v58, %v5472_v57 }
 0xa5b   : > { %v5490_v61 = vmax.f32 %v5482_v5, 0.0 }
 0xa5c   : > { %v5492_v50 = vmax.f32 %v5484_v55, 0.0  ;;  %v5494_v9 = vmax.f32 %v5486_v13, 0.0  ;;  %v5496_v24 = vmax.f32 %v5488_v40, 0.0 }
 0xa5d   : > { %5754 = vst [vmem:[%s9624_s14 + $0x48] sm:$0xff] %v5490_v61 }
 0xa5e   : > { %5756 = vst [vmem:[%s9624_s14 + $0x58] sm:$0xff] %v5492_v50  ;;  %5758 = vst [vmem:[%s9624_s14 + $0x68] sm:$0xff] %v5494_v9 }
 0xa5f   : > { %5760 = vst [vmem:[%s9624_s14 + $0x78] sm:$0xff] %v5496_v24 }
 0xa60 PF: > { %s22_s17 = sadd.s32 1, %s5964_s17  }
 0xa61   : > { %p19_p1 = scmp.ge.s32.totalorder %s22_s17, 4  }
 0xa63   :  { %21 = sbr.rel (!%p19_p1) target bundleno = 1 (0x1), region = 106 }
 0xa6a   :  { %5530 = vsyncpa [#allocation5], 1 }
 0xa6b   :  { %5532 = vsyncpa [#allocation5 + $0x1], 1 }

</bundles_post_ra>
